<compile_context>
chip_gen: v5e
topology: v5e:2x2
jax: 0.10.0
libtpu: 0.0.40
codegen_flags: <defaults>
</compile_context>

<pallas_src>
import jax
import jax.numpy as jnp
from jax import lax
from jax.experimental import pallas as pl
from jax.experimental.pallas import tpu as pltpu


# ----------------------------------------------------------------------------
# Pallas kernel: fused embedding+input-projection, LSTM recurrence, e2d head.
# ----------------------------------------------------------------------------
def _encoder_lstm_kernel(
    # runtime inputs (blocked per batch chunk)
    tokens_ref,    # (T, Bc, 1) int32  time-major token ids
    mask_ref,      # (T, Bc, 1) f32    1.0 while t < length, 0.0 afterwards
    # parameters (full blocks, gate order permuted to (i, f, o, g))
    table_ref,     # (V, 4H)  bf16     fused emb @ W_ih gate table
    w_hh_ref,      # (H, 4H)  f32
    b_gates_ref,   # (1, 4H)  f32      = b_ih + b_hh
    w_e2d_ref,     # (H, H)   f32      encoder2decoder weight
    b_e2d_ref,     # (1, H)   f32      encoder2decoder bias
    # outputs
    ctx_out,       # (T, Bc, H) f32    per-step hidden states, zero past length
    dec_init_out,  # (Bc, H)  f32      tanh(encoder2decoder(h_T))
    c_t_out,       # (Bc, H)  f32      final cell state
    # scratch
    xg_ref,        # VMEM (T, Bc, 4H) f32: precomputed input-side gates
):
    f32 = jnp.float32
    T, Bc, _ = tokens_ref.shape
    H = w_hh_ref.shape[0]
    V = table_ref.shape[0]

    # --- input-side gates for ALL timesteps: one bf16 MXU matmul -------------
    # One-hot values (0/1) are exact in bf16; the only rounding is the fused
    # table cast, accumulated in f32.
    iota_v = lax.broadcasted_iota(jnp.int32, (T, Bc, V), 2)
    onehot = (iota_v == tokens_ref[...]).astype(jnp.bfloat16).reshape(T * Bc, V)
    xg2d = jnp.dot(onehot, table_ref[...], preferred_element_type=f32)  # (T*Bc, 4H)
    xg_ref[...] = xg2d.reshape(T, Bc, 4 * H) + b_gates_ref[...]

    # TODO(synk): for realistic vocab sizes replace the one-hot matmul with an
    # SMEM-token gather of `table` rows (PrefetchScalarGridSpec / pl.Element),
    # and time-chunk the xg precompute for large T*B (v7x has 64 MiB VMEM).

    w_hh = w_hh_ref[...]   # hoisted: read the recurrent weight once
    # TODO(synk): hold W_hh resident in MXU weight registers across the loop
    # via pltpu.matmul_push_rhs / matmul_acc_lhs / matmul_pop.

    # --- time recurrence (fully unrolled, h/c carried in vregs) --------------
    def step(t, carry):
        h, c = carry
        gates = xg_ref[t] + jnp.dot(h, w_hh, preferred_element_type=f32)  # (Bc, 4H)
        ifo = jax.nn.sigmoid(gates[:, : 3 * H])     # i, f, o in one contiguous call
        g_g = jnp.tanh(gates[:, 3 * H:])
        i_g = ifo[:, :H]
        f_g = ifo[:, H: 2 * H]
        o_g = ifo[:, 2 * H:]
        c_new = f_g * c + i_g * g_g
        h_new = o_g * jnp.tanh(c_new)
        # packed-sequence semantics: freeze state past each sequence length;
        # write zeros into ctx for padded positions.
        valid = mask_ref[t] > 0.0                   # (Bc, 1) bool
        h = jnp.where(valid, h_new, h)
        c = jnp.where(valid, c_new, c)
        ctx_out[t] = jnp.where(valid, h_new, 0.0)
        return (h, c)

    zeros = jnp.zeros((Bc, H), f32)
    h_fin, c_fin = lax.fori_loop(0, T, step, (zeros, zeros), unroll=True)

    # --- decoder_init = tanh(encoder2decoder(h_t)) ----------------------------
    dec_init_out[...] = jnp.tanh(
        jnp.dot(h_fin, w_e2d_ref[...], preferred_element_type=f32) + b_e2d_ref[...]
    )
    c_t_out[...] = c_fin

    # TODO(synk): bidirectional / num_layers>1, sub_out='max', zero_init and
    # training-mode dropout are not implemented (module defaults assumed).


# ----------------------------------------------------------------------------
# Wrapper
# ----------------------------------------------------------------------------
def _permute_gates(x, H):
    """Reorder last-dim gate blocks from PyTorch's (i, f, g, o) to (i, f, o, g)."""
    return jnp.concatenate(
        [x[..., : 2 * H], x[..., 3 * H:], x[..., 2 * H: 3 * H]], axis=-1)


@jax.jit
def encoder_lstm(tokens, lengths, params):
    """tokens: (B, T) int32; lengths: (B,) int32 (descending, max == T)."""
    emb, w_ih, b_ih, w_hh, b_hh, w_e2d, b_e2d = params
    B, T = tokens.shape
    H = w_hh.shape[0]
    V = emb.shape[0]

    # v7x megacore: split the (independent) batch across TensorCores when it is
    # large enough to keep 8-sublane alignment per chunk.  v5e/v6e: one chunk.
    num_chunks = 2 if (B >= 16 and B % 16 == 0) else 1
    Bc = B // num_chunks

    # Fold embedding into the input projection (single (V, 4H) gate table),
    # fold the two LSTM biases, permute gate columns to (i, f, o, g).
    table = _permute_gates(jnp.dot(emb, w_ih), H).astype(jnp.bfloat16)   # (V, 4H)
    b_gates = _permute_gates(b_ih + b_hh, H)                             # (1, 4H)
    w_hh_p = _permute_gates(w_hh, H)                                     # (H, 4H)

    # Time-major tokens + precomputed validity mask (no per-step length math).
    tokens_tm = jnp.transpose(tokens).astype(jnp.int32).reshape(T, B, 1)
    mask_tm = (
        jnp.arange(T, dtype=jnp.int32)[:, None] < lengths.astype(jnp.int32)[None, :]
    ).astype(jnp.float32).reshape(T, B, 1)

    ctx_tbh, dec_init, c_t = pl.pallas_call(
        _encoder_lstm_kernel,
        out_shape=(
            jax.ShapeDtypeStruct((T, B, H), jnp.float32),   # ctx (time-major)
            jax.ShapeDtypeStruct((B, H), jnp.float32),      # decoder_init
            jax.ShapeDtypeStruct((B, H), jnp.float32),      # c_t
        ),
        grid=(num_chunks,),
        in_specs=[
            pl.BlockSpec((T, Bc, 1), lambda b: (0, b, 0)),   # tokens
            pl.BlockSpec((T, Bc, 1), lambda b: (0, b, 0)),   # mask
            pl.BlockSpec((V, 4 * H), lambda b: (0, 0)),      # fused gate table
            pl.BlockSpec((H, 4 * H), lambda b: (0, 0)),      # w_hh
            pl.BlockSpec((1, 4 * H), lambda b: (0, 0)),      # b_gates
            pl.BlockSpec((H, H), lambda b: (0, 0)),          # w_e2d
            pl.BlockSpec((1, H), lambda b: (0, 0)),          # b_e2d
        ],
        out_specs=(
            pl.BlockSpec((T, Bc, H), lambda b: (0, b, 0)),
            pl.BlockSpec((Bc, H), lambda b: (b, 0)),
            pl.BlockSpec((Bc, H), lambda b: (b, 0)),
        ),
        scratch_shapes=[pltpu.VMEM((T, Bc, 4 * H), jnp.float32)],
        compiler_params=pltpu.CompilerParams(dimension_semantics=("parallel",)),
    )(tokens_tm, mask_tm, table, w_hh_p, b_gates, w_e2d, b_e2d)

    # Kernel stores lane-dense time-major ctx; convert to batch-first to match
    # the PyTorch module.  (Consumers that accept time-major ctx can skip this
    # wrapper-side relayout and its extra HBM round trip at large shapes.)
    ctx = jnp.transpose(ctx_tbh, (1, 0, 2))                  # (B, T, H)
    return ctx, dec_init, c_t


# ----------------------------------------------------------------------------
# Pure-JAX f32 reference (mirrors the PyTorch forward) for a sanity check.
# ----------------------------------------------------------------------------
def _reference(tokens, lengths, params):
    emb, w_ih, b_ih, w_hh, b_hh, w_e2d, b_e2d = params
    B, T = tokens.shape
    H = w_hh.shape[0]
    embeds = emb[tokens]                                     # (B, T, E)
    h = jnp.zeros((B, H), jnp.float32)
    c = jnp.zeros((B, H), jnp.float32)
    ctx_steps = []
    for t in range(T):
        gates = embeds[:, t, :] @ w_ih + b_ih + h @ w_hh + b_hh
        i_g = jax.nn.sigmoid(gates[:, :H])
        f_g = jax.nn.sigmoid(gates[:, H:2 * H])
        g_g = jnp.tanh(gates[:, 2 * H:3 * H])
        o_g = jax.nn.sigmoid(gates[:, 3 * H:])
        c_new = f_g * c + i_g * g_g
        h_new = o_g * jnp.tanh(c_new)
        valid = (t < lengths)[:, None].astype(jnp.float32)
        h = valid * h_new + (1.0 - valid) * h
        c = valid * c_new + (1.0 - valid) * c
        ctx_steps.append(valid * h_new)
    ctx = jnp.stack(ctx_steps, axis=1)                       # (B, T, H)
    dec_init = jnp.tanh(h @ w_e2d + b_e2d)
    return ctx, dec_init, c


# ----------------------------------------------------------------------------
# Deterministic parameter / input construction and run.
# ----------------------------------------------------------------------------
def _uniform(key, shape, fan_in):
    k = 1.0 / jnp.sqrt(jnp.float32(fan_in))
    return jax.random.uniform(key, shape, jnp.float32, -k, k)


if __name__ == "__main__":
    B = 8      # batch
    T = 16     # seq_len
    V = 128    # vocab_size
    E = 64     # embedding_size
    H = 128    # hidden_size
    PAD = 0    # padding_idx

    root = jax.random.PRNGKey(0)
    ks = jax.random.split(root, 8)

    # parameters: weights stored as [in, out] (PyTorch weights would need a .T)
    emb = jax.random.normal(ks[0], (V, E), jnp.float32)
    emb = emb.at[PAD].set(0.0)                    # nn.Embedding padding_idx row
    w_ih = _uniform(ks[1], (E, 4 * H), H)
    b_ih = _uniform(ks[2], (1, 4 * H), H)
    w_hh = _uniform(ks[3], (H, 4 * H), H)
    b_hh = _uniform(ks[4], (1, 4 * H), H)
    w_e2d = _uniform(ks[5], (H, H), H)
    b_e2d = _uniform(ks[6], (1, H), H)
    params = (emb, w_ih, b_ih, w_hh, b_hh, w_e2d, b_e2d)

    # runtime inputs: lengths sorted descending (pack_padded_sequence contract),
    # max length == T; tokens past each length set to padding_idx.
    lengths = jnp.array([16, 14, 12, 11, 9, 7, 5, 4], dtype=jnp.int32)
    tokens = jax.random.randint(ks[7], (B, T), 1, V, dtype=jnp.int32)
    pos = jnp.arange(T, dtype=jnp.int32)[None, :]
    tokens = jnp.where(pos < lengths[:, None], tokens, PAD)

    outs = jax.block_until_ready(encoder_lstm(tokens, lengths, params))
    refs = _reference(tokens, lengths, params)

    # The fused gate table is stored in bf16 (MXU-native on v6e/v7x), so the
    # tolerance vs. the pure-f32 reference is a bit looser than 1e-4.
    for o, r in zip(outs, refs):
        assert o.shape == r.shape, (o.shape, r.shape)
        assert jnp.allclose(o, r, atol=3e-2, rtol=3e-2), float(jnp.max(jnp.abs(o - r)))

    print("KERNEL_OK")
</pallas_src>

<mosaic_0001>
module attributes {stable_mosaic.version = 11 : i64} {
  func.func @_encoder_lstm_kernel(%arg0: i32, %arg1: memref<16x8x1xi32, #tpu.memory_space<vmem>>, %arg2: memref<16x8x1xf32, #tpu.memory_space<vmem>>, %arg3: memref<128x512xbf16, #tpu.memory_space<vmem>>, %arg4: memref<128x512xf32, #tpu.memory_space<vmem>>, %arg5: memref<1x512xf32, #tpu.memory_space<vmem>>, %arg6: memref<128x128xf32, #tpu.memory_space<vmem>>, %arg7: memref<1x128xf32, #tpu.memory_space<vmem>>, %arg8: memref<16x8x128xf32, #tpu.memory_space<vmem>>, %arg9: memref<8x128xf32, #tpu.memory_space<vmem>>, %arg10: memref<8x128xf32, #tpu.memory_space<vmem>>, %arg11: memref<16x8x512xf32, #tpu.memory_space<vmem>>) attributes {dimension_semantics = [#tpu.dimension_semantics<parallel>], iteration_bounds = array<i64: 1>, scalar_prefetch = 0 : i64, scratch_operands = 1 : i64, tpu.core_type = #tpu.core_type<tc>, window_params = [{transform_indices = @transform_0, window_bounds = array<i64: 16, 8, 1>}, {transform_indices = @transform_1, window_bounds = array<i64: 16, 8, 1>}, {pipeline_mode = #tpu.pipeline_mode<synchronous>, transform_indices = @transform_2, window_bounds = array<i64: 128, 512>}, {pipeline_mode = #tpu.pipeline_mode<synchronous>, transform_indices = @transform_3, window_bounds = array<i64: 128, 512>}, {pipeline_mode = #tpu.pipeline_mode<synchronous>, transform_indices = @transform_4, window_bounds = array<i64: 1, 512>}, {pipeline_mode = #tpu.pipeline_mode<synchronous>, transform_indices = @transform_5, window_bounds = array<i64: 128, 128>}, {pipeline_mode = #tpu.pipeline_mode<synchronous>, transform_indices = @transform_6, window_bounds = array<i64: 1, 128>}, {transform_indices = @transform_7, window_bounds = array<i64: 16, 8, 128>}, {transform_indices = @transform_8, window_bounds = array<i64: 8, 128>}, {transform_indices = @transform_9, window_bounds = array<i64: 8, 128>}]} {
    %0 = tpu.iota {dimensions = array<i32: 2>} : vector<16x8x128xi32>
    %c0 = arith.constant 0 : index
    %c0_0 = arith.constant 0 : index
    %c0_1 = arith.constant 0 : index
    %1 = vector.load %arg1[%c0, %c0_0, %c0_1] : memref<16x8x1xi32, #tpu.memory_space<vmem>>, vector<16x8x1xi32>
    %2 = vector.broadcast %1 : vector<16x8x1xi32> to vector<16x8x128xi32>
    %3 = arith.cmpi eq, %0, %2 : vector<16x8x128xi32>
    %4 = arith.extui %3 : vector<16x8x128xi1> to vector<16x8x128xi32>
    %5 = arith.sitofp %4 : vector<16x8x128xi32> to vector<16x8x128xf32>
    %6 = arith.truncf %5 : vector<16x8x128xf32> to vector<16x8x128xbf16>
    %7 = vector.shape_cast %6 : vector<16x8x128xbf16> to vector<128x128xbf16>
    %c0_2 = arith.constant 0 : index
    %c0_3 = arith.constant 0 : index
    %8 = vector.load %arg3[%c0_2, %c0_3] : memref<128x512xbf16, #tpu.memory_space<vmem>>, vector<128x512xbf16>
    %cst = arith.constant dense<0.000000e+00> : vector<128x512xf32>
    %9 = tpu.matmul %7, %8, %cst {dimension_numbers = #tpu.dot_dimension_numbers<[1], [0], [0], [1], [0, 0, 1, 1], [], []>} : vector<128x128xbf16>, vector<128x512xbf16>, vector<128x512xf32> -> vector<128x512xf32>
    %10 = vector.shape_cast %9 : vector<128x512xf32> to vector<16x8x512xf32>
    %c0_4 = arith.constant 0 : index
    %c0_5 = arith.constant 0 : index
    %11 = vector.load %arg5[%c0_4, %c0_5] : memref<1x512xf32, #tpu.memory_space<vmem>>, vector<1x512xf32>
    %12 = vector.shape_cast %11 : vector<1x512xf32> to vector<1x1x512xf32>
    %13 = vector.broadcast %12 : vector<1x1x512xf32> to vector<16x8x512xf32>
    %14 = arith.addf %10, %13 : vector<16x8x512xf32>
    %c0_6 = arith.constant 0 : index
    %c0_7 = arith.constant 0 : index
    %c0_8 = arith.constant 0 : index
    %15 = vector.load %arg11[%c0_6, %c0_7, %c0_8] : memref<16x8x512xf32, #tpu.memory_space<vmem>>, vector<16x8x512xf32>
    tpu.vector_store %arg11[%c0_6, %c0_7, %c0_8], %14 {strides = array<i32>} : memref<16x8x512xf32, #tpu.memory_space<vmem>>, vector<16x8x512xf32>,
    %c0_9 = arith.constant 0 : index
    %c0_10 = arith.constant 0 : index
    %16 = vector.load %arg4[%c0_9, %c0_10] : memref<128x512xf32, #tpu.memory_space<vmem>>, vector<128x512xf32>
    %cst_11 = arith.constant 0.000000e+00 : f32
    %17 = vector.broadcast %cst_11 : f32 to vector<8x128xf32>
    %c0_i32 = arith.constant 0 : i32
    %18 = arith.index_cast %c0_i32 : i32 to index
    %c0_12 = arith.constant 0 : index
    %c0_13 = arith.constant 0 : index
    %19 = vector.load %arg11[%18, %c0_12, %c0_13] : memref<16x8x512xf32, #tpu.memory_space<vmem>>, vector<1x8x512xf32>
    %20 = vector.shape_cast %19 : vector<1x8x512xf32> to vector<8x512xf32>
    %cst_14 = arith.constant dense<0.000000e+00> : vector<8x512xf32>
    %21 = tpu.matmul %17, %16, %cst_14 {dimension_numbers = #tpu.dot_dimension_numbers<[1], [0], [0], [1], [0, 0, 1, 1], [], []>} : vector<8x128xf32>, vector<128x512xf32>, vector<8x512xf32> -> vector<8x512xf32>
    %22 = arith.addf %20, %21 : vector<8x512xf32>
    %23 = vector.extract_strided_slice %22 {offsets = [0, 0], sizes = [8, 384], strides = [1, 1]} : vector<8x512xf32> to vector<8x384xf32>
    %24 = arith.negf %23 : vector<8x384xf32>
    %25 = math.exp %24 : vector<8x384xf32>
    %cst_15 = arith.constant 1.000000e+00 : f32
    %26 = vector.broadcast %cst_15 : f32 to vector<8x384xf32>
    %27 = arith.addf %26, %25 : vector<8x384xf32>
    %28 = arith.divf %26, %27 : vector<8x384xf32>
    %29 = vector.extract_strided_slice %22 {offsets = [0, 384], sizes = [8, 128], strides = [1, 1]} : vector<8x512xf32> to vector<8x128xf32>
    %30 = math.tanh %29 : vector<8x128xf32>
    %31 = vector.extract_strided_slice %28 {offsets = [0, 0], sizes = [8, 128], strides = [1, 1]} : vector<8x384xf32> to vector<8x128xf32>
    %32 = vector.extract_strided_slice %28 {offsets = [0, 128], sizes = [8, 128], strides = [1, 1]} : vector<8x384xf32> to vector<8x128xf32>
    %33 = vector.extract_strided_slice %28 {offsets = [0, 256], sizes = [8, 128], strides = [1, 1]} : vector<8x384xf32> to vector<8x128xf32>
    %34 = arith.mulf %32, %17 : vector<8x128xf32>
    %35 = arith.mulf %31, %30 : vector<8x128xf32>
    %36 = arith.addf %34, %35 : vector<8x128xf32>
    %37 = math.tanh %36 : vector<8x128xf32>
    %38 = arith.mulf %33, %37 : vector<8x128xf32>
    %39 = arith.index_cast %c0_i32 : i32 to index
    %c0_16 = arith.constant 0 : index
    %c0_17 = arith.constant 0 : index
    %40 = vector.load %arg2[%39, %c0_16, %c0_17] : memref<16x8x1xf32, #tpu.memory_space<vmem>>, vector<1x8x1xf32>
    %41 = vector.shape_cast %40 : vector<1x8x1xf32> to vector<8x1xf32>
    %cst_18 = arith.constant 0.000000e+00 : f32
    %42 = vector.broadcast %cst_18 : f32 to vector<8x1xf32>
    %43 = arith.cmpf ogt, %41, %42 : vector<8x1xf32>
    %44 = vector.shape_cast %43 : vector<8x1xi1> to vector<8x1xi1>
    %45 = vector.broadcast %44 : vector<8x1xi1> to vector<8x128xi1>
    %46 = arith.select %45, %38, %17 : vector<8x128xi1>, vector<8x128xf32>
    %47 = vector.shape_cast %43 : vector<8x1xi1> to vector<8x1xi1>
    %48 = vector.broadcast %47 : vector<8x1xi1> to vector<8x128xi1>
    %49 = arith.select %48, %36, %17 : vector<8x128xi1>, vector<8x128xf32>
    %cst_19 = arith.constant 0.000000e+00 : f32
    %50 = vector.shape_cast %43 : vector<8x1xi1> to vector<8x1xi1>
    %51 = vector.broadcast %50 : vector<8x1xi1> to vector<8x128xi1>
    %52 = vector.broadcast %cst_19 : f32 to vector<8x128xf32>
    %53 = arith.select %51, %38, %52 : vector<8x128xi1>, vector<8x128xf32>
    %54 = arith.index_cast %c0_i32 : i32 to index
    %c0_20 = arith.constant 0 : index
    %c0_21 = arith.constant 0 : index
    %55 = vector.load %arg8[%54, %c0_20, %c0_21] : memref<16x8x128xf32, #tpu.memory_space<vmem>>, vector<1x8x128xf32>
    %56 = vector.shape_cast %55 : vector<1x8x128xf32> to vector<8x128xf32>
    %57 = vector.shape_cast %53 : vector<8x128xf32> to vector<1x8x128xf32>
    tpu.vector_store %arg8[%54, %c0_20, %c0_21], %57 {strides = array<i32>} : memref<16x8x128xf32, #tpu.memory_space<vmem>>, vector<1x8x128xf32>,
    %c1_i32 = arith.constant 1 : i32
    %58 = arith.index_cast %c1_i32 : i32 to index
    %c0_22 = arith.constant 0 : index
    %c0_23 = arith.constant 0 : index
    %59 = vector.load %arg11[%58, %c0_22, %c0_23] : memref<16x8x512xf32, #tpu.memory_space<vmem>>, vector<1x8x512xf32>
    %60 = vector.shape_cast %59 : vector<1x8x512xf32> to vector<8x512xf32>
    %cst_24 = arith.constant dense<0.000000e+00> : vector<8x512xf32>
    %61 = tpu.matmul %46, %16, %cst_24 {dimension_numbers = #tpu.dot_dimension_numbers<[1], [0], [0], [1], [0, 0, 1, 1], [], []>} : vector<8x128xf32>, vector<128x512xf32>, vector<8x512xf32> -> vector<8x512xf32>
    %62 = arith.addf %60, %61 : vector<8x512xf32>
    %63 = vector.extract_strided_slice %62 {offsets = [0, 0], sizes = [8, 384], strides = [1, 1]} : vector<8x512xf32> to vector<8x384xf32>
    %64 = arith.negf %63 : vector<8x384xf32>
    %65 = math.exp %64 : vector<8x384xf32>
    %cst_25 = arith.constant 1.000000e+00 : f32
    %66 = vector.broadcast %cst_25 : f32 to vector<8x384xf32>
    %67 = arith.addf %66, %65 : vector<8x384xf32>
    %68 = arith.divf %66, %67 : vector<8x384xf32>
    %69 = vector.extract_strided_slice %62 {offsets = [0, 384], sizes = [8, 128], strides = [1, 1]} : vector<8x512xf32> to vector<8x128xf32>
    %70 = math.tanh %69 : vector<8x128xf32>
    %71 = vector.extract_strided_slice %68 {offsets = [0, 0], sizes = [8, 128], strides = [1, 1]} : vector<8x384xf32> to vector<8x128xf32>
    %72 = vector.extract_strided_slice %68 {offsets = [0, 128], sizes = [8, 128], strides = [1, 1]} : vector<8x384xf32> to vector<8x128xf32>
    %73 = vector.extract_strided_slice %68 {offsets = [0, 256], sizes = [8, 128], strides = [1, 1]} : vector<8x384xf32> to vector<8x128xf32>
    %74 = arith.mulf %72, %49 : vector<8x128xf32>
    %75 = arith.mulf %71, %70 : vector<8x128xf32>
    %76 = arith.addf %74, %75 : vector<8x128xf32>
    %77 = math.tanh %76 : vector<8x128xf32>
    %78 = arith.mulf %73, %77 : vector<8x128xf32>
    %79 = arith.index_cast %c1_i32 : i32 to index
    %c0_26 = arith.constant 0 : index
    %c0_27 = arith.constant 0 : index
    %80 = vector.load %arg2[%79, %c0_26, %c0_27] : memref<16x8x1xf32, #tpu.memory_space<vmem>>, vector<1x8x1xf32>
    %81 = vector.shape_cast %80 : vector<1x8x1xf32> to vector<8x1xf32>
    %cst_28 = arith.constant 0.000000e+00 : f32
    %82 = vector.broadcast %cst_28 : f32 to vector<8x1xf32>
    %83 = arith.cmpf ogt, %81, %82 : vector<8x1xf32>
    %84 = vector.shape_cast %83 : vector<8x1xi1> to vector<8x1xi1>
    %85 = vector.broadcast %84 : vector<8x1xi1> to vector<8x128xi1>
    %86 = arith.select %85, %78, %46 : vector<8x128xi1>, vector<8x128xf32>
    %87 = vector.shape_cast %83 : vector<8x1xi1> to vector<8x1xi1>
    %88 = vector.broadcast %87 : vector<8x1xi1> to vector<8x128xi1>
    %89 = arith.select %88, %76, %49 : vector<8x128xi1>, vector<8x128xf32>
    %cst_29 = arith.constant 0.000000e+00 : f32
    %90 = vector.shape_cast %83 : vector<8x1xi1> to vector<8x1xi1>
    %91 = vector.broadcast %90 : vector<8x1xi1> to vector<8x128xi1>
    %92 = vector.broadcast %cst_29 : f32 to vector<8x128xf32>
    %93 = arith.select %91, %78, %92 : vector<8x128xi1>, vector<8x128xf32>
    %94 = arith.index_cast %c1_i32 : i32 to index
    %c0_30 = arith.constant 0 : index
    %c0_31 = arith.constant 0 : index
    %95 = vector.load %arg8[%94, %c0_30, %c0_31] : memref<16x8x128xf32, #tpu.memory_space<vmem>>, vector<1x8x128xf32>
    %96 = vector.shape_cast %95 : vector<1x8x128xf32> to vector<8x128xf32>
    %97 = vector.shape_cast %93 : vector<8x128xf32> to vector<1x8x128xf32>
    tpu.vector_store %arg8[%94, %c0_30, %c0_31], %97 {strides = array<i32>} : memref<16x8x128xf32, #tpu.memory_space<vmem>>, vector<1x8x128xf32>,
    %c2_i32 = arith.constant 2 : i32
    %98 = arith.index_cast %c2_i32 : i32 to index
    %c0_32 = arith.constant 0 : index
    %c0_33 = arith.constant 0 : index
    %99 = vector.load %arg11[%98, %c0_32, %c0_33] : memref<16x8x512xf32, #tpu.memory_space<vmem>>, vector<1x8x512xf32>
    %100 = vector.shape_cast %99 : vector<1x8x512xf32> to vector<8x512xf32>
    %cst_34 = arith.constant dense<0.000000e+00> : vector<8x512xf32>
    %101 = tpu.matmul %86, %16, %cst_34 {dimension_numbers = #tpu.dot_dimension_numbers<[1], [0], [0], [1], [0, 0, 1, 1], [], []>} : vector<8x128xf32>, vector<128x512xf32>, vector<8x512xf32> -> vector<8x512xf32>
    %102 = arith.addf %100, %101 : vector<8x512xf32>
    %103 = vector.extract_strided_slice %102 {offsets = [0, 0], sizes = [8, 384], strides = [1, 1]} : vector<8x512xf32> to vector<8x384xf32>
    %104 = arith.negf %103 : vector<8x384xf32>
    %105 = math.exp %104 : vector<8x384xf32>
    %cst_35 = arith.constant 1.000000e+00 : f32
    %106 = vector.broadcast %cst_35 : f32 to vector<8x384xf32>
    %107 = arith.addf %106, %105 : vector<8x384xf32>
    %108 = arith.divf %106, %107 : vector<8x384xf32>
    %109 = vector.extract_strided_slice %102 {offsets = [0, 384], sizes = [8, 128], strides = [1, 1]} : vector<8x512xf32> to vector<8x128xf32>
    %110 = math.tanh %109 : vector<8x128xf32>
    %111 = vector.extract_strided_slice %108 {offsets = [0, 0], sizes = [8, 128], strides = [1, 1]} : vector<8x384xf32> to vector<8x128xf32>
    %112 = vector.extract_strided_slice %108 {offsets = [0, 128], sizes = [8, 128], strides = [1, 1]} : vector<8x384xf32> to vector<8x128xf32>
    %113 = vector.extract_strided_slice %108 {offsets = [0, 256], sizes = [8, 128], strides = [1, 1]} : vector<8x384xf32> to vector<8x128xf32>
    %114 = arith.mulf %112, %89 : vector<8x128xf32>
    %115 = arith.mulf %111, %110 : vector<8x128xf32>
    %116 = arith.addf %114, %115 : vector<8x128xf32>
    %117 = math.tanh %116 : vector<8x128xf32>
    %118 = arith.mulf %113, %117 : vector<8x128xf32>
    %119 = arith.index_cast %c2_i32 : i32 to index
    %c0_36 = arith.constant 0 : index
    %c0_37 = arith.constant 0 : index
    %120 = vector.load %arg2[%119, %c0_36, %c0_37] : memref<16x8x1xf32, #tpu.memory_space<vmem>>, vector<1x8x1xf32>
    %121 = vector.shape_cast %120 : vector<1x8x1xf32> to vector<8x1xf32>
    %cst_38 = arith.constant 0.000000e+00 : f32
    %122 = vector.broadcast %cst_38 : f32 to vector<8x1xf32>
    %123 = arith.cmpf ogt, %121, %122 : vector<8x1xf32>
    %124 = vector.shape_cast %123 : vector<8x1xi1> to vector<8x1xi1>
    %125 = vector.broadcast %124 : vector<8x1xi1> to vector<8x128xi1>
    %126 = arith.select %125, %118, %86 : vector<8x128xi1>, vector<8x128xf32>
    %127 = vector.shape_cast %123 : vector<8x1xi1> to vector<8x1xi1>
    %128 = vector.broadcast %127 : vector<8x1xi1> to vector<8x128xi1>
    %129 = arith.select %128, %116, %89 : vector<8x128xi1>, vector<8x128xf32>
    %cst_39 = arith.constant 0.000000e+00 : f32
    %130 = vector.shape_cast %123 : vector<8x1xi1> to vector<8x1xi1>
    %131 = vector.broadcast %130 : vector<8x1xi1> to vector<8x128xi1>
    %132 = vector.broadcast %cst_39 : f32 to vector<8x128xf32>
    %133 = arith.select %131, %118, %132 : vector<8x128xi1>, vector<8x128xf32>
    %134 = arith.index_cast %c2_i32 : i32 to index
    %c0_40 = arith.constant 0 : index
    %c0_41 = arith.constant 0 : index
    %135 = vector.load %arg8[%134, %c0_40, %c0_41] : memref<16x8x128xf32, #tpu.memory_space<vmem>>, vector<1x8x128xf32>
    %136 = vector.shape_cast %135 : vector<1x8x128xf32> to vector<8x128xf32>
    %137 = vector.shape_cast %133 : vector<8x128xf32> to vector<1x8x128xf32>
    tpu.vector_store %arg8[%134, %c0_40, %c0_41], %137 {strides = array<i32>} : memref<16x8x128xf32, #tpu.memory_space<vmem>>, vector<1x8x128xf32>,
    %c3_i32 = arith.constant 3 : i32
    %138 = arith.index_cast %c3_i32 : i32 to index
    %c0_42 = arith.constant 0 : index
    %c0_43 = arith.constant 0 : index
    %139 = vector.load %arg11[%138, %c0_42, %c0_43] : memref<16x8x512xf32, #tpu.memory_space<vmem>>, vector<1x8x512xf32>
    %140 = vector.shape_cast %139 : vector<1x8x512xf32> to vector<8x512xf32>
    %cst_44 = arith.constant dense<0.000000e+00> : vector<8x512xf32>
    %141 = tpu.matmul %126, %16, %cst_44 {dimension_numbers = #tpu.dot_dimension_numbers<[1], [0], [0], [1], [0, 0, 1, 1], [], []>} : vector<8x128xf32>, vector<128x512xf32>, vector<8x512xf32> -> vector<8x512xf32>
    %142 = arith.addf %140, %141 : vector<8x512xf32>
    %143 = vector.extract_strided_slice %142 {offsets = [0, 0], sizes = [8, 384], strides = [1, 1]} : vector<8x512xf32> to vector<8x384xf32>
    %144 = arith.negf %143 : vector<8x384xf32>
    %145 = math.exp %144 : vector<8x384xf32>
    %cst_45 = arith.constant 1.000000e+00 : f32
    %146 = vector.broadcast %cst_45 : f32 to vector<8x384xf32>
    %147 = arith.addf %146, %145 : vector<8x384xf32>
    %148 = arith.divf %146, %147 : vector<8x384xf32>
    %149 = vector.extract_strided_slice %142 {offsets = [0, 384], sizes = [8, 128], strides = [1, 1]} : vector<8x512xf32> to vector<8x128xf32>
    %150 = math.tanh %149 : vector<8x128xf32>
    %151 = vector.extract_strided_slice %148 {offsets = [0, 0], sizes = [8, 128], strides = [1, 1]} : vector<8x384xf32> to vector<8x128xf32>
    %152 = vector.extract_strided_slice %148 {offsets = [0, 128], sizes = [8, 128], strides = [1, 1]} : vector<8x384xf32> to vector<8x128xf32>
    %153 = vector.extract_strided_slice %148 {offsets = [0, 256], sizes = [8, 128], strides = [1, 1]} : vector<8x384xf32> to vector<8x128xf32>
    %154 = arith.mulf %152, %129 : vector<8x128xf32>
    %155 = arith.mulf %151, %150 : vector<8x128xf32>
    %156 = arith.addf %154, %155 : vector<8x128xf32>
    %157 = math.tanh %156 : vector<8x128xf32>
    %158 = arith.mulf %153, %157 : vector<8x128xf32>
    %159 = arith.index_cast %c3_i32 : i32 to index
    %c0_46 = arith.constant 0 : index
    %c0_47 = arith.constant 0 : index
    %160 = vector.load %arg2[%159, %c0_46, %c0_47] : memref<16x8x1xf32, #tpu.memory_space<vmem>>, vector<1x8x1xf32>
    %161 = vector.shape_cast %160 : vector<1x8x1xf32> to vector<8x1xf32>
    %cst_48 = arith.constant 0.000000e+00 : f32
    %162 = vector.broadcast %cst_48 : f32 to vector<8x1xf32>
    %163 = arith.cmpf ogt, %161, %162 : vector<8x1xf32>
    %164 = vector.shape_cast %163 : vector<8x1xi1> to vector<8x1xi1>
    %165 = vector.broadcast %164 : vector<8x1xi1> to vector<8x128xi1>
    %166 = arith.select %165, %158, %126 : vector<8x128xi1>, vector<8x128xf32>
    %167 = vector.shape_cast %163 : vector<8x1xi1> to vector<8x1xi1>
    %168 = vector.broadcast %167 : vector<8x1xi1> to vector<8x128xi1>
    %169 = arith.select %168, %156, %129 : vector<8x128xi1>, vector<8x128xf32>
    %cst_49 = arith.constant 0.000000e+00 : f32
    %170 = vector.shape_cast %163 : vector<8x1xi1> to vector<8x1xi1>
    %171 = vector.broadcast %170 : vector<8x1xi1> to vector<8x128xi1>
    %172 = vector.broadcast %cst_49 : f32 to vector<8x128xf32>
    %173 = arith.select %171, %158, %172 : vector<8x128xi1>, vector<8x128xf32>
    %174 = arith.index_cast %c3_i32 : i32 to index
    %c0_50 = arith.constant 0 : index
    %c0_51 = arith.constant 0 : index
    %175 = vector.load %arg8[%174, %c0_50, %c0_51] : memref<16x8x128xf32, #tpu.memory_space<vmem>>, vector<1x8x128xf32>
    %176 = vector.shape_cast %175 : vector<1x8x128xf32> to vector<8x128xf32>
    %177 = vector.shape_cast %173 : vector<8x128xf32> to vector<1x8x128xf32>
    tpu.vector_store %arg8[%174, %c0_50, %c0_51], %177 {strides = array<i32>} : memref<16x8x128xf32, #tpu.memory_space<vmem>>, vector<1x8x128xf32>,
    %c4_i32 = arith.constant 4 : i32
    %178 = arith.index_cast %c4_i32 : i32 to index
    %c0_52 = arith.constant 0 : index
    %c0_53 = arith.constant 0 : index
    %179 = vector.load %arg11[%178, %c0_52, %c0_53] : memref<16x8x512xf32, #tpu.memory_space<vmem>>, vector<1x8x512xf32>
    %180 = vector.shape_cast %179 : vector<1x8x512xf32> to vector<8x512xf32>
    %cst_54 = arith.constant dense<0.000000e+00> : vector<8x512xf32>
    %181 = tpu.matmul %166, %16, %cst_54 {dimension_numbers = #tpu.dot_dimension_numbers<[1], [0], [0], [1], [0, 0, 1, 1], [], []>} : vector<8x128xf32>, vector<128x512xf32>, vector<8x512xf32> -> vector<8x512xf32>
    %182 = arith.addf %180, %181 : vector<8x512xf32>
    %183 = vector.extract_strided_slice %182 {offsets = [0, 0], sizes = [8, 384], strides = [1, 1]} : vector<8x512xf32> to vector<8x384xf32>
    %184 = arith.negf %183 : vector<8x384xf32>
    %185 = math.exp %184 : vector<8x384xf32>
    %cst_55 = arith.constant 1.000000e+00 : f32
    %186 = vector.broadcast %cst_55 : f32 to vector<8x384xf32>
    %187 = arith.addf %186, %185 : vector<8x384xf32>
    %188 = arith.divf %186, %187 : vector<8x384xf32>
    %189 = vector.extract_strided_slice %182 {offsets = [0, 384], sizes = [8, 128], strides = [1, 1]} : vector<8x512xf32> to vector<8x128xf32>
    %190 = math.tanh %189 : vector<8x128xf32>
    %191 = vector.extract_strided_slice %188 {offsets = [0, 0], sizes = [8, 128], strides = [1, 1]} : vector<8x384xf32> to vector<8x128xf32>
    %192 = vector.extract_strided_slice %188 {offsets = [0, 128], sizes = [8, 128], strides = [1, 1]} : vector<8x384xf32> to vector<8x128xf32>
    %193 = vector.extract_strided_slice %188 {offsets = [0, 256], sizes = [8, 128], strides = [1, 1]} : vector<8x384xf32> to vector<8x128xf32>
    %194 = arith.mulf %192, %169 : vector<8x128xf32>
    %195 = arith.mulf %191, %190 : vector<8x128xf32>
    %196 = arith.addf %194, %195 : vector<8x128xf32>
    %197 = math.tanh %196 : vector<8x128xf32>
    %198 = arith.mulf %193, %197 : vector<8x128xf32>
    %199 = arith.index_cast %c4_i32 : i32 to index
    %c0_56 = arith.constant 0 : index
    %c0_57 = arith.constant 0 : index
    %200 = vector.load %arg2[%199, %c0_56, %c0_57] : memref<16x8x1xf32, #tpu.memory_space<vmem>>, vector<1x8x1xf32>
    %201 = vector.shape_cast %200 : vector<1x8x1xf32> to vector<8x1xf32>
    %cst_58 = arith.constant 0.000000e+00 : f32
    %202 = vector.broadcast %cst_58 : f32 to vector<8x1xf32>
    %203 = arith.cmpf ogt, %201, %202 : vector<8x1xf32>
    %204 = vector.shape_cast %203 : vector<8x1xi1> to vector<8x1xi1>
    %205 = vector.broadcast %204 : vector<8x1xi1> to vector<8x128xi1>
    %206 = arith.select %205, %198, %166 : vector<8x128xi1>, vector<8x128xf32>
    %207 = vector.shape_cast %203 : vector<8x1xi1> to vector<8x1xi1>
    %208 = vector.broadcast %207 : vector<8x1xi1> to vector<8x128xi1>
    %209 = arith.select %208, %196, %169 : vector<8x128xi1>, vector<8x128xf32>
    %cst_59 = arith.constant 0.000000e+00 : f32
    %210 = vector.shape_cast %203 : vector<8x1xi1> to vector<8x1xi1>
    %211 = vector.broadcast %210 : vector<8x1xi1> to vector<8x128xi1>
    %212 = vector.broadcast %cst_59 : f32 to vector<8x128xf32>
    %213 = arith.select %211, %198, %212 : vector<8x128xi1>, vector<8x128xf32>
    %214 = arith.index_cast %c4_i32 : i32 to index
    %c0_60 = arith.constant 0 : index
    %c0_61 = arith.constant 0 : index
    %215 = vector.load %arg8[%214, %c0_60, %c0_61] : memref<16x8x128xf32, #tpu.memory_space<vmem>>, vector<1x8x128xf32>
    %216 = vector.shape_cast %215 : vector<1x8x128xf32> to vector<8x128xf32>
    %217 = vector.shape_cast %213 : vector<8x128xf32> to vector<1x8x128xf32>
    tpu.vector_store %arg8[%214, %c0_60, %c0_61], %217 {strides = array<i32>} : memref<16x8x128xf32, #tpu.memory_space<vmem>>, vector<1x8x128xf32>,
    %c5_i32 = arith.constant 5 : i32
    %218 = arith.index_cast %c5_i32 : i32 to index
    %c0_62 = arith.constant 0 : index
    %c0_63 = arith.constant 0 : index
    %219 = vector.load %arg11[%218, %c0_62, %c0_63] : memref<16x8x512xf32, #tpu.memory_space<vmem>>, vector<1x8x512xf32>
    %220 = vector.shape_cast %219 : vector<1x8x512xf32> to vector<8x512xf32>
    %cst_64 = arith.constant dense<0.000000e+00> : vector<8x512xf32>
    %221 = tpu.matmul %206, %16, %cst_64 {dimension_numbers = #tpu.dot_dimension_numbers<[1], [0], [0], [1], [0, 0, 1, 1], [], []>} : vector<8x128xf32>, vector<128x512xf32>, vector<8x512xf32> -> vector<8x512xf32>
    %222 = arith.addf %220, %221 : vector<8x512xf32>
    %223 = vector.extract_strided_slice %222 {offsets = [0, 0], sizes = [8, 384], strides = [1, 1]} : vector<8x512xf32> to vector<8x384xf32>
    %224 = arith.negf %223 : vector<8x384xf32>
    %225 = math.exp %224 : vector<8x384xf32>
    %cst_65 = arith.constant 1.000000e+00 : f32
    %226 = vector.broadcast %cst_65 : f32 to vector<8x384xf32>
    %227 = arith.addf %226, %225 : vector<8x384xf32>
    %228 = arith.divf %226, %227 : vector<8x384xf32>
    %229 = vector.extract_strided_slice %222 {offsets = [0, 384], sizes = [8, 128], strides = [1, 1]} : vector<8x512xf32> to vector<8x128xf32>
    %230 = math.tanh %229 : vector<8x128xf32>
    %231 = vector.extract_strided_slice %228 {offsets = [0, 0], sizes = [8, 128], strides = [1, 1]} : vector<8x384xf32> to vector<8x128xf32>
    %232 = vector.extract_strided_slice %228 {offsets = [0, 128], sizes = [8, 128], strides = [1, 1]} : vector<8x384xf32> to vector<8x128xf32>
    %233 = vector.extract_strided_slice %228 {offsets = [0, 256], sizes = [8, 128], strides = [1, 1]} : vector<8x384xf32> to vector<8x128xf32>
    %234 = arith.mulf %232, %209 : vector<8x128xf32>
    %235 = arith.mulf %231, %230 : vector<8x128xf32>
    %236 = arith.addf %234, %235 : vector<8x128xf32>
    %237 = math.tanh %236 : vector<8x128xf32>
    %238 = arith.mulf %233, %237 : vector<8x128xf32>
    %239 = arith.index_cast %c5_i32 : i32 to index
    %c0_66 = arith.constant 0 : index
    %c0_67 = arith.constant 0 : index
    %240 = vector.load %arg2[%239, %c0_66, %c0_67] : memref<16x8x1xf32, #tpu.memory_space<vmem>>, vector<1x8x1xf32>
    %241 = vector.shape_cast %240 : vector<1x8x1xf32> to vector<8x1xf32>
    %cst_68 = arith.constant 0.000000e+00 : f32
    %242 = vector.broadcast %cst_68 : f32 to vector<8x1xf32>
    %243 = arith.cmpf ogt, %241, %242 : vector<8x1xf32>
    %244 = vector.shape_cast %243 : vector<8x1xi1> to vector<8x1xi1>
    %245 = vector.broadcast %244 : vector<8x1xi1> to vector<8x128xi1>
    %246 = arith.select %245, %238, %206 : vector<8x128xi1>, vector<8x128xf32>
    %247 = vector.shape_cast %243 : vector<8x1xi1> to vector<8x1xi1>
    %248 = vector.broadcast %247 : vector<8x1xi1> to vector<8x128xi1>
    %249 = arith.select %248, %236, %209 : vector<8x128xi1>, vector<8x128xf32>
    %cst_69 = arith.constant 0.000000e+00 : f32
    %250 = vector.shape_cast %243 : vector<8x1xi1> to vector<8x1xi1>
    %251 = vector.broadcast %250 : vector<8x1xi1> to vector<8x128xi1>
    %252 = vector.broadcast %cst_69 : f32 to vector<8x128xf32>
    %253 = arith.select %251, %238, %252 : vector<8x128xi1>, vector<8x128xf32>
    %254 = arith.index_cast %c5_i32 : i32 to index
    %c0_70 = arith.constant 0 : index
    %c0_71 = arith.constant 0 : index
    %255 = vector.load %arg8[%254, %c0_70, %c0_71] : memref<16x8x128xf32, #tpu.memory_space<vmem>>, vector<1x8x128xf32>
    %256 = vector.shape_cast %255 : vector<1x8x128xf32> to vector<8x128xf32>
    %257 = vector.shape_cast %253 : vector<8x128xf32> to vector<1x8x128xf32>
    tpu.vector_store %arg8[%254, %c0_70, %c0_71], %257 {strides = array<i32>} : memref<16x8x128xf32, #tpu.memory_space<vmem>>, vector<1x8x128xf32>,
    %c6_i32 = arith.constant 6 : i32
    %258 = arith.index_cast %c6_i32 : i32 to index
    %c0_72 = arith.constant 0 : index
    %c0_73 = arith.constant 0 : index
    %259 = vector.load %arg11[%258, %c0_72, %c0_73] : memref<16x8x512xf32, #tpu.memory_space<vmem>>, vector<1x8x512xf32>
    %260 = vector.shape_cast %259 : vector<1x8x512xf32> to vector<8x512xf32>
    %cst_74 = arith.constant dense<0.000000e+00> : vector<8x512xf32>
    %261 = tpu.matmul %246, %16, %cst_74 {dimension_numbers = #tpu.dot_dimension_numbers<[1], [0], [0], [1], [0, 0, 1, 1], [], []>} : vector<8x128xf32>, vector<128x512xf32>, vector<8x512xf32> -> vector<8x512xf32>
    %262 = arith.addf %260, %261 : vector<8x512xf32>
    %263 = vector.extract_strided_slice %262 {offsets = [0, 0], sizes = [8, 384], strides = [1, 1]} : vector<8x512xf32> to vector<8x384xf32>
    %264 = arith.negf %263 : vector<8x384xf32>
    %265 = math.exp %264 : vector<8x384xf32>
    %cst_75 = arith.constant 1.000000e+00 : f32
    %266 = vector.broadcast %cst_75 : f32 to vector<8x384xf32>
    %267 = arith.addf %266, %265 : vector<8x384xf32>
    %268 = arith.divf %266, %267 : vector<8x384xf32>
    %269 = vector.extract_strided_slice %262 {offsets = [0, 384], sizes = [8, 128], strides = [1, 1]} : vector<8x512xf32> to vector<8x128xf32>
    %270 = math.tanh %269 : vector<8x128xf32>
    %271 = vector.extract_strided_slice %268 {offsets = [0, 0], sizes = [8, 128], strides = [1, 1]} : vector<8x384xf32> to vector<8x128xf32>
    %272 = vector.extract_strided_slice %268 {offsets = [0, 128], sizes = [8, 128], strides = [1, 1]} : vector<8x384xf32> to vector<8x128xf32>
    %273 = vector.extract_strided_slice %268 {offsets = [0, 256], sizes = [8, 128], strides = [1, 1]} : vector<8x384xf32> to vector<8x128xf32>
    %274 = arith.mulf %272, %249 : vector<8x128xf32>
    %275 = arith.mulf %271, %270 : vector<8x128xf32>
    %276 = arith.addf %274, %275 : vector<8x128xf32>
    %277 = math.tanh %276 : vector<8x128xf32>
    %278 = arith.mulf %273, %277 : vector<8x128xf32>
    %279 = arith.index_cast %c6_i32 : i32 to index
    %c0_76 = arith.constant 0 : index
    %c0_77 = arith.constant 0 : index
    %280 = vector.load %arg2[%279, %c0_76, %c0_77] : memref<16x8x1xf32, #tpu.memory_space<vmem>>, vector<1x8x1xf32>
    %281 = vector.shape_cast %280 : vector<1x8x1xf32> to vector<8x1xf32>
    %cst_78 = arith.constant 0.000000e+00 : f32
    %282 = vector.broadcast %cst_78 : f32 to vector<8x1xf32>
    %283 = arith.cmpf ogt, %281, %282 : vector<8x1xf32>
    %284 = vector.shape_cast %283 : vector<8x1xi1> to vector<8x1xi1>
    %285 = vector.broadcast %284 : vector<8x1xi1> to vector<8x128xi1>
    %286 = arith.select %285, %278, %246 : vector<8x128xi1>, vector<8x128xf32>
    %287 = vector.shape_cast %283 : vector<8x1xi1> to vector<8x1xi1>
    %288 = vector.broadcast %287 : vector<8x1xi1> to vector<8x128xi1>
    %289 = arith.select %288, %276, %249 : vector<8x128xi1>, vector<8x128xf32>
    %cst_79 = arith.constant 0.000000e+00 : f32
    %290 = vector.shape_cast %283 : vector<8x1xi1> to vector<8x1xi1>
    %291 = vector.broadcast %290 : vector<8x1xi1> to vector<8x128xi1>
    %292 = vector.broadcast %cst_79 : f32 to vector<8x128xf32>
    %293 = arith.select %291, %278, %292 : vector<8x128xi1>, vector<8x128xf32>
    %294 = arith.index_cast %c6_i32 : i32 to index
    %c0_80 = arith.constant 0 : index
    %c0_81 = arith.constant 0 : index
    %295 = vector.load %arg8[%294, %c0_80, %c0_81] : memref<16x8x128xf32, #tpu.memory_space<vmem>>, vector<1x8x128xf32>
    %296 = vector.shape_cast %295 : vector<1x8x128xf32> to vector<8x128xf32>
    %297 = vector.shape_cast %293 : vector<8x128xf32> to vector<1x8x128xf32>
    tpu.vector_store %arg8[%294, %c0_80, %c0_81], %297 {strides = array<i32>} : memref<16x8x128xf32, #tpu.memory_space<vmem>>, vector<1x8x128xf32>,
    %c7_i32 = arith.constant 7 : i32
    %298 = arith.index_cast %c7_i32 : i32 to index
    %c0_82 = arith.constant 0 : index
    %c0_83 = arith.constant 0 : index
    %299 = vector.load %arg11[%298, %c0_82, %c0_83] : memref<16x8x512xf32, #tpu.memory_space<vmem>>, vector<1x8x512xf32>
    %300 = vector.shape_cast %299 : vector<1x8x512xf32> to vector<8x512xf32>
    %cst_84 = arith.constant dense<0.000000e+00> : vector<8x512xf32>
    %301 = tpu.matmul %286, %16, %cst_84 {dimension_numbers = #tpu.dot_dimension_numbers<[1], [0], [0], [1], [0, 0, 1, 1], [], []>} : vector<8x128xf32>, vector<128x512xf32>, vector<8x512xf32> -> vector<8x512xf32>
    %302 = arith.addf %300, %301 : vector<8x512xf32>
    %303 = vector.extract_strided_slice %302 {offsets = [0, 0], sizes = [8, 384], strides = [1, 1]} : vector<8x512xf32> to vector<8x384xf32>
    %304 = arith.negf %303 : vector<8x384xf32>
    %305 = math.exp %304 : vector<8x384xf32>
    %cst_85 = arith.constant 1.000000e+00 : f32
    %306 = vector.broadcast %cst_85 : f32 to vector<8x384xf32>
    %307 = arith.addf %306, %305 : vector<8x384xf32>
    %308 = arith.divf %306, %307 : vector<8x384xf32>
    %309 = vector.extract_strided_slice %302 {offsets = [0, 384], sizes = [8, 128], strides = [1, 1]} : vector<8x512xf32> to vector<8x128xf32>
    %310 = math.tanh %309 : vector<8x128xf32>
    %311 = vector.extract_strided_slice %308 {offsets = [0, 0], sizes = [8, 128], strides = [1, 1]} : vector<8x384xf32> to vector<8x128xf32>
    %312 = vector.extract_strided_slice %308 {offsets = [0, 128], sizes = [8, 128], strides = [1, 1]} : vector<8x384xf32> to vector<8x128xf32>
    %313 = vector.extract_strided_slice %308 {offsets = [0, 256], sizes = [8, 128], strides = [1, 1]} : vector<8x384xf32> to vector<8x128xf32>
    %314 = arith.mulf %312, %289 : vector<8x128xf32>
    %315 = arith.mulf %311, %310 : vector<8x128xf32>
    %316 = arith.addf %314, %315 : vector<8x128xf32>
    %317 = math.tanh %316 : vector<8x128xf32>
    %318 = arith.mulf %313, %317 : vector<8x128xf32>
    %319 = arith.index_cast %c7_i32 : i32 to index
    %c0_86 = arith.constant 0 : index
    %c0_87 = arith.constant 0 : index
    %320 = vector.load %arg2[%319, %c0_86, %c0_87] : memref<16x8x1xf32, #tpu.memory_space<vmem>>, vector<1x8x1xf32>
    %321 = vector.shape_cast %320 : vector<1x8x1xf32> to vector<8x1xf32>
    %cst_88 = arith.constant 0.000000e+00 : f32
    %322 = vector.broadcast %cst_88 : f32 to vector<8x1xf32>
    %323 = arith.cmpf ogt, %321, %322 : vector<8x1xf32>
    %324 = vector.shape_cast %323 : vector<8x1xi1> to vector<8x1xi1>
    %325 = vector.broadcast %324 : vector<8x1xi1> to vector<8x128xi1>
    %326 = arith.select %325, %318, %286 : vector<8x128xi1>, vector<8x128xf32>
    %327 = vector.shape_cast %323 : vector<8x1xi1> to vector<8x1xi1>
    %328 = vector.broadcast %327 : vector<8x1xi1> to vector<8x128xi1>
    %329 = arith.select %328, %316, %289 : vector<8x128xi1>, vector<8x128xf32>
    %cst_89 = arith.constant 0.000000e+00 : f32
    %330 = vector.shape_cast %323 : vector<8x1xi1> to vector<8x1xi1>
    %331 = vector.broadcast %330 : vector<8x1xi1> to vector<8x128xi1>
    %332 = vector.broadcast %cst_89 : f32 to vector<8x128xf32>
    %333 = arith.select %331, %318, %332 : vector<8x128xi1>, vector<8x128xf32>
    %334 = arith.index_cast %c7_i32 : i32 to index
    %c0_90 = arith.constant 0 : index
    %c0_91 = arith.constant 0 : index
    %335 = vector.load %arg8[%334, %c0_90, %c0_91] : memref<16x8x128xf32, #tpu.memory_space<vmem>>, vector<1x8x128xf32>
    %336 = vector.shape_cast %335 : vector<1x8x128xf32> to vector<8x128xf32>
    %337 = vector.shape_cast %333 : vector<8x128xf32> to vector<1x8x128xf32>
    tpu.vector_store %arg8[%334, %c0_90, %c0_91], %337 {strides = array<i32>} : memref<16x8x128xf32, #tpu.memory_space<vmem>>, vector<1x8x128xf32>,
    %c8_i32 = arith.constant 8 : i32
    %338 = arith.index_cast %c8_i32 : i32 to index
    %c0_92 = arith.constant 0 : index
    %c0_93 = arith.constant 0 : index
    %339 = vector.load %arg11[%338, %c0_92, %c0_93] : memref<16x8x512xf32, #tpu.memory_space<vmem>>, vector<1x8x512xf32>
    %340 = vector.shape_cast %339 : vector<1x8x512xf32> to vector<8x512xf32>
    %cst_94 = arith.constant dense<0.000000e+00> : vector<8x512xf32>
    %341 = tpu.matmul %326, %16, %cst_94 {dimension_numbers = #tpu.dot_dimension_numbers<[1], [0], [0], [1], [0, 0, 1, 1], [], []>} : vector<8x128xf32>, vector<128x512xf32>, vector<8x512xf32> -> vector<8x512xf32>
    %342 = arith.addf %340, %341 : vector<8x512xf32>
    %343 = vector.extract_strided_slice %342 {offsets = [0, 0], sizes = [8, 384], strides = [1, 1]} : vector<8x512xf32> to vector<8x384xf32>
    %344 = arith.negf %343 : vector<8x384xf32>
    %345 = math.exp %344 : vector<8x384xf32>
    %cst_95 = arith.constant 1.000000e+00 : f32
    %346 = vector.broadcast %cst_95 : f32 to vector<8x384xf32>
    %347 = arith.addf %346, %345 : vector<8x384xf32>
    %348 = arith.divf %346, %347 : vector<8x384xf32>
    %349 = vector.extract_strided_slice %342 {offsets = [0, 384], sizes = [8, 128], strides = [1, 1]} : vector<8x512xf32> to vector<8x128xf32>
    %350 = math.tanh %349 : vector<8x128xf32>
    %351 = vector.extract_strided_slice %348 {offsets = [0, 0], sizes = [8, 128], strides = [1, 1]} : vector<8x384xf32> to vector<8x128xf32>
    %352 = vector.extract_strided_slice %348 {offsets = [0, 128], sizes = [8, 128], strides = [1, 1]} : vector<8x384xf32> to vector<8x128xf32>
    %353 = vector.extract_strided_slice %348 {offsets = [0, 256], sizes = [8, 128], strides = [1, 1]} : vector<8x384xf32> to vector<8x128xf32>
    %354 = arith.mulf %352, %329 : vector<8x128xf32>
    %355 = arith.mulf %351, %350 : vector<8x128xf32>
    %356 = arith.addf %354, %355 : vector<8x128xf32>
    %357 = math.tanh %356 : vector<8x128xf32>
    %358 = arith.mulf %353, %357 : vector<8x128xf32>
    %359 = arith.index_cast %c8_i32 : i32 to index
    %c0_96 = arith.constant 0 : index
    %c0_97 = arith.constant 0 : index
    %360 = vector.load %arg2[%359, %c0_96, %c0_97] : memref<16x8x1xf32, #tpu.memory_space<vmem>>, vector<1x8x1xf32>
    %361 = vector.shape_cast %360 : vector<1x8x1xf32> to vector<8x1xf32>
    %cst_98 = arith.constant 0.000000e+00 : f32
    %362 = vector.broadcast %cst_98 : f32 to vector<8x1xf32>
    %363 = arith.cmpf ogt, %361, %362 : vector<8x1xf32>
    %364 = vector.shape_cast %363 : vector<8x1xi1> to vector<8x1xi1>
    %365 = vector.broadcast %364 : vector<8x1xi1> to vector<8x128xi1>
    %366 = arith.select %365, %358, %326 : vector<8x128xi1>, vector<8x128xf32>
    %367 = vector.shape_cast %363 : vector<8x1xi1> to vector<8x1xi1>
    %368 = vector.broadcast %367 : vector<8x1xi1> to vector<8x128xi1>
    %369 = arith.select %368, %356, %329 : vector<8x128xi1>, vector<8x128xf32>
    %cst_99 = arith.constant 0.000000e+00 : f32
    %370 = vector.shape_cast %363 : vector<8x1xi1> to vector<8x1xi1>
    %371 = vector.broadcast %370 : vector<8x1xi1> to vector<8x128xi1>
    %372 = vector.broadcast %cst_99 : f32 to vector<8x128xf32>
    %373 = arith.select %371, %358, %372 : vector<8x128xi1>, vector<8x128xf32>
    %374 = arith.index_cast %c8_i32 : i32 to index
    %c0_100 = arith.constant 0 : index
    %c0_101 = arith.constant 0 : index
    %375 = vector.load %arg8[%374, %c0_100, %c0_101] : memref<16x8x128xf32, #tpu.memory_space<vmem>>, vector<1x8x128xf32>
    %376 = vector.shape_cast %375 : vector<1x8x128xf32> to vector<8x128xf32>
    %377 = vector.shape_cast %373 : vector<8x128xf32> to vector<1x8x128xf32>
    tpu.vector_store %arg8[%374, %c0_100, %c0_101], %377 {strides = array<i32>} : memref<16x8x128xf32, #tpu.memory_space<vmem>>, vector<1x8x128xf32>,
    %c9_i32 = arith.constant 9 : i32
    %378 = arith.index_cast %c9_i32 : i32 to index
    %c0_102 = arith.constant 0 : index
    %c0_103 = arith.constant 0 : index
    %379 = vector.load %arg11[%378, %c0_102, %c0_103] : memref<16x8x512xf32, #tpu.memory_space<vmem>>, vector<1x8x512xf32>
    %380 = vector.shape_cast %379 : vector<1x8x512xf32> to vector<8x512xf32>
    %cst_104 = arith.constant dense<0.000000e+00> : vector<8x512xf32>
    %381 = tpu.matmul %366, %16, %cst_104 {dimension_numbers = #tpu.dot_dimension_numbers<[1], [0], [0], [1], [0, 0, 1, 1], [], []>} : vector<8x128xf32>, vector<128x512xf32>, vector<8x512xf32> -> vector<8x512xf32>
    %382 = arith.addf %380, %381 : vector<8x512xf32>
    %383 = vector.extract_strided_slice %382 {offsets = [0, 0], sizes = [8, 384], strides = [1, 1]} : vector<8x512xf32> to vector<8x384xf32>
    %384 = arith.negf %383 : vector<8x384xf32>
    %385 = math.exp %384 : vector<8x384xf32>
    %cst_105 = arith.constant 1.000000e+00 : f32
    %386 = vector.broadcast %cst_105 : f32 to vector<8x384xf32>
    %387 = arith.addf %386, %385 : vector<8x384xf32>
    %388 = arith.divf %386, %387 : vector<8x384xf32>
    %389 = vector.extract_strided_slice %382 {offsets = [0, 384], sizes = [8, 128], strides = [1, 1]} : vector<8x512xf32> to vector<8x128xf32>
    %390 = math.tanh %389 : vector<8x128xf32>
    %391 = vector.extract_strided_slice %388 {offsets = [0, 0], sizes = [8, 128], strides = [1, 1]} : vector<8x384xf32> to vector<8x128xf32>
    %392 = vector.extract_strided_slice %388 {offsets = [0, 128], sizes = [8, 128], strides = [1, 1]} : vector<8x384xf32> to vector<8x128xf32>
    %393 = vector.extract_strided_slice %388 {offsets = [0, 256], sizes = [8, 128], strides = [1, 1]} : vector<8x384xf32> to vector<8x128xf32>
    %394 = arith.mulf %392, %369 : vector<8x128xf32>
    %395 = arith.mulf %391, %390 : vector<8x128xf32>
    %396 = arith.addf %394, %395 : vector<8x128xf32>
    %397 = math.tanh %396 : vector<8x128xf32>
    %398 = arith.mulf %393, %397 : vector<8x128xf32>
    %399 = arith.index_cast %c9_i32 : i32 to index
    %c0_106 = arith.constant 0 : index
    %c0_107 = arith.constant 0 : index
    %400 = vector.load %arg2[%399, %c0_106, %c0_107] : memref<16x8x1xf32, #tpu.memory_space<vmem>>, vector<1x8x1xf32>
    %401 = vector.shape_cast %400 : vector<1x8x1xf32> to vector<8x1xf32>
    %cst_108 = arith.constant 0.000000e+00 : f32
    %402 = vector.broadcast %cst_108 : f32 to vector<8x1xf32>
    %403 = arith.cmpf ogt, %401, %402 : vector<8x1xf32>
    %404 = vector.shape_cast %403 : vector<8x1xi1> to vector<8x1xi1>
    %405 = vector.broadcast %404 : vector<8x1xi1> to vector<8x128xi1>
    %406 = arith.select %405, %398, %366 : vector<8x128xi1>, vector<8x128xf32>
    %407 = vector.shape_cast %403 : vector<8x1xi1> to vector<8x1xi1>
    %408 = vector.broadcast %407 : vector<8x1xi1> to vector<8x128xi1>
    %409 = arith.select %408, %396, %369 : vector<8x128xi1>, vector<8x128xf32>
    %cst_109 = arith.constant 0.000000e+00 : f32
    %410 = vector.shape_cast %403 : vector<8x1xi1> to vector<8x1xi1>
    %411 = vector.broadcast %410 : vector<8x1xi1> to vector<8x128xi1>
    %412 = vector.broadcast %cst_109 : f32 to vector<8x128xf32>
    %413 = arith.select %411, %398, %412 : vector<8x128xi1>, vector<8x128xf32>
    %414 = arith.index_cast %c9_i32 : i32 to index
    %c0_110 = arith.constant 0 : index
    %c0_111 = arith.constant 0 : index
    %415 = vector.load %arg8[%414, %c0_110, %c0_111] : memref<16x8x128xf32, #tpu.memory_space<vmem>>, vector<1x8x128xf32>
    %416 = vector.shape_cast %415 : vector<1x8x128xf32> to vector<8x128xf32>
    %417 = vector.shape_cast %413 : vector<8x128xf32> to vector<1x8x128xf32>
    tpu.vector_store %arg8[%414, %c0_110, %c0_111], %417 {strides = array<i32>} : memref<16x8x128xf32, #tpu.memory_space<vmem>>, vector<1x8x128xf32>,
    %c10_i32 = arith.constant 10 : i32
    %418 = arith.index_cast %c10_i32 : i32 to index
    %c0_112 = arith.constant 0 : index
    %c0_113 = arith.constant 0 : index
    %419 = vector.load %arg11[%418, %c0_112, %c0_113] : memref<16x8x512xf32, #tpu.memory_space<vmem>>, vector<1x8x512xf32>
    %420 = vector.shape_cast %419 : vector<1x8x512xf32> to vector<8x512xf32>
    %cst_114 = arith.constant dense<0.000000e+00> : vector<8x512xf32>
    %421 = tpu.matmul %406, %16, %cst_114 {dimension_numbers = #tpu.dot_dimension_numbers<[1], [0], [0], [1], [0, 0, 1, 1], [], []>} : vector<8x128xf32>, vector<128x512xf32>, vector<8x512xf32> -> vector<8x512xf32>
    %422 = arith.addf %420, %421 : vector<8x512xf32>
    %423 = vector.extract_strided_slice %422 {offsets = [0, 0], sizes = [8, 384], strides = [1, 1]} : vector<8x512xf32> to vector<8x384xf32>
    %424 = arith.negf %423 : vector<8x384xf32>
    %425 = math.exp %424 : vector<8x384xf32>
    %cst_115 = arith.constant 1.000000e+00 : f32
    %426 = vector.broadcast %cst_115 : f32 to vector<8x384xf32>
    %427 = arith.addf %426, %425 : vector<8x384xf32>
    %428 = arith.divf %426, %427 : vector<8x384xf32>
    %429 = vector.extract_strided_slice %422 {offsets = [0, 384], sizes = [8, 128], strides = [1, 1]} : vector<8x512xf32> to vector<8x128xf32>
    %430 = math.tanh %429 : vector<8x128xf32>
    %431 = vector.extract_strided_slice %428 {offsets = [0, 0], sizes = [8, 128], strides = [1, 1]} : vector<8x384xf32> to vector<8x128xf32>
    %432 = vector.extract_strided_slice %428 {offsets = [0, 128], sizes = [8, 128], strides = [1, 1]} : vector<8x384xf32> to vector<8x128xf32>
    %433 = vector.extract_strided_slice %428 {offsets = [0, 256], sizes = [8, 128], strides = [1, 1]} : vector<8x384xf32> to vector<8x128xf32>
    %434 = arith.mulf %432, %409 : vector<8x128xf32>
    %435 = arith.mulf %431, %430 : vector<8x128xf32>
    %436 = arith.addf %434, %435 : vector<8x128xf32>
    %437 = math.tanh %436 : vector<8x128xf32>
    %438 = arith.mulf %433, %437 : vector<8x128xf32>
    %439 = arith.index_cast %c10_i32 : i32 to index
    %c0_116 = arith.constant 0 : index
    %c0_117 = arith.constant 0 : index
    %440 = vector.load %arg2[%439, %c0_116, %c0_117] : memref<16x8x1xf32, #tpu.memory_space<vmem>>, vector<1x8x1xf32>
    %441 = vector.shape_cast %440 : vector<1x8x1xf32> to vector<8x1xf32>
    %cst_118 = arith.constant 0.000000e+00 : f32
    %442 = vector.broadcast %cst_118 : f32 to vector<8x1xf32>
    %443 = arith.cmpf ogt, %441, %442 : vector<8x1xf32>
    %444 = vector.shape_cast %443 : vector<8x1xi1> to vector<8x1xi1>
    %445 = vector.broadcast %444 : vector<8x1xi1> to vector<8x128xi1>
    %446 = arith.select %445, %438, %406 : vector<8x128xi1>, vector<8x128xf32>
    %447 = vector.shape_cast %443 : vector<8x1xi1> to vector<8x1xi1>
    %448 = vector.broadcast %447 : vector<8x1xi1> to vector<8x128xi1>
    %449 = arith.select %448, %436, %409 : vector<8x128xi1>, vector<8x128xf32>
    %cst_119 = arith.constant 0.000000e+00 : f32
    %450 = vector.shape_cast %443 : vector<8x1xi1> to vector<8x1xi1>
    %451 = vector.broadcast %450 : vector<8x1xi1> to vector<8x128xi1>
    %452 = vector.broadcast %cst_119 : f32 to vector<8x128xf32>
    %453 = arith.select %451, %438, %452 : vector<8x128xi1>, vector<8x128xf32>
    %454 = arith.index_cast %c10_i32 : i32 to index
    %c0_120 = arith.constant 0 : index
    %c0_121 = arith.constant 0 : index
    %455 = vector.load %arg8[%454, %c0_120, %c0_121] : memref<16x8x128xf32, #tpu.memory_space<vmem>>, vector<1x8x128xf32>
    %456 = vector.shape_cast %455 : vector<1x8x128xf32> to vector<8x128xf32>
    %457 = vector.shape_cast %453 : vector<8x128xf32> to vector<1x8x128xf32>
    tpu.vector_store %arg8[%454, %c0_120, %c0_121], %457 {strides = array<i32>} : memref<16x8x128xf32, #tpu.memory_space<vmem>>, vector<1x8x128xf32>,
    %c11_i32 = arith.constant 11 : i32
    %458 = arith.index_cast %c11_i32 : i32 to index
    %c0_122 = arith.constant 0 : index
    %c0_123 = arith.constant 0 : index
    %459 = vector.load %arg11[%458, %c0_122, %c0_123] : memref<16x8x512xf32, #tpu.memory_space<vmem>>, vector<1x8x512xf32>
    %460 = vector.shape_cast %459 : vector<1x8x512xf32> to vector<8x512xf32>
    %cst_124 = arith.constant dense<0.000000e+00> : vector<8x512xf32>
    %461 = tpu.matmul %446, %16, %cst_124 {dimension_numbers = #tpu.dot_dimension_numbers<[1], [0], [0], [1], [0, 0, 1, 1], [], []>} : vector<8x128xf32>, vector<128x512xf32>, vector<8x512xf32> -> vector<8x512xf32>
    %462 = arith.addf %460, %461 : vector<8x512xf32>
    %463 = vector.extract_strided_slice %462 {offsets = [0, 0], sizes = [8, 384], strides = [1, 1]} : vector<8x512xf32> to vector<8x384xf32>
    %464 = arith.negf %463 : vector<8x384xf32>
    %465 = math.exp %464 : vector<8x384xf32>
    %cst_125 = arith.constant 1.000000e+00 : f32
    %466 = vector.broadcast %cst_125 : f32 to vector<8x384xf32>
    %467 = arith.addf %466, %465 : vector<8x384xf32>
    %468 = arith.divf %466, %467 : vector<8x384xf32>
    %469 = vector.extract_strided_slice %462 {offsets = [0, 384], sizes = [8, 128], strides = [1, 1]} : vector<8x512xf32> to vector<8x128xf32>
    %470 = math.tanh %469 : vector<8x128xf32>
    %471 = vector.extract_strided_slice %468 {offsets = [0, 0], sizes = [8, 128], strides = [1, 1]} : vector<8x384xf32> to vector<8x128xf32>
    %472 = vector.extract_strided_slice %468 {offsets = [0, 128], sizes = [8, 128], strides = [1, 1]} : vector<8x384xf32> to vector<8x128xf32>
    %473 = vector.extract_strided_slice %468 {offsets = [0, 256], sizes = [8, 128], strides = [1, 1]} : vector<8x384xf32> to vector<8x128xf32>
    %474 = arith.mulf %472, %449 : vector<8x128xf32>
    %475 = arith.mulf %471, %470 : vector<8x128xf32>
    %476 = arith.addf %474, %475 : vector<8x128xf32>
    %477 = math.tanh %476 : vector<8x128xf32>
    %478 = arith.mulf %473, %477 : vector<8x128xf32>
    %479 = arith.index_cast %c11_i32 : i32 to index
    %c0_126 = arith.constant 0 : index
    %c0_127 = arith.constant 0 : index
    %480 = vector.load %arg2[%479, %c0_126, %c0_127] : memref<16x8x1xf32, #tpu.memory_space<vmem>>, vector<1x8x1xf32>
    %481 = vector.shape_cast %480 : vector<1x8x1xf32> to vector<8x1xf32>
    %cst_128 = arith.constant 0.000000e+00 : f32
    %482 = vector.broadcast %cst_128 : f32 to vector<8x1xf32>
    %483 = arith.cmpf ogt, %481, %482 : vector<8x1xf32>
    %484 = vector.shape_cast %483 : vector<8x1xi1> to vector<8x1xi1>
    %485 = vector.broadcast %484 : vector<8x1xi1> to vector<8x128xi1>
    %486 = arith.select %485, %478, %446 : vector<8x128xi1>, vector<8x128xf32>
    %487 = vector.shape_cast %483 : vector<8x1xi1> to vector<8x1xi1>
    %488 = vector.broadcast %487 : vector<8x1xi1> to vector<8x128xi1>
    %489 = arith.select %488, %476, %449 : vector<8x128xi1>, vector<8x128xf32>
    %cst_129 = arith.constant 0.000000e+00 : f32
    %490 = vector.shape_cast %483 : vector<8x1xi1> to vector<8x1xi1>
    %491 = vector.broadcast %490 : vector<8x1xi1> to vector<8x128xi1>
    %492 = vector.broadcast %cst_129 : f32 to vector<8x128xf32>
    %493 = arith.select %491, %478, %492 : vector<8x128xi1>, vector<8x128xf32>
    %494 = arith.index_cast %c11_i32 : i32 to index
    %c0_130 = arith.constant 0 : index
    %c0_131 = arith.constant 0 : index
    %495 = vector.load %arg8[%494, %c0_130, %c0_131] : memref<16x8x128xf32, #tpu.memory_space<vmem>>, vector<1x8x128xf32>
    %496 = vector.shape_cast %495 : vector<1x8x128xf32> to vector<8x128xf32>
    %497 = vector.shape_cast %493 : vector<8x128xf32> to vector<1x8x128xf32>
    tpu.vector_store %arg8[%494, %c0_130, %c0_131], %497 {strides = array<i32>} : memref<16x8x128xf32, #tpu.memory_space<vmem>>, vector<1x8x128xf32>,
    %c12_i32 = arith.constant 12 : i32
    %498 = arith.index_cast %c12_i32 : i32 to index
    %c0_132 = arith.constant 0 : index
    %c0_133 = arith.constant 0 : index
    %499 = vector.load %arg11[%498, %c0_132, %c0_133] : memref<16x8x512xf32, #tpu.memory_space<vmem>>, vector<1x8x512xf32>
    %500 = vector.shape_cast %499 : vector<1x8x512xf32> to vector<8x512xf32>
    %cst_134 = arith.constant dense<0.000000e+00> : vector<8x512xf32>
    %501 = tpu.matmul %486, %16, %cst_134 {dimension_numbers = #tpu.dot_dimension_numbers<[1], [0], [0], [1], [0, 0, 1, 1], [], []>} : vector<8x128xf32>, vector<128x512xf32>, vector<8x512xf32> -> vector<8x512xf32>
    %502 = arith.addf %500, %501 : vector<8x512xf32>
    %503 = vector.extract_strided_slice %502 {offsets = [0, 0], sizes = [8, 384], strides = [1, 1]} : vector<8x512xf32> to vector<8x384xf32>
    %504 = arith.negf %503 : vector<8x384xf32>
    %505 = math.exp %504 : vector<8x384xf32>
    %cst_135 = arith.constant 1.000000e+00 : f32
    %506 = vector.broadcast %cst_135 : f32 to vector<8x384xf32>
    %507 = arith.addf %506, %505 : vector<8x384xf32>
    %508 = arith.divf %506, %507 : vector<8x384xf32>
    %509 = vector.extract_strided_slice %502 {offsets = [0, 384], sizes = [8, 128], strides = [1, 1]} : vector<8x512xf32> to vector<8x128xf32>
    %510 = math.tanh %509 : vector<8x128xf32>
    %511 = vector.extract_strided_slice %508 {offsets = [0, 0], sizes = [8, 128], strides = [1, 1]} : vector<8x384xf32> to vector<8x128xf32>
    %512 = vector.extract_strided_slice %508 {offsets = [0, 128], sizes = [8, 128], strides = [1, 1]} : vector<8x384xf32> to vector<8x128xf32>
    %513 = vector.extract_strided_slice %508 {offsets = [0, 256], sizes = [8, 128], strides = [1, 1]} : vector<8x384xf32> to vector<8x128xf32>
    %514 = arith.mulf %512, %489 : vector<8x128xf32>
    %515 = arith.mulf %511, %510 : vector<8x128xf32>
    %516 = arith.addf %514, %515 : vector<8x128xf32>
    %517 = math.tanh %516 : vector<8x128xf32>
    %518 = arith.mulf %513, %517 : vector<8x128xf32>
    %519 = arith.index_cast %c12_i32 : i32 to index
    %c0_136 = arith.constant 0 : index
    %c0_137 = arith.constant 0 : index
    %520 = vector.load %arg2[%519, %c0_136, %c0_137] : memref<16x8x1xf32, #tpu.memory_space<vmem>>, vector<1x8x1xf32>
    %521 = vector.shape_cast %520 : vector<1x8x1xf32> to vector<8x1xf32>
    %cst_138 = arith.constant 0.000000e+00 : f32
    %522 = vector.broadcast %cst_138 : f32 to vector<8x1xf32>
    %523 = arith.cmpf ogt, %521, %522 : vector<8x1xf32>
    %524 = vector.shape_cast %523 : vector<8x1xi1> to vector<8x1xi1>
    %525 = vector.broadcast %524 : vector<8x1xi1> to vector<8x128xi1>
    %526 = arith.select %525, %518, %486 : vector<8x128xi1>, vector<8x128xf32>
    %527 = vector.shape_cast %523 : vector<8x1xi1> to vector<8x1xi1>
    %528 = vector.broadcast %527 : vector<8x1xi1> to vector<8x128xi1>
    %529 = arith.select %528, %516, %489 : vector<8x128xi1>, vector<8x128xf32>
    %cst_139 = arith.constant 0.000000e+00 : f32
    %530 = vector.shape_cast %523 : vector<8x1xi1> to vector<8x1xi1>
    %531 = vector.broadcast %530 : vector<8x1xi1> to vector<8x128xi1>
    %532 = vector.broadcast %cst_139 : f32 to vector<8x128xf32>
    %533 = arith.select %531, %518, %532 : vector<8x128xi1>, vector<8x128xf32>
    %534 = arith.index_cast %c12_i32 : i32 to index
    %c0_140 = arith.constant 0 : index
    %c0_141 = arith.constant 0 : index
    %535 = vector.load %arg8[%534, %c0_140, %c0_141] : memref<16x8x128xf32, #tpu.memory_space<vmem>>, vector<1x8x128xf32>
    %536 = vector.shape_cast %535 : vector<1x8x128xf32> to vector<8x128xf32>
    %537 = vector.shape_cast %533 : vector<8x128xf32> to vector<1x8x128xf32>
    tpu.vector_store %arg8[%534, %c0_140, %c0_141], %537 {strides = array<i32>} : memref<16x8x128xf32, #tpu.memory_space<vmem>>, vector<1x8x128xf32>,
    %c13_i32 = arith.constant 13 : i32
    %538 = arith.index_cast %c13_i32 : i32 to index
    %c0_142 = arith.constant 0 : index
    %c0_143 = arith.constant 0 : index
    %539 = vector.load %arg11[%538, %c0_142, %c0_143] : memref<16x8x512xf32, #tpu.memory_space<vmem>>, vector<1x8x512xf32>
    %540 = vector.shape_cast %539 : vector<1x8x512xf32> to vector<8x512xf32>
    %cst_144 = arith.constant dense<0.000000e+00> : vector<8x512xf32>
    %541 = tpu.matmul %526, %16, %cst_144 {dimension_numbers = #tpu.dot_dimension_numbers<[1], [0], [0], [1], [0, 0, 1, 1], [], []>} : vector<8x128xf32>, vector<128x512xf32>, vector<8x512xf32> -> vector<8x512xf32>
    %542 = arith.addf %540, %541 : vector<8x512xf32>
    %543 = vector.extract_strided_slice %542 {offsets = [0, 0], sizes = [8, 384], strides = [1, 1]} : vector<8x512xf32> to vector<8x384xf32>
    %544 = arith.negf %543 : vector<8x384xf32>
    %545 = math.exp %544 : vector<8x384xf32>
    %cst_145 = arith.constant 1.000000e+00 : f32
    %546 = vector.broadcast %cst_145 : f32 to vector<8x384xf32>
    %547 = arith.addf %546, %545 : vector<8x384xf32>
    %548 = arith.divf %546, %547 : vector<8x384xf32>
    %549 = vector.extract_strided_slice %542 {offsets = [0, 384], sizes = [8, 128], strides = [1, 1]} : vector<8x512xf32> to vector<8x128xf32>
    %550 = math.tanh %549 : vector<8x128xf32>
    %551 = vector.extract_strided_slice %548 {offsets = [0, 0], sizes = [8, 128], strides = [1, 1]} : vector<8x384xf32> to vector<8x128xf32>
    %552 = vector.extract_strided_slice %548 {offsets = [0, 128], sizes = [8, 128], strides = [1, 1]} : vector<8x384xf32> to vector<8x128xf32>
    %553 = vector.extract_strided_slice %548 {offsets = [0, 256], sizes = [8, 128], strides = [1, 1]} : vector<8x384xf32> to vector<8x128xf32>
    %554 = arith.mulf %552, %529 : vector<8x128xf32>
    %555 = arith.mulf %551, %550 : vector<8x128xf32>
    %556 = arith.addf %554, %555 : vector<8x128xf32>
    %557 = math.tanh %556 : vector<8x128xf32>
    %558 = arith.mulf %553, %557 : vector<8x128xf32>
    %559 = arith.index_cast %c13_i32 : i32 to index
    %c0_146 = arith.constant 0 : index
    %c0_147 = arith.constant 0 : index
    %560 = vector.load %arg2[%559, %c0_146, %c0_147] : memref<16x8x1xf32, #tpu.memory_space<vmem>>, vector<1x8x1xf32>
    %561 = vector.shape_cast %560 : vector<1x8x1xf32> to vector<8x1xf32>
    %cst_148 = arith.constant 0.000000e+00 : f32
    %562 = vector.broadcast %cst_148 : f32 to vector<8x1xf32>
    %563 = arith.cmpf ogt, %561, %562 : vector<8x1xf32>
    %564 = vector.shape_cast %563 : vector<8x1xi1> to vector<8x1xi1>
    %565 = vector.broadcast %564 : vector<8x1xi1> to vector<8x128xi1>
    %566 = arith.select %565, %558, %526 : vector<8x128xi1>, vector<8x128xf32>
    %567 = vector.shape_cast %563 : vector<8x1xi1> to vector<8x1xi1>
    %568 = vector.broadcast %567 : vector<8x1xi1> to vector<8x128xi1>
    %569 = arith.select %568, %556, %529 : vector<8x128xi1>, vector<8x128xf32>
    %cst_149 = arith.constant 0.000000e+00 : f32
    %570 = vector.shape_cast %563 : vector<8x1xi1> to vector<8x1xi1>
    %571 = vector.broadcast %570 : vector<8x1xi1> to vector<8x128xi1>
    %572 = vector.broadcast %cst_149 : f32 to vector<8x128xf32>
    %573 = arith.select %571, %558, %572 : vector<8x128xi1>, vector<8x128xf32>
    %574 = arith.index_cast %c13_i32 : i32 to index
    %c0_150 = arith.constant 0 : index
    %c0_151 = arith.constant 0 : index
    %575 = vector.load %arg8[%574, %c0_150, %c0_151] : memref<16x8x128xf32, #tpu.memory_space<vmem>>, vector<1x8x128xf32>
    %576 = vector.shape_cast %575 : vector<1x8x128xf32> to vector<8x128xf32>
    %577 = vector.shape_cast %573 : vector<8x128xf32> to vector<1x8x128xf32>
    tpu.vector_store %arg8[%574, %c0_150, %c0_151], %577 {strides = array<i32>} : memref<16x8x128xf32, #tpu.memory_space<vmem>>, vector<1x8x128xf32>,
    %c14_i32 = arith.constant 14 : i32
    %578 = arith.index_cast %c14_i32 : i32 to index
    %c0_152 = arith.constant 0 : index
    %c0_153 = arith.constant 0 : index
    %579 = vector.load %arg11[%578, %c0_152, %c0_153] : memref<16x8x512xf32, #tpu.memory_space<vmem>>, vector<1x8x512xf32>
    %580 = vector.shape_cast %579 : vector<1x8x512xf32> to vector<8x512xf32>
    %cst_154 = arith.constant dense<0.000000e+00> : vector<8x512xf32>
    %581 = tpu.matmul %566, %16, %cst_154 {dimension_numbers = #tpu.dot_dimension_numbers<[1], [0], [0], [1], [0, 0, 1, 1], [], []>} : vector<8x128xf32>, vector<128x512xf32>, vector<8x512xf32> -> vector<8x512xf32>
    %582 = arith.addf %580, %581 : vector<8x512xf32>
    %583 = vector.extract_strided_slice %582 {offsets = [0, 0], sizes = [8, 384], strides = [1, 1]} : vector<8x512xf32> to vector<8x384xf32>
    %584 = arith.negf %583 : vector<8x384xf32>
    %585 = math.exp %584 : vector<8x384xf32>
    %cst_155 = arith.constant 1.000000e+00 : f32
    %586 = vector.broadcast %cst_155 : f32 to vector<8x384xf32>
    %587 = arith.addf %586, %585 : vector<8x384xf32>
    %588 = arith.divf %586, %587 : vector<8x384xf32>
    %589 = vector.extract_strided_slice %582 {offsets = [0, 384], sizes = [8, 128], strides = [1, 1]} : vector<8x512xf32> to vector<8x128xf32>
    %590 = math.tanh %589 : vector<8x128xf32>
    %591 = vector.extract_strided_slice %588 {offsets = [0, 0], sizes = [8, 128], strides = [1, 1]} : vector<8x384xf32> to vector<8x128xf32>
    %592 = vector.extract_strided_slice %588 {offsets = [0, 128], sizes = [8, 128], strides = [1, 1]} : vector<8x384xf32> to vector<8x128xf32>
    %593 = vector.extract_strided_slice %588 {offsets = [0, 256], sizes = [8, 128], strides = [1, 1]} : vector<8x384xf32> to vector<8x128xf32>
    %594 = arith.mulf %592, %569 : vector<8x128xf32>
    %595 = arith.mulf %591, %590 : vector<8x128xf32>
    %596 = arith.addf %594, %595 : vector<8x128xf32>
    %597 = math.tanh %596 : vector<8x128xf32>
    %598 = arith.mulf %593, %597 : vector<8x128xf32>
    %599 = arith.index_cast %c14_i32 : i32 to index
    %c0_156 = arith.constant 0 : index
    %c0_157 = arith.constant 0 : index
    %600 = vector.load %arg2[%599, %c0_156, %c0_157] : memref<16x8x1xf32, #tpu.memory_space<vmem>>, vector<1x8x1xf32>
    %601 = vector.shape_cast %600 : vector<1x8x1xf32> to vector<8x1xf32>
    %cst_158 = arith.constant 0.000000e+00 : f32
    %602 = vector.broadcast %cst_158 : f32 to vector<8x1xf32>
    %603 = arith.cmpf ogt, %601, %602 : vector<8x1xf32>
    %604 = vector.shape_cast %603 : vector<8x1xi1> to vector<8x1xi1>
    %605 = vector.broadcast %604 : vector<8x1xi1> to vector<8x128xi1>
    %606 = arith.select %605, %598, %566 : vector<8x128xi1>, vector<8x128xf32>
    %607 = vector.shape_cast %603 : vector<8x1xi1> to vector<8x1xi1>
    %608 = vector.broadcast %607 : vector<8x1xi1> to vector<8x128xi1>
    %609 = arith.select %608, %596, %569 : vector<8x128xi1>, vector<8x128xf32>
    %cst_159 = arith.constant 0.000000e+00 : f32
    %610 = vector.shape_cast %603 : vector<8x1xi1> to vector<8x1xi1>
    %611 = vector.broadcast %610 : vector<8x1xi1> to vector<8x128xi1>
    %612 = vector.broadcast %cst_159 : f32 to vector<8x128xf32>
    %613 = arith.select %611, %598, %612 : vector<8x128xi1>, vector<8x128xf32>
    %614 = arith.index_cast %c14_i32 : i32 to index
    %c0_160 = arith.constant 0 : index
    %c0_161 = arith.constant 0 : index
    %615 = vector.load %arg8[%614, %c0_160, %c0_161] : memref<16x8x128xf32, #tpu.memory_space<vmem>>, vector<1x8x128xf32>
    %616 = vector.shape_cast %615 : vector<1x8x128xf32> to vector<8x128xf32>
    %617 = vector.shape_cast %613 : vector<8x128xf32> to vector<1x8x128xf32>
    tpu.vector_store %arg8[%614, %c0_160, %c0_161], %617 {strides = array<i32>} : memref<16x8x128xf32, #tpu.memory_space<vmem>>, vector<1x8x128xf32>,
    %c15_i32 = arith.constant 15 : i32
    %618 = arith.index_cast %c15_i32 : i32 to index
    %c0_162 = arith.constant 0 : index
    %c0_163 = arith.constant 0 : index
    %619 = vector.load %arg11[%618, %c0_162, %c0_163] : memref<16x8x512xf32, #tpu.memory_space<vmem>>, vector<1x8x512xf32>
    %620 = vector.shape_cast %619 : vector<1x8x512xf32> to vector<8x512xf32>
    %cst_164 = arith.constant dense<0.000000e+00> : vector<8x512xf32>
    %621 = tpu.matmul %606, %16, %cst_164 {dimension_numbers = #tpu.dot_dimension_numbers<[1], [0], [0], [1], [0, 0, 1, 1], [], []>} : vector<8x128xf32>, vector<128x512xf32>, vector<8x512xf32> -> vector<8x512xf32>
    %622 = arith.addf %620, %621 : vector<8x512xf32>
    %623 = vector.extract_strided_slice %622 {offsets = [0, 0], sizes = [8, 384], strides = [1, 1]} : vector<8x512xf32> to vector<8x384xf32>
    %624 = arith.negf %623 : vector<8x384xf32>
    %625 = math.exp %624 : vector<8x384xf32>
    %cst_165 = arith.constant 1.000000e+00 : f32
    %626 = vector.broadcast %cst_165 : f32 to vector<8x384xf32>
    %627 = arith.addf %626, %625 : vector<8x384xf32>
    %628 = arith.divf %626, %627 : vector<8x384xf32>
    %629 = vector.extract_strided_slice %622 {offsets = [0, 384], sizes = [8, 128], strides = [1, 1]} : vector<8x512xf32> to vector<8x128xf32>
    %630 = math.tanh %629 : vector<8x128xf32>
    %631 = vector.extract_strided_slice %628 {offsets = [0, 0], sizes = [8, 128], strides = [1, 1]} : vector<8x384xf32> to vector<8x128xf32>
    %632 = vector.extract_strided_slice %628 {offsets = [0, 128], sizes = [8, 128], strides = [1, 1]} : vector<8x384xf32> to vector<8x128xf32>
    %633 = vector.extract_strided_slice %628 {offsets = [0, 256], sizes = [8, 128], strides = [1, 1]} : vector<8x384xf32> to vector<8x128xf32>
    %634 = arith.mulf %632, %609 : vector<8x128xf32>
    %635 = arith.mulf %631, %630 : vector<8x128xf32>
    %636 = arith.addf %634, %635 : vector<8x128xf32>
    %637 = math.tanh %636 : vector<8x128xf32>
    %638 = arith.mulf %633, %637 : vector<8x128xf32>
    %639 = arith.index_cast %c15_i32 : i32 to index
    %c0_166 = arith.constant 0 : index
    %c0_167 = arith.constant 0 : index
    %640 = vector.load %arg2[%639, %c0_166, %c0_167] : memref<16x8x1xf32, #tpu.memory_space<vmem>>, vector<1x8x1xf32>
    %641 = vector.shape_cast %640 : vector<1x8x1xf32> to vector<8x1xf32>
    %cst_168 = arith.constant 0.000000e+00 : f32
    %642 = vector.broadcast %cst_168 : f32 to vector<8x1xf32>
    %643 = arith.cmpf ogt, %641, %642 : vector<8x1xf32>
    %644 = vector.shape_cast %643 : vector<8x1xi1> to vector<8x1xi1>
    %645 = vector.broadcast %644 : vector<8x1xi1> to vector<8x128xi1>
    %646 = arith.select %645, %638, %606 : vector<8x128xi1>, vector<8x128xf32>
    %647 = vector.shape_cast %643 : vector<8x1xi1> to vector<8x1xi1>
    %648 = vector.broadcast %647 : vector<8x1xi1> to vector<8x128xi1>
    %649 = arith.select %648, %636, %609 : vector<8x128xi1>, vector<8x128xf32>
    %cst_169 = arith.constant 0.000000e+00 : f32
    %650 = vector.shape_cast %643 : vector<8x1xi1> to vector<8x1xi1>
    %651 = vector.broadcast %650 : vector<8x1xi1> to vector<8x128xi1>
    %652 = vector.broadcast %cst_169 : f32 to vector<8x128xf32>
    %653 = arith.select %651, %638, %652 : vector<8x128xi1>, vector<8x128xf32>
    %654 = arith.index_cast %c15_i32 : i32 to index
    %c0_170 = arith.constant 0 : index
    %c0_171 = arith.constant 0 : index
    %655 = vector.load %arg8[%654, %c0_170, %c0_171] : memref<16x8x128xf32, #tpu.memory_space<vmem>>, vector<1x8x128xf32>
    %656 = vector.shape_cast %655 : vector<1x8x128xf32> to vector<8x128xf32>
    %657 = vector.shape_cast %653 : vector<8x128xf32> to vector<1x8x128xf32>
    tpu.vector_store %arg8[%654, %c0_170, %c0_171], %657 {strides = array<i32>} : memref<16x8x128xf32, #tpu.memory_space<vmem>>, vector<1x8x128xf32>,
    %c16_i32 = arith.constant 16 : i32
    %c0_172 = arith.constant 0 : index
    %c0_173 = arith.constant 0 : index
    %658 = vector.load %arg6[%c0_172, %c0_173] : memref<128x128xf32, #tpu.memory_space<vmem>>, vector<128x128xf32>
    %cst_174 = arith.constant dense<0.000000e+00> : vector<8x128xf32>
    %659 = tpu.matmul %646, %658, %cst_174 {dimension_numbers = #tpu.dot_dimension_numbers<[1], [0], [0], [1], [0, 0, 1, 1], [], []>} : vector<8x128xf32>, vector<128x128xf32>, vector<8x128xf32> -> vector<8x128xf32>
    %c0_175 = arith.constant 0 : index
    %c0_176 = arith.constant 0 : index
    %660 = vector.load %arg7[%c0_175, %c0_176] : memref<1x128xf32, #tpu.memory_space<vmem>>, vector<1x128xf32>
    %661 = vector.broadcast %660 : vector<1x128xf32> to vector<8x128xf32>
    %662 = arith.addf %659, %661 : vector<8x128xf32>
    %663 = math.tanh %662 : vector<8x128xf32>
    %c0_177 = arith.constant 0 : index
    %c0_178 = arith.constant 0 : index
    %664 = vector.load %arg9[%c0_177, %c0_178] : memref<8x128xf32, #tpu.memory_space<vmem>>, vector<8x128xf32>
    tpu.vector_store %arg9[%c0_177, %c0_178], %663 {strides = array<i32>} : memref<8x128xf32, #tpu.memory_space<vmem>>, vector<8x128xf32>,
    %c0_179 = arith.constant 0 : index
    %c0_180 = arith.constant 0 : index
    %665 = vector.load %arg10[%c0_179, %c0_180] : memref<8x128xf32, #tpu.memory_space<vmem>>, vector<8x128xf32>
    tpu.vector_store %arg10[%c0_179, %c0_180], %649 {strides = array<i32>} : memref<8x128xf32, #tpu.memory_space<vmem>>, vector<8x128xf32>,
    return
  }
  func.func @transform_0(%arg0: i32) -> (i32, i32, i32) {
    %c0_i32 = arith.constant 0 : i32
    %c0_i32_0 = arith.constant 0 : i32
    %c0_i32_1 = arith.constant 0 : i32
    return %c0_i32, %arg0, %c0_i32_0 : i32, i32, i32
  }
  func.func @transform_1(%arg0: i32) -> (i32, i32, i32) {
    %c0_i32 = arith.constant 0 : i32
    %c0_i32_0 = arith.constant 0 : i32
    %c0_i32_1 = arith.constant 0 : i32
    return %c0_i32, %arg0, %c0_i32_0 : i32, i32, i32
  }
  func.func @transform_2(%arg0: i32) -> (i32, i32) {
    %c0_i32 = arith.constant 0 : i32
    %c0_i32_0 = arith.constant 0 : i32
    %c0_i32_1 = arith.constant 0 : i32
    return %c0_i32, %c0_i32_0 : i32, i32
  }
  func.func @transform_3(%arg0: i32) -> (i32, i32) {
    %c0_i32 = arith.constant 0 : i32
    %c0_i32_0 = arith.constant 0 : i32
    %c0_i32_1 = arith.constant 0 : i32
    return %c0_i32, %c0_i32_0 : i32, i32
  }
  func.func @transform_4(%arg0: i32) -> (i32, i32) {
    %c0_i32 = arith.constant 0 : i32
    %c0_i32_0 = arith.constant 0 : i32
    %c0_i32_1 = arith.constant 0 : i32
    return %c0_i32, %c0_i32_0 : i32, i32
  }
  func.func @transform_5(%arg0: i32) -> (i32, i32) {
    %c0_i32 = arith.constant 0 : i32
    %c0_i32_0 = arith.constant 0 : i32
    %c0_i32_1 = arith.constant 0 : i32
    return %c0_i32, %c0_i32_0 : i32, i32
  }
  func.func @transform_6(%arg0: i32) -> (i32, i32) {
    %c0_i32 = arith.constant 0 : i32
    %c0_i32_0 = arith.constant 0 : i32
    %c0_i32_1 = arith.constant 0 : i32
    return %c0_i32, %c0_i32_0 : i32, i32
  }
  func.func @transform_7(%arg0: i32) -> (i32, i32, i32) {
    %c0_i32 = arith.constant 0 : i32
    %c0_i32_0 = arith.constant 0 : i32
    %c0_i32_1 = arith.constant 0 : i32
    return %c0_i32, %arg0, %c0_i32_0 : i32, i32, i32
  }
  func.func @transform_8(%arg0: i32) -> (i32, i32) {
    %c0_i32 = arith.constant 0 : i32
    %c0_i32_0 = arith.constant 0 : i32
    return %arg0, %c0_i32 : i32, i32
  }
  func.func @transform_9(%arg0: i32) -> (i32, i32) {
    %c0_i32 = arith.constant 0 : i32
    %c0_i32_0 = arith.constant 0 : i32
    return %arg0, %c0_i32 : i32, i32
  }
}

</mosaic_0001>

<bundles_post_ra>
// kernel: encoder_lstm.1
= control target key start
LH: loop header
LB: loop body
LE: loop exit
PB: predicated region body
PF: predicated region fallthrough
CT: control target
= control target key end

     0   :  { %15 = vsyncpa [#allocation4], 0  ;;  %v4295_v3 = vmov 0   ;;  %s7611_s0 = inlined_call_operand.vmem [shape: s32[16,8,1], index: 0, kind: input, shape index: {}]   ;;  %s7612_s1 = inlined_call_operand.vmem [shape: f32[16,8,1], index: 1, kind: input, shape index: {}]   ;;  %s7613_s2 = inlined_call_operand.vmem [shape: bf16[128,512], index: 2, kind: input, shape index: {}]   ;;  %s7614_s3 = inlined_call_operand.vmem [shape: f32[128,512], index: 3, kind: input, shape index: {}]   ;;  %s7615_s4 = inlined_call_operand.vmem [shape: f32[1,512], index: 4, kind: input, shape index: {}]   ;;  %s7616_s5 = inlined_call_operand.vmem [shape: f32[128,128], index: 5, kind: input, shape index: {}]   ;;  %s7617_s6 = inlined_call_operand.vmem [shape: f32[1,128], index: 6, kind: input, shape index: {}]   ;;  %s7618_s7 = inlined_call_operand.vmem [shape: f32[16,8,128], index: 7, kind: output, shape index: {0}]   ;;  %s7619_s8 = inlined_call_operand.hbm [shape: f32[8,128], index: 8, kind: output, shape index: {1}]   ;;  %s7620_s9 = inlined_call_operand.hbm [shape: f32[8,128], index: 9, kind: output, shape index: {2}]  }
   0x1   :  { %v37_v0 = vld [vmem:[%s7611_s0 + $0x20] sm:$0xff]  ;;  %v35_v1 = vld [vmem:[%s7611_s0 + $0x10] sm:$0xff]  ;;  %3778 = vset.pattern.permute.xlu2 %v4295_v3  ;;  %3777 = vset.pattern.permute.xlu1 %v4295_v3 }
   0x2   :  { %v33_v2 = vld [vmem:[%s7611_s0] sm:$0xff]  ;;  %3776 = vset.pattern.permute.xlu0 %v4295_v3  ;;  %62 = vperm.xlu2 %3778, %v37_v0  }
   0x3   :  { %56 = vperm.xlu1 %3777, %v35_v1   ;;  %50 = vperm.xlu0 %3776, %v33_v2  }
   0x4   :  { %16 = vsyncpa [#allocation6], 0  ;;  %v38_v4 = vld [vmem:[%s7611_s0 + $0x28] sm:$0xff]  ;;  %v36_v5 = vld [vmem:[%s7611_s0 + $0x18] sm:$0xff]  ;;  %s4298_s30 = smov [#allocation3]   ;;  %s3487_s12 = sshll.u32 %s7619_s8, 4  ;;  %s3488_s12 = int_to_ptr.hbm [resolvable:$true] %s3487_s12 }
   0x5   :  { %v34_v6 = vld [vmem:[%s7611_s0 + $0x8] sm:$0xff]  ;;  %v41_v7 = vld [vmem:[%s7611_s0 + $0x40] sm:$0xff]  ;;  %v40_v8 = vld [vmem:[%s7611_s0 + $0x38] sm:$0xff]  ;;  %s3485_s10 = sshll.u32 %s4298_s30, 4  ;;  %s3486_s10 = int_to_ptr.vmem [resolvable:$true] %s3485_s10 }
   0x6   :  { %v39_v9 = vld [vmem:[%s7611_s0 + $0x30] sm:$0xff]  ;;  %v44_v10 = vld [vmem:[%s7611_s0 + $0x58] sm:$0xff]  ;;  %v42_v12 = vld [vmem:[%s7611_s0 + $0x48] sm:$0xff] }
   0x7   :  { %v43_v11 = vld [vmem:[%s7611_s0 + $0x50] sm:$0xff]  ;;  %v46_v14 = vld [vmem:[%s7611_s0 + $0x68] sm:$0xff]  ;;  %v45_v15 = vld [vmem:[%s7611_s0 + $0x60] sm:$0xff] }
   0x8   :  { %v47_v13 = vld [vmem:[%s7611_s0 + $0x70] sm:$0xff]  ;;  %v3668_v16 = vld [vmem:[%s7612_s1 + $0x8] sm:$0xff]  ;;  %v950_v17 = vld [vmem:[%s7612_s1] sm:$0xff] }
   0x9   :  { %vm1114_vm0 = vcmp.gt.f32.partialorder %v3668_v16, 0.0  ;;  %vm951_vm1 = vcmp.gt.f32.partialorder %v950_v17, 0.0  ;;  %v48_v20 = vld [vmem:[%s7611_s0 + $0x78] sm:$0xff]  ;;  %v3683_v21 = vld [vmem:[%s7612_s1 + $0x20] sm:$0xff]  ;;  %v3673_v23 = vld [vmem:[%s7612_s1 + $0x10] sm:$0xff] }
   0xa   :  { %65 = vperm.xlu2 %3778, %v38_v4   ;;  %v1115_v18 = vsel %vm1114_vm0, 1, %v4295_v3  ;;  %v952_v19 = vsel %vm951_vm1, 1, %v4295_v3  ;;  %v3678_v22 = vld [vmem:[%s7612_s1 + $0x18] sm:$0xff]  ;;  %vm1609_vm2 = vcmp.gt.f32.partialorder %v3683_v21, 0.0  ;;  %vm1279_vm4 = vcmp.gt.f32.partialorder %v3673_v23, 0.0  ;;  %v3693_v28 = vld [vmem:[%s7612_s1 + $0x30] sm:$0xff] }
   0xb   :  { %59 = vperm.xlu1 %3777, %v36_v5   ;;  %53 = vperm.xlu0 %3776, %v34_v6   ;;  %vm1444_vm3 = vcmp.gt.f32.partialorder %v3678_v22, 0.0  ;;  %v1610_v24 = vsel %vm1609_vm2, 1, %v4295_v3  ;;  %v1280_v26 = vsel %vm1279_vm4, 1, %v4295_v3  ;;  %v3698_v27 = vld [vmem:[%s7612_s1 + $0x38] sm:$0xff]  ;;  %v3688_v29 = vld [vmem:[%s7612_s1 + $0x28] sm:$0xff]  ;;  %vm1939_vm6 = vcmp.gt.f32.partialorder %v3693_v28, 0.0 }
   0xc   :  { %v1445_v25 = vsel %vm1444_vm3, 1, %v4295_v3  ;;  %vm2104_vm5 = vcmp.gt.f32.partialorder %v3698_v27, 0.0  ;;  %vm1774_vm7 = vcmp.gt.f32.partialorder %v3688_v29, 0.0  ;;  %v1940_v31 = vsel %vm1939_vm6, 1, %v4295_v3  ;;  %v3713_v33 = vld [vmem:[%s7612_s1 + $0x50] sm:$0xff]  ;;  %v3708_v34 = vld [vmem:[%s7612_s1 + $0x48] sm:$0xff] }
   0xd   :  { %v2105_v30 = vsel %vm2104_vm5, 1, %v4295_v3  ;;  %v1775_v32 = vsel %vm1774_vm7, 1, %v4295_v3  ;;  %v3703_v35 = vld [vmem:[%s7612_s1 + $0x40] sm:$0xff]  ;;  %vm2599_vm8 = vcmp.gt.f32.partialorder %v3713_v33, 0.0  ;;  %vm2434_vm9 = vcmp.gt.f32.partialorder %v3708_v34, 0.0  ;;  %v3728_v39 = vld [vmem:[%s7612_s1 + $0x68] sm:$0xff] }
   0xe   :  { %vm2269_vm10 = vcmp.gt.f32.partialorder %v3703_v35, 0.0  ;;  %v2600_v36 = vsel %vm2599_vm8, 1, %v4295_v3  ;;  %v2435_v37 = vsel %vm2434_vm9, 1, %v4295_v3  ;;  %v3723_v40 = vld [vmem:[%s7612_s1 + $0x60] sm:$0xff]  ;;  %v3718_v41 = vld [vmem:[%s7612_s1 + $0x58] sm:$0xff]  ;;  %vm3094_vm11 = vcmp.gt.f32.partialorder %v3728_v39, 0.0 }
   0xf   :  { %v2270_v38 = vsel %vm2269_vm10, 1, %v4295_v3  ;;  %vm2929_vm12 = vcmp.gt.f32.partialorder %v3723_v40, 0.0  ;;  %vm2764_vm13 = vcmp.gt.f32.partialorder %v3718_v41, 0.0  ;;  %v3644_v42 = vld [vmem:[%s7613_s2 + $0xe0] sm:$0xf]  ;;  %v3095_v53 = vsel %vm3094_vm11, 1, %v4295_v3 }
  0x10   :  { %v3770_v43 = vld [vmem:[%s7613_s2 + $0xec] sm:$0xf0]  ;;  %v3768_v44 = vld [vmem:[%s7613_s2 + $0xe4] sm:$0xf]  ;;  %v3646_v46 = vld [vmem:[%s7613_s2 + $0xf0] sm:$0xf0] }
  0x11   :  { %v3645_v45 = vor.u32 %v3770_v43, %v3644_v42  ;;  %v3652_v47 = vld [vmem:[%s7613_s2 + $0xe8] sm:$0xf]  ;;  %v3771_v48 = vld [vmem:[%s7613_s2 + $0xf4] sm:$0xf0]  ;;  %v3649_v49 = vor.u32 %v3768_v44, %v3646_v46  ;;  %v3769_v51 = vld [vmem:[%s7613_s2 + $0xec] sm:$0xf] }
  0x12   :  { %74 = vperm.xlu2 %3778, %v41_v7   ;;  %v3653_v50 = vor.u32 %v3771_v48, %v3652_v47  ;;  %v3654_v52 = vld [vmem:[%s7613_s2 + $0xf8] sm:$0xf0]  ;;  %v2930_v54 = vsel %vm2929_vm12, 1, %v4295_v3  ;;  %v2765_v55 = vsel %vm2764_vm13, 1, %v4295_v3  ;;  %v3733_v57 = vld [vmem:[%s7612_s1 + $0x70] sm:$0xff] }
  0x13   :  { %71 = vperm.xlu1 %3777, %v40_v8   ;;  %68 = vperm.xlu0 %3776, %v39_v9   ;;  %v3738_v56 = vld [vmem:[%s7612_s1 + $0x78] sm:$0xff]  ;;  %v3657_v58 = vor.u32 %v3769_v51, %v3654_v52  ;;  %v3628_v59 = vld [vmem:[%s7613_s2 + $0xc0] sm:$0xf]  ;;  %v3766_v60 = vld [vmem:[%s7613_s2 + $0xcc] sm:$0xf0]  ;;  %vm3259_vm15 = vcmp.gt.f32.partialorder %v3733_v57, 0.0 }
  0x14   :  { %401 = vmatpush.bf16.msra.mxu0 %v3645_v45  ;;  %450 = vmatpush.bf16.msra.mxu1 %v3649_v49  ;;  %v3764_v61 = vld [vmem:[%s7613_s2 + $0xc4] sm:$0xf]  ;;  %v3629_v62 = vor.u32 %v3766_v60, %v3628_v59  ;;  %v3630_v63 = vld [vmem:[%s7613_s2 + $0xd0] sm:$0xf0]  ;;  %v3636_v0 = vld [vmem:[%s7613_s2 + $0xc8] sm:$0xf] }
  0x15   :  { %499 = vmatpush.bf16.msra.mxu2 %v3653_v50  ;;  %548 = vmatpush.bf16.msra.mxu3 %v3657_v58  ;;  %v3767_v1 = vld [vmem:[%s7613_s2 + $0xd4] sm:$0xf0]  ;;  %v3633_v2 = vor.u32 %v3764_v61, %v3630_v63  ;;  %v3765_v5 = vld [vmem:[%s7613_s2 + $0xcc] sm:$0xf]  ;;  %v3638_v6 = vld [vmem:[%s7613_s2 + $0xd8] sm:$0xf0] }
  0x16   :  { %v3637_v4 = vor.u32 %v3767_v1, %v3636_v0  ;;  %vm3424_vm14 = vcmp.gt.f32.partialorder %v3738_v56, 0.0  ;;  %v3641_v7 = vor.u32 %v3765_v5, %v3638_v6  ;;  %v3612_v8 = vld [vmem:[%s7613_s2 + $0xa0] sm:$0xf]  ;;  %v3762_v9 = vld [vmem:[%s7613_s2 + $0xac] sm:$0xf0] }
  0x17   :  { %v3761_v17 = vld [vmem:[%s7613_s2 + $0xac] sm:$0xf]  ;;  %v3596_v22 = vld [vmem:[%s7613_s2 + $0x80] sm:$0xf]  ;;  %v3758_v23 = vld [vmem:[%s7613_s2 + $0x8c] sm:$0xf0] }
  0x18   :  { %402 = vmatpush.bf16.msra.mxu0 %v3629_v62  ;;  %451 = vmatpush.bf16.msra.mxu1 %v3633_v2  ;;  %v3759_v27 = vld [vmem:[%s7613_s2 + $0x94] sm:$0xf0]  ;;  %v3580_v33 = vld [vmem:[%s7613_s2 + $0x60] sm:$0xf]  ;;  %v3754_v34 = vld [vmem:[%s7613_s2 + $0x6c] sm:$0xf0] }
  0x19   :  { %500 = vmatpush.bf16.msra.mxu2 %v3637_v4  ;;  %549 = vmatpush.bf16.msra.mxu3 %v3641_v7  ;;  %v3752_v35 = vld [vmem:[%s7613_s2 + $0x64] sm:$0xf]  ;;  %v3755_v39 = vld [vmem:[%s7613_s2 + $0x74] sm:$0xf0]  ;;  %v3753_v42 = vld [vmem:[%s7613_s2 + $0x6c] sm:$0xf] }
  0x1a   :  { %83 = vperm.xlu2 %3778, %v44_v10   ;;  %v3760_v10 = vld [vmem:[%s7613_s2 + $0xa4] sm:$0xf]  ;;  %v3590_v43 = vld [vmem:[%s7613_s2 + $0x78] sm:$0xf0]  ;;  %v3564_v45 = vld [vmem:[%s7613_s2 + $0x40] sm:$0xf] }
  0x1b   :  { %80 = vperm.xlu1 %3777, %v43_v11   ;;  %77 = vperm.xlu0 %3776, %v42_v12   ;;  %v3613_v11 = vor.u32 %v3762_v9, %v3612_v8  ;;  %v3614_v12 = vld [vmem:[%s7613_s2 + $0xb0] sm:$0xf0]  ;;  %v3593_v44 = vor.u32 %v3753_v42, %v3590_v43  ;;  %v3750_v46 = vld [vmem:[%s7613_s2 + $0x4c] sm:$0xf0]  ;;  %v3748_v47 = vld [vmem:[%s7613_s2 + $0x44] sm:$0xf] }
  0x1c   :  { %v3565_v48 = vor.u32 %v3750_v46, %v3564_v45  ;;  %v3566_v49 = vld [vmem:[%s7613_s2 + $0x50] sm:$0xf0]  ;;  %v3572_v50 = vld [vmem:[%s7613_s2 + $0x48] sm:$0xf]  ;;  %v3751_v51 = vld [vmem:[%s7613_s2 + $0x54] sm:$0xf0] }
  0x1d   :  { %403 = vmatpush.bf16.msra.mxu0 %v3613_v11  ;;  %v3569_v52 = vor.u32 %v3748_v47, %v3566_v49  ;;  %v3548_v57 = vld [vmem:[%s7613_s2 + $0x20] sm:$0xf]  ;;  %v3746_v58 = vld [vmem:[%s7613_s2 + $0x2c] sm:$0xf0]  ;;  %v3744_v59 = vld [vmem:[%s7613_s2 + $0x24] sm:$0xf] }
  0x1e   :  { %v3549_v60 = vor.u32 %v3746_v58, %v3548_v57  ;;  %v3550_v61 = vld [vmem:[%s7613_s2 + $0x30] sm:$0xf0]  ;;  %v3556_v62 = vld [vmem:[%s7613_s2 + $0x28] sm:$0xf]  ;;  %v3747_v63 = vld [vmem:[%s7613_s2 + $0x34] sm:$0xf0] }
  0x1f   :  { %v3553_v0 = vor.u32 %v3744_v59, %v3550_v61  ;;  %v3557_v1 = vor.u32 %v3747_v63, %v3556_v62  ;;  %v3745_v2 = vld [vmem:[%s7613_s2 + $0x2c] sm:$0xf]  ;;  %v3558_v4 = vld [vmem:[%s7613_s2 + $0x38] sm:$0xf0]  ;;  %v3532_v6 = vld [vmem:[%s7613_s2] sm:$0xf] }
  0x20   :  { %v3561_v5 = vor.u32 %v3745_v2, %v3558_v4  ;;  %v3742_v7 = vld [vmem:[%s7613_s2 + $0xc] sm:$0xf0]  ;;  %v3740_v8 = vld [vmem:[%s7613_s2 + $0x4] sm:$0xf]  ;;  %v3540_v11 = vld [vmem:[%s7613_s2 + $0x8] sm:$0xf] }
  0x21   :  { %v3533_v9 = vor.u32 %v3742_v7, %v3532_v6  ;;  %v4738_v42 = vld [vmem:[%s7614_s3 + $0x188] sm:$0xff]  ;;  %v4750_v45 = vld [vmem:[%s7614_s3 + $0x1b8] sm:$0xff]  ;;  %v4757_v46 = vld [vmem:[%s7614_s3 + $0x160] sm:$0xff] }
  0x22   :  { %92 = vperm.xlu2 %3778, %v47_v13   ;;  %v3620_v13 = vld [vmem:[%s7613_s2 + $0xa8] sm:$0xf]  ;;  %v4774_v49 = vld [vmem:[%s7614_s3 + $0x198] sm:$0xff]  ;;  %v4795_v57 = vld [vmem:[%s7614_s3 + $0x150] sm:$0xff] }
  0x23   :  { %89 = vperm.xlu1 %3777, %v46_v14   ;;  %86 = vperm.xlu0 %3776, %v45_v15   ;;  %v3763_v14 = vld [vmem:[%s7613_s2 + $0xb4] sm:$0xf0]  ;;  %v3617_v15 = vor.u32 %v3760_v10, %v3614_v12  ;;  %v3534_v10 = vld [vmem:[%s7613_s2 + $0x10] sm:$0xf0]  ;;  %v4762_v47 = vld [vmem:[%s7614_s3 + $0x168] sm:$0xff] }
  0x24   :  { %v3621_v16 = vor.u32 %v3763_v14, %v3620_v13  ;;  %v3743_v12 = vld [vmem:[%s7613_s2 + $0x14] sm:$0xf0]  ;;  %v3537_v13 = vor.u32 %v3740_v8, %v3534_v10  ;;  %v4811_v63 = vld [vmem:[%s7614_s3 + $0x120] sm:$0xff]  ;;  %v4847_v10 = vld [vmem:[%s7614_s3 + $0x110] sm:$0xff] }
  0x25   :  { %452 = vmatpush.bf16.msra.mxu1 %v3617_v15  ;;  %v3541_v14 = vor.u32 %v3743_v12, %v3540_v11  ;;  %v3741_v15 = vld [vmem:[%s7613_s2 + $0xc] sm:$0xf]  ;;  %v4802_v58 = vld [vmem:[%s7614_s3 + $0x178] sm:$0xff]  ;;  %v4837_v8 = vld [vmem:[%s7614_s3 + $0x100] sm:$0xff] }
  0x26   :  { %501 = vmatpush.bf16.msra.mxu2 %v3621_v16  ;;  %v3542_v16 = vld [vmem:[%s7613_s2 + $0x18] sm:$0xf0] }
  0x27   :  { %v4828_v2 = vld [vmem:[%s7614_s3 + $0x158] sm:$0xff] }
  0x28   :  { %v4854_v11 = vld [vmem:[%s7614_s3 + $0x138] sm:$0xff] }
  0x2a   :  { %1117 = vperm.xlu2 %3778, %v1115_v18   ;;  %v3622_v18 = vld [vmem:[%s7613_s2 + $0xb8] sm:$0xf0] }
  0x2b   :  { %954 = vperm.xlu1 %3777, %v952_v19   ;;  %95 = vperm.xlu0 %3776, %v48_v20   ;;  %v3425_v19 = vsel %vm3424_vm14, 1, %v4295_v3  ;;  %v3260_v20 = vsel %vm3259_vm15, 1, %v4295_v3  ;;  %v3625_v21 = vor.u32 %v3761_v17, %v3622_v18  ;;  %v3598_v3 = vld [vmem:[%s7613_s2 + $0x90] sm:$0xf0]  ;;  %v3545_v17 = vor.u32 %v3741_v15, %v3542_v16  ;;  %v4661_v18 = vld [vmem:[%s7614_s3 + $0x1e0] sm:$0xff] }
  0x2d   :  { %550 = vmatpush.bf16.msra.mxu3 %v3625_v21  ;;  %v31_v21 = vlaneseq }
  0x32   :  { %1612 = vperm.xlu2 %3778, %v1610_v24   ;;  %v3756_v24 = vld [vmem:[%s7613_s2 + $0x84] sm:$0xf] }
  0x33   :  { %1447 = vperm.xlu1 %3777, %v1445_v25   ;;  %1282 = vperm.xlu0 %3776, %v1280_v26   ;;  %v3597_v25 = vor.u32 %v3758_v23, %v3596_v22  ;;  %v3604_v26 = vld [vmem:[%s7613_s2 + $0x88] sm:$0xf]  ;;  %v3601_v28 = vor.u32 %v3756_v24, %v3598_v3  ;;  %v4676_v22 = vand.u32 127, %v31_v21  ;;  %v4681_v23 = vld [vmem:[%s7614_s3 + $0x1c0] sm:$0xff] }
  0x34   :  { %v3605_v29 = vor.u32 %v3759_v27, %v3604_v26  ;;  %v4686_v24 = vld [vmem:[%s7614_s3 + $0x1c8] sm:$0xff]  ;;  %v4698_v26 = vld [vmem:[%s7614_s3 + $0x1f8] sm:$0xff] }
  0x35   :  { %404 = vmatpush.bf16.msra.mxu0 %v3597_v25  ;;  %453 = vmatpush.bf16.msra.mxu1 %v3601_v28  ;;  %v4691_v25 = vld [vmem:[%s7614_s3 + $0x1d0] sm:$0xff]  ;;  %v7621_v28 = vmov 0.0   ;;  %v4868_v21 = vld [vmem:[%s7614_s3 + $0xe8] sm:$0xff] }
  0x36   :  { %502 = vmatpush.bf16.msra.mxu2 %v3605_v29 }
  0x3a   :  { %2107 = vperm.xlu2 %3778, %v2105_v30   ;;  %v3757_v30 = vld [vmem:[%s7613_s2 + $0x8c] sm:$0xf] }
  0x3b   :  { %1942 = vperm.xlu1 %3777, %v1940_v31   ;;  %1777 = vperm.xlu0 %3776, %v1775_v32   ;;  %v3606_v31 = vld [vmem:[%s7613_s2 + $0x98] sm:$0xf0] }
  0x3c   :  { %v3609_v32 = vor.u32 %v3757_v30, %v3606_v31  ;;  %v4707_v30 = vld [vmem:[%s7614_s3 + $0x1a0] sm:$0xff]  ;;  %v4712_v31 = vld [vmem:[%s7614_s3 + $0x1a8] sm:$0xff] }
  0x3e   :  { %551 = vmatpush.bf16.msra.mxu3 %v3609_v32  ;;  %v4717_v32 = vld [vmem:[%s7614_s3 + $0x1b0] sm:$0xff] }
  0x42   :  { %2602 = vperm.xlu2 %3778, %v2600_v36   ;;  %v3581_v36 = vor.u32 %v3754_v34, %v3580_v33  ;;  %552 = vmatpush.bf16.msra.mxu3 %v3593_v44  ;;  %v4724_v34 = vld [vmem:[%s7614_s3 + $0x1d8] sm:$0xff]  ;;  %v4745_v44 = vld [vmem:[%s7614_s3 + $0x190] sm:$0xff] }
  0x43   :  { %2437 = vperm.xlu1 %3777, %v2435_v37   ;;  %2272 = vperm.xlu0 %3776, %v2270_v38   ;;  %v3582_v37 = vld [vmem:[%s7613_s2 + $0x70] sm:$0xf0]  ;;  %v3588_v38 = vld [vmem:[%s7613_s2 + $0x68] sm:$0xf] }
  0x44   :  { %v3585_v40 = vor.u32 %v3752_v35, %v3582_v37  ;;  %v3589_v41 = vor.u32 %v3755_v39, %v3588_v38  ;;  %405 = vmatpush.bf16.msra.mxu0 %v3581_v36 }
  0x46   :  { %454 = vmatpush.bf16.msra.mxu1 %v3585_v40  ;;  %503 = vmatpush.bf16.msra.mxu2 %v3589_v41  ;;  %v4733_v41 = vld [vmem:[%s7614_s3 + $0x180] sm:$0xff] }
  0x48   :  { %406 = vmatpush.bf16.msra.mxu0 %v3565_v48  ;;  %v4767_v48 = vld [vmem:[%s7614_s3 + $0x170] sm:$0xff] }
  0x4a   :  { %3097 = vperm.xlu2 %3778, %v3095_v53   ;;  %v3573_v53 = vor.u32 %v3751_v51, %v3572_v50  ;;  %455 = vmatpush.bf16.msra.mxu1 %v3569_v52 }
  0x4b   :  { %2932 = vperm.xlu1 %3777, %v2930_v54   ;;  %2767 = vperm.xlu0 %3776, %v2765_v55   ;;  %v3749_v54 = vld [vmem:[%s7613_s2 + $0x4c] sm:$0xf]  ;;  %v3574_v55 = vld [vmem:[%s7613_s2 + $0x58] sm:$0xf0]  ;;  %s4297_s2 = smov [#allocation5]  }
  0x4c   :  { %v3577_v56 = vor.u32 %v3749_v54, %v3574_v55  ;;  %504 = vmatpush.bf16.msra.mxu2 %v3573_v53  ;;  %407 = vmatpush.bf16.msra.mxu0 %v3549_v60  ;;  %v4785_v55 = vld [vmem:[%s7614_s3 + $0x140] sm:$0xff]  ;;  %s3496_s27 = sshll.u32 %s4297_s2, 4  ;;  %s3497_s27 = int_to_ptr.vmem [resolvable:$true] %s3496_s27 }
  0x4e   :  { %553 = vmatpush.bf16.msra.mxu3 %v3577_v56  ;;  %456 = vmatpush.bf16.msra.mxu1 %v3553_v0  ;;  %v4790_v56 = vld [vmem:[%s7614_s3 + $0x148] sm:$0xff] }
  0x4f   :  { %v4816_v0 = vld [vmem:[%s7614_s3 + $0x128] sm:$0xff] }
  0x50   :  { %505 = vmatpush.bf16.msra.mxu2 %v3557_v1  ;;  %408 = vmatpush.bf16.msra.mxu0 %v3533_v9  ;;  %v4821_v1 = vld [vmem:[%s7614_s3 + $0x130] sm:$0xff]  ;;  %v4842_v9 = vld [vmem:[%s7614_s3 + $0x108] sm:$0xff] }
  0x52   :  { %554 = vmatpush.bf16.msra.mxu3 %v3561_v5  ;;  %457 = vmatpush.bf16.msra.mxu1 %v3537_v13 }
  0x53   :  { %3427 = vperm.xlu1 %3777, %v3425_v19   ;;  %3262 = vperm.xlu0 %3776, %v3260_v20   ;;  %v4666_v19 = vld [vmem:[%s7614_s3 + $0x1e8] sm:$0xff]  ;;  %v4671_v20 = vld [vmem:[%s7614_s3 + $0x1f0] sm:$0xff] }
  0x54   :  { %506 = vmatpush.bf16.msra.mxu2 %v3541_v14  ;;  %803 = vmatpush.msrb.mxu0 %v4661_v18 }
  0x56   :  { %555 = vmatpush.bf16.msra.mxu3 %v3545_v17  ;;  %823 = vmatpush.msrb.mxu1 %v4666_v19  ;;  %v4863_v17 = vld [vmem:[%s7614_s3 + $0xe0] sm:$0xff] }
  0x57   :  { %804 = vmatpush.msrb.mxu0 %v4681_v23 }
  0x58   :  { %843 = vmatpush.msrb.mxu2 %v4671_v20  ;;  %824 = vmatpush.msrb.mxu1 %v4686_v24 }
  0x59   :  { %805 = vmatpush.msrb.mxu0 %v4707_v30 }
  0x5a   :  { %844 = vmatpush.msrb.mxu2 %v4691_v25  ;;  %863 = vmatpush.msrb.mxu3 %v4698_v26 }
  0x5b   :  { %825 = vmatpush.msrb.mxu1 %v4712_v31  ;;  %806 = vmatpush.msrb.mxu0 %v4733_v41 }
  0x5c   :  { %845 = vmatpush.msrb.mxu2 %v4717_v32  ;;  %864 = vmatpush.msrb.mxu3 %v4724_v34  ;;  %v63_v52 = vpop.permute.xlu2 %62 }
  0x5d   :  { %826 = vmatpush.msrb.mxu1 %v4738_v42  ;;  %807 = vmatpush.msrb.mxu0 %v4757_v46  ;;  %vm101_vm4 = vcmp.eq.s32.totalorder %v4676_v22, %v63_v52 }
  0x5e   :  { %846 = vmatpush.msrb.mxu2 %v4745_v44  ;;  %865 = vmatpush.msrb.mxu3 %v4750_v45  ;;  %v3518_v4 = vsel %vm101_vm4, 1.0, %v7621_v28 }
  0x5f   :  { %827 = vmatpush.msrb.mxu1 %v4762_v47  ;;  %808 = vmatpush.msrb.mxu0 %v4785_v55  ;;  %v149_v6 = vpack.c.bf16 %v3518_v4, %v3518_v4  ;;  %v4942_v4 = vld [vmem:[%s7614_s3 + $0x88] sm:$0xff] }
  0x60   :  { %847 = vmatpush.msrb.mxu2 %v4767_v48  ;;  %866 = vmatpush.msrb.mxu3 %v4774_v49 }
  0x61   :  { %828 = vmatpush.msrb.mxu1 %v4790_v56  ;;  %809 = vmatpush.msrb.mxu0 %v4811_v63  ;;  %v213_v12 = vunpack.c.l.b16 %v149_v6 }
  0x62   :  { %848 = vmatpush.msrb.mxu2 %v4795_v57  ;;  %867 = vmatpush.msrb.mxu3 %v4802_v58 }
  0x63   :  { %829 = vmatpush.msrb.mxu1 %v4816_v0  ;;  %810 = vmatpush.msrb.mxu0 %v4837_v8 }
  0x64   :  { %v66_v62 = vpop.permute.xlu2 %65  ;;  %849 = vmatpush.msrb.mxu2 %v4821_v1  ;;  %868 = vmatpush.msrb.mxu3 %v4828_v2 }
  0x65   :  { %vm102_vm5 = vcmp.eq.s32.totalorder %v4676_v22, %v66_v62  ;;  %830 = vmatpush.msrb.mxu1 %v4842_v9  ;;  %811 = vmatpush.msrb.mxu0 %v4863_v17  ;;  %v4937_v62 = vld [vmem:[%s7614_s3 + $0x80] sm:$0xff] }
  0x66   :  { %v3519_v5 = vsel %vm102_vm5, 1.0, %v7621_v28  ;;  %850 = vmatpush.msrb.mxu2 %v4847_v10  ;;  %869 = vmatpush.msrb.mxu3 %v4854_v11 }
  0x67   :  { %v150_v7 = vpack.c.bf16 %v3519_v5, %v3519_v5  ;;  %831 = vmatpush.msrb.mxu1 %v4868_v21 }
  0x69   :  { %v214_v13 = vunpack.c.l.b16 %v150_v7  ;;  %v4951_v7 = vld [vmem:[%s7614_s3 + $0x90] sm:$0xff] }
  0x6b   :  { %v227_v16 = vpack.c.b16 %v214_v13, %v213_v12  ;;  %v4956_v12 = vld [vmem:[%s7614_s3 + $0xb8] sm:$0xff] }
  0x75   :  { %v51_v3 = vpop.permute.xlu0 %50  ;;  %v57_v27 = vpop.permute.xlu1 %56 }
  0x76   :  { %vm97_vm0 = vcmp.eq.s32.totalorder %v4676_v22, %v51_v3  ;;  %vm99_vm2 = vcmp.eq.s32.totalorder %v4676_v22, %v57_v27  ;;  %v4873_v3 = vld [vmem:[%s7614_s3 + $0xf0] sm:$0xff]  ;;  %v4880_v27 = vld [vmem:[%s7614_s3 + $0x118] sm:$0xff] }
  0x77   :  { %v3514_v29 = vsel %vm97_vm0, 1.0, %v7621_v28  ;;  %v3516_v50 = vsel %vm99_vm2, 1.0, %v7621_v28  ;;  %851 = vmatpush.msrb.mxu2 %v4873_v3  ;;  %870 = vmatpush.msrb.mxu3 %v4880_v27 }
  0x78   :  { %v145_v35 = vpack.c.bf16 %v3514_v29, %v3514_v29  ;;  %v147_v53 = vpack.c.bf16 %v3516_v50, %v3516_v50  ;;  %v4885_v29 = vld [vmem:[%s7614_s3 + $0xc0] sm:$0xff] }
  0x79   :  { %812 = vmatpush.msrb.mxu0 %v4885_v29 }
  0x7a   :  { %v209_v38 = vunpack.c.l.b16 %v145_v35  ;;  %v211_v59 = vunpack.c.l.b16 %v147_v53  ;;  %v75_v53 = vpop.permute.xlu2 %74 }
  0x7b   :  { %vm105_vm8 = vcmp.eq.s32.totalorder %v4676_v22, %v75_v53  ;;  %v4994_v53 = vld [vmem:[%s7614_s3 + $0x48] sm:$0xff] }
  0x7c   :  { %v3522_v5 = vsel %vm105_vm8, 1.0, %v7621_v28  ;;  %7843 = vst [vmem:[#allocation12_spill] sm:$0xff] %v4994_v53 }
  0x7d   :  { %v54_v33 = vpop.permute.xlu0 %53  ;;  %v60_v43 = vpop.permute.xlu1 %59  ;;  %v153_v13 = vpack.c.bf16 %v3522_v5, %v3522_v5 }
  0x7e   :  { %vm98_vm1 = vcmp.eq.s32.totalorder %v4676_v22, %v54_v33  ;;  %vm100_vm3 = vcmp.eq.s32.totalorder %v4676_v22, %v60_v43  ;;  %v4890_v33 = vld [vmem:[%s7614_s3 + $0xc8] sm:$0xff] }
  0x7f   :  { %v3515_v36 = vsel %vm98_vm1, 1.0, %v7621_v28  ;;  %v3517_v51 = vsel %vm100_vm3, 1.0, %v7621_v28  ;;  %832 = vmatpush.msrb.mxu1 %v4890_v33 }
  0x80   :  { %v146_v37 = vpack.c.bf16 %v3515_v36, %v3515_v36  ;;  %v148_v54 = vpack.c.bf16 %v3517_v51, %v3517_v51 }
  0x82   :  { %v210_v39 = vunpack.c.l.b16 %v146_v37  ;;  %v212_v60 = vunpack.c.l.b16 %v148_v54  ;;  %v4899_v37 = vld [vmem:[%s7614_s3 + $0xd0] sm:$0xff]  ;;  %v4915_v54 = vld [vmem:[%s7614_s3 + $0xa0] sm:$0xff] }
  0x83   :  { %852 = vmatpush.msrb.mxu2 %v4899_v37  ;;  %813 = vmatpush.msrb.mxu0 %v4915_v54 }
  0x84   :  { %v225_v40 = vpack.c.b16 %v210_v39, %v209_v38  ;;  %v226_v61 = vpack.c.b16 %v212_v60, %v211_v59  ;;  %v4904_v38 = vld [vmem:[%s7614_s3 + $0xf8] sm:$0xff]  ;;  %v4920_v59 = vld [vmem:[%s7614_s3 + $0xa8] sm:$0xff]  ;;  %v4925_v60 = vld [vmem:[%s7614_s3 + $0xb0] sm:$0xff] }
  0x85   :  { %v72_v14 = vpop.permute.xlu1 %71  ;;  %v69_v15 = vpop.permute.xlu0 %68  ;;  %871 = vmatpush.msrb.mxu3 %v4904_v38  ;;  %833 = vmatpush.msrb.mxu1 %v4920_v59 }
  0x86   :  { %409 = vmatmul.bf16.vlgmr.msra.gmra.mxu0 %v225_v40  ;;  %458 = vmatmul.bf16.vlgmr.msra.gmra.mxu1 %v225_v40  ;;  %vm104_vm6 = vcmp.eq.s32.totalorder %v4676_v22, %v72_v14  ;;  %vm103_vm7 = vcmp.eq.s32.totalorder %v4676_v22, %v69_v15  ;;  %v217_v15 = vunpack.c.l.b16 %v153_v13  ;;  %v5003_v13 = vld [vmem:[%s7614_s3 + $0x50] sm:$0xff] }
  0x87   :  { %507 = vmatmul.bf16.vlgmr.msra.gmra.mxu2 %v225_v40  ;;  %556 = vmatmul.bf16.vlgmr.msra.gmra.mxu3 %v225_v40  ;;  %v3521_v35 = vsel %vm104_vm6, 1.0, %v7621_v28  ;;  %v3520_v36 = vsel %vm103_vm7, 1.0, %v7621_v28  ;;  %7844 = vst [vmem:[#allocation13_spill] sm:$0xff] %v5003_v13 }
  0x88   :  { %v152_v39 = vpack.c.bf16 %v3521_v35, %v3521_v35  ;;  %v151_v40 = vpack.c.bf16 %v3520_v36, %v3520_v36  ;;  %853 = vmatpush.msrb.mxu2 %v4925_v60  ;;  %814 = vmatpush.msrb.mxu0 %v4937_v62 }
  0x89   :  { %834 = vmatpush.msrb.mxu1 %v4942_v4 }
  0x8a   :  { %v216_v43 = vunpack.c.l.b16 %v152_v39  ;;  %v215_v50 = vunpack.c.l.b16 %v151_v40  ;;  %854 = vmatpush.msrb.mxu2 %v4951_v7  ;;  %v84_v39 = vpop.permute.xlu2 %83  ;;  %v4967_v40 = vld [vmem:[%s7614_s3 + $0x60] sm:$0xff] }
  0x8b   :  { %vm108_vm10 = vcmp.eq.s32.totalorder %v4676_v22, %v84_v39  ;;  %815 = vmatpush.msrb.mxu0 %v4967_v40 }
  0x8c   :  { %v228_v52 = vpack.c.b16 %v216_v43, %v215_v50  ;;  %v4972_v43 = vld [vmem:[%s7614_s3 + $0x68] sm:$0xff]  ;;  %v4977_v50 = vld [vmem:[%s7614_s3 + $0x70] sm:$0xff]  ;;  %v3525_v5 = vsel %vm108_vm10, 1.0, %v7621_v28 }
  0x8d   :  { %v78_v51 = vpop.permute.xlu0 %77  ;;  %v81_v35 = vpop.permute.xlu1 %80  ;;  %7840 = vst [vmem:[#allocation9_spill] sm:$0xff] %v4977_v50  ;;  %835 = vmatpush.msrb.mxu1 %v4972_v43  ;;  %855 = vmatpush.msrb.mxu2 %v4977_v50 }
  0x8e   :  { %vm106_vm9 = vcmp.eq.s32.totalorder %v4676_v22, %v78_v51  ;;  %vm107_vm11 = vcmp.eq.s32.totalorder %v4676_v22, %v81_v35  ;;  %v4984_v51 = vld [vmem:[%s7614_s3 + $0x98] sm:$0xff] }
  0x8f   :  { %v3523_v6 = vsel %vm106_vm9, 1.0, %v7621_v28  ;;  %7841 = vst [vmem:[#allocation10_spill] sm:$0xff] %v4984_v51  ;;  %836 = vmatpush.msrb.mxu1 %v4994_v53  ;;  %856 = vmatpush.msrb.mxu2 %v5003_v13  ;;  %v5019_v13 = vld [vmem:[%s7614_s3 + $0x20] sm:$0xff] }
  0x90   :  { %v154_v14 = vpack.c.bf16 %v3523_v6, %v3523_v6  ;;  %v3524_v6 = vsel %vm107_vm11, 1.0, %v7621_v28  ;;  %7846 = vst [vmem:[#allocation15_spill] sm:$0xff] %v5019_v13 }
  0x95   :  { %v90_v39 = vpop.permute.xlu1 %89  ;;  %v87_v28 = vpop.permute.xlu0 %86 }
  0x96   :  { %414 = vmatmul.bf16.gmra.mxu0 %v226_v61  ;;  %463 = vmatmul.bf16.gmra.mxu1 %v226_v61  ;;  %vm110_vm12 = vcmp.eq.s32.totalorder %v4676_v22, %v90_v39  ;;  %vm109_vm13 = vcmp.eq.s32.totalorder %v4676_v22, %v87_v28  ;;  %v5036_v28 = vld [vmem:[%s7614_s3 + $0x58] sm:$0xff] }
  0x97   :  { %512 = vmatmul.bf16.gmra.mxu2 %v226_v61  ;;  %561 = vmatmul.bf16.gmra.mxu3 %v226_v61  ;;  %v4932_v61 = vld [vmem:[%s7614_s3 + $0xd8] sm:$0xff]  ;;  %7849 = vst [vmem:[#allocation18_spill] sm:$0xff] %v5036_v28 }
  0x98   :  { %872 = vmatpush.msrb.mxu3 %v4932_v61 }
  0x9a   :  { %873 = vmatpush.msrb.mxu3 %v4956_v12 }
  0x9c   :  { %874 = vmatpush.msrb.mxu3 %v4984_v51 }
  0x9d   :  { %v96_v51 = vpop.permute.xlu0 %95 }
  0x9e   :  { %vm112_vm14 = vcmp.eq.s32.totalorder %v4676_v22, %v96_v51 }
  0xa6   :  { %419 = vmatmul.bf16.gmra.mxu0 %v227_v16  ;;  %468 = vmatmul.bf16.gmra.mxu1 %v227_v16 }
  0xa7   :  { %517 = vmatmul.bf16.gmra.mxu2 %v227_v16  ;;  %566 = vmatmul.bf16.gmra.mxu3 %v227_v16  ;;  %v218_v16 = vunpack.c.l.b16 %v154_v14  ;;  %v5008_v14 = vld [vmem:[%s7614_s3 + $0x78] sm:$0xff] }
  0xa8   :  { %7845 = vst [vmem:[#allocation14_spill] sm:$0xff] %v5008_v14  ;;  %875 = vmatpush.msrb.mxu3 %v5008_v14 }
  0xa9   :  { %v229_v36 = vpack.c.b16 %v218_v16, %v217_v15  ;;  %v156_v15 = vpack.c.bf16 %v3525_v5, %v3525_v5  ;;  %v155_v16 = vpack.c.bf16 %v3524_v6, %v3524_v6  ;;  %v5024_v5 = vld [vmem:[%s7614_s3 + $0x28] sm:$0xff]  ;;  %v5029_v6 = vld [vmem:[%s7614_s3 + $0x30] sm:$0xff] }
  0xaa   :  { %7847 = vst [vmem:[#allocation16_spill] sm:$0xff] %v5024_v5  ;;  %837 = vmatpush.msrb.mxu1 %v5024_v5  ;;  %857 = vmatpush.msrb.mxu2 %v5029_v6 }
  0xab   :  { %v220_v35 = vunpack.c.l.b16 %v156_v15  ;;  %7848 = vst [vmem:[#allocation17_spill] sm:$0xff] %v5029_v6  ;;  %v5046_v15 = vld [vmem:[%s7614_s3 + $0x8] sm:$0xff]  ;;  %876 = vmatpush.msrb.mxu3 %v5036_v28 }
  0xac   :  { %7851 = vst [vmem:[#allocation20_spill] sm:$0xff] %v5046_v15  ;;  %838 = vmatpush.msrb.mxu1 %v5046_v15 }
  0xae   :  { %985 = vmatpush.msra.mxu1 %v4666_v19 }
  0xb0   :  { %986 = vmatpush.msra.mxu1 %v4686_v24 }
  0xb2   :  { %987 = vmatpush.msra.mxu1 %v4712_v31 }
  0xb4   :  { %988 = vmatpush.msra.mxu1 %v4738_v42 }
  0xb6   :  { %424 = vmatmul.bf16.gmra.mxu0 %v228_v52  ;;  %473 = vmatmul.bf16.gmra.mxu1 %v228_v52 }
  0xb7   :  { %522 = vmatmul.bf16.gmra.mxu2 %v228_v52  ;;  %571 = vmatmul.bf16.gmra.mxu3 %v228_v52  ;;  %v4989_v52 = vld [vmem:[%s7614_s3 + $0x40] sm:$0xff] }
  0xb8   :  { %7842 = vst [vmem:[#allocation11_spill] sm:$0xff] %v4989_v52  ;;  %816 = vmatpush.msrb.mxu0 %v4989_v52  ;;  %989 = vmatpush.msra.mxu1 %v4762_v47 }
  0xba   :  { %817 = vmatpush.msrb.mxu0 %v5019_v13  ;;  %990 = vmatpush.msra.mxu1 %v4790_v56 }
  0xbc   :  { %991 = vmatpush.msra.mxu1 %v4816_v0 }
  0xbe   :  { %992 = vmatpush.msra.mxu1 %v4842_v9 }
  0xc0   :  { %993 = vmatpush.msra.mxu1 %v4868_v21 }
  0xc2   :  { %994 = vmatpush.msra.mxu1 %v4890_v33 }
  0xc4   :  { %995 = vmatpush.msra.mxu1 %v4920_v59 }
  0xc6   :  { %429 = vmatmul.bf16.gmra.mxu0 %v229_v36  ;;  %478 = vmatmul.bf16.gmra.mxu1 %v229_v36 }
  0xc7   :  { %527 = vmatmul.bf16.gmra.mxu2 %v229_v36  ;;  %576 = vmatmul.bf16.gmra.mxu3 %v229_v36  ;;  %v219_v36 = vunpack.c.l.b16 %v155_v16  ;;  %v7852_v16 = vmov 0.0  }
  0xc8   :  { %996 = vmatpush.msra.mxu1 %v4942_v4 }
  0xc9   :  { %v230_v50 = vpack.c.b16 %v220_v35, %v219_v36  ;;  %v3527_v35 = vsel %vm110_vm12, 1.0, %v7852_v16  ;;  %v3526_v36 = vsel %vm109_vm13, 1.0, %v7852_v16 }
  0xca   :  { %v158_v39 = vpack.c.bf16 %v3527_v35, %v3527_v35  ;;  %v157_v14 = vpack.c.bf16 %v3526_v36, %v3526_v36  ;;  %v5065_v35 = vld [vmem:[%s7614_s3 + $0x38] sm:$0xff]  ;;  %997 = vmatpush.msra.mxu1 %v4972_v43 }
  0xcb   :  { %7853 = vst [vmem:[#allocation21_spill] sm:$0xff] %v5065_v35  ;;  %877 = vmatpush.msrb.mxu3 %v5065_v35 }
  0xcc   :  { %v222_v6 = vunpack.c.l.b16 %v158_v39  ;;  %v221_v28 = vunpack.c.l.b16 %v157_v14  ;;  %v5072_v39 = vld [vmem:[%s7614_s3 + $0x10] sm:$0xff]  ;;  %v5079_v14 = vld [vmem:[%s7614_s3 + $0x18] sm:$0xff]  ;;  %998 = vmatpush.msra.mxu1 %v4994_v53 }
  0xcd   :  { %7854 = vst [vmem:[#allocation22_spill] sm:$0xff] %v5072_v39  ;;  %858 = vmatpush.msrb.mxu2 %v5072_v39  ;;  %878 = vmatpush.msrb.mxu3 %v5079_v14 }
  0xce   :  { %v231_v36 = vpack.c.b16 %v222_v6, %v221_v28  ;;  %7855 = vst [vmem:[#allocation23_spill] sm:$0xff] %v5079_v14  ;;  %v93_v6 = vpop.permute.xlu2 %92  ;;  %v3529_v28 = vsel %vm112_vm14, 1.0, %v7852_v16  ;;  %999 = vmatpush.msra.mxu1 %v5024_v5  ;;  %v7861_v5 = vld [vmem:[#allocation13_spill] sm:$0xff] }
  0xcf   :  { %vm111_vm15 = vcmp.eq.s32.totalorder %v4676_v22, %v93_v6  ;;  %1005 = vmatpush.msra.mxu2 %v4671_v20  ;;  %1025 = vmatpush.msra.mxu3 %v4698_v26  ;;  %v160_v22 = vpack.c.bf16 %v3529_v28, %v3529_v28 }
  0xd0   :  { %v3528_v51 = vsel %vm111_vm15, 1.0, %v7852_v16  ;;  %1000 = vmatpush.msra.mxu1 %v5046_v15  ;;  %v7863_v15 = vld [vmem:[#allocation17_spill] sm:$0xff] }
  0xd1   :  { %1006 = vmatpush.msra.mxu2 %v4691_v25  ;;  %1026 = vmatpush.msra.mxu3 %v4724_v34  ;;  %v224_v6 = vunpack.c.l.b16 %v160_v22  ;;  %v7856_v22 = vld [vmem:[#allocation10_spill] sm:$0xff] }
  0xd3   :  { %1007 = vmatpush.msra.mxu2 %v4717_v32  ;;  %1027 = vmatpush.msra.mxu3 %v4750_v45 }
  0xd5   :  { %1008 = vmatpush.msra.mxu2 %v4745_v44  ;;  %1028 = vmatpush.msra.mxu3 %v4774_v49 }
  0xd6   :  { %434 = vmatmul.bf16.gmra.mxu0 %v230_v50  ;;  %483 = vmatmul.bf16.gmra.mxu1 %v230_v50 }
  0xd7   :  { %532 = vmatmul.bf16.gmra.mxu2 %v230_v50  ;;  %581 = vmatmul.bf16.gmra.mxu3 %v230_v50  ;;  %v5041_v50 = vld [vmem:[%s7614_s3] sm:$0xff] }
  0xd8   :  { %7850 = vst [vmem:[#allocation19_spill] sm:$0xff] %v5041_v50  ;;  %818 = vmatpush.msrb.mxu0 %v5041_v50  ;;  %1009 = vmatpush.msra.mxu2 %v4767_v48 }
  0xd9   :  { %1029 = vmatpush.msra.mxu3 %v4802_v58 }
  0xda   :  { %965 = vmatpush.msra.mxu0 %v4661_v18  ;;  %1010 = vmatpush.msra.mxu2 %v4795_v57 }
  0xdb   :  { %1030 = vmatpush.msra.mxu3 %v4828_v2 }
  0xdc   :  { %966 = vmatpush.msra.mxu0 %v4681_v23  ;;  %1011 = vmatpush.msra.mxu2 %v4821_v1 }
  0xdd   :  { %1031 = vmatpush.msra.mxu3 %v4854_v11 }
  0xde   :  { %967 = vmatpush.msra.mxu0 %v4707_v30  ;;  %1012 = vmatpush.msra.mxu2 %v4847_v10 }
  0xdf   :  { %1032 = vmatpush.msra.mxu3 %v4880_v27 }
  0xe0   :  { %968 = vmatpush.msra.mxu0 %v4733_v41  ;;  %1013 = vmatpush.msra.mxu2 %v4873_v3 }
  0xe1   :  { %1033 = vmatpush.msra.mxu3 %v4904_v38 }
  0xe2   :  { %969 = vmatpush.msra.mxu0 %v4757_v46  ;;  %1014 = vmatpush.msra.mxu2 %v4899_v37 }
  0xe3   :  { %1034 = vmatpush.msra.mxu3 %v4932_v61 }
  0xe4   :  { %970 = vmatpush.msra.mxu0 %v4785_v55  ;;  %1015 = vmatpush.msra.mxu2 %v4925_v60 }
  0xe5   :  { %1035 = vmatpush.msra.mxu3 %v4956_v12 }
  0xe6   :  { %439 = vmatmul.bf16.gmra.mxu0 %v231_v36  ;;  %488 = vmatmul.bf16.gmra.mxu1 %v231_v36 }
  0xe7   :  { %537 = vmatmul.bf16.gmra.mxu2 %v231_v36  ;;  %586 = vmatmul.bf16.gmra.mxu3 %v231_v36  ;;  %v159_v36 = vpack.c.bf16 %v3528_v51, %v3528_v51 }
  0xe8   :  { %971 = vmatpush.msra.mxu0 %v4811_v63  ;;  %1016 = vmatpush.msra.mxu2 %v4951_v7 }
  0xe9   :  { %v223_v28 = vunpack.c.l.b16 %v159_v36  ;;  %1036 = vmatpush.msra.mxu3 %v7856_v22  ;;  %v7857_v36 = vld [vmem:[#allocation9_spill] sm:$0xff] }
  0xea   :  { %972 = vmatpush.msra.mxu0 %v4837_v8  ;;  %1017 = vmatpush.msra.mxu2 %v7857_v36 }
  0xeb   :  { %v232_v51 = vpack.c.b16 %v224_v6, %v223_v28  ;;  %v7858_v6 = vld [vmem:[#allocation14_spill] sm:$0xff] }
  0xec   :  { %973 = vmatpush.msra.mxu0 %v4863_v17  ;;  %1037 = vmatpush.msra.mxu3 %v7858_v6 }
  0xed   :  { %1018 = vmatpush.msra.mxu2 %v7861_v5 }
  0xee   :  { %974 = vmatpush.msra.mxu0 %v4885_v29 }
  0xef   :  { %1019 = vmatpush.msra.mxu2 %v7863_v15 }
  0xf0   :  { %975 = vmatpush.msra.mxu0 %v4915_v54 }
  0xf1   :  { %1020 = vmatpush.msra.mxu2 %v5072_v39 }
  0xf2   :  { %976 = vmatpush.msra.mxu0 %v4937_v62 }
  0xf4   :  { %977 = vmatpush.msra.mxu0 %v4967_v40 }
  0xf6   :  { %444 = vmatmul.bf16.gmra.mxu0 %v232_v51  ;;  %493 = vmatmul.bf16.gmra.mxu1 %v232_v51 }
  0xf7   :  { %542 = vmatmul.bf16.gmra.mxu2 %v232_v51  ;;  %591 = vmatmul.bf16.gmra.mxu3 %v232_v51 }
  0xf8   :  { %978 = vmatpush.msra.mxu0 %v4989_v52 }
  0xfa   :  { %979 = vmatpush.msra.mxu0 %v5019_v13  ;;  %v7862_v13 = vld [vmem:[#allocation18_spill] sm:$0xff] }
  0xfb   :  { %1038 = vmatpush.msra.mxu3 %v7862_v13 }
  0xfc   :  { %980 = vmatpush.msra.mxu0 %v5041_v50 }
  0xfd   :  { %1039 = vmatpush.msra.mxu3 %v5065_v35 }
  0xff   :  { %1040 = vmatpush.msra.mxu3 %v5079_v14 }
 0x103   :  { %v5134_v28 = vpop.f32.mrf.mxu0  ;;  %v5136_v51 = vpop.f32.mrf.mxu1 }
 0x104   :  { %7859 = vst [vmem:[#allocation10_spill] sm:$0xff] %v5134_v28 }
 0x105   :  { %7860 = vst [vmem:[#allocation9_spill] sm:$0xff] %v5136_v51 }
 0x106   :  { %819 = vmatmul.f32.vlgmr.msrb.gmra.mxu0 %v7852_v16  ;;  %839 = vmatmul.f32.vlgmr.msrb.gmra.mxu1 %v7852_v16 }
 0x107   :  { %859 = vmatmul.f32.vlgmr.msrb.gmra.mxu2 %v7852_v16  ;;  %879 = vmatmul.f32.vlgmr.msrb.gmra.mxu3 %v7852_v16  ;;  %v7879_v16 = vld [vmem:[#allocation15_spill] sm:$0xff] }
 0x108   :  { %1130 = vmatpush.msrb.mxu0 %v4661_v18  ;;  %1150 = vmatpush.msrb.mxu1 %v4666_v19 }
 0x109   :  { %1170 = vmatpush.msrb.mxu2 %v4671_v20  ;;  %1190 = vmatpush.msrb.mxu3 %v4698_v26 }
 0x10a   :  { %v5148_v51 = vpop.f32.mrf.mxu2  ;;  %v5150_v28 = vpop.f32.mrf.mxu3  ;;  %1131 = vmatpush.msrb.mxu0 %v4681_v23  ;;  %1151 = vmatpush.msrb.mxu1 %v4686_v24 }
 0x10b   :  { %v5154_v50 = vpop.f32.mrf.mxu0  ;;  %v5156_v13 = vpop.f32.mrf.mxu1  ;;  %1171 = vmatpush.msrb.mxu2 %v4691_v25  ;;  %1191 = vmatpush.msrb.mxu3 %v4724_v34 }
 0x10c   :  { %7864 = vst [vmem:[#allocation24_spill] sm:$0xff] %v5154_v50  ;;  %1132 = vmatpush.msrb.mxu0 %v4707_v30  ;;  %1152 = vmatpush.msrb.mxu1 %v4712_v31 }
 0x10d   :  { %7865 = vst [vmem:[#allocation25_spill] sm:$0xff] %v5156_v13  ;;  %1172 = vmatpush.msrb.mxu2 %v4717_v32  ;;  %1192 = vmatpush.msrb.mxu3 %v4750_v45 }
 0x10e   :  { %1133 = vmatpush.msrb.mxu0 %v4733_v41  ;;  %1153 = vmatpush.msrb.mxu1 %v4738_v42  ;;  %v7878_v42 = vld [vmem:[#allocation18_spill] sm:$0xff] }
 0x10f   :  { %1173 = vmatpush.msrb.mxu2 %v4745_v44  ;;  %1193 = vmatpush.msrb.mxu3 %v4774_v49 }
 0x110   :  { %1134 = vmatpush.msrb.mxu0 %v4757_v46  ;;  %1154 = vmatpush.msrb.mxu1 %v4762_v47 }
 0x111   :  { %1174 = vmatpush.msrb.mxu2 %v4767_v48  ;;  %1194 = vmatpush.msrb.mxu3 %v4802_v58 }
 0x112   :  { %v5172_v18 = vpop.f32.mrf.mxu2  ;;  %v5174_v19 = vpop.f32.mrf.mxu3  ;;  %1135 = vmatpush.msrb.mxu0 %v4785_v55  ;;  %1155 = vmatpush.msrb.mxu1 %v4790_v56 }
 0x113   :  { %7866 = vst [vmem:[#allocation26_spill] sm:$0xff] %v5172_v18  ;;  %v5178_v20 = vpop.f32.mrf.mxu0  ;;  %v5180_v23 = vpop.f32.mrf.mxu1  ;;  %1175 = vmatpush.msrb.mxu2 %v4795_v57  ;;  %1195 = vmatpush.msrb.mxu3 %v4828_v2 }
 0x114   :  { %7867 = vst [vmem:[#allocation27_spill] sm:$0xff] %v5174_v19  ;;  %1136 = vmatpush.msrb.mxu0 %v4811_v63  ;;  %1156 = vmatpush.msrb.mxu1 %v4816_v0 }
 0x115   :  { %7868 = vst [vmem:[#allocation28_spill] sm:$0xff] %v5178_v20  ;;  %1176 = vmatpush.msrb.mxu2 %v4821_v1  ;;  %1196 = vmatpush.msrb.mxu3 %v4854_v11 }
 0x116   :  { %7869 = vst [vmem:[#allocation29_spill] sm:$0xff] %v5180_v23  ;;  %1137 = vmatpush.msrb.mxu0 %v4837_v8  ;;  %1157 = vmatpush.msrb.mxu1 %v4842_v9 }
 0x117   :  { %1177 = vmatpush.msrb.mxu2 %v4847_v10  ;;  %1197 = vmatpush.msrb.mxu3 %v4880_v27 }
 0x118   :  { %1138 = vmatpush.msrb.mxu0 %v4863_v17  ;;  %1158 = vmatpush.msrb.mxu1 %v4868_v21 }
 0x119   :  { %1178 = vmatpush.msrb.mxu2 %v4873_v3  ;;  %1198 = vmatpush.msrb.mxu3 %v4904_v38 }
 0x11a   :  { %v5196_v24 = vpop.f32.mrf.mxu2  ;;  %v5198_v25 = vpop.f32.mrf.mxu3  ;;  %1139 = vmatpush.msrb.mxu0 %v4885_v29  ;;  %1159 = vmatpush.msrb.mxu1 %v4890_v33 }
 0x11b   :  { %7870 = vst [vmem:[#allocation30_spill] sm:$0xff] %v5196_v24  ;;  %v5202_v26 = vpop.f32.mrf.mxu0  ;;  %v5204_v30 = vpop.f32.mrf.mxu1  ;;  %1179 = vmatpush.msrb.mxu2 %v4899_v37  ;;  %1199 = vmatpush.msrb.mxu3 %v4932_v61 }
 0x11c   :  { %7871 = vst [vmem:[#allocation31_spill] sm:$0xff] %v5198_v25  ;;  %1140 = vmatpush.msrb.mxu0 %v4915_v54  ;;  %1160 = vmatpush.msrb.mxu1 %v4920_v59 }
 0x11d   :  { %7872 = vst [vmem:[#allocation32_spill] sm:$0xff] %v5202_v26  ;;  %1180 = vmatpush.msrb.mxu2 %v4925_v60  ;;  %1200 = vmatpush.msrb.mxu3 %v4956_v12 }
 0x11e   :  { %7873 = vst [vmem:[#allocation33_spill] sm:$0xff] %v5204_v30  ;;  %1141 = vmatpush.msrb.mxu0 %v4937_v62  ;;  %1161 = vmatpush.msrb.mxu1 %v4942_v4 }
 0x11f   :  { %1181 = vmatpush.msrb.mxu2 %v4951_v7  ;;  %1201 = vmatpush.msrb.mxu3 %v7856_v22 }
 0x120   :  { %1142 = vmatpush.msrb.mxu0 %v4967_v40  ;;  %1162 = vmatpush.msrb.mxu1 %v4972_v43 }
 0x121   :  { %1182 = vmatpush.msrb.mxu2 %v7857_v36  ;;  %1202 = vmatpush.msrb.mxu3 %v7858_v6 }
 0x122   :  { %v5220_v31 = vpop.f32.mrf.mxu2  ;;  %v5222_v32 = vpop.f32.mrf.mxu3  ;;  %1143 = vmatpush.msrb.mxu0 %v4989_v52  ;;  %1163 = vmatpush.msrb.mxu1 %v4994_v53 }
 0x123   :  { %7874 = vst [vmem:[#allocation34_spill] sm:$0xff] %v5220_v31  ;;  %v5226_v34 = vpop.f32.mrf.mxu0  ;;  %v5228_v41 = vpop.f32.mrf.mxu1  ;;  %1183 = vmatpush.msrb.mxu2 %v7861_v5  ;;  %1203 = vmatpush.msrb.mxu3 %v7878_v42 }
 0x124   :  { %7875 = vst [vmem:[#allocation35_spill] sm:$0xff] %v5222_v32  ;;  %1144 = vmatpush.msrb.mxu0 %v7879_v16  ;;  %v7880_v32 = vld [vmem:[#allocation16_spill] sm:$0xff]  ;;  %v955_v52 = vpop.permute.xlu1 %954 }
 0x125   :  { %7876 = vst [vmem:[#allocation36_spill] sm:$0xff] %v5226_v34  ;;  %1164 = vmatpush.msrb.mxu1 %v7880_v32  ;;  %1184 = vmatpush.msrb.mxu2 %v7863_v15  ;;  %v7882_v34 = vld [vmem:[#allocation20_spill] sm:$0xff]  ;;  %vm956_vm8 = vcmp.eq.s32.totalorder %v955_v52, 1  ;;  %v5384_v52 = vld [vmem:[%s7614_s3 + $0x1f0] sm:$0xff] }
 0x126   :  { %7877 = vst [vmem:[#allocation37_spill] sm:$0xff] %v5228_v41  ;;  %1204 = vmatpush.msrb.mxu3 %v5065_v35  ;;  %v7881_v41 = vld [vmem:[#allocation19_spill] sm:$0xff] }
 0x127   :  { %1145 = vmatpush.msrb.mxu0 %v7881_v41  ;;  %1165 = vmatpush.msrb.mxu1 %v7882_v34 }
 0x128   :  { %1185 = vmatpush.msrb.mxu2 %v5072_v39  ;;  %1205 = vmatpush.msrb.mxu3 %v5079_v14 }
 0x12a   :  { %v5244_v31 = vpop.f32.mrf.mxu2  ;;  %v5246_v30 = vpop.f32.mrf.mxu3 }
 0x12b   :  { %7883 = vst [vmem:[#allocation38_spill] sm:$0xff] %v5244_v31  ;;  %v5248_v26 = vpop.f32.mrf.mxu0  ;;  %v5250_v25 = vpop.f32.mrf.mxu1 }
 0x12c   :  { %7884 = vst [vmem:[#allocation39_spill] sm:$0xff] %v5246_v30 }
 0x12d   :  { %7885 = vst [vmem:[#allocation40_spill] sm:$0xff] %v5248_v26 }
 0x12e   :  { %7886 = vst [vmem:[#allocation41_spill] sm:$0xff] %v5250_v25 }
 0x132   :  { %v5252_v24 = vpop.f32.mrf.mxu2  ;;  %v5254_v23 = vpop.f32.mrf.mxu3 }
 0x133   :  { %7887 = vst [vmem:[#allocation42_spill] sm:$0xff] %v5252_v24  ;;  %v5256_v20 = vpop.f32.mrf.mxu0  ;;  %v5258_v19 = vpop.f32.mrf.mxu1 }
 0x134   :  { %7888 = vst [vmem:[#allocation43_spill] sm:$0xff] %v5254_v23 }
 0x135   :  { %7889 = vst [vmem:[#allocation44_spill] sm:$0xff] %v5256_v20 }
 0x136   :  { %7890 = vst [vmem:[#allocation45_spill] sm:$0xff] %v5258_v19 }
 0x13a   :  { %v5260_v18 = vpop.f32.mrf.mxu2  ;;  %v5262_v13 = vpop.f32.mrf.mxu3 }
 0x13b   :  { %7891 = vst [vmem:[#allocation46_spill] sm:$0xff] %v5260_v18  ;;  %v5264_v50 = vpop.f32.mrf.mxu0  ;;  %v5266_v31 = vpop.f32.mrf.mxu1 }
 0x13c   :  { %7892 = vst [vmem:[#allocation47_spill] sm:$0xff] %v5262_v13 }
 0x13d   :  { %7893 = vst [vmem:[#allocation48_spill] sm:$0xff] %v5264_v50 }
 0x13e   :  { %7894 = vst [vmem:[#allocation49_spill] sm:$0xff] %v5266_v31 }
 0x142   :  { %v5268_v30 = vpop.f32.mrf.mxu2  ;;  %v5270_v26 = vpop.f32.mrf.mxu3 }
 0x143   :  { %7895 = vst [vmem:[#allocation50_spill] sm:$0xff] %v5268_v30  ;;  %v5272_v25 = vpop.f32.mrf.mxu0  ;;  %v5274_v24 = vpop.f32.mrf.mxu1 }
 0x144   :  { %7896 = vst [vmem:[#allocation51_spill] sm:$0xff] %v5270_v26 }
 0x145   :  { %7897 = vst [vmem:[#allocation52_spill] sm:$0xff] %v5272_v25 }
 0x146   :  { %7898 = vst [vmem:[#allocation53_spill] sm:$0xff] %v5274_v24 }
 0x14a   :  { %v5276_v23 = vpop.f32.mrf.mxu2  ;;  %v5278_v20 = vpop.f32.mrf.mxu3 }
 0x14b   :  { %7899 = vst [vmem:[#allocation54_spill] sm:$0xff] %v5276_v23  ;;  %v5280_v19 = vpop.f32.mrf.mxu0  ;;  %v5282_v18 = vpop.f32.mrf.mxu1 }
 0x14c   :  { %7900 = vst [vmem:[#allocation55_spill] sm:$0xff] %v5278_v20 }
 0x14d   :  { %7901 = vst [vmem:[#allocation56_spill] sm:$0xff] %v5280_v19 }
 0x14e   :  { %7902 = vst [vmem:[#allocation57_spill] sm:$0xff] %v5282_v18 }
 0x152   :  { %v5284_v13 = vpop.f32.mrf.mxu2  ;;  %v5286_v50 = vpop.f32.mrf.mxu3 }
 0x153   :  { %7903 = vst [vmem:[#allocation58_spill] sm:$0xff] %v5284_v13  ;;  %v5288_v31 = vpop.f32.mrf.mxu0  ;;  %v5290_v30 = vpop.f32.mrf.mxu1 }
 0x154   :  { %7904 = vst [vmem:[#allocation59_spill] sm:$0xff] %v5286_v50 }
 0x155   :  { %7905 = vst [vmem:[#allocation60_spill] sm:$0xff] %v5288_v31 }
 0x156   :  { %7906 = vst [vmem:[#allocation61_spill] sm:$0xff] %v5290_v30 }
 0x15a   :  { %v5292_v26 = vpop.f32.mrf.mxu2  ;;  %v5294_v25 = vpop.f32.mrf.mxu3 }
 0x15b   :  { %7907 = vst [vmem:[#allocation62_spill] sm:$0xff] %v5292_v26  ;;  %v5296_v24 = vpop.f32.mrf.mxu0  ;;  %v5298_v23 = vpop.f32.mrf.mxu1 }
 0x15c   :  { %7908 = vst [vmem:[#allocation63_spill] sm:$0xff] %v5294_v25 }
 0x15d   :  { %7909 = vst [vmem:[#allocation64_spill] sm:$0xff] %v5296_v24 }
 0x15e   :  { %7910 = vst [vmem:[#allocation65_spill] sm:$0xff] %v5298_v23 }
 0x162   :  { %v5300_v20 = vpop.f32.mrf.mxu2  ;;  %v5302_v19 = vpop.f32.mrf.mxu3 }
 0x163   :  { %7911 = vst [vmem:[#allocation66_spill] sm:$0xff] %v5300_v20  ;;  %v5304_v18 = vpop.f32.mrf.mxu0  ;;  %v5306_v13 = vpop.f32.mrf.mxu1 }
 0x164   :  { %7912 = vst [vmem:[#allocation67_spill] sm:$0xff] %v5302_v19 }
 0x165   :  { %7913 = vst [vmem:[#allocation68_spill] sm:$0xff] %v5304_v18 }
 0x166   :  { %7914 = vst [vmem:[#allocation69_spill] sm:$0xff] %v5306_v13 }
 0x16a   :  { %v5308_v50 = vpop.f32.mrf.mxu2  ;;  %v5314_v26 = vpop.f32.mrf.mxu3 }
 0x16b   :  { %7915 = vst [vmem:[#allocation70_spill] sm:$0xff] %v5308_v50  ;;  %v5310_v31 = vpop.f32.mrf.mxu0  ;;  %v5312_v30 = vpop.f32.mrf.mxu1  ;;  %v597_v50 = vld [vmem:[%s7615_s4] sm:$0xf]  ;;  %s3498_s4 = sshll.u32 %s7620_s9, 4  ;;  %s3499_s4 = int_to_ptr.hbm [resolvable:$true] %s3498_s4 }
 0x16c   :  { %7916 = vst [vmem:[#allocation71_spill] sm:$0xff] %v5310_v31  ;;  %v5345_v41 = vperm.slane %v597_v50, 2 }
 0x16d   :  { %7917 = vst [vmem:[#allocation72_spill] sm:$0xff] %v5312_v30  ;;  %v5333_v30 = vperm.slane %v597_v50, 0 }
 0x16e   :  { %7918 = vst [vmem:[#allocation73_spill] sm:$0xff] %v5314_v26  ;;  %v5335_v26 = vperm.slane %v597_v50, 1 }
 0x16f   :  { %7926 = vst [vmem:[#allocation81_spill] sm:$0xff] %v5333_v30 }
 0x170   :  { %7927 = vst [vmem:[#allocation82_spill] sm:$0xff] %v5335_v26 }
 0x172   :  { %v5316_v25 = vpop.f32.mrf.mxu2  ;;  %v5322_v20 = vpop.f32.mrf.mxu3 }
 0x173   :  { %7919 = vst [vmem:[#allocation74_spill] sm:$0xff] %v5316_v25  ;;  %v5318_v24 = vpop.f32.mrf.mxu0  ;;  %v5320_v23 = vpop.f32.mrf.mxu1 }
 0x174   :  { %7920 = vst [vmem:[#allocation75_spill] sm:$0xff] %v5318_v24  ;;  %v7929_v24 = vld [vmem:[#allocation10_spill] sm:$0xff] }
 0x175   :  { %7921 = vst [vmem:[#allocation76_spill] sm:$0xff] %v5320_v23  ;;  %v607_v23 = vadd.f32 %v5333_v30, %v7929_v24 }
 0x176   :  { %7922 = vst [vmem:[#allocation77_spill] sm:$0xff] %v5322_v20  ;;  %v7930_v20 = vld [vmem:[#allocation9_spill] sm:$0xff] }
 0x177   :  { %7932 = vst [vmem:[#allocation9_spill] sm:$0xff] %v5345_v41 }
 0x17a   :  { %v5324_v19 = vpop.f32.mrf.mxu2  ;;  %v5337_v25 = vpop.f32.mrf.mxu3 }
 0x17b   :  { %7923 = vst [vmem:[#allocation78_spill] sm:$0xff] %v5324_v19  ;;  %v5329_v13 = vpop.f32.mrf.mxu0  ;;  %v5331_v31 = vpop.f32.mrf.mxu1  ;;  %v608_v19 = vadd.f32 %v5335_v26, %v7930_v20 }
 0x17c   :  { %7924 = vst [vmem:[#allocation79_spill] sm:$0xff] %v5329_v13 }
 0x17d   :  { %7925 = vst [vmem:[#allocation80_spill] sm:$0xff] %v5331_v31 }
 0x17e   :  { %7928 = vst [vmem:[#allocation83_spill] sm:$0xff] %v5337_v25  ;;  %v609_v25 = vadd.f32 %v5345_v41, %v5148_v51 }
 0x182   :  { %v5343_v18 = vpop.f32.mrf.mxu2  ;;  %v5349_v15 = vpop.f32.mrf.mxu3 }
 0x183   :  { %7931 = vst [vmem:[#allocation10_spill] sm:$0xff] %v5343_v18  ;;  %v820_v14 = vpop.f32.mrf.mxu0  ;;  %v840_v39 = vpop.f32.mrf.mxu1 }
 0x184   :  { %v883_v34 = vadd.f32 %v820_v14, %v607_v23  ;;  %v884_v13 = vadd.f32 %v840_v39, %v608_v19  ;;  %7933 = vst [vmem:[#allocation84_spill] sm:$0xff] %v5349_v15  ;;  %v5351_v39 = vperm.slane %v597_v50, 3 }
 0x186   :  { %v3658_v31 = vmul.f32 -1.442695, %v883_v34  ;;  %v3659_v35 = vmul.f32 -1.442695, %v884_v13  ;;  %7934 = vst [vmem:[#allocation85_spill] sm:$0xff] %v5351_v39  ;;  %v610_v51 = vadd.f32 %v5351_v39, %v5150_v28 }
 0x188   :  { %3780 = vpow2.f32 %v3658_v31 }
 0x189   :  { %3782 = vpow2.f32 %v3659_v35 }
 0x18a   :  { %v860_v24 = vpop.f32.mrf.mxu2  ;;  %v880_v13 = vpop.f32.mrf.mxu3 }
 0x18b   :  { %v885_v30 = vadd.f32 %v860_v24, %v609_v25  ;;  %v886_v31 = vadd.f32 %v880_v13, %v610_v51 }
 0x18d   :  { %v3660_v20 = vmul.f32 -1.442695, %v885_v30 }
 0x18e   :  { %v3781_v26 = vpop.eup %3780 }
 0x18f   :  { %v3783_v18 = vpop.eup %3782  ;;  %v896_v32 = vadd.f32 1.0, %v3781_v26  ;;  %3784 = vpow2.f32 %v3660_v20 }
 0x190   :  { %v897_v14 = vadd.f32 1.0, %v3783_v18 }
 0x191   :  { %3786 = vrcp.f32 %v896_v32  ;;  %v910_v20 = vand.u32 2147483648, %v896_v32  ;;  %v908_v15 = vand.u32 2147483647, %v896_v32  ;;  %vm904_vm2 = vweird.f32 %v896_v32 }
 0x192   :  { %3788 = vrcp.f32 %v897_v14  ;;  %v925_v50 = vand.u32 2147483648, %v897_v14  ;;  %v923_v16 = vand.u32 2147483647, %v897_v14  ;;  %vm919_vm3 = vweird.f32 %v897_v14 }
 0x193   :  { %vm909_vm5 = vcmp.eq.f32.partialorder %v908_v15, 8.507059e+37 }
 0x194   :  { %v926_v39 = vor.u32 1.1754944e-38, %v925_v50  ;;  %vm924_vm7 = vcmp.eq.f32.partialorder %v923_v16, 8.507059e+37  ;;  %v5396_v50 = vld [vmem:[%s7614_s3 + $0x1c0] sm:$0xff] }
 0x195   :  { %v3785_v19 = vpop.eup %3784 }
 0x196   :  { %v898_v35 = vadd.f32 1.0, %v3785_v19  ;;  %v911_v19 = vor.u32 1.1754944e-38, %v910_v20 }
 0x197   :  { %v3787_v23 = vpop.eup %3786 }
 0x198   :  { %v3789_v34 = vpop.eup %3788  ;;  %v900_v25 = vmul.f32 %v3787_v23, %v896_v32  ;;  %3790 = vrcp.f32 %v898_v35  ;;  %vm905_vm0 = vweird.f32 %v3787_v23  ;;  %v940_v20 = vand.u32 2147483648, %v898_v35 }
 0x199   :  { %v915_v30 = vmul.f32 %v3789_v34, %v897_v14  ;;  %3792 = vtanh.f32 %v886_v31  ;;  %vm920_vm1 = vweird.f32 %v3789_v34  ;;  %vm906_vm4 = vmor %vm904_vm2, %vm905_vm0  ;;  %vm934_vm10 = vweird.f32 %v898_v35 }
 0x19a   :  { %v901_v24 = vsub.f32 1.0, %v900_v25  ;;  %vm921_vm6 = vmor %vm919_vm3, %vm920_vm1  ;;  %v938_v15 = vand.u32 2147483647, %v898_v35 }
 0x19b   :  { %v916_v26 = vsub.f32 1.0, %v915_v30 }
 0x19c   :  { %v902_v18 = vmul.f32 %v3787_v23, %v901_v24  ;;  %vm939_vm12 = vcmp.eq.f32.partialorder %v938_v15, 8.507059e+37 }
 0x19d   :  { %v917_v41 = vmul.f32 %v3789_v34, %v916_v26 }
 0x19e   :  { %v3791_v42 = vpop.eup %3790  ;;  %v903_v28 = vadd.f32 %v3787_v23, %v902_v18 }
 0x19f   :  { %v930_v13 = vmul.f32 %v3791_v42, %v898_v35  ;;  %v918_v51 = vadd.f32 %v3789_v34, %v917_v41  ;;  %v3793_v31 = vpop.eup %3792  ;;  %vm935_vm9 = vweird.f32 %v3791_v42  ;;  %v5390_v35 = vld [vmem:[%s7614_s3 + $0x1f8] sm:$0xff] }
 0x1a0   :  { %v907_v25 = vsel %vm906_vm4, %v3787_v23, %v903_v28  ;;  %vm936_vm11 = vmor %vm934_vm10, %vm935_vm9  ;;  %v5402_v28 = vld [vmem:[%s7614_s3 + $0x1c8] sm:$0xff] }
 0x1a1   :  { %v931_v30 = vsub.f32 1.0, %v930_v13  ;;  %v912_v24 = vsel %vm909_vm5, %v911_v19, %v907_v25  ;;  %v922_v5 = vsel %vm921_vm6, %v3789_v34, %v918_v51  ;;  %v941_v34 = vor.u32 1.1754944e-38, %v940_v20  ;;  %v5408_v13 = vld [vmem:[%s7614_s3 + $0x1d0] sm:$0xff]  ;;  %v5414_v19 = vld [vmem:[%s7614_s3 + $0x1d8] sm:$0xff]  ;;  %v5420_v51 = vld [vmem:[%s7614_s3 + $0x1a0] sm:$0xff] }
 0x1a2   :  { %v927_v26 = vsel %vm924_vm7, %v926_v39, %v922_v5  ;;  %v946_v53 = vmul.f32 %v3793_v31, %v912_v24  ;;  %v5426_v25 = vld [vmem:[%s7614_s3 + $0x1a8] sm:$0xff]  ;;  %v5432_v31 = vld [vmem:[%s7614_s3 + $0x1b0] sm:$0xff] }
 0x1a3   :  { %v932_v6 = vmul.f32 %v3791_v42, %v931_v30  ;;  %v945_v18 = vmul.f32 0.0, %v927_v26  ;;  %v5439_v30 = vld [vmem:[%s7614_s3 + $0x180] sm:$0xff]  ;;  %v5445_v24 = vld [vmem:[%s7614_s3 + $0x188] sm:$0xff]  ;;  %v7955_v26 = vld [vmem:[#allocation85_spill] sm:$0xff] }
 0x1a5   :  { %v947_v32 = vadd.f32 %v946_v53, %v945_v18  ;;  %v933_v14 = vadd.f32 %v3791_v42, %v932_v6  ;;  %v5372_v6 = vld [vmem:[%s7614_s3 + $0x1e0] sm:$0xff] }
 0x1a7   :  { %3794 = vtanh.f32 %v947_v32  ;;  %v5356_v41 = vsel %vm956_vm8, %v947_v32, 0.0  ;;  %v937_v23 = vsel %vm936_vm11, %v3791_v42, %v933_v14  ;;  %v5378_v42 = vld [vmem:[%s7614_s3 + $0x1e8] sm:$0xff] }
 0x1a8   :  { %v942_v16 = vsel %vm939_vm12, %v941_v34, %v937_v23 }
 0x1ad   :  { %v3795_v5 = vpop.eup %3794 }
 0x1ae   :  { %v949_v39 = vmul.f32 %v3795_v5, %v942_v16 }
 0x1b0   :  { %3661 = vmatmul.msk.f32.vlgmr.msra.gmra.mxu0 %vm956_vm8, %v949_v39  ;;  %3662 = vmatmul.msk.f32.vlgmr.msra.gmra.mxu1 %vm956_vm8, %v949_v39  ;;  %v5361_v53 = vsel %vm956_vm8, %v949_v39, 0.0 }
 0x1b1   :  { %3663 = vmatmul.msk.f32.vlgmr.msra.gmra.mxu2 %vm956_vm8, %v949_v39  ;;  %3664 = vmatmul.msk.f32.vlgmr.msra.gmra.mxu3 %vm956_vm8, %v949_v39  ;;  %959 = vst [vmem:[%s7618_s7] sm:$0xff] %v5361_v53 }
 0x1b2   :  { %1295 = vmatpush.msra.mxu0 %v5372_v6  ;;  %1315 = vmatpush.msra.mxu1 %v5378_v42 }
 0x1b3   :  { %1335 = vmatpush.msra.mxu2 %v5384_v52  ;;  %1355 = vmatpush.msra.mxu3 %v5390_v35 }
 0x1b4   :  { %1296 = vmatpush.msra.mxu0 %v5396_v50  ;;  %1316 = vmatpush.msra.mxu1 %v5402_v28 }
 0x1b5   :  { %1336 = vmatpush.msra.mxu2 %v5408_v13  ;;  %1356 = vmatpush.msra.mxu3 %v5414_v19 }
 0x1b6   :  { %1297 = vmatpush.msra.mxu0 %v5420_v51  ;;  %1317 = vmatpush.msra.mxu1 %v5426_v25 }
 0x1b7   :  { %1337 = vmatpush.msra.mxu2 %v5432_v31  ;;  %1357 = vmatpush.msra.mxu3 %v4750_v45  ;;  %v7936_v45 = vld [vmem:[#allocation11_spill] sm:$0xff] }
 0x1b8   :  { %1298 = vmatpush.msra.mxu0 %v5439_v30  ;;  %1318 = vmatpush.msra.mxu1 %v5445_v24 }
 0x1b9   :  { %1338 = vmatpush.msra.mxu2 %v4745_v44  ;;  %1358 = vmatpush.msra.mxu3 %v4774_v49  ;;  %v7935_v44 = vld [vmem:[#allocation14_spill] sm:$0xff]  ;;  %v7940_v49 = vld [vmem:[#allocation15_spill] sm:$0xff] }
 0x1ba   :  { %1299 = vmatpush.msra.mxu0 %v4757_v46  ;;  %1319 = vmatpush.msra.mxu1 %v4762_v47  ;;  %v7937_v46 = vld [vmem:[#allocation12_spill] sm:$0xff]  ;;  %v7938_v47 = vld [vmem:[#allocation13_spill] sm:$0xff] }
 0x1bb   :  { %1339 = vmatpush.msra.mxu2 %v4767_v48  ;;  %1359 = vmatpush.msra.mxu3 %v4802_v58  ;;  %v7939_v48 = vld [vmem:[#allocation18_spill] sm:$0xff]  ;;  %v7944_v58 = vld [vmem:[#allocation19_spill] sm:$0xff] }
 0x1bc   :  { %1300 = vmatpush.msra.mxu0 %v4785_v55  ;;  %1320 = vmatpush.msra.mxu1 %v4790_v56  ;;  %v7941_v55 = vld [vmem:[#allocation16_spill] sm:$0xff]  ;;  %v7942_v56 = vld [vmem:[#allocation17_spill] sm:$0xff] }
 0x1bd   :  { %1340 = vmatpush.msra.mxu2 %v4795_v57  ;;  %1360 = vmatpush.msra.mxu3 %v4828_v2  ;;  %v7943_v57 = vld [vmem:[#allocation21_spill] sm:$0xff]  ;;  %v7948_v2 = vld [vmem:[#allocation24_spill] sm:$0xff] }
 0x1be   :  { %1301 = vmatpush.msra.mxu0 %v4811_v63  ;;  %1321 = vmatpush.msra.mxu1 %v4816_v0  ;;  %v7945_v63 = vld [vmem:[#allocation20_spill] sm:$0xff]  ;;  %v7946_v0 = vld [vmem:[#allocation22_spill] sm:$0xff] }
 0x1bf   :  { %1341 = vmatpush.msra.mxu2 %v4821_v1  ;;  %1361 = vmatpush.msra.mxu3 %v4854_v11  ;;  %v7947_v1 = vld [vmem:[#allocation23_spill] sm:$0xff]  ;;  %v7951_v11 = vld [vmem:[#allocation82_spill] sm:$0xff] }
 0x1c0   :  { %1302 = vmatpush.msra.mxu0 %v4837_v8  ;;  %1322 = vmatpush.msra.mxu1 %v4842_v9  ;;  %v7949_v8 = vld [vmem:[#allocation81_spill] sm:$0xff] }
 0x1c1   :  { %1342 = vmatpush.msra.mxu2 %v4847_v10  ;;  %1362 = vmatpush.msra.mxu3 %v4880_v27  ;;  %v611_v9 = vadd.f32 %v7949_v8, %v7948_v2  ;;  %v7950_v10 = vld [vmem:[#allocation25_spill] sm:$0xff] }
 0x1c2   :  { %1303 = vmatpush.msra.mxu0 %v4863_v17  ;;  %1323 = vmatpush.msra.mxu1 %v4868_v21  ;;  %v612_v17 = vadd.f32 %v7951_v11, %v7950_v10 }
 0x1c3   :  { %1343 = vmatpush.msra.mxu2 %v4873_v3  ;;  %1363 = vmatpush.msra.mxu3 %v4904_v38  ;;  %v7952_v38 = vld [vmem:[#allocation26_spill] sm:$0xff] }
 0x1c4   :  { %1304 = vmatpush.msra.mxu0 %v4885_v29  ;;  %1324 = vmatpush.msra.mxu1 %v4890_v33 }
 0x1c5   :  { %1344 = vmatpush.msra.mxu2 %v4899_v37  ;;  %1364 = vmatpush.msra.mxu3 %v4932_v61 }
 0x1c6   :  { %1305 = vmatpush.msra.mxu0 %v4915_v54  ;;  %1325 = vmatpush.msra.mxu1 %v4920_v59  ;;  %v7953_v54 = vld [vmem:[#allocation9_spill] sm:$0xff] }
 0x1c7   :  { %1345 = vmatpush.msra.mxu2 %v4925_v60  ;;  %1365 = vmatpush.msra.mxu3 %v4956_v12  ;;  %v613_v59 = vadd.f32 %v7953_v54, %v7952_v38 }
 0x1c8   :  { %1306 = vmatpush.msra.mxu0 %v4937_v62  ;;  %1326 = vmatpush.msra.mxu1 %v4942_v4 }
 0x1c9   :  { %1346 = vmatpush.msra.mxu2 %v4951_v7  ;;  %1366 = vmatpush.msra.mxu3 %v7856_v22 }
 0x1ca   :  { %1307 = vmatpush.msra.mxu0 %v4967_v40  ;;  %1327 = vmatpush.msra.mxu1 %v4972_v43 }
 0x1cb   :  { %1347 = vmatpush.msra.mxu2 %v7857_v36  ;;  %1367 = vmatpush.msra.mxu3 %v7935_v44  ;;  %v7954_v36 = vld [vmem:[#allocation27_spill] sm:$0xff] }
 0x1cc   :  { %1308 = vmatpush.msra.mxu0 %v7936_v45  ;;  %1328 = vmatpush.msra.mxu1 %v7937_v46  ;;  %v614_v18 = vadd.f32 %v7955_v26, %v7954_v36  ;;  %v5551_v36 = vld [vmem:[%s7614_s3 + $0x198] sm:$0xff] }
 0x1cd   :  { %1348 = vmatpush.msra.mxu2 %v7938_v47  ;;  %1368 = vmatpush.msra.mxu3 %v7939_v48 }
 0x1ce   :  { %1309 = vmatpush.msra.mxu0 %v7940_v49  ;;  %1329 = vmatpush.msra.mxu1 %v7941_v55 }
 0x1cf   :  { %1349 = vmatpush.msra.mxu2 %v7942_v56  ;;  %1369 = vmatpush.msra.mxu3 %v7943_v57 }
 0x1d0   :  { %1310 = vmatpush.msra.mxu0 %v7944_v58  ;;  %1330 = vmatpush.msra.mxu1 %v7945_v63 }
 0x1d1   :  { %1350 = vmatpush.msra.mxu2 %v7946_v0  ;;  %1370 = vmatpush.msra.mxu3 %v7947_v1 }
 0x22d   :  { %v982_v21 = vpop.f32.mrf.mxu0  ;;  %v1002_v3 = vpop.f32.mrf.mxu1 }
 0x22e   :  { %v1045_v27 = vadd.f32 %v982_v21, %v611_v9  ;;  %v1046_v29 = vadd.f32 %v1002_v3, %v612_v17 }
 0x230   :  { %v3665_v33 = vmul.f32 -1.442695, %v1045_v27  ;;  %v3666_v37 = vmul.f32 -1.442695, %v1046_v29 }
 0x232   :  { %3796 = vpow2.f32 %v3665_v33  ;;  %v1118_v33 = vpop.permute.xlu2 %1117 }
 0x233   :  { %3798 = vpow2.f32 %v3666_v37  ;;  %vm1119_vm5 = vcmp.eq.s32.totalorder %v1118_v33, 1  ;;  %v5737_v33 = vld [vmem:[%s7614_s3 + $0x90] sm:$0xff] }
 0x234   :  { %v1022_v60 = vpop.f32.mrf.mxu2  ;;  %v1042_v43 = vpop.f32.mrf.mxu3  ;;  %7966 = vst [vmem:[#allocation20_spill] sm:$0xff] %v5737_v33 }
 0x235   :  { %v1047_v61 = vadd.f32 %v1022_v60, %v613_v59  ;;  %v1048_v20 = vadd.f32 %v1042_v43, %v614_v18  ;;  %v5557_v18 = vld [vmem:[%s7614_s3 + $0x160] sm:$0xff] }
 0x237   :  { %v3667_v62 = vmul.f32 -1.442695, %v1047_v61 }
 0x238   :  { %v3797_v4 = vpop.eup %3796 }
 0x239   :  { %v3799_v7 = vpop.eup %3798  ;;  %v1058_v12 = vadd.f32 1.0, %v3797_v4  ;;  %3800 = vpow2.f32 %v3667_v62 }
 0x23a   :  { %v1059_v40 = vadd.f32 1.0, %v3799_v7 }
 0x23b   :  { %3802 = vrcp.f32 %v1058_v12  ;;  %v1072_v39 = vand.u32 2147483648, %v1058_v12  ;;  %v1070_v46 = vand.u32 2147483647, %v1058_v12  ;;  %vm1066_vm15 = vweird.f32 %v1058_v12 }
 0x23c   :  { %3804 = vrcp.f32 %v1059_v40  ;;  %v1087_v44 = vand.u32 2147483648, %v1059_v40  ;;  %v1085_v48 = vand.u32 2147483647, %v1059_v40  ;;  %vm1081_vm0 = vweird.f32 %v1059_v40 }
 0x23d   :  { %v1073_v57 = vor.u32 1.1754944e-38, %v1072_v39  ;;  %vm1071_vm3 = vcmp.eq.f32.partialorder %v1070_v46, 8.507059e+37  ;;  %v5611_v39 = vld [vmem:[%s7614_s3 + $0x128] sm:$0xff]  ;;  %v5629_v46 = vld [vmem:[%s7614_s3 + $0x100] sm:$0xff] }
 0x23e   :  { %v1088_v63 = vor.u32 1.1754944e-38, %v1087_v44  ;;  %vm1086_vm4 = vcmp.eq.f32.partialorder %v1085_v48, 8.507059e+37  ;;  %v5617_v44 = vld [vmem:[%s7614_s3 + $0x130] sm:$0xff] }
 0x23f   :  { %v3801_v22 = vpop.eup %3800  ;;  %v5641_v48 = vld [vmem:[%s7614_s3 + $0x110] sm:$0xff] }
 0x240   :  { %v1060_v32 = vadd.f32 1.0, %v3801_v22 }
 0x241   :  { %v3803_v14 = vpop.eup %3802 }
 0x242   :  { %v3805_v15 = vpop.eup %3804  ;;  %v1062_v23 = vmul.f32 %v3803_v14, %v1058_v12  ;;  %3806 = vrcp.f32 %v1060_v32  ;;  %vm1067_vm13 = vweird.f32 %v3803_v14  ;;  %v1102_v59 = vand.u32 2147483648, %v1060_v32 }
 0x243   :  { %v1077_v34 = vmul.f32 %v3805_v15, %v1059_v40  ;;  %3808 = vtanh.f32 %v1048_v20  ;;  %vm1082_vm14 = vweird.f32 %v3805_v15  ;;  %vm1068_vm1 = vmor %vm1066_vm15, %vm1067_vm13  ;;  %vm1096_vm7 = vweird.f32 %v1060_v32  ;;  %v5575_v20 = vld [vmem:[%s7614_s3 + $0x178] sm:$0xff] }
 0x244   :  { %v1063_v5 = vsub.f32 1.0, %v1062_v23  ;;  %vm1083_vm2 = vmor %vm1081_vm0, %vm1082_vm14  ;;  %v1100_v61 = vand.u32 2147483647, %v1060_v32  ;;  %v1103_v4 = vor.u32 1.1754944e-38, %v1102_v59  ;;  %v5587_v23 = vld [vmem:[%s7614_s3 + $0x148] sm:$0xff] }
 0x245   :  { %v1078_v16 = vsub.f32 1.0, %v1077_v34  ;;  %v5593_v34 = vld [vmem:[%s7614_s3 + $0x150] sm:$0xff]  ;;  %v5755_v59 = vld [vmem:[%s7614_s3 + $0x68] sm:$0xff] }
 0x246   :  { %v1064_v45 = vmul.f32 %v3803_v14, %v1063_v5  ;;  %vm1101_vm9 = vcmp.eq.f32.partialorder %v1100_v61, 8.507059e+37  ;;  %v5599_v5 = vld [vmem:[%s7614_s3 + $0x158] sm:$0xff]  ;;  %7969 = vst [vmem:[#allocation24_spill] sm:$0xff] %v5755_v59  ;;  %v5761_v61 = vld [vmem:[%s7614_s3 + $0x70] sm:$0xff] }
 0x247   :  { %v1079_v47 = vmul.f32 %v3805_v15, %v1078_v16  ;;  %v5605_v16 = vld [vmem:[%s7614_s3 + $0x120] sm:$0xff]  ;;  %7970 = vst [vmem:[#allocation25_spill] sm:$0xff] %v5761_v61 }
 0x248   :  { %v3807_v49 = vpop.eup %3806  ;;  %v1065_v55 = vadd.f32 %v3803_v14, %v1064_v45  ;;  %v5623_v45 = vld [vmem:[%s7614_s3 + $0x138] sm:$0xff] }
 0x249   :  { %v1092_v56 = vmul.f32 %v3807_v49, %v1060_v32  ;;  %v1080_v58 = vadd.f32 %v3805_v15, %v1079_v47  ;;  %v3809_v2 = vpop.eup %3808  ;;  %vm1097_vm6 = vweird.f32 %v3807_v49  ;;  %v5563_v32 = vld [vmem:[%s7614_s3 + $0x168] sm:$0xff] }
 0x24a   :  { %v1069_v0 = vsel %vm1068_vm1, %v3803_v14, %v1065_v55  ;;  %vm1098_vm8 = vmor %vm1096_vm7, %vm1097_vm6  ;;  %v5569_v14 = vld [vmem:[%s7614_s3 + $0x170] sm:$0xff]  ;;  %v5635_v47 = vld [vmem:[%s7614_s3 + $0x108] sm:$0xff] }
 0x24b   :  { %v1093_v9 = vsub.f32 1.0, %v1092_v56  ;;  %v1074_v10 = vsel %vm1071_vm3, %v1073_v57, %v1069_v0  ;;  %v1084_v17 = vsel %vm1083_vm2, %v3805_v15, %v1080_v58  ;;  %v5581_v15 = vld [vmem:[%s7614_s3 + $0x140] sm:$0xff]  ;;  %v5659_v56 = vld [vmem:[%s7614_s3 + $0xe8] sm:$0xff]  ;;  %v5665_v57 = vld [vmem:[%s7614_s3 + $0xf0] sm:$0xff] }
 0x24c   :  { %v1089_v21 = vsel %vm1086_vm4, %v1088_v63, %v1084_v17  ;;  %v1108_v3 = vmul.f32 %v3809_v2, %v1074_v10  ;;  %v5653_v55 = vld [vmem:[%s7614_s3 + $0xe0] sm:$0xff]  ;;  %v5671_v58 = vld [vmem:[%s7614_s3 + $0xf8] sm:$0xff]  ;;  %v5683_v0 = vld [vmem:[%s7614_s3 + $0xc8] sm:$0xff] }
 0x24d   :  { %v1094_v27 = vmul.f32 %v3807_v49, %v1093_v9  ;;  %v1107_v29 = vmul.f32 %v1089_v21, %v5356_v41  ;;  %v5677_v63 = vld [vmem:[%s7614_s3 + $0xc0] sm:$0xff]  ;;  %7957 = vst [vmem:[#allocation11_spill] sm:$0xff] %v5683_v0  ;;  %v5689_v2 = vld [vmem:[%s7614_s3 + $0xd0] sm:$0xff]  ;;  %v5695_v9 = vld [vmem:[%s7614_s3 + $0xd8] sm:$0xff] }
 0x24e   :  { %7956 = vst [vmem:[#allocation14_spill] sm:$0xff] %v5677_v63  ;;  %v5701_v10 = vld [vmem:[%s7614_s3 + $0xa0] sm:$0xff]  ;;  %v5707_v17 = vld [vmem:[%s7614_s3 + $0xa8] sm:$0xff]  ;;  %v5713_v21 = vld [vmem:[%s7614_s3 + $0xb0] sm:$0xff] }
 0x24f   :  { %v1109_v37 = vadd.f32 %v1108_v3, %v1107_v29  ;;  %v1095_v38 = vadd.f32 %v3807_v49, %v1094_v27  ;;  %7958 = vst [vmem:[#allocation12_spill] sm:$0xff] %v5689_v2  ;;  %v5719_v3 = vld [vmem:[%s7614_s3 + $0xb8] sm:$0xff]  ;;  %v5725_v27 = vld [vmem:[%s7614_s3 + $0x80] sm:$0xff]  ;;  %v5731_v29 = vld [vmem:[%s7614_s3 + $0x88] sm:$0xff] }
 0x250   :  { %7959 = vst [vmem:[#allocation13_spill] sm:$0xff] %v5695_v9 }
 0x251   :  { %3810 = vtanh.f32 %v1109_v37  ;;  %v5509_v60 = vsel %vm1119_vm5, %v1109_v37, %v5356_v41  ;;  %v1099_v62 = vsel %vm1098_vm8, %v3807_v49, %v1095_v38  ;;  %v5537_v41 = vld [vmem:[%s7614_s3 + $0x1b8] sm:$0xff]  ;;  %7960 = vst [vmem:[#allocation18_spill] sm:$0xff] %v5701_v10  ;;  %v5749_v38 = vld [vmem:[%s7614_s3 + $0x60] sm:$0xff] }
 0x252   :  { %v1104_v12 = vsel %vm1101_vm9, %v1103_v4, %v1099_v62  ;;  %v5647_v49 = vld [vmem:[%s7614_s3 + $0x118] sm:$0xff]  ;;  %7961 = vst [vmem:[#allocation15_spill] sm:$0xff] %v5707_v17  ;;  %v5773_v4 = vld [vmem:[%s7614_s3 + $0x40] sm:$0xff] }
 0x253   :  { %7962 = vst [vmem:[#allocation16_spill] sm:$0xff] %v5713_v21  ;;  %v5743_v37 = vld [vmem:[%s7614_s3 + $0x98] sm:$0xff] }
 0x254   :  { %7963 = vst [vmem:[#allocation17_spill] sm:$0xff] %v5719_v3  ;;  %v5767_v62 = vld [vmem:[%s7614_s3 + $0x78] sm:$0xff] }
 0x255   :  { %7964 = vst [vmem:[#allocation21_spill] sm:$0xff] %v5725_v27 }
 0x256   :  { %7965 = vst [vmem:[#allocation19_spill] sm:$0xff] %v5731_v29 }
 0x257   :  { %v3811_v7 = vpop.eup %3810  ;;  %7967 = vst [vmem:[#allocation22_spill] sm:$0xff] %v5743_v37 }
 0x258   :  { %v1111_v40 = vmul.f32 %v3811_v7, %v1104_v12  ;;  %7968 = vst [vmem:[#allocation23_spill] sm:$0xff] %v5749_v38  ;;  %v5779_v7 = vld [vmem:[%s7614_s3 + $0x48] sm:$0xff]  ;;  %v5785_v12 = vld [vmem:[%s7614_s3 + $0x50] sm:$0xff] }
 0x259   :  { %7971 = vst [vmem:[#allocation26_spill] sm:$0xff] %v5767_v62 }
 0x25a   :  { %v5513_v43 = vsel %vm1119_vm5, %v1111_v40, %v5361_v53  ;;  %v1122_v22 = vsel %vm1119_vm5, %v1111_v40, 0.0  ;;  %v5545_v53 = vld [vmem:[%s7614_s3 + $0x190] sm:$0xff]  ;;  %7972 = vst [vmem:[#allocation27_spill] sm:$0xff] %v5773_v4  ;;  %v5791_v40 = vld [vmem:[%s7614_s3 + $0x58] sm:$0xff] }
 0x25b   :  { %3669 = vst [vmem:[%s7618_s7 + $0x8] sm:$0xff] %v1122_v22  ;;  %1146 = vmatmul.f32.vlgmr.msrb.gmra.mxu0 %v5513_v43  ;;  %1166 = vmatmul.f32.vlgmr.msrb.gmra.mxu1 %v5513_v43  ;;  %v5797_v22 = vld [vmem:[%s7614_s3 + $0x20] sm:$0xff] }
 0x25c   :  { %1186 = vmatmul.f32.vlgmr.msrb.gmra.mxu2 %v5513_v43  ;;  %1206 = vmatmul.f32.vlgmr.msrb.gmra.mxu3 %v5513_v43  ;;  %7973 = vst [vmem:[#allocation86_spill] sm:$0xff] %v5779_v7 }
 0x25d   :  { %1460 = vmatpush.msrb.mxu0 %v5372_v6  ;;  %1480 = vmatpush.msrb.mxu1 %v5378_v42  ;;  %7974 = vst [vmem:[#allocation87_spill] sm:$0xff] %v5785_v12 }
 0x25e   :  { %1500 = vmatpush.msrb.mxu2 %v5384_v52  ;;  %1520 = vmatpush.msrb.mxu3 %v5390_v35  ;;  %7975 = vst [vmem:[#allocation88_spill] sm:$0xff] %v5791_v40 }
 0x25f   :  { %1461 = vmatpush.msrb.mxu0 %v5396_v50  ;;  %1481 = vmatpush.msrb.mxu1 %v5402_v28  ;;  %7976 = vst [vmem:[#allocation89_spill] sm:$0xff] %v5797_v22 }
 0x260   :  { %1501 = vmatpush.msrb.mxu2 %v5408_v13  ;;  %1521 = vmatpush.msrb.mxu3 %v5414_v19 }
 0x261   :  { %1462 = vmatpush.msrb.mxu0 %v5420_v51  ;;  %1482 = vmatpush.msrb.mxu1 %v5426_v25 }
 0x262   :  { %1502 = vmatpush.msrb.mxu2 %v5432_v31  ;;  %1522 = vmatpush.msrb.mxu3 %v5537_v41 }
 0x263   :  { %1463 = vmatpush.msrb.mxu0 %v5439_v30  ;;  %1483 = vmatpush.msrb.mxu1 %v5445_v24 }
 0x264   :  { %1503 = vmatpush.msrb.mxu2 %v5545_v53  ;;  %1523 = vmatpush.msrb.mxu3 %v5551_v36 }
 0x265   :  { %1464 = vmatpush.msrb.mxu0 %v5557_v18  ;;  %1484 = vmatpush.msrb.mxu1 %v5563_v32 }
 0x266   :  { %1504 = vmatpush.msrb.mxu2 %v5569_v14  ;;  %1524 = vmatpush.msrb.mxu3 %v5575_v20 }
 0x267   :  { %1465 = vmatpush.msrb.mxu0 %v5581_v15  ;;  %1485 = vmatpush.msrb.mxu1 %v5587_v23 }
 0x268   :  { %1505 = vmatpush.msrb.mxu2 %v5593_v34  ;;  %1525 = vmatpush.msrb.mxu3 %v5599_v5 }
 0x269   :  { %1466 = vmatpush.msrb.mxu0 %v5605_v16  ;;  %1486 = vmatpush.msrb.mxu1 %v5611_v39 }
 0x26a   :  { %1506 = vmatpush.msrb.mxu2 %v5617_v44  ;;  %1526 = vmatpush.msrb.mxu3 %v5623_v45 }
 0x26b   :  { %1467 = vmatpush.msrb.mxu0 %v5629_v46  ;;  %1487 = vmatpush.msrb.mxu1 %v5635_v47 }
 0x26c   :  { %1507 = vmatpush.msrb.mxu2 %v5641_v48  ;;  %1527 = vmatpush.msrb.mxu3 %v5647_v49 }
 0x26d   :  { %1468 = vmatpush.msrb.mxu0 %v5653_v55  ;;  %1488 = vmatpush.msrb.mxu1 %v5659_v56 }
 0x26e   :  { %1508 = vmatpush.msrb.mxu2 %v5665_v57  ;;  %1528 = vmatpush.msrb.mxu3 %v5671_v58 }
 0x26f   :  { %1469 = vmatpush.msrb.mxu0 %v5677_v63  ;;  %1489 = vmatpush.msrb.mxu1 %v5683_v0  ;;  %v1283_v0 = vpop.permute.xlu0 %1282 }
 0x270   :  { %1509 = vmatpush.msrb.mxu2 %v5689_v2  ;;  %1529 = vmatpush.msrb.mxu3 %v5695_v9  ;;  %vm1284_vm2 = vcmp.eq.s32.totalorder %v1283_v0, 1  ;;  %v7989_v0 = vld [vmem:[#allocation12_spill] sm:$0xff] }
 0x271   :  { %1470 = vmatpush.msrb.mxu0 %v5701_v10  ;;  %1490 = vmatpush.msrb.mxu1 %v5707_v17 }
 0x272   :  { %1510 = vmatpush.msrb.mxu2 %v5713_v21  ;;  %1530 = vmatpush.msrb.mxu3 %v5719_v3 }
 0x273   :  { %1471 = vmatpush.msrb.mxu0 %v5725_v27  ;;  %1491 = vmatpush.msrb.mxu1 %v5731_v29  ;;  %v7985_v29 = vld [vmem:[#allocation30_spill] sm:$0xff] }
 0x274   :  { %1511 = vmatpush.msrb.mxu2 %v5737_v33  ;;  %1531 = vmatpush.msrb.mxu3 %v5743_v37  ;;  %v617_v27 = vadd.f32 %v7953_v54, %v7985_v29 }
 0x275   :  { %1472 = vmatpush.msrb.mxu0 %v5749_v38  ;;  %1492 = vmatpush.msrb.mxu1 %v5755_v59 }
 0x276   :  { %1512 = vmatpush.msrb.mxu2 %v5761_v61  ;;  %1532 = vmatpush.msrb.mxu3 %v5767_v62 }
 0x277   :  { %1473 = vmatpush.msrb.mxu0 %v5773_v4  ;;  %1493 = vmatpush.msrb.mxu1 %v5779_v7  ;;  %v5803_v7 = vld [vmem:[%s7614_s3 + $0x28] sm:$0xff] }
 0x278   :  { %1513 = vmatpush.msrb.mxu2 %v5785_v12  ;;  %1533 = vmatpush.msrb.mxu3 %v5791_v40  ;;  %7977 = vst [vmem:[#allocation90_spill] sm:$0xff] %v5803_v7  ;;  %v5809_v12 = vld [vmem:[%s7614_s3 + $0x30] sm:$0xff]  ;;  %v5815_v40 = vld [vmem:[%s7614_s3 + $0x38] sm:$0xff] }
 0x279   :  { %1474 = vmatpush.msrb.mxu0 %v5797_v22  ;;  %1494 = vmatpush.msrb.mxu1 %v5803_v7  ;;  %7978 = vst [vmem:[#allocation91_spill] sm:$0xff] %v5809_v12  ;;  %v5821_v22 = vld [vmem:[%s7614_s3] sm:$0xff]  ;;  %v5827_v7 = vld [vmem:[%s7614_s3 + $0x8] sm:$0xff] }
 0x27a   :  { %1514 = vmatpush.msrb.mxu2 %v5809_v12  ;;  %7979 = vst [vmem:[#allocation92_spill] sm:$0xff] %v5815_v40  ;;  %1534 = vmatpush.msrb.mxu3 %v5815_v40  ;;  %v5833_v12 = vld [vmem:[%s7614_s3 + $0x10] sm:$0xff]  ;;  %v7983_v40 = vld [vmem:[#allocation28_spill] sm:$0xff] }
 0x27b   :  { %7980 = vst [vmem:[#allocation93_spill] sm:$0xff] %v5821_v22  ;;  %1475 = vmatpush.msrb.mxu0 %v5821_v22  ;;  %1495 = vmatpush.msrb.mxu1 %v5827_v7  ;;  %v615_v4 = vadd.f32 %v7949_v8, %v7983_v40  ;;  %v7984_v22 = vld [vmem:[#allocation29_spill] sm:$0xff] }
 0x27c   :  { %7981 = vst [vmem:[#allocation94_spill] sm:$0xff] %v5827_v7  ;;  %1515 = vmatpush.msrb.mxu2 %v5833_v12  ;;  %1535 = vmatpush.msrb.mxu3 %v7947_v1  ;;  %v616_v62 = vadd.f32 %v7951_v11, %v7984_v22 }
 0x27d   :  { %7982 = vst [vmem:[#allocation95_spill] sm:$0xff] %v5833_v12 }
 0x2d8   :  { %v1147_v61 = vpop.f32.mrf.mxu0  ;;  %v1167_v59 = vpop.f32.mrf.mxu1 }
 0x2d9   :  { %v1210_v38 = vadd.f32 %v1147_v61, %v615_v4  ;;  %v1211_v37 = vadd.f32 %v1167_v59, %v616_v62  ;;  %v7986_v59 = vld [vmem:[#allocation31_spill] sm:$0xff] }
 0x2db   :  { %v3670_v7 = vmul.f32 -1.442695, %v1210_v38  ;;  %v3671_v33 = vmul.f32 -1.442695, %v1211_v37  ;;  %v618_v37 = vadd.f32 %v7955_v26, %v7986_v59 }
 0x2dd   :  { %3812 = vpow2.f32 %v3670_v7 }
 0x2de   :  { %3814 = vpow2.f32 %v3671_v33 }
 0x2df   :  { %v1187_v12 = vpop.f32.mrf.mxu2  ;;  %v1207_v22 = vpop.f32.mrf.mxu3 }
 0x2e0   :  { %v1212_v3 = vadd.f32 %v1187_v12, %v617_v27  ;;  %v1213_v4 = vadd.f32 %v1207_v22, %v618_v37 }
 0x2e2   :  { %v3672_v1 = vmul.f32 -1.442695, %v1212_v3 }
 0x2e3   :  { %v3813_v21 = vpop.eup %3812 }
 0x2e4   :  { %v3815_v17 = vpop.eup %3814  ;;  %v1223_v40 = vadd.f32 1.0, %v3813_v21  ;;  %3816 = vpow2.f32 %v3672_v1 }
 0x2e5   :  { %v1224_v8 = vadd.f32 1.0, %v3815_v17 }
 0x2e6   :  { %3818 = vrcp.f32 %v1223_v40  ;;  %v1237_v12 = vand.u32 2147483648, %v1223_v40  ;;  %v1235_v1 = vand.u32 2147483647, %v1223_v40  ;;  %vm1231_vm12 = vweird.f32 %v1223_v40 }
 0x2e7   :  { %3820 = vrcp.f32 %v1224_v8  ;;  %v1252_v21 = vand.u32 2147483648, %v1224_v8  ;;  %v1250_v11 = vand.u32 2147483647, %v1224_v8  ;;  %vm1246_vm13 = vweird.f32 %v1224_v8 }
 0x2e8   :  { %vm1236_vm0 = vcmp.eq.f32.partialorder %v1235_v1, 8.507059e+37  ;;  %v7992_v1 = vld [vmem:[#allocation15_spill] sm:$0xff] }
 0x2e9   :  { %vm1251_vm1 = vcmp.eq.f32.partialorder %v1250_v11, 8.507059e+37 }
 0x2ea   :  { %v3817_v61 = vpop.eup %3816 }
 0x2eb   :  { %v1225_v38 = vadd.f32 1.0, %v3817_v61  ;;  %v1238_v61 = vor.u32 1.1754944e-38, %v1237_v12 }
 0x2ec   :  { %v3819_v62 = vpop.eup %3818 }
 0x2ed   :  { %v3821_v29 = vpop.eup %3820  ;;  %v1227_v33 = vmul.f32 %v3819_v62, %v1223_v40  ;;  %3822 = vrcp.f32 %v1225_v38  ;;  %vm1232_vm10 = vweird.f32 %v3819_v62  ;;  %vm1261_vm4 = vweird.f32 %v1225_v38 }
 0x2ee   :  { %v1242_v27 = vmul.f32 %v3821_v29, %v1224_v8  ;;  %3824 = vtanh.f32 %v1213_v4  ;;  %vm1247_vm11 = vweird.f32 %v3821_v29  ;;  %vm1233_vm14 = vmor %vm1231_vm12, %vm1232_vm10  ;;  %v1265_v12 = vand.u32 2147483647, %v1225_v38 }
 0x2ef   :  { %v1228_v3 = vsub.f32 1.0, %v1227_v33  ;;  %vm1248_vm15 = vmor %vm1246_vm13, %vm1247_vm11  ;;  %v1253_v33 = vor.u32 1.1754944e-38, %v1252_v21 }
 0x2f0   :  { %v1243_v7 = vsub.f32 1.0, %v1242_v27  ;;  %vm1266_vm6 = vcmp.eq.f32.partialorder %v1265_v12, 8.507059e+37  ;;  %v8006_v12 = vld [vmem:[#allocation88_spill] sm:$0xff] }
 0x2f1   :  { %v1229_v17 = vmul.f32 %v3819_v62, %v1228_v3 }
 0x2f2   :  { %v1244_v54 = vmul.f32 %v3821_v29, %v1243_v7 }
 0x2f3   :  { %v3823_v10 = vpop.eup %3822  ;;  %v1230_v59 = vadd.f32 %v3819_v62, %v1229_v17 }
 0x2f4   :  { %v1257_v22 = vmul.f32 %v3823_v10, %v1225_v38  ;;  %v1245_v37 = vadd.f32 %v3821_v29, %v1244_v54  ;;  %v3825_v4 = vpop.eup %3824  ;;  %vm1262_vm3 = vweird.f32 %v3823_v10  ;;  %v1267_v54 = vand.u32 2147483648, %v1225_v38  ;;  %v7991_v38 = vld [vmem:[#allocation18_spill] sm:$0xff] }
 0x2f5   :  { %v1234_v27 = vsel %vm1233_vm14, %v3819_v62, %v1230_v59  ;;  %vm1263_vm5 = vmor %vm1261_vm4, %vm1262_vm3  ;;  %v7993_v59 = vld [vmem:[#allocation16_spill] sm:$0xff] }
 0x2f6   :  { %v1258_v26 = vsub.f32 1.0, %v1257_v22  ;;  %v1239_v3 = vsel %vm1236_vm0, %v1238_v61, %v1234_v27  ;;  %v1249_v9 = vsel %vm1248_vm15, %v3821_v29, %v1245_v37  ;;  %v7994_v22 = vld [vmem:[#allocation17_spill] sm:$0xff]  ;;  %v7996_v37 = vld [vmem:[#allocation19_spill] sm:$0xff]  ;;  %v7998_v27 = vld [vmem:[#allocation22_spill] sm:$0xff] }
 0x2f7   :  { %v1254_v7 = vsel %vm1251_vm1, %v1253_v33, %v1249_v9  ;;  %v1273_v2 = vmul.f32 %v3825_v4, %v1239_v3  ;;  %v1268_v9 = vor.u32 1.1754944e-38, %v1267_v54  ;;  %v7995_v61 = vld [vmem:[#allocation21_spill] sm:$0xff]  ;;  %v7997_v33 = vld [vmem:[#allocation20_spill] sm:$0xff]  ;;  %v7999_v4 = vld [vmem:[#allocation23_spill] sm:$0xff] }
 0x2f8   :  { %v1259_v63 = vmul.f32 %v3823_v10, %v1258_v26  ;;  %v1272_v40 = vmul.f32 %v1254_v7, %v5509_v60  ;;  %v8000_v3 = vld [vmem:[#allocation24_spill] sm:$0xff]  ;;  %v8001_v7 = vld [vmem:[#allocation25_spill] sm:$0xff]  ;;  %v8005_v54 = vld [vmem:[#allocation87_spill] sm:$0xff] }
 0x2fa   :  { %v1274_v8 = vadd.f32 %v1273_v2, %v1272_v40  ;;  %v1260_v17 = vadd.f32 %v3823_v10, %v1259_v63  ;;  %v8002_v40 = vld [vmem:[#allocation26_spill] sm:$0xff] }
 0x2fc   :  { %3826 = vtanh.f32 %v1274_v8  ;;  %v5848_v62 = vsel %vm1284_vm2, %v1274_v8, %v5509_v60  ;;  %v1264_v11 = vsel %vm1263_vm5, %v3823_v10, %v1260_v17  ;;  %v7987_v60 = vld [vmem:[#allocation14_spill] sm:$0xff]  ;;  %v7990_v10 = vld [vmem:[#allocation13_spill] sm:$0xff]  ;;  %v8003_v8 = vld [vmem:[#allocation27_spill] sm:$0xff] }
 0x2fd   :  { %v1269_v26 = vsel %vm1266_vm6, %v1268_v9, %v1264_v11  ;;  %v8004_v17 = vld [vmem:[#allocation86_spill] sm:$0xff]  ;;  %v8007_v11 = vld [vmem:[#allocation89_spill] sm:$0xff] }
 0x2fe   :  { %v8008_v9 = vld [vmem:[#allocation90_spill] sm:$0xff] }
 0x302   :  { %v3827_v29 = vpop.eup %3826 }
 0x303   :  { %v1276_v21 = vmul.f32 %v3827_v29, %v1269_v26  ;;  %v8009_v29 = vld [vmem:[#allocation91_spill] sm:$0xff]  ;;  %v8010_v26 = vld [vmem:[#allocation92_spill] sm:$0xff] }
 0x305   :  { %v5852_v2 = vsel %vm1284_vm2, %v1276_v21, %v5513_v43  ;;  %v1287_v63 = vsel %vm1284_vm2, %v1276_v21, 0.0  ;;  %v7988_v43 = vld [vmem:[#allocation11_spill] sm:$0xff]  ;;  %v8011_v21 = vld [vmem:[#allocation93_spill] sm:$0xff] }
 0x306   :  { %3674 = vst [vmem:[%s7618_s7 + $0x10] sm:$0xff] %v1287_v63  ;;  %1311 = vmatmul.f32.vlgmr.msra.gmra.mxu0 %v5852_v2  ;;  %1331 = vmatmul.f32.vlgmr.msra.gmra.mxu1 %v5852_v2  ;;  %v8012_v63 = vld [vmem:[#allocation94_spill] sm:$0xff] }
 0x307   :  { %1351 = vmatmul.f32.vlgmr.msra.gmra.mxu2 %v5852_v2  ;;  %1371 = vmatmul.f32.vlgmr.msra.gmra.mxu3 %v5852_v2 }
 0x308   :  { %1625 = vmatpush.msra.mxu0 %v5372_v6  ;;  %1645 = vmatpush.msra.mxu1 %v5378_v42 }
 0x309   :  { %1665 = vmatpush.msra.mxu2 %v5384_v52  ;;  %1685 = vmatpush.msra.mxu3 %v5390_v35 }
 0x30a   :  { %1626 = vmatpush.msra.mxu0 %v5396_v50  ;;  %1646 = vmatpush.msra.mxu1 %v5402_v28 }
 0x30b   :  { %1666 = vmatpush.msra.mxu2 %v5408_v13  ;;  %1686 = vmatpush.msra.mxu3 %v5414_v19 }
 0x30c   :  { %1627 = vmatpush.msra.mxu0 %v5420_v51  ;;  %1647 = vmatpush.msra.mxu1 %v5426_v25 }
 0x30d   :  { %1667 = vmatpush.msra.mxu2 %v5432_v31  ;;  %1687 = vmatpush.msra.mxu3 %v5537_v41 }
 0x30e   :  { %1628 = vmatpush.msra.mxu0 %v5439_v30  ;;  %1648 = vmatpush.msra.mxu1 %v5445_v24 }
 0x30f   :  { %1668 = vmatpush.msra.mxu2 %v5545_v53  ;;  %1688 = vmatpush.msra.mxu3 %v5551_v36 }
 0x310   :  { %1629 = vmatpush.msra.mxu0 %v5557_v18  ;;  %1649 = vmatpush.msra.mxu1 %v5563_v32 }
 0x311   :  { %1669 = vmatpush.msra.mxu2 %v5569_v14  ;;  %1689 = vmatpush.msra.mxu3 %v5575_v20 }
 0x312   :  { %1630 = vmatpush.msra.mxu0 %v5581_v15  ;;  %1650 = vmatpush.msra.mxu1 %v5587_v23 }
 0x313   :  { %1670 = vmatpush.msra.mxu2 %v5593_v34  ;;  %1690 = vmatpush.msra.mxu3 %v5599_v5 }
 0x314   :  { %1631 = vmatpush.msra.mxu0 %v5605_v16  ;;  %1651 = vmatpush.msra.mxu1 %v5611_v39 }
 0x315   :  { %1671 = vmatpush.msra.mxu2 %v5617_v44  ;;  %1691 = vmatpush.msra.mxu3 %v5623_v45 }
 0x316   :  { %1632 = vmatpush.msra.mxu0 %v5629_v46  ;;  %1652 = vmatpush.msra.mxu1 %v5635_v47 }
 0x317   :  { %1672 = vmatpush.msra.mxu2 %v5641_v48  ;;  %1692 = vmatpush.msra.mxu3 %v5647_v49 }
 0x318   :  { %1633 = vmatpush.msra.mxu0 %v5653_v55  ;;  %1653 = vmatpush.msra.mxu1 %v5659_v56 }
 0x319   :  { %1673 = vmatpush.msra.mxu2 %v5665_v57  ;;  %1693 = vmatpush.msra.mxu3 %v5671_v58 }
 0x31a   :  { %1634 = vmatpush.msra.mxu0 %v7987_v60  ;;  %1654 = vmatpush.msra.mxu1 %v7988_v43  ;;  %v1448_v43 = vpop.permute.xlu1 %1447 }
 0x31b   :  { %1674 = vmatpush.msra.mxu2 %v7989_v0  ;;  %1694 = vmatpush.msra.mxu3 %v7990_v10  ;;  %vm1449_vm15 = vcmp.eq.s32.totalorder %v1448_v43, 1  ;;  %v8038_v43 = vld [vmem:[#allocation26_spill] sm:$0xff] }
 0x31c   :  { %1635 = vmatpush.msra.mxu0 %v7991_v38  ;;  %1655 = vmatpush.msra.mxu1 %v7992_v1 }
 0x31d   :  { %1675 = vmatpush.msra.mxu2 %v7993_v59  ;;  %1695 = vmatpush.msra.mxu3 %v7994_v22 }
 0x31e   :  { %1636 = vmatpush.msra.mxu0 %v7995_v61  ;;  %1656 = vmatpush.msra.mxu1 %v7996_v37 }
 0x31f   :  { %1676 = vmatpush.msra.mxu2 %v7997_v33  ;;  %1696 = vmatpush.msra.mxu3 %v7998_v27  ;;  %v8020_v27 = vld [vmem:[#allocation9_spill] sm:$0xff] }
 0x320   :  { %1637 = vmatpush.msra.mxu0 %v7999_v4  ;;  %1657 = vmatpush.msra.mxu1 %v8000_v3 }
 0x321   :  { %1677 = vmatpush.msra.mxu2 %v8001_v7  ;;  %1697 = vmatpush.msra.mxu3 %v8002_v40  ;;  %v8013_v40 = vld [vmem:[#allocation95_spill] sm:$0xff] }
 0x322   :  { %1638 = vmatpush.msra.mxu0 %v8003_v8  ;;  %1658 = vmatpush.msra.mxu1 %v8004_v17  ;;  %v8017_v17 = vld [vmem:[#allocation33_spill] sm:$0xff] }
 0x323   :  { %1678 = vmatpush.msra.mxu2 %v8005_v54  ;;  %1698 = vmatpush.msra.mxu3 %v8006_v12  ;;  %v5928_v54 = vld [vmem:[%s7614_s3 + $0x18] sm:$0xff]  ;;  %v8016_v12 = vld [vmem:[#allocation81_spill] sm:$0xff] }
 0x324   :  { %1639 = vmatpush.msra.mxu0 %v8007_v11  ;;  %1659 = vmatpush.msra.mxu1 %v8008_v9  ;;  %8014 = vst [vmem:[#allocation28_spill] sm:$0xff] %v5928_v54  ;;  %v8015_v11 = vld [vmem:[#allocation32_spill] sm:$0xff] }
 0x325   :  { %1679 = vmatpush.msra.mxu2 %v8009_v29  ;;  %1699 = vmatpush.msra.mxu3 %v8010_v26  ;;  %v619_v9 = vadd.f32 %v8016_v12, %v8015_v11  ;;  %v8018_v29 = vld [vmem:[#allocation82_spill] sm:$0xff] }
 0x326   :  { %1640 = vmatpush.msra.mxu0 %v8011_v21  ;;  %1660 = vmatpush.msra.mxu1 %v8012_v63  ;;  %v620_v8 = vadd.f32 %v8018_v29, %v8017_v17 }
 0x327   :  { %1680 = vmatpush.msra.mxu2 %v8013_v40  ;;  %1700 = vmatpush.msra.mxu3 %v5928_v54  ;;  %v8019_v40 = vld [vmem:[#allocation34_spill] sm:$0xff] }
 0x328   :  { %v621_v33 = vadd.f32 %v8020_v27, %v8019_v40 }
 0x383   :  { %v1312_v26 = vpop.f32.mrf.mxu0  ;;  %v1332_v7 = vpop.f32.mrf.mxu1 }
 0x384   :  { %v1375_v21 = vadd.f32 %v1312_v26, %v619_v9  ;;  %v1376_v3 = vadd.f32 %v1332_v7, %v620_v8  ;;  %v8021_v7 = vld [vmem:[#allocation35_spill] sm:$0xff]  ;;  %v8022_v8 = vld [vmem:[#allocation85_spill] sm:$0xff] }
 0x386   :  { %v3675_v63 = vmul.f32 -1.442695, %v1375_v21  ;;  %v3676_v4 = vmul.f32 -1.442695, %v1376_v3  ;;  %v622_v3 = vadd.f32 %v8022_v8, %v8021_v7 }
 0x388   :  { %3828 = vpow2.f32 %v3675_v63 }
 0x389   :  { %3830 = vpow2.f32 %v3676_v4 }
 0x38a   :  { %v1352_v37 = vpop.f32.mrf.mxu2  ;;  %v1372_v17 = vpop.f32.mrf.mxu3 }
 0x38b   :  { %v1377_v61 = vadd.f32 %v1352_v37, %v621_v33  ;;  %v1378_v63 = vadd.f32 %v1372_v17, %v622_v3 }
 0x38d   :  { %v3677_v54 = vmul.f32 -1.442695, %v1377_v61 }
 0x38e   :  { %v3829_v22 = vpop.eup %3828 }
 0x38f   :  { %v3831_v59 = vpop.eup %3830  ;;  %v1388_v11 = vadd.f32 1.0, %v3829_v22  ;;  %3832 = vpow2.f32 %v3677_v54 }
 0x390   :  { %v1389_v12 = vadd.f32 1.0, %v3831_v59 }
 0x391   :  { %3834 = vrcp.f32 %v1388_v11  ;;  %v1402_v27 = vand.u32 2147483648, %v1388_v11  ;;  %v1400_v54 = vand.u32 2147483647, %v1388_v11  ;;  %vm1396_vm9 = vweird.f32 %v1388_v11 }
 0x392   :  { %3836 = vrcp.f32 %v1389_v12  ;;  %v1417_v22 = vand.u32 2147483648, %v1389_v12  ;;  %v1415_v1 = vand.u32 2147483647, %v1389_v12  ;;  %vm1411_vm10 = vweird.f32 %v1389_v12 }
 0x393   :  { %vm1401_vm13 = vcmp.eq.f32.partialorder %v1400_v54, 8.507059e+37  ;;  %v8041_v54 = vld [vmem:[#allocation87_spill] sm:$0xff] }
 0x394   :  { %vm1416_vm14 = vcmp.eq.f32.partialorder %v1415_v1, 8.507059e+37 }
 0x395   :  { %v3833_v9 = vpop.eup %3832 }
 0x396   :  { %v1390_v26 = vadd.f32 1.0, %v3833_v9  ;;  %v1403_v9 = vor.u32 1.1754944e-38, %v1402_v27 }
 0x397   :  { %v3835_v21 = vpop.eup %3834 }
 0x398   :  { %v3837_v40 = vpop.eup %3836  ;;  %v1392_v4 = vmul.f32 %v3835_v21, %v1388_v11  ;;  %3838 = vrcp.f32 %v1390_v26  ;;  %vm1397_vm7 = vweird.f32 %v3835_v21  ;;  %v1432_v27 = vand.u32 2147483648, %v1390_v26 }
 0x399   :  { %v1407_v37 = vmul.f32 %v3837_v40, %v1389_v12  ;;  %3840 = vtanh.f32 %v1378_v63  ;;  %vm1412_vm8 = vweird.f32 %v3837_v40  ;;  %vm1398_vm11 = vmor %vm1396_vm9, %vm1397_vm7  ;;  %vm1426_vm1 = vweird.f32 %v1390_v26 }
 0x39a   :  { %v1393_v61 = vsub.f32 1.0, %v1392_v4  ;;  %vm1413_vm12 = vmor %vm1411_vm10, %vm1412_vm8  ;;  %v1418_v4 = vor.u32 1.1754944e-38, %v1417_v22 }
 0x39b   :  { %v1408_v33 = vsub.f32 1.0, %v1407_v37 }
 0x39c   :  { %v1394_v59 = vmul.f32 %v3835_v21, %v1393_v61 }
 0x39d   :  { %v1409_v29 = vmul.f32 %v3837_v40, %v1408_v33 }
 0x39e   :  { %v3839_v38 = vpop.eup %3838  ;;  %v1395_v7 = vadd.f32 %v3835_v21, %v1394_v59 }
 0x39f   :  { %v1422_v17 = vmul.f32 %v3839_v38, %v1390_v26  ;;  %v1410_v3 = vadd.f32 %v3837_v40, %v1409_v29  ;;  %v3841_v63 = vpop.eup %3840  ;;  %vm1427_vm0 = vweird.f32 %v3839_v38 }
 0x3a0   :  { %v1399_v37 = vsel %vm1398_vm11, %v3835_v21, %v1395_v7  ;;  %v1430_v21 = vand.u32 2147483647, %v1390_v26  ;;  %vm1428_vm2 = vmor %vm1426_vm1, %vm1427_vm0  ;;  %v8040_v26 = vld [vmem:[#allocation86_spill] sm:$0xff]  ;;  %v8042_v7 = vld [vmem:[#allocation88_spill] sm:$0xff] }
 0x3a1   :  { %v1423_v8 = vsub.f32 1.0, %v1422_v17  ;;  %v1404_v61 = vsel %vm1401_vm13, %v1403_v9, %v1399_v37  ;;  %v1414_v10 = vsel %vm1413_vm12, %v3837_v40, %v1410_v3  ;;  %v8043_v17 = vld [vmem:[#allocation89_spill] sm:$0xff]  ;;  %v8044_v9 = vld [vmem:[#allocation90_spill] sm:$0xff]  ;;  %v8045_v3 = vld [vmem:[#allocation91_spill] sm:$0xff] }
 0x3a2   :  { %v1419_v33 = vsel %vm1416_vm14, %v1418_v4, %v1414_v10  ;;  %v1438_v0 = vmul.f32 %v3841_v63, %v1404_v61  ;;  %v1433_v10 = vor.u32 1.1754944e-38, %v1432_v27  ;;  %vm1431_vm3 = vcmp.eq.f32.partialorder %v1430_v21, 8.507059e+37  ;;  %v8046_v4 = vld [vmem:[#allocation92_spill] sm:$0xff]  ;;  %v8047_v37 = vld [vmem:[#allocation93_spill] sm:$0xff]  ;;  %v8048_v63 = vld [vmem:[#allocation94_spill] sm:$0xff] }
 0x3a3   :  { %v1424_v60 = vmul.f32 %v3839_v38, %v1423_v8  ;;  %v1437_v11 = vmul.f32 %v1419_v33, %v5848_v62  ;;  %v8049_v61 = vld [vmem:[#allocation95_spill] sm:$0xff]  ;;  %v8050_v33 = vld [vmem:[#allocation28_spill] sm:$0xff]  ;;  %v8053_v27 = vld [vmem:[#allocation37_spill] sm:$0xff] }
 0x3a4   :  { %v8054_v21 = vld [vmem:[#allocation82_spill] sm:$0xff] }
 0x3a5   :  { %v1439_v12 = vadd.f32 %v1438_v0, %v1437_v11  ;;  %v1425_v59 = vadd.f32 %v3839_v38, %v1424_v60  ;;  %v8051_v11 = vld [vmem:[#allocation36_spill] sm:$0xff] }
 0x3a7   :  { %3842 = vtanh.f32 %v1439_v12  ;;  %v5942_v29 = vsel %vm1449_vm15, %v1439_v12, %v5848_v62  ;;  %v1429_v1 = vsel %vm1428_vm2, %v3839_v38, %v1425_v59  ;;  %v8036_v62 = vld [vmem:[#allocation24_spill] sm:$0xff]  ;;  %v8039_v38 = vld [vmem:[#allocation27_spill] sm:$0xff]  ;;  %v8052_v12 = vld [vmem:[#allocation81_spill] sm:$0xff] }
 0x3a8   :  { %v1434_v8 = vsel %vm1431_vm3, %v1433_v10, %v1429_v1  ;;  %v623_v59 = vadd.f32 %v8052_v12, %v8051_v11  ;;  %v624_v1 = vadd.f32 %v8054_v21, %v8053_v27 }
 0x3ad   :  { %v3843_v40 = vpop.eup %3842 }
 0x3ae   :  { %v1441_v22 = vmul.f32 %v3843_v40, %v1434_v8 }
 0x3b0   :  { %v5946_v0 = vsel %vm1449_vm15, %v1441_v22, %v5852_v2  ;;  %v1452_v60 = vsel %vm1449_vm15, %v1441_v22, 0.0  ;;  %v8037_v2 = vld [vmem:[#allocation25_spill] sm:$0xff] }
 0x3b1   :  { %3679 = vst [vmem:[%s7618_s7 + $0x18] sm:$0xff] %v1452_v60  ;;  %1476 = vmatmul.f32.vlgmr.msrb.gmra.mxu0 %v5946_v0  ;;  %1496 = vmatmul.f32.vlgmr.msrb.gmra.mxu1 %v5946_v0 }
 0x3b2   :  { %1516 = vmatmul.f32.vlgmr.msrb.gmra.mxu2 %v5946_v0  ;;  %1536 = vmatmul.f32.vlgmr.msrb.gmra.mxu3 %v5946_v0 }
 0x3b3   :  { %1790 = vmatpush.msrb.mxu0 %v5372_v6  ;;  %1810 = vmatpush.msrb.mxu1 %v5378_v42  ;;  %v8023_v6 = vld [vmem:[#allocation14_spill] sm:$0xff]  ;;  %v8024_v42 = vld [vmem:[#allocation11_spill] sm:$0xff] }
 0x3b4   :  { %1830 = vmatpush.msrb.mxu2 %v5384_v52  ;;  %1850 = vmatpush.msrb.mxu3 %v5390_v35  ;;  %v8025_v52 = vld [vmem:[#allocation12_spill] sm:$0xff]  ;;  %v8026_v35 = vld [vmem:[#allocation13_spill] sm:$0xff] }
 0x3b5   :  { %1791 = vmatpush.msrb.mxu0 %v5396_v50  ;;  %1811 = vmatpush.msrb.mxu1 %v5402_v28  ;;  %v8027_v50 = vld [vmem:[#allocation18_spill] sm:$0xff]  ;;  %v8028_v28 = vld [vmem:[#allocation15_spill] sm:$0xff] }
 0x3b6   :  { %1831 = vmatpush.msrb.mxu2 %v5408_v13  ;;  %1851 = vmatpush.msrb.mxu3 %v5414_v19  ;;  %v8029_v13 = vld [vmem:[#allocation16_spill] sm:$0xff]  ;;  %v8030_v19 = vld [vmem:[#allocation17_spill] sm:$0xff] }
 0x3b7   :  { %1792 = vmatpush.msrb.mxu0 %v5420_v51  ;;  %1812 = vmatpush.msrb.mxu1 %v5426_v25  ;;  %v8031_v51 = vld [vmem:[#allocation21_spill] sm:$0xff]  ;;  %v8032_v25 = vld [vmem:[#allocation19_spill] sm:$0xff] }
 0x3b8   :  { %1832 = vmatpush.msrb.mxu2 %v5432_v31  ;;  %1852 = vmatpush.msrb.mxu3 %v5537_v41  ;;  %v8033_v31 = vld [vmem:[#allocation20_spill] sm:$0xff] }
 0x3b9   :  { %1793 = vmatpush.msrb.mxu0 %v5439_v30  ;;  %1813 = vmatpush.msrb.mxu1 %v5445_v24  ;;  %v8034_v30 = vld [vmem:[#allocation22_spill] sm:$0xff]  ;;  %v8035_v24 = vld [vmem:[#allocation23_spill] sm:$0xff] }
 0x3ba   :  { %1833 = vmatpush.msrb.mxu2 %v5545_v53  ;;  %1853 = vmatpush.msrb.mxu3 %v5551_v36 }
 0x3bb   :  { %1794 = vmatpush.msrb.mxu0 %v5557_v18  ;;  %1814 = vmatpush.msrb.mxu1 %v5563_v32 }
 0x3bc   :  { %1834 = vmatpush.msrb.mxu2 %v5569_v14  ;;  %1854 = vmatpush.msrb.mxu3 %v5575_v20 }
 0x3bd   :  { %1795 = vmatpush.msrb.mxu0 %v5581_v15  ;;  %1815 = vmatpush.msrb.mxu1 %v5587_v23 }
 0x3be   :  { %1835 = vmatpush.msrb.mxu2 %v5593_v34  ;;  %1855 = vmatpush.msrb.mxu3 %v5599_v5 }
 0x3bf   :  { %1796 = vmatpush.msrb.mxu0 %v5605_v16  ;;  %1816 = vmatpush.msrb.mxu1 %v5611_v39 }
 0x3c0   :  { %1836 = vmatpush.msrb.mxu2 %v5617_v44  ;;  %1856 = vmatpush.msrb.mxu3 %v5623_v45 }
 0x3c1   :  { %1797 = vmatpush.msrb.mxu0 %v5629_v46  ;;  %1817 = vmatpush.msrb.mxu1 %v5635_v47 }
 0x3c2   :  { %1837 = vmatpush.msrb.mxu2 %v5641_v48  ;;  %1857 = vmatpush.msrb.mxu3 %v5647_v49 }
 0x3c3   :  { %1798 = vmatpush.msrb.mxu0 %v5653_v55  ;;  %1818 = vmatpush.msrb.mxu1 %v5659_v56 }
 0x3c4   :  { %1838 = vmatpush.msrb.mxu2 %v5665_v57  ;;  %1858 = vmatpush.msrb.mxu3 %v5671_v58 }
 0x3c5   :  { %1799 = vmatpush.msrb.mxu0 %v8023_v6  ;;  %1819 = vmatpush.msrb.mxu1 %v8024_v42 }
 0x3c6   :  { %1839 = vmatpush.msrb.mxu2 %v8025_v52  ;;  %1859 = vmatpush.msrb.mxu3 %v8026_v35 }
 0x3c7   :  { %1800 = vmatpush.msrb.mxu0 %v8027_v50  ;;  %1820 = vmatpush.msrb.mxu1 %v8028_v28 }
 0x3c8   :  { %1840 = vmatpush.msrb.mxu2 %v8029_v13  ;;  %1860 = vmatpush.msrb.mxu3 %v8030_v19 }
 0x3c9   :  { %1801 = vmatpush.msrb.mxu0 %v8031_v51  ;;  %1821 = vmatpush.msrb.mxu1 %v8032_v25 }
 0x3ca   :  { %1841 = vmatpush.msrb.mxu2 %v8033_v31  ;;  %1861 = vmatpush.msrb.mxu3 %v8034_v30 }
 0x3cb   :  { %1802 = vmatpush.msrb.mxu0 %v8035_v24  ;;  %1822 = vmatpush.msrb.mxu1 %v8036_v62 }
 0x3cc   :  { %1842 = vmatpush.msrb.mxu2 %v8037_v2  ;;  %1862 = vmatpush.msrb.mxu3 %v8038_v43 }
 0x3cd   :  { %1803 = vmatpush.msrb.mxu0 %v8039_v38  ;;  %1823 = vmatpush.msrb.mxu1 %v8040_v26 }
 0x3ce   :  { %1843 = vmatpush.msrb.mxu2 %v8041_v54  ;;  %1863 = vmatpush.msrb.mxu3 %v8042_v7 }
 0x3cf   :  { %1804 = vmatpush.msrb.mxu0 %v8043_v17  ;;  %1824 = vmatpush.msrb.mxu1 %v8044_v9 }
 0x3d0   :  { %1844 = vmatpush.msrb.mxu2 %v8045_v3  ;;  %1864 = vmatpush.msrb.mxu3 %v8046_v4  ;;  %v8056_v3 = vld [vmem:[#allocation9_spill] sm:$0xff] }
 0x3d1   :  { %1805 = vmatpush.msrb.mxu0 %v8047_v37  ;;  %1825 = vmatpush.msrb.mxu1 %v8048_v63  ;;  %v8055_v37 = vld [vmem:[#allocation38_spill] sm:$0xff] }
 0x3d2   :  { %1845 = vmatpush.msrb.mxu2 %v8049_v61  ;;  %1865 = vmatpush.msrb.mxu3 %v8050_v33  ;;  %v625_v63 = vadd.f32 %v8056_v3, %v8055_v37 }
 0x42e   :  { %v1477_v10 = vpop.f32.mrf.mxu0  ;;  %v1497_v40 = vpop.f32.mrf.mxu1 }
 0x42f   :  { %v1540_v8 = vadd.f32 %v1477_v10, %v623_v59  ;;  %v1541_v22 = vadd.f32 %v1497_v40, %v624_v1  ;;  %v8057_v1 = vld [vmem:[#allocation39_spill] sm:$0xff]  ;;  %v8058_v10 = vld [vmem:[#allocation85_spill] sm:$0xff] }
 0x430   :  { %v626_v40 = vadd.f32 %v8058_v10, %v8057_v1 }
 0x431   :  { %v3680_v60 = vmul.f32 -1.442695, %v1540_v8  ;;  %v3681_v4 = vmul.f32 -1.442695, %v1541_v22 }
 0x433   :  { %3844 = vpow2.f32 %v3680_v60 }
 0x434   :  { %3846 = vpow2.f32 %v3681_v4 }
 0x435   :  { %v1517_v61 = vpop.f32.mrf.mxu2  ;;  %v1537_v27 = vpop.f32.mrf.mxu3 }
 0x436   :  { %v1542_v9 = vadd.f32 %v1517_v61, %v625_v63  ;;  %v1543_v60 = vadd.f32 %v1537_v27, %v626_v40 }
 0x438   :  { %v3682_v33 = vmul.f32 -1.442695, %v1542_v9 }
 0x439   :  { %v3845_v17 = vpop.eup %3844 }
 0x43a   :  { %v3847_v7 = vpop.eup %3846  ;;  %v1553_v11 = vadd.f32 1.0, %v3845_v17  ;;  %3848 = vpow2.f32 %v3682_v33 }
 0x43b   :  { %v1554_v12 = vadd.f32 1.0, %v3847_v7 }
 0x43c   :  { %3850 = vrcp.f32 %v1553_v11  ;;  %v1567_v3 = vand.u32 2147483648, %v1553_v11  ;;  %v1565_v33 = vand.u32 2147483647, %v1553_v11  ;;  %vm1561_vm6 = vweird.f32 %v1553_v11 }
 0x43d   :  { %3852 = vrcp.f32 %v1554_v12  ;;  %v1582_v17 = vand.u32 2147483648, %v1554_v12  ;;  %v1580_v54 = vand.u32 2147483647, %v1554_v12  ;;  %vm1576_vm7 = vweird.f32 %v1554_v12 }
 0x43e   :  { %vm1566_vm10 = vcmp.eq.f32.partialorder %v1565_v33, 8.507059e+37  ;;  %v6078_v33 = vld [vmem:[%s7614_s3 + $0x1c8] sm:$0xff] }
 0x43f   :  { %vm1581_vm11 = vcmp.eq.f32.partialorder %v1580_v54, 8.507059e+37 }
 0x440   :  { %v3849_v59 = vpop.eup %3848 }
 0x441   :  { %v1555_v8 = vadd.f32 1.0, %v3849_v59  ;;  %v1568_v59 = vor.u32 1.1754944e-38, %v1567_v3 }
 0x442   :  { %v3851_v22 = vpop.eup %3850 }
 0x443   :  { %v3853_v37 = vpop.eup %3852  ;;  %v1557_v4 = vmul.f32 %v3851_v22, %v1553_v11  ;;  %3854 = vrcp.f32 %v1555_v8  ;;  %vm1562_vm4 = vweird.f32 %v3851_v22  ;;  %v1613_v11 = vpop.permute.xlu2 %1612  ;;  %v1597_v3 = vand.u32 2147483648, %v1555_v8 }
 0x444   :  { %v1572_v63 = vmul.f32 %v3853_v37, %v1554_v12  ;;  %3856 = vtanh.f32 %v1543_v60  ;;  %vm1577_vm5 = vweird.f32 %v3853_v37  ;;  %vm1563_vm8 = vmor %vm1561_vm6, %vm1562_vm4  ;;  %vm1614_vm12 = vcmp.eq.s32.totalorder %v1613_v11, 1  ;;  %v8080_v11 = vld [vmem:[#allocation43_spill] sm:$0xff] }
 0x445   :  { %v1558_v9 = vsub.f32 1.0, %v1557_v4  ;;  %vm1578_vm9 = vmor %vm1576_vm7, %vm1577_vm5  ;;  %v1583_v4 = vor.u32 1.1754944e-38, %v1582_v17  ;;  %vm1591_vm14 = vweird.f32 %v1555_v8 }
 0x446   :  { %v1573_v61 = vsub.f32 1.0, %v1572_v63 }
 0x447   :  { %v1559_v7 = vmul.f32 %v3851_v22, %v1558_v9 }
 0x448   :  { %v1574_v21 = vmul.f32 %v3853_v37, %v1573_v61 }
 0x449   :  { %v3855_v26 = vpop.eup %3854  ;;  %v1560_v1 = vadd.f32 %v3851_v22, %v1559_v7 }
 0x44a   :  { %v1587_v27 = vmul.f32 %v3855_v26, %v1555_v8  ;;  %v1575_v40 = vadd.f32 %v3853_v37, %v1574_v21  ;;  %v3857_v60 = vpop.eup %3856  ;;  %vm1592_vm13 = vweird.f32 %v3855_v26 }
 0x44b   :  { %v1564_v63 = vsel %vm1563_vm8, %v3851_v22, %v1560_v1  ;;  %v1595_v22 = vand.u32 2147483647, %v1555_v8  ;;  %vm1593_vm15 = vmor %vm1591_vm14, %vm1592_vm13  ;;  %v6072_v8 = vld [vmem:[%s7614_s3 + $0x1c0] sm:$0xff]  ;;  %v6084_v1 = vld [vmem:[%s7614_s3 + $0x1d0] sm:$0xff] }
 0x44c   :  { %v1588_v10 = vsub.f32 1.0, %v1587_v27  ;;  %v1569_v9 = vsel %vm1566_vm10, %v1568_v59, %v1564_v63  ;;  %v1579_v38 = vsel %vm1578_vm9, %v3853_v37, %v1575_v40  ;;  %v6090_v27 = vld [vmem:[%s7614_s3 + $0x1d8] sm:$0xff]  ;;  %v6096_v59 = vld [vmem:[%s7614_s3 + $0x1a0] sm:$0xff]  ;;  %v6102_v40 = vld [vmem:[%s7614_s3 + $0x1a8] sm:$0xff] }
 0x44d   :  { %v1584_v61 = vsel %vm1581_vm11, %v1583_v4, %v1579_v38  ;;  %v1603_v43 = vmul.f32 %v3857_v60, %v1569_v9  ;;  %v1598_v38 = vor.u32 1.1754944e-38, %v1597_v3  ;;  %vm1596_vm0 = vcmp.eq.f32.partialorder %v1595_v22, 8.507059e+37  ;;  %v6108_v4 = vld [vmem:[%s7614_s3 + $0x1b0] sm:$0xff]  ;;  %v6115_v63 = vld [vmem:[%s7614_s3 + $0x180] sm:$0xff]  ;;  %v6121_v60 = vld [vmem:[%s7614_s3 + $0x188] sm:$0xff] }
 0x44e   :  { %v1589_v2 = vmul.f32 %v3855_v26, %v1588_v10  ;;  %v1602_v7 = vmul.f32 %v1584_v61, %v5942_v29 }
 0x450   :  { %v1604_v12 = vadd.f32 %v1603_v43, %v1602_v7  ;;  %v1590_v62 = vadd.f32 %v3855_v26, %v1589_v2 }
 0x452   :  { %3858 = vtanh.f32 %v1604_v12  ;;  %v6031_v21 = vsel %vm1614_vm12, %v1604_v12, %v5942_v29  ;;  %v1594_v54 = vsel %vm1593_vm15, %v3855_v26, %v1590_v62  ;;  %v6048_v29 = vld [vmem:[%s7614_s3 + $0x1e0] sm:$0xff]  ;;  %v6060_v62 = vld [vmem:[%s7614_s3 + $0x1f0] sm:$0xff]  ;;  %v6066_v26 = vld [vmem:[%s7614_s3 + $0x1f8] sm:$0xff] }
 0x453   :  { %v1599_v37 = vsel %vm1596_vm0, %v1598_v38, %v1594_v54  ;;  %v8081_v12 = vld [vmem:[#allocation85_spill] sm:$0xff] }
 0x454   :  { %v630_v3 = vadd.f32 %v8081_v12, %v8080_v11  ;;  %v6227_v11 = vld [vmem:[%s7614_s3 + $0x198] sm:$0xff] }
 0x458   :  { %v3859_v10 = vpop.eup %3858 }
 0x459   :  { %v1606_v17 = vmul.f32 %v3859_v10, %v1599_v37 }
 0x45b   :  { %v6035_v43 = vsel %vm1614_vm12, %v1606_v17, %v5946_v0  ;;  %v1617_v2 = vsel %vm1614_vm12, %v1606_v17, 0.0  ;;  %v6054_v0 = vld [vmem:[%s7614_s3 + $0x1e8] sm:$0xff] }
 0x45c   :  { %3684 = vst [vmem:[%s7618_s7 + $0x20] sm:$0xff] %v1617_v2  ;;  %1641 = vmatmul.f32.vlgmr.msra.gmra.mxu0 %v6035_v43  ;;  %1661 = vmatmul.f32.vlgmr.msra.gmra.mxu1 %v6035_v43 }
 0x45d   :  { %1681 = vmatmul.f32.vlgmr.msra.gmra.mxu2 %v6035_v43  ;;  %1701 = vmatmul.f32.vlgmr.msra.gmra.mxu3 %v6035_v43 }
 0x45e   :  { %1955 = vmatpush.msra.mxu0 %v6048_v29  ;;  %1975 = vmatpush.msra.mxu1 %v6054_v0 }
 0x45f   :  { %1995 = vmatpush.msra.mxu2 %v6060_v62  ;;  %2015 = vmatpush.msra.mxu3 %v6066_v26 }
 0x460   :  { %1956 = vmatpush.msra.mxu0 %v6072_v8  ;;  %1976 = vmatpush.msra.mxu1 %v6078_v33 }
 0x461   :  { %1996 = vmatpush.msra.mxu2 %v6084_v1  ;;  %2016 = vmatpush.msra.mxu3 %v6090_v27 }
 0x462   :  { %1957 = vmatpush.msra.mxu0 %v6096_v59  ;;  %1977 = vmatpush.msra.mxu1 %v6102_v40 }
 0x463   :  { %1997 = vmatpush.msra.mxu2 %v6108_v4  ;;  %2017 = vmatpush.msra.mxu3 %v5537_v41  ;;  %v8059_v41 = vld [vmem:[#allocation24_spill] sm:$0xff] }
 0x464   :  { %1958 = vmatpush.msra.mxu0 %v6115_v63  ;;  %1978 = vmatpush.msra.mxu1 %v6121_v60 }
 0x465   :  { %1998 = vmatpush.msra.mxu2 %v5545_v53  ;;  %2018 = vmatpush.msra.mxu3 %v5551_v36  ;;  %v8060_v53 = vld [vmem:[#allocation25_spill] sm:$0xff]  ;;  %v8061_v36 = vld [vmem:[#allocation26_spill] sm:$0xff] }
 0x466   :  { %1959 = vmatpush.msra.mxu0 %v5557_v18  ;;  %1979 = vmatpush.msra.mxu1 %v5563_v32  ;;  %v8062_v18 = vld [vmem:[#allocation27_spill] sm:$0xff]  ;;  %v8063_v32 = vld [vmem:[#allocation86_spill] sm:$0xff] }
 0x467   :  { %1999 = vmatpush.msra.mxu2 %v5569_v14  ;;  %2019 = vmatpush.msra.mxu3 %v5575_v20  ;;  %v8064_v14 = vld [vmem:[#allocation87_spill] sm:$0xff]  ;;  %v8065_v20 = vld [vmem:[#allocation88_spill] sm:$0xff] }
 0x468   :  { %1960 = vmatpush.msra.mxu0 %v5581_v15  ;;  %1980 = vmatpush.msra.mxu1 %v5587_v23  ;;  %v8066_v15 = vld [vmem:[#allocation89_spill] sm:$0xff]  ;;  %v8067_v23 = vld [vmem:[#allocation90_spill] sm:$0xff] }
 0x469   :  { %2000 = vmatpush.msra.mxu2 %v5593_v34  ;;  %2020 = vmatpush.msra.mxu3 %v5599_v5  ;;  %v8068_v34 = vld [vmem:[#allocation91_spill] sm:$0xff]  ;;  %v8069_v5 = vld [vmem:[#allocation92_spill] sm:$0xff] }
 0x46a   :  { %1961 = vmatpush.msra.mxu0 %v5605_v16  ;;  %1981 = vmatpush.msra.mxu1 %v5611_v39  ;;  %v8070_v16 = vld [vmem:[#allocation93_spill] sm:$0xff]  ;;  %v8071_v39 = vld [vmem:[#allocation94_spill] sm:$0xff] }
 0x46b   :  { %2001 = vmatpush.msra.mxu2 %v5617_v44  ;;  %2021 = vmatpush.msra.mxu3 %v5623_v45  ;;  %v8072_v44 = vld [vmem:[#allocation95_spill] sm:$0xff]  ;;  %v8073_v45 = vld [vmem:[#allocation28_spill] sm:$0xff] }
 0x46c   :  { %1962 = vmatpush.msra.mxu0 %v5629_v46  ;;  %1982 = vmatpush.msra.mxu1 %v5635_v47  ;;  %v8074_v46 = vld [vmem:[#allocation40_spill] sm:$0xff]  ;;  %v8075_v47 = vld [vmem:[#allocation81_spill] sm:$0xff] }
 0x46d   :  { %2002 = vmatpush.msra.mxu2 %v5641_v48  ;;  %2022 = vmatpush.msra.mxu3 %v5647_v49  ;;  %v627_v48 = vadd.f32 %v8075_v47, %v8074_v46  ;;  %v8076_v49 = vld [vmem:[#allocation41_spill] sm:$0xff] }
 0x46e   :  { %1963 = vmatpush.msra.mxu0 %v5653_v55  ;;  %1983 = vmatpush.msra.mxu1 %v5659_v56  ;;  %v8077_v55 = vld [vmem:[#allocation82_spill] sm:$0xff] }
 0x46f   :  { %2003 = vmatpush.msra.mxu2 %v5665_v57  ;;  %2023 = vmatpush.msra.mxu3 %v5671_v58  ;;  %v628_v56 = vadd.f32 %v8077_v55, %v8076_v49 }
 0x470   :  { %1964 = vmatpush.msra.mxu0 %v8023_v6  ;;  %1984 = vmatpush.msra.mxu1 %v8024_v42 }
 0x471   :  { %2004 = vmatpush.msra.mxu2 %v8025_v52  ;;  %2024 = vmatpush.msra.mxu3 %v8026_v35 }
 0x472   :  { %1965 = vmatpush.msra.mxu0 %v8027_v50  ;;  %1985 = vmatpush.msra.mxu1 %v8028_v28  ;;  %v8078_v50 = vld [vmem:[#allocation42_spill] sm:$0xff]  ;;  %v8079_v28 = vld [vmem:[#allocation9_spill] sm:$0xff] }
 0x473   :  { %2005 = vmatpush.msra.mxu2 %v8029_v13  ;;  %2025 = vmatpush.msra.mxu3 %v8030_v19  ;;  %v629_v13 = vadd.f32 %v8079_v28, %v8078_v50 }
 0x474   :  { %1966 = vmatpush.msra.mxu0 %v8031_v51  ;;  %1986 = vmatpush.msra.mxu1 %v8032_v25 }
 0x475   :  { %2006 = vmatpush.msra.mxu2 %v8033_v31  ;;  %2026 = vmatpush.msra.mxu3 %v8034_v30 }
 0x476   :  { %1967 = vmatpush.msra.mxu0 %v8035_v24  ;;  %1987 = vmatpush.msra.mxu1 %v8059_v41 }
 0x477   :  { %2007 = vmatpush.msra.mxu2 %v8060_v53  ;;  %2027 = vmatpush.msra.mxu3 %v8061_v36 }
 0x478   :  { %1968 = vmatpush.msra.mxu0 %v8062_v18  ;;  %1988 = vmatpush.msra.mxu1 %v8063_v32 }
 0x479   :  { %2008 = vmatpush.msra.mxu2 %v8064_v14  ;;  %2028 = vmatpush.msra.mxu3 %v8065_v20 }
 0x47a   :  { %1969 = vmatpush.msra.mxu0 %v8066_v15  ;;  %1989 = vmatpush.msra.mxu1 %v8067_v23 }
 0x47b   :  { %2009 = vmatpush.msra.mxu2 %v8068_v34  ;;  %2029 = vmatpush.msra.mxu3 %v8069_v5 }
 0x47c   :  { %1970 = vmatpush.msra.mxu0 %v8070_v16  ;;  %1990 = vmatpush.msra.mxu1 %v8071_v39 }
 0x47d   :  { %2010 = vmatpush.msra.mxu2 %v8072_v44  ;;  %2030 = vmatpush.msra.mxu3 %v8073_v45 }
 0x4d9   :  { %v1642_v57 = vpop.f32.mrf.mxu0  ;;  %v1662_v58 = vpop.f32.mrf.mxu1 }
 0x4da   :  { %v1705_v6 = vadd.f32 %v1642_v57, %v627_v48  ;;  %v1706_v42 = vadd.f32 %v1662_v58, %v628_v56 }
 0x4dc   :  { %v3685_v52 = vmul.f32 -1.442695, %v1705_v6  ;;  %v3686_v35 = vmul.f32 -1.442695, %v1706_v42  ;;  %v1778_v6 = vpop.permute.xlu0 %1777 }
 0x4dd   :  { %vm1779_vm9 = vcmp.eq.s32.totalorder %v1778_v6, 1  ;;  %v6401_v6 = vld [vmem:[%s7614_s3 + $0x80] sm:$0xff] }
 0x4de   :  { %3860 = vpow2.f32 %v3685_v52  ;;  %8090 = vst [vmem:[#allocation11_spill] sm:$0xff] %v6401_v6 }
 0x4df   :  { %3862 = vpow2.f32 %v3686_v35 }
 0x4e0   :  { %v1682_v19 = vpop.f32.mrf.mxu2  ;;  %v1702_v61 = vpop.f32.mrf.mxu3 }
 0x4e1   :  { %v1707_v51 = vadd.f32 %v1682_v19, %v629_v13  ;;  %v1708_v38 = vadd.f32 %v1702_v61, %v630_v3  ;;  %v6233_v3 = vld [vmem:[%s7614_s3 + $0x160] sm:$0xff] }
 0x4e3   :  { %v3687_v25 = vmul.f32 -1.442695, %v1707_v51 }
 0x4e4   :  { %v3861_v31 = vpop.eup %3860 }
 0x4e5   :  { %v3863_v30 = vpop.eup %3862  ;;  %v1718_v24 = vadd.f32 1.0, %v3861_v31  ;;  %3864 = vpow2.f32 %v3687_v25 }
 0x4e6   :  { %v1719_v9 = vadd.f32 1.0, %v3863_v30 }
 0x4e7   :  { %3866 = vrcp.f32 %v1718_v24  ;;  %v1732_v53 = vand.u32 2147483648, %v1718_v24  ;;  %v1730_v32 = vand.u32 2147483647, %v1718_v24  ;;  %vm1726_vm3 = vweird.f32 %v1718_v24 }
 0x4e8   :  { %3868 = vrcp.f32 %v1719_v9  ;;  %v1747_v36 = vand.u32 2147483648, %v1719_v9  ;;  %v1745_v20 = vand.u32 2147483647, %v1719_v9  ;;  %vm1741_vm4 = vweird.f32 %v1719_v9 }
 0x4e9   :  { %v1733_v5 = vor.u32 1.1754944e-38, %v1732_v53  ;;  %vm1731_vm7 = vcmp.eq.f32.partialorder %v1730_v32, 8.507059e+37  ;;  %v6287_v53 = vld [vmem:[%s7614_s3 + $0x128] sm:$0xff]  ;;  %v6305_v32 = vld [vmem:[%s7614_s3 + $0x100] sm:$0xff] }
 0x4ea   :  { %v1748_v39 = vor.u32 1.1754944e-38, %v1747_v36  ;;  %vm1746_vm8 = vcmp.eq.f32.partialorder %v1745_v20, 8.507059e+37  ;;  %v6293_v36 = vld [vmem:[%s7614_s3 + $0x130] sm:$0xff] }
 0x4eb   :  { %v3865_v7 = vpop.eup %3864  ;;  %v6317_v20 = vld [vmem:[%s7614_s3 + $0x110] sm:$0xff] }
 0x4ec   :  { %v1720_v22 = vadd.f32 1.0, %v3865_v7 }
 0x4ed   :  { %v3867_v54 = vpop.eup %3866 }
 0x4ee   :  { %v3869_v10 = vpop.eup %3868  ;;  %v1722_v37 = vmul.f32 %v3867_v54, %v1718_v24  ;;  %3870 = vrcp.f32 %v1720_v22  ;;  %vm1727_vm1 = vweird.f32 %v3867_v54  ;;  %v1762_v13 = vand.u32 2147483648, %v1720_v22 }
 0x4ef   :  { %v1737_v17 = vmul.f32 %v3869_v10, %v1719_v9  ;;  %3872 = vtanh.f32 %v1708_v38  ;;  %vm1742_vm2 = vweird.f32 %v3869_v10  ;;  %vm1728_vm5 = vmor %vm1726_vm3, %vm1727_vm1  ;;  %vm1756_vm11 = vweird.f32 %v1720_v22  ;;  %v6251_v38 = vld [vmem:[%s7614_s3 + $0x178] sm:$0xff] }
 0x4f0   :  { %v1723_v2 = vsub.f32 1.0, %v1722_v37  ;;  %vm1743_vm6 = vmor %vm1741_vm4, %vm1742_vm2  ;;  %v1760_v51 = vand.u32 2147483647, %v1720_v22  ;;  %v1763_v31 = vor.u32 1.1754944e-38, %v1762_v13  ;;  %v6263_v37 = vld [vmem:[%s7614_s3 + $0x148] sm:$0xff] }
 0x4f1   :  { %v1738_v41 = vsub.f32 1.0, %v1737_v17  ;;  %v6269_v17 = vld [vmem:[%s7614_s3 + $0x150] sm:$0xff]  ;;  %v6431_v13 = vld [vmem:[%s7614_s3 + $0x68] sm:$0xff] }
 0x4f2   :  { %v1724_v18 = vmul.f32 %v3867_v54, %v1723_v2  ;;  %vm1761_vm13 = vcmp.eq.f32.partialorder %v1760_v51, 8.507059e+37  ;;  %v6275_v2 = vld [vmem:[%s7614_s3 + $0x158] sm:$0xff]  ;;  %8095 = vst [vmem:[#allocation16_spill] sm:$0xff] %v6431_v13  ;;  %v6437_v51 = vld [vmem:[%s7614_s3 + $0x70] sm:$0xff] }
 0x4f3   :  { %v1739_v14 = vmul.f32 %v3869_v10, %v1738_v41  ;;  %v6281_v41 = vld [vmem:[%s7614_s3 + $0x120] sm:$0xff]  ;;  %8096 = vst [vmem:[#allocation17_spill] sm:$0xff] %v6437_v51 }
 0x4f4   :  { %v3871_v15 = vpop.eup %3870  ;;  %v1725_v23 = vadd.f32 %v3867_v54, %v1724_v18  ;;  %v6299_v18 = vld [vmem:[%s7614_s3 + $0x138] sm:$0xff] }
 0x4f5   :  { %v1752_v34 = vmul.f32 %v3871_v15, %v1720_v22  ;;  %v1740_v16 = vadd.f32 %v3869_v10, %v1739_v14  ;;  %v3873_v46 = vpop.eup %3872  ;;  %vm1757_vm10 = vweird.f32 %v3871_v15  ;;  %v6239_v22 = vld [vmem:[%s7614_s3 + $0x168] sm:$0xff] }
 0x4f6   :  { %v1729_v44 = vsel %vm1728_vm5, %v3867_v54, %v1725_v23  ;;  %vm1758_vm12 = vmor %vm1756_vm11, %vm1757_vm10  ;;  %v6245_v54 = vld [vmem:[%s7614_s3 + $0x170] sm:$0xff]  ;;  %v6311_v14 = vld [vmem:[%s7614_s3 + $0x108] sm:$0xff] }
 0x4f7   :  { %v1753_v48 = vsub.f32 1.0, %v1752_v34  ;;  %v1734_v49 = vsel %vm1731_vm7, %v1733_v5, %v1729_v44  ;;  %v1744_v56 = vsel %vm1743_vm6, %v3869_v10, %v1740_v16  ;;  %v6257_v10 = vld [vmem:[%s7614_s3 + $0x140] sm:$0xff]  ;;  %v6335_v34 = vld [vmem:[%s7614_s3 + $0xe8] sm:$0xff]  ;;  %v6341_v5 = vld [vmem:[%s7614_s3 + $0xf0] sm:$0xff] }
 0x4f8   :  { %v1749_v57 = vsel %vm1746_vm8, %v1748_v39, %v1744_v56  ;;  %v1768_v58 = vmul.f32 %v3873_v46, %v1734_v49  ;;  %v6329_v23 = vld [vmem:[%s7614_s3 + $0xe0] sm:$0xff]  ;;  %v6347_v16 = vld [vmem:[%s7614_s3 + $0xf8] sm:$0xff]  ;;  %v6359_v44 = vld [vmem:[%s7614_s3 + $0xc8] sm:$0xff] }
 0x4f9   :  { %v1754_v42 = vmul.f32 %v3871_v15, %v1753_v48  ;;  %v1767_v52 = vmul.f32 %v1749_v57, %v6031_v21  ;;  %v6353_v39 = vld [vmem:[%s7614_s3 + $0xc0] sm:$0xff]  ;;  %8083 = vst [vmem:[#allocation30_spill] sm:$0xff] %v6359_v44  ;;  %v6365_v46 = vld [vmem:[%s7614_s3 + $0xd0] sm:$0xff]  ;;  %v6371_v48 = vld [vmem:[%s7614_s3 + $0xd8] sm:$0xff] }
 0x4fa   :  { %8082 = vst [vmem:[#allocation29_spill] sm:$0xff] %v6353_v39  ;;  %v6377_v49 = vld [vmem:[%s7614_s3 + $0xa0] sm:$0xff]  ;;  %v6383_v56 = vld [vmem:[%s7614_s3 + $0xa8] sm:$0xff]  ;;  %v6389_v57 = vld [vmem:[%s7614_s3 + $0xb0] sm:$0xff] }
 0x4fb   :  { %v1769_v35 = vadd.f32 %v1768_v58, %v1767_v52  ;;  %v1755_v50 = vadd.f32 %v3871_v15, %v1754_v42  ;;  %8084 = vst [vmem:[#allocation31_spill] sm:$0xff] %v6365_v46  ;;  %v6395_v58 = vld [vmem:[%s7614_s3 + $0xb8] sm:$0xff]  ;;  %v6407_v42 = vld [vmem:[%s7614_s3 + $0x88] sm:$0xff]  ;;  %v6413_v52 = vld [vmem:[%s7614_s3 + $0x90] sm:$0xff] }
 0x4fc   :  { %8085 = vst [vmem:[#allocation32_spill] sm:$0xff] %v6371_v48 }
 0x4fd   :  { %3874 = vtanh.f32 %v1769_v35  ;;  %v6185_v19 = vsel %vm1779_vm9, %v1769_v35, %v6031_v21  ;;  %v1759_v25 = vsel %vm1758_vm12, %v3871_v15, %v1755_v50  ;;  %v6213_v21 = vld [vmem:[%s7614_s3 + $0x1b8] sm:$0xff]  ;;  %8086 = vst [vmem:[#allocation33_spill] sm:$0xff] %v6377_v49  ;;  %v6425_v50 = vld [vmem:[%s7614_s3 + $0x60] sm:$0xff] }
 0x4fe   :  { %v1764_v24 = vsel %vm1761_vm13, %v1763_v31, %v1759_v25  ;;  %v6323_v15 = vld [vmem:[%s7614_s3 + $0x118] sm:$0xff]  ;;  %8087 = vst [vmem:[#allocation34_spill] sm:$0xff] %v6383_v56  ;;  %v6449_v31 = vld [vmem:[%s7614_s3 + $0x40] sm:$0xff] }
 0x4ff   :  { %8088 = vst [vmem:[#allocation35_spill] sm:$0xff] %v6389_v57  ;;  %v6419_v35 = vld [vmem:[%s7614_s3 + $0x98] sm:$0xff] }
 0x500   :  { %8089 = vst [vmem:[#allocation14_spill] sm:$0xff] %v6395_v58  ;;  %v6443_v25 = vld [vmem:[%s7614_s3 + $0x78] sm:$0xff] }
 0x501   :  { %8091 = vst [vmem:[#allocation12_spill] sm:$0xff] %v6407_v42 }
 0x502   :  { %8092 = vst [vmem:[#allocation13_spill] sm:$0xff] %v6413_v52 }
 0x503   :  { %v3875_v30 = vpop.eup %3874  ;;  %8093 = vst [vmem:[#allocation18_spill] sm:$0xff] %v6419_v35 }
 0x504   :  { %v1771_v9 = vmul.f32 %v3875_v30, %v1764_v24  ;;  %8094 = vst [vmem:[#allocation15_spill] sm:$0xff] %v6425_v50  ;;  %v6455_v30 = vld [vmem:[%s7614_s3 + $0x48] sm:$0xff]  ;;  %v6461_v24 = vld [vmem:[%s7614_s3 + $0x50] sm:$0xff] }
 0x505   :  { %8097 = vst [vmem:[#allocation21_spill] sm:$0xff] %v6443_v25 }
 0x506   :  { %v6189_v61 = vsel %vm1779_vm9, %v1771_v9, %v6035_v43  ;;  %v1782_v7 = vsel %vm1779_vm9, %v1771_v9, 0.0  ;;  %v6221_v43 = vld [vmem:[%s7614_s3 + $0x190] sm:$0xff]  ;;  %8098 = vst [vmem:[#allocation19_spill] sm:$0xff] %v6449_v31  ;;  %v6467_v9 = vld [vmem:[%s7614_s3 + $0x58] sm:$0xff] }
 0x507   :  { %3689 = vst [vmem:[%s7618_s7 + $0x28] sm:$0xff] %v1782_v7  ;;  %1806 = vmatmul.f32.vlgmr.msrb.gmra.mxu0 %v6189_v61  ;;  %1826 = vmatmul.f32.vlgmr.msrb.gmra.mxu1 %v6189_v61  ;;  %v6473_v7 = vld [vmem:[%s7614_s3 + $0x20] sm:$0xff] }
 0x508   :  { %1846 = vmatmul.f32.vlgmr.msrb.gmra.mxu2 %v6189_v61  ;;  %1866 = vmatmul.f32.vlgmr.msrb.gmra.mxu3 %v6189_v61  ;;  %8099 = vst [vmem:[#allocation20_spill] sm:$0xff] %v6455_v30 }
 0x509   :  { %2120 = vmatpush.msrb.mxu0 %v6048_v29  ;;  %2140 = vmatpush.msrb.mxu1 %v6054_v0  ;;  %8100 = vst [vmem:[#allocation22_spill] sm:$0xff] %v6461_v24 }
 0x50a   :  { %2160 = vmatpush.msrb.mxu2 %v6060_v62  ;;  %2180 = vmatpush.msrb.mxu3 %v6066_v26  ;;  %8101 = vst [vmem:[#allocation23_spill] sm:$0xff] %v6467_v9 }
 0x50b   :  { %2121 = vmatpush.msrb.mxu0 %v6072_v8  ;;  %2141 = vmatpush.msrb.mxu1 %v6078_v33  ;;  %8102 = vst [vmem:[#allocation36_spill] sm:$0xff] %v6473_v7 }
 0x50c   :  { %2161 = vmatpush.msrb.mxu2 %v6084_v1  ;;  %2181 = vmatpush.msrb.mxu3 %v6090_v27 }
 0x50d   :  { %2122 = vmatpush.msrb.mxu0 %v6096_v59  ;;  %2142 = vmatpush.msrb.mxu1 %v6102_v40 }
 0x50e   :  { %2162 = vmatpush.msrb.mxu2 %v6108_v4  ;;  %2182 = vmatpush.msrb.mxu3 %v6213_v21 }
 0x50f   :  { %2123 = vmatpush.msrb.mxu0 %v6115_v63  ;;  %2143 = vmatpush.msrb.mxu1 %v6121_v60 }
 0x510   :  { %2163 = vmatpush.msrb.mxu2 %v6221_v43  ;;  %2183 = vmatpush.msrb.mxu3 %v6227_v11 }
 0x511   :  { %2124 = vmatpush.msrb.mxu0 %v6233_v3  ;;  %2144 = vmatpush.msrb.mxu1 %v6239_v22 }
 0x512   :  { %2164 = vmatpush.msrb.mxu2 %v6245_v54  ;;  %2184 = vmatpush.msrb.mxu3 %v6251_v38 }
 0x513   :  { %2125 = vmatpush.msrb.mxu0 %v6257_v10  ;;  %2145 = vmatpush.msrb.mxu1 %v6263_v37 }
 0x514   :  { %2165 = vmatpush.msrb.mxu2 %v6269_v17  ;;  %2185 = vmatpush.msrb.mxu3 %v6275_v2 }
 0x515   :  { %2126 = vmatpush.msrb.mxu0 %v6281_v41  ;;  %2146 = vmatpush.msrb.mxu1 %v6287_v53 }
 0x516   :  { %2166 = vmatpush.msrb.mxu2 %v6293_v36  ;;  %2186 = vmatpush.msrb.mxu3 %v6299_v18 }
 0x517   :  { %2127 = vmatpush.msrb.mxu0 %v6305_v32  ;;  %2147 = vmatpush.msrb.mxu1 %v6311_v14 }
 0x518   :  { %2167 = vmatpush.msrb.mxu2 %v6317_v20  ;;  %2187 = vmatpush.msrb.mxu3 %v6323_v15 }
 0x519   :  { %2128 = vmatpush.msrb.mxu0 %v6329_v23  ;;  %2148 = vmatpush.msrb.mxu1 %v6335_v34 }
 0x51a   :  { %2168 = vmatpush.msrb.mxu2 %v6341_v5  ;;  %2188 = vmatpush.msrb.mxu3 %v6347_v16 }
 0x51b   :  { %2129 = vmatpush.msrb.mxu0 %v6353_v39  ;;  %2149 = vmatpush.msrb.mxu1 %v6359_v44  ;;  %v1943_v44 = vpop.permute.xlu1 %1942 }
 0x51c   :  { %2169 = vmatpush.msrb.mxu2 %v6365_v46  ;;  %2189 = vmatpush.msrb.mxu3 %v6371_v48  ;;  %vm1944_vm6 = vcmp.eq.s32.totalorder %v1943_v44, 1  ;;  %v8115_v44 = vld [vmem:[#allocation31_spill] sm:$0xff] }
 0x51d   :  { %2130 = vmatpush.msrb.mxu0 %v6377_v49  ;;  %2150 = vmatpush.msrb.mxu1 %v6383_v56 }
 0x51e   :  { %2170 = vmatpush.msrb.mxu2 %v6389_v57  ;;  %2190 = vmatpush.msrb.mxu3 %v6395_v58 }
 0x51f   :  { %2131 = vmatpush.msrb.mxu0 %v6401_v6  ;;  %2151 = vmatpush.msrb.mxu1 %v6407_v42  ;;  %v8111_v42 = vld [vmem:[#allocation46_spill] sm:$0xff] }
 0x520   :  { %2171 = vmatpush.msrb.mxu2 %v6413_v52  ;;  %2191 = vmatpush.msrb.mxu3 %v6419_v35  ;;  %v633_v6 = vadd.f32 %v8079_v28, %v8111_v42 }
 0x521   :  { %2132 = vmatpush.msrb.mxu0 %v6425_v50  ;;  %2152 = vmatpush.msrb.mxu1 %v6431_v13 }
 0x522   :  { %2172 = vmatpush.msrb.mxu2 %v6437_v51  ;;  %2192 = vmatpush.msrb.mxu3 %v6443_v25 }
 0x523   :  { %2133 = vmatpush.msrb.mxu0 %v6449_v31  ;;  %2153 = vmatpush.msrb.mxu1 %v6455_v30  ;;  %v6479_v30 = vld [vmem:[%s7614_s3 + $0x28] sm:$0xff] }
 0x524   :  { %2173 = vmatpush.msrb.mxu2 %v6461_v24  ;;  %2193 = vmatpush.msrb.mxu3 %v6467_v9  ;;  %8103 = vst [vmem:[#allocation37_spill] sm:$0xff] %v6479_v30  ;;  %v6485_v24 = vld [vmem:[%s7614_s3 + $0x30] sm:$0xff]  ;;  %v6491_v9 = vld [vmem:[%s7614_s3 + $0x38] sm:$0xff] }
 0x525   :  { %2134 = vmatpush.msrb.mxu0 %v6473_v7  ;;  %2154 = vmatpush.msrb.mxu1 %v6479_v30  ;;  %8104 = vst [vmem:[#allocation38_spill] sm:$0xff] %v6485_v24  ;;  %v6497_v7 = vld [vmem:[%s7614_s3] sm:$0xff]  ;;  %v6503_v30 = vld [vmem:[%s7614_s3 + $0x8] sm:$0xff] }
 0x526   :  { %2174 = vmatpush.msrb.mxu2 %v6485_v24  ;;  %8105 = vst [vmem:[#allocation39_spill] sm:$0xff] %v6491_v9  ;;  %2194 = vmatpush.msrb.mxu3 %v6491_v9  ;;  %v6509_v24 = vld [vmem:[%s7614_s3 + $0x10] sm:$0xff]  ;;  %v8109_v9 = vld [vmem:[#allocation44_spill] sm:$0xff] }
 0x527   :  { %8106 = vst [vmem:[#allocation24_spill] sm:$0xff] %v6497_v7  ;;  %2135 = vmatpush.msrb.mxu0 %v6497_v7  ;;  %2155 = vmatpush.msrb.mxu1 %v6503_v30  ;;  %v631_v31 = vadd.f32 %v8075_v47, %v8109_v9  ;;  %v8110_v7 = vld [vmem:[#allocation45_spill] sm:$0xff] }
 0x528   :  { %8107 = vst [vmem:[#allocation25_spill] sm:$0xff] %v6503_v30  ;;  %2175 = vmatpush.msrb.mxu2 %v6509_v24  ;;  %2195 = vmatpush.msrb.mxu3 %v8073_v45  ;;  %v632_v25 = vadd.f32 %v8077_v55, %v8110_v7 }
 0x529   :  { %8108 = vst [vmem:[#allocation26_spill] sm:$0xff] %v6509_v24 }
 0x584   :  { %v1807_v51 = vpop.f32.mrf.mxu0  ;;  %v1827_v13 = vpop.f32.mrf.mxu1 }
 0x585   :  { %v1870_v50 = vadd.f32 %v1807_v51, %v631_v31  ;;  %v1871_v35 = vadd.f32 %v1827_v13, %v632_v25  ;;  %v8112_v13 = vld [vmem:[#allocation47_spill] sm:$0xff] }
 0x587   :  { %v3690_v30 = vmul.f32 -1.442695, %v1870_v50  ;;  %v3691_v52 = vmul.f32 -1.442695, %v1871_v35  ;;  %v634_v35 = vadd.f32 %v8081_v12, %v8112_v13 }
 0x589   :  { %3876 = vpow2.f32 %v3690_v30 }
 0x58a   :  { %3878 = vpow2.f32 %v3691_v52 }
 0x58b   :  { %v1847_v24 = vpop.f32.mrf.mxu2  ;;  %v1867_v7 = vpop.f32.mrf.mxu3 }
 0x58c   :  { %v1872_v58 = vadd.f32 %v1847_v24, %v633_v6  ;;  %v1873_v31 = vadd.f32 %v1867_v7, %v634_v35 }
 0x58e   :  { %v3692_v45 = vmul.f32 -1.442695, %v1872_v58 }
 0x58f   :  { %v3877_v57 = vpop.eup %3876 }
 0x590   :  { %v3879_v56 = vpop.eup %3878  ;;  %v1883_v9 = vadd.f32 1.0, %v3877_v57  ;;  %3880 = vpow2.f32 %v3692_v45 }
 0x591   :  { %v1884_v47 = vadd.f32 1.0, %v3879_v56 }
 0x592   :  { %3882 = vrcp.f32 %v1883_v9  ;;  %v1897_v24 = vand.u32 2147483648, %v1883_v9  ;;  %v1895_v45 = vand.u32 2147483647, %v1883_v9  ;;  %vm1891_vm0 = vweird.f32 %v1883_v9 }
 0x593   :  { %3884 = vrcp.f32 %v1884_v47  ;;  %v1912_v57 = vand.u32 2147483648, %v1884_v47  ;;  %v1910_v55 = vand.u32 2147483647, %v1884_v47  ;;  %vm1906_vm1 = vweird.f32 %v1884_v47 }
 0x594   :  { %vm1896_vm4 = vcmp.eq.f32.partialorder %v1895_v45, 8.507059e+37  ;;  %v8118_v45 = vld [vmem:[#allocation34_spill] sm:$0xff] }
 0x595   :  { %vm1911_vm5 = vcmp.eq.f32.partialorder %v1910_v55, 8.507059e+37 }
 0x596   :  { %v3881_v51 = vpop.eup %3880 }
 0x597   :  { %v1885_v50 = vadd.f32 1.0, %v3881_v51  ;;  %v1898_v51 = vor.u32 1.1754944e-38, %v1897_v24 }
 0x598   :  { %v3883_v25 = vpop.eup %3882 }
 0x599   :  { %v3885_v42 = vpop.eup %3884  ;;  %v1887_v52 = vmul.f32 %v3883_v25, %v1883_v9  ;;  %3886 = vrcp.f32 %v1885_v50  ;;  %vm1892_vm14 = vweird.f32 %v3883_v25  ;;  %vm1921_vm8 = vweird.f32 %v1885_v50 }
 0x59a   :  { %v1902_v6 = vmul.f32 %v3885_v42, %v1884_v47  ;;  %3888 = vtanh.f32 %v1873_v31  ;;  %vm1907_vm15 = vweird.f32 %v3885_v42  ;;  %vm1893_vm2 = vmor %vm1891_vm0, %vm1892_vm14  ;;  %v1925_v24 = vand.u32 2147483647, %v1885_v50 }
 0x59b   :  { %v1888_v58 = vsub.f32 1.0, %v1887_v52  ;;  %vm1908_vm3 = vmor %vm1906_vm1, %vm1907_vm15  ;;  %v1913_v52 = vor.u32 1.1754944e-38, %v1912_v57 }
 0x59c   :  { %v1903_v30 = vsub.f32 1.0, %v1902_v6  ;;  %vm1926_vm10 = vcmp.eq.f32.partialorder %v1925_v24, 8.507059e+37  ;;  %v8132_v24 = vld [vmem:[#allocation23_spill] sm:$0xff] }
 0x59d   :  { %v1889_v56 = vmul.f32 %v3883_v25, %v1888_v58 }
 0x59e   :  { %v1904_v28 = vmul.f32 %v3885_v42, %v1903_v30 }
 0x59f   :  { %v3887_v49 = vpop.eup %3886  ;;  %v1890_v13 = vadd.f32 %v3883_v25, %v1889_v56 }
 0x5a0   :  { %v1917_v7 = vmul.f32 %v3887_v49, %v1885_v50  ;;  %v1905_v35 = vadd.f32 %v3885_v42, %v1904_v28  ;;  %v3889_v31 = vpop.eup %3888  ;;  %vm1922_vm7 = vweird.f32 %v3887_v49  ;;  %v1927_v28 = vand.u32 2147483648, %v1885_v50  ;;  %v8117_v50 = vld [vmem:[#allocation33_spill] sm:$0xff] }
 0x5a1   :  { %v1894_v6 = vsel %vm1893_vm2, %v3883_v25, %v1890_v13  ;;  %vm1923_vm9 = vmor %vm1921_vm8, %vm1922_vm7  ;;  %v8119_v13 = vld [vmem:[#allocation35_spill] sm:$0xff] }
 0x5a2   :  { %v1918_v12 = vsub.f32 1.0, %v1917_v7  ;;  %v1899_v58 = vsel %vm1896_vm4, %v1898_v51, %v1894_v6  ;;  %v1909_v48 = vsel %vm1908_vm3, %v3885_v42, %v1905_v35  ;;  %v8120_v7 = vld [vmem:[#allocation14_spill] sm:$0xff]  ;;  %v8121_v51 = vld [vmem:[#allocation11_spill] sm:$0xff]  ;;  %v8122_v35 = vld [vmem:[#allocation12_spill] sm:$0xff] }
 0x5a3   :  { %v1914_v30 = vsel %vm1911_vm5, %v1913_v52, %v1909_v48  ;;  %v1933_v46 = vmul.f32 %v3889_v31, %v1899_v58  ;;  %v1928_v48 = vor.u32 1.1754944e-38, %v1927_v28  ;;  %v8123_v52 = vld [vmem:[#allocation13_spill] sm:$0xff]  ;;  %v8124_v6 = vld [vmem:[#allocation18_spill] sm:$0xff]  ;;  %v8125_v31 = vld [vmem:[#allocation15_spill] sm:$0xff] }
 0x5a4   :  { %v1919_v39 = vmul.f32 %v3887_v49, %v1918_v12  ;;  %v1932_v9 = vmul.f32 %v1914_v30, %v6185_v19  ;;  %v8126_v58 = vld [vmem:[#allocation16_spill] sm:$0xff]  ;;  %v8127_v30 = vld [vmem:[#allocation17_spill] sm:$0xff]  ;;  %v8131_v28 = vld [vmem:[#allocation22_spill] sm:$0xff] }
 0x5a6   :  { %v1934_v47 = vadd.f32 %v1933_v46, %v1932_v9  ;;  %v1920_v56 = vadd.f32 %v3887_v49, %v1919_v39  ;;  %v8128_v9 = vld [vmem:[#allocation21_spill] sm:$0xff] }
 0x5a8   :  { %3890 = vtanh.f32 %v1934_v47  ;;  %v6524_v25 = vsel %vm1944_vm6, %v1934_v47, %v6185_v19  ;;  %v1924_v55 = vsel %vm1923_vm9, %v3887_v49, %v1920_v56  ;;  %v8113_v19 = vld [vmem:[#allocation29_spill] sm:$0xff]  ;;  %v8116_v49 = vld [vmem:[#allocation32_spill] sm:$0xff]  ;;  %v8129_v47 = vld [vmem:[#allocation19_spill] sm:$0xff] }
 0x5a9   :  { %v1929_v12 = vsel %vm1926_vm10, %v1928_v48, %v1924_v55  ;;  %v8130_v56 = vld [vmem:[#allocation20_spill] sm:$0xff]  ;;  %v8134_v48 = vld [vmem:[#allocation37_spill] sm:$0xff] }
 0x5aa   :  { %v8133_v55 = vld [vmem:[#allocation36_spill] sm:$0xff] }
 0x5ae   :  { %v3891_v42 = vpop.eup %3890 }
 0x5af   :  { %v1936_v57 = vmul.f32 %v3891_v42, %v1929_v12  ;;  %v8135_v42 = vld [vmem:[#allocation38_spill] sm:$0xff]  ;;  %v8136_v12 = vld [vmem:[#allocation39_spill] sm:$0xff] }
 0x5b1   :  { %v6528_v46 = vsel %vm1944_vm6, %v1936_v57, %v6189_v61  ;;  %v1947_v39 = vsel %vm1944_vm6, %v1936_v57, 0.0  ;;  %v8114_v61 = vld [vmem:[#allocation30_spill] sm:$0xff]  ;;  %v8137_v57 = vld [vmem:[#allocation24_spill] sm:$0xff] }
 0x5b2   :  { %3694 = vst [vmem:[%s7618_s7 + $0x30] sm:$0xff] %v1947_v39  ;;  %1971 = vmatmul.f32.vlgmr.msra.gmra.mxu0 %v6528_v46  ;;  %1991 = vmatmul.f32.vlgmr.msra.gmra.mxu1 %v6528_v46  ;;  %v8138_v39 = vld [vmem:[#allocation25_spill] sm:$0xff] }
 0x5b3   :  { %2011 = vmatmul.f32.vlgmr.msra.gmra.mxu2 %v6528_v46  ;;  %2031 = vmatmul.f32.vlgmr.msra.gmra.mxu3 %v6528_v46 }
 0x5b4   :  { %2285 = vmatpush.msra.mxu0 %v6048_v29  ;;  %2305 = vmatpush.msra.mxu1 %v6054_v0 }
 0x5b5   :  { %2325 = vmatpush.msra.mxu2 %v6060_v62  ;;  %2345 = vmatpush.msra.mxu3 %v6066_v26 }
 0x5b6   :  { %2286 = vmatpush.msra.mxu0 %v6072_v8  ;;  %2306 = vmatpush.msra.mxu1 %v6078_v33 }
 0x5b7   :  { %2326 = vmatpush.msra.mxu2 %v6084_v1  ;;  %2346 = vmatpush.msra.mxu3 %v6090_v27 }
 0x5b8   :  { %2287 = vmatpush.msra.mxu0 %v6096_v59  ;;  %2307 = vmatpush.msra.mxu1 %v6102_v40 }
 0x5b9   :  { %2327 = vmatpush.msra.mxu2 %v6108_v4  ;;  %2347 = vmatpush.msra.mxu3 %v6213_v21 }
 0x5ba   :  { %2288 = vmatpush.msra.mxu0 %v6115_v63  ;;  %2308 = vmatpush.msra.mxu1 %v6121_v60 }
 0x5bb   :  { %2328 = vmatpush.msra.mxu2 %v6221_v43  ;;  %2348 = vmatpush.msra.mxu3 %v6227_v11 }
 0x5bc   :  { %2289 = vmatpush.msra.mxu0 %v6233_v3  ;;  %2309 = vmatpush.msra.mxu1 %v6239_v22 }
 0x5bd   :  { %2329 = vmatpush.msra.mxu2 %v6245_v54  ;;  %2349 = vmatpush.msra.mxu3 %v6251_v38 }
 0x5be   :  { %2290 = vmatpush.msra.mxu0 %v6257_v10  ;;  %2310 = vmatpush.msra.mxu1 %v6263_v37 }
 0x5bf   :  { %2330 = vmatpush.msra.mxu2 %v6269_v17  ;;  %2350 = vmatpush.msra.mxu3 %v6275_v2 }
 0x5c0   :  { %2291 = vmatpush.msra.mxu0 %v6281_v41  ;;  %2311 = vmatpush.msra.mxu1 %v6287_v53 }
 0x5c1   :  { %2331 = vmatpush.msra.mxu2 %v6293_v36  ;;  %2351 = vmatpush.msra.mxu3 %v6299_v18 }
 0x5c2   :  { %2292 = vmatpush.msra.mxu0 %v6305_v32  ;;  %2312 = vmatpush.msra.mxu1 %v6311_v14 }
 0x5c3   :  { %2332 = vmatpush.msra.mxu2 %v6317_v20  ;;  %2352 = vmatpush.msra.mxu3 %v6323_v15 }
 0x5c4   :  { %2293 = vmatpush.msra.mxu0 %v6329_v23  ;;  %2313 = vmatpush.msra.mxu1 %v6335_v34 }
 0x5c5   :  { %2333 = vmatpush.msra.mxu2 %v6341_v5  ;;  %2353 = vmatpush.msra.mxu3 %v6347_v16 }
 0x5c6   :  { %2294 = vmatpush.msra.mxu0 %v8113_v19  ;;  %2314 = vmatpush.msra.mxu1 %v8114_v61  ;;  %v2108_v61 = vpop.permute.xlu2 %2107 }
 0x5c7   :  { %2334 = vmatpush.msra.mxu2 %v8115_v44  ;;  %2354 = vmatpush.msra.mxu3 %v8116_v49  ;;  %vm2109_vm3 = vcmp.eq.s32.totalorder %v2108_v61, 1  ;;  %v8164_v61 = vld [vmem:[#allocation21_spill] sm:$0xff] }
 0x5c8   :  { %2295 = vmatpush.msra.mxu0 %v8117_v50  ;;  %2315 = vmatpush.msra.mxu1 %v8118_v45 }
 0x5c9   :  { %2335 = vmatpush.msra.mxu2 %v8119_v13  ;;  %2355 = vmatpush.msra.mxu3 %v8120_v7 }
 0x5ca   :  { %2296 = vmatpush.msra.mxu0 %v8121_v51  ;;  %2316 = vmatpush.msra.mxu1 %v8122_v35 }
 0x5cb   :  { %2336 = vmatpush.msra.mxu2 %v8123_v52  ;;  %2356 = vmatpush.msra.mxu3 %v8124_v6  ;;  %v8146_v6 = vld [vmem:[#allocation9_spill] sm:$0xff] }
 0x5cc   :  { %2297 = vmatpush.msra.mxu0 %v8125_v31  ;;  %2317 = vmatpush.msra.mxu1 %v8126_v58 }
 0x5cd   :  { %2337 = vmatpush.msra.mxu2 %v8127_v30  ;;  %2357 = vmatpush.msra.mxu3 %v8128_v9  ;;  %v8139_v9 = vld [vmem:[#allocation26_spill] sm:$0xff] }
 0x5ce   :  { %2298 = vmatpush.msra.mxu0 %v8129_v47  ;;  %2318 = vmatpush.msra.mxu1 %v8130_v56  ;;  %v8143_v56 = vld [vmem:[#allocation49_spill] sm:$0xff] }
 0x5cf   :  { %2338 = vmatpush.msra.mxu2 %v8131_v28  ;;  %2358 = vmatpush.msra.mxu3 %v8132_v24  ;;  %v6604_v28 = vld [vmem:[%s7614_s3 + $0x18] sm:$0xff]  ;;  %v8142_v24 = vld [vmem:[#allocation81_spill] sm:$0xff] }
 0x5d0   :  { %2299 = vmatpush.msra.mxu0 %v8133_v55  ;;  %2319 = vmatpush.msra.mxu1 %v8134_v48  ;;  %8140 = vst [vmem:[#allocation27_spill] sm:$0xff] %v6604_v28  ;;  %v8141_v55 = vld [vmem:[#allocation48_spill] sm:$0xff] }
 0x5d1   :  { %2339 = vmatpush.msra.mxu2 %v8135_v42  ;;  %2359 = vmatpush.msra.mxu3 %v8136_v12  ;;  %v635_v48 = vadd.f32 %v8142_v24, %v8141_v55  ;;  %v8144_v42 = vld [vmem:[#allocation82_spill] sm:$0xff] }
 0x5d2   :  { %2300 = vmatpush.msra.mxu0 %v8137_v57  ;;  %2320 = vmatpush.msra.mxu1 %v8138_v39  ;;  %v636_v47 = vadd.f32 %v8144_v42, %v8143_v56 }
 0x5d3   :  { %2340 = vmatpush.msra.mxu2 %v8139_v9  ;;  %2360 = vmatpush.msra.mxu3 %v6604_v28  ;;  %v8145_v9 = vld [vmem:[#allocation50_spill] sm:$0xff] }
 0x5d4   :  { %v637_v52 = vadd.f32 %v8146_v6, %v8145_v9 }
 0x62f   :  { %v1972_v12 = vpop.f32.mrf.mxu0  ;;  %v1992_v30 = vpop.f32.mrf.mxu1 }
 0x630   :  { %v2035_v57 = vadd.f32 %v1972_v12, %v635_v48  ;;  %v2036_v58 = vadd.f32 %v1992_v30, %v636_v47  ;;  %v8147_v30 = vld [vmem:[#allocation51_spill] sm:$0xff]  ;;  %v8148_v47 = vld [vmem:[#allocation85_spill] sm:$0xff] }
 0x632   :  { %v3695_v39 = vmul.f32 -1.442695, %v2035_v57  ;;  %v3696_v31 = vmul.f32 -1.442695, %v2036_v58  ;;  %v638_v58 = vadd.f32 %v8148_v47, %v8147_v30 }
 0x634   :  { %3892 = vpow2.f32 %v3695_v39 }
 0x635   :  { %3894 = vpow2.f32 %v3696_v31 }
 0x636   :  { %v2012_v35 = vpop.f32.mrf.mxu2  ;;  %v2032_v56 = vpop.f32.mrf.mxu3 }
 0x637   :  { %v2037_v51 = vadd.f32 %v2012_v35, %v637_v52  ;;  %v2038_v39 = vadd.f32 %v2032_v56, %v638_v58 }
 0x639   :  { %v3697_v28 = vmul.f32 -1.442695, %v2037_v51 }
 0x63a   :  { %v3893_v7 = vpop.eup %3892 }
 0x63b   :  { %v3895_v13 = vpop.eup %3894  ;;  %v2048_v55 = vadd.f32 1.0, %v3893_v7  ;;  %3896 = vpow2.f32 %v3697_v28 }
 0x63c   :  { %v2049_v24 = vadd.f32 1.0, %v3895_v13 }
 0x63d   :  { %3898 = vrcp.f32 %v2048_v55  ;;  %v2062_v6 = vand.u32 2147483648, %v2048_v55  ;;  %v2060_v28 = vand.u32 2147483647, %v2048_v55  ;;  %vm2056_vm13 = vweird.f32 %v2048_v55 }
 0x63e   :  { %3900 = vrcp.f32 %v2049_v24  ;;  %v2077_v7 = vand.u32 2147483648, %v2049_v24  ;;  %v2075_v45 = vand.u32 2147483647, %v2049_v24  ;;  %vm2071_vm14 = vweird.f32 %v2049_v24 }
 0x63f   :  { %vm2061_vm1 = vcmp.eq.f32.partialorder %v2060_v28, 8.507059e+37  ;;  %v8167_v28 = vld [vmem:[#allocation22_spill] sm:$0xff] }
 0x640   :  { %vm2076_vm2 = vcmp.eq.f32.partialorder %v2075_v45, 8.507059e+37 }
 0x641   :  { %v3897_v48 = vpop.eup %3896 }
 0x642   :  { %v2050_v12 = vadd.f32 1.0, %v3897_v48  ;;  %v2063_v48 = vor.u32 1.1754944e-38, %v2062_v6 }
 0x643   :  { %v3899_v57 = vpop.eup %3898 }
 0x644   :  { %v3901_v9 = vpop.eup %3900  ;;  %v2052_v31 = vmul.f32 %v3899_v57, %v2048_v55  ;;  %3902 = vrcp.f32 %v2050_v12  ;;  %vm2057_vm11 = vweird.f32 %v3899_v57  ;;  %v2092_v6 = vand.u32 2147483648, %v2050_v12 }
 0x645   :  { %v2067_v35 = vmul.f32 %v3901_v9, %v2049_v24  ;;  %3904 = vtanh.f32 %v2038_v39  ;;  %vm2072_vm12 = vweird.f32 %v3901_v9  ;;  %vm2058_vm15 = vmor %vm2056_vm13, %vm2057_vm11  ;;  %vm2086_vm5 = vweird.f32 %v2050_v12 }
 0x646   :  { %v2053_v51 = vsub.f32 1.0, %v2052_v31  ;;  %vm2073_vm0 = vmor %vm2071_vm14, %vm2072_vm12  ;;  %v2078_v31 = vor.u32 1.1754944e-38, %v2077_v7 }
 0x647   :  { %v2068_v52 = vsub.f32 1.0, %v2067_v35 }
 0x648   :  { %v2054_v13 = vmul.f32 %v3899_v57, %v2053_v51 }
 0x649   :  { %v2069_v42 = vmul.f32 %v3901_v9, %v2068_v52 }
 0x64a   :  { %v3903_v50 = vpop.eup %3902  ;;  %v2055_v30 = vadd.f32 %v3899_v57, %v2054_v13 }
 0x64b   :  { %v2082_v56 = vmul.f32 %v3903_v50, %v2050_v12  ;;  %v2070_v58 = vadd.f32 %v3901_v9, %v2069_v42  ;;  %v3905_v39 = vpop.eup %3904  ;;  %vm2087_vm4 = vweird.f32 %v3903_v50 }
 0x64c   :  { %v2059_v35 = vsel %vm2058_vm15, %v3899_v57, %v2055_v30  ;;  %v2090_v57 = vand.u32 2147483647, %v2050_v12  ;;  %vm2088_vm6 = vmor %vm2086_vm5, %vm2087_vm4  ;;  %v8166_v12 = vld [vmem:[#allocation20_spill] sm:$0xff]  ;;  %v8168_v30 = vld [vmem:[#allocation23_spill] sm:$0xff] }
 0x64d   :  { %v2083_v47 = vsub.f32 1.0, %v2082_v56  ;;  %v2064_v51 = vsel %vm2061_vm1, %v2063_v48, %v2059_v35  ;;  %v2074_v49 = vsel %vm2073_vm0, %v3901_v9, %v2070_v58  ;;  %v8169_v56 = vld [vmem:[#allocation36_spill] sm:$0xff]  ;;  %v8170_v48 = vld [vmem:[#allocation37_spill] sm:$0xff]  ;;  %v8171_v58 = vld [vmem:[#allocation38_spill] sm:$0xff] }
 0x64e   :  { %v2079_v52 = vsel %vm2076_vm2, %v2078_v31, %v2074_v49  ;;  %v2098_v44 = vmul.f32 %v3905_v39, %v2064_v51  ;;  %v2093_v49 = vor.u32 1.1754944e-38, %v2092_v6  ;;  %vm2091_vm7 = vcmp.eq.f32.partialorder %v2090_v57, 8.507059e+37  ;;  %v8172_v31 = vld [vmem:[#allocation39_spill] sm:$0xff]  ;;  %v8173_v35 = vld [vmem:[#allocation24_spill] sm:$0xff]  ;;  %v8174_v39 = vld [vmem:[#allocation25_spill] sm:$0xff] }
 0x64f   :  { %v2084_v19 = vmul.f32 %v3903_v50, %v2083_v47  ;;  %v2097_v55 = vmul.f32 %v2079_v52, %v6524_v25  ;;  %v8175_v51 = vld [vmem:[#allocation26_spill] sm:$0xff]  ;;  %v8176_v52 = vld [vmem:[#allocation27_spill] sm:$0xff]  ;;  %v8179_v6 = vld [vmem:[#allocation53_spill] sm:$0xff] }
 0x650   :  { %v8180_v57 = vld [vmem:[#allocation82_spill] sm:$0xff] }
 0x651   :  { %v2099_v24 = vadd.f32 %v2098_v44, %v2097_v55  ;;  %v2085_v13 = vadd.f32 %v3903_v50, %v2084_v19  ;;  %v8177_v55 = vld [vmem:[#allocation52_spill] sm:$0xff] }
 0x653   :  { %3906 = vtanh.f32 %v2099_v24  ;;  %v6618_v42 = vsel %vm2109_vm3, %v2099_v24, %v6524_v25  ;;  %v2089_v45 = vsel %vm2088_vm6, %v3903_v50, %v2085_v13  ;;  %v8162_v25 = vld [vmem:[#allocation16_spill] sm:$0xff]  ;;  %v8165_v50 = vld [vmem:[#allocation19_spill] sm:$0xff]  ;;  %v8178_v24 = vld [vmem:[#allocation81_spill] sm:$0xff] }
 0x654   :  { %v2094_v47 = vsel %vm2091_vm7, %v2093_v49, %v2089_v45  ;;  %v639_v13 = vadd.f32 %v8178_v24, %v8177_v55  ;;  %v640_v45 = vadd.f32 %v8180_v57, %v8179_v6 }
 0x659   :  { %v3907_v9 = vpop.eup %3906 }
 0x65a   :  { %v2101_v7 = vmul.f32 %v3907_v9, %v2094_v47 }
 0x65c   :  { %v6622_v44 = vsel %vm2109_vm3, %v2101_v7, %v6528_v46  ;;  %v2112_v19 = vsel %vm2109_vm3, %v2101_v7, 0.0  ;;  %v8163_v46 = vld [vmem:[#allocation17_spill] sm:$0xff] }
 0x65d   :  { %3699 = vst [vmem:[%s7618_s7 + $0x38] sm:$0xff] %v2112_v19  ;;  %2136 = vmatmul.f32.vlgmr.msrb.gmra.mxu0 %v6622_v44  ;;  %2156 = vmatmul.f32.vlgmr.msrb.gmra.mxu1 %v6622_v44 }
 0x65e   :  { %2176 = vmatmul.f32.vlgmr.msrb.gmra.mxu2 %v6622_v44  ;;  %2196 = vmatmul.f32.vlgmr.msrb.gmra.mxu3 %v6622_v44 }
 0x65f   :  { %2450 = vmatpush.msrb.mxu0 %v6048_v29  ;;  %2470 = vmatpush.msrb.mxu1 %v6054_v0  ;;  %v8149_v29 = vld [vmem:[#allocation29_spill] sm:$0xff]  ;;  %v8150_v0 = vld [vmem:[#allocation30_spill] sm:$0xff] }
 0x660   :  { %2490 = vmatpush.msrb.mxu2 %v6060_v62  ;;  %2510 = vmatpush.msrb.mxu3 %v6066_v26  ;;  %v8151_v62 = vld [vmem:[#allocation31_spill] sm:$0xff]  ;;  %v8152_v26 = vld [vmem:[#allocation32_spill] sm:$0xff] }
 0x661   :  { %2451 = vmatpush.msrb.mxu0 %v6072_v8  ;;  %2471 = vmatpush.msrb.mxu1 %v6078_v33  ;;  %v8153_v8 = vld [vmem:[#allocation33_spill] sm:$0xff]  ;;  %v8154_v33 = vld [vmem:[#allocation34_spill] sm:$0xff] }
 0x662   :  { %2491 = vmatpush.msrb.mxu2 %v6084_v1  ;;  %2511 = vmatpush.msrb.mxu3 %v6090_v27  ;;  %v8155_v1 = vld [vmem:[#allocation35_spill] sm:$0xff]  ;;  %v8156_v27 = vld [vmem:[#allocation14_spill] sm:$0xff] }
 0x663   :  { %2452 = vmatpush.msrb.mxu0 %v6096_v59  ;;  %2472 = vmatpush.msrb.mxu1 %v6102_v40  ;;  %v8157_v59 = vld [vmem:[#allocation11_spill] sm:$0xff]  ;;  %v8158_v40 = vld [vmem:[#allocation12_spill] sm:$0xff] }
 0x664   :  { %2492 = vmatpush.msrb.mxu2 %v6108_v4  ;;  %2512 = vmatpush.msrb.mxu3 %v6213_v21  ;;  %v8159_v4 = vld [vmem:[#allocation13_spill] sm:$0xff] }
 0x665   :  { %2453 = vmatpush.msrb.mxu0 %v6115_v63  ;;  %2473 = vmatpush.msrb.mxu1 %v6121_v60  ;;  %v8160_v63 = vld [vmem:[#allocation18_spill] sm:$0xff]  ;;  %v8161_v60 = vld [vmem:[#allocation15_spill] sm:$0xff] }
 0x666   :  { %2493 = vmatpush.msrb.mxu2 %v6221_v43  ;;  %2513 = vmatpush.msrb.mxu3 %v6227_v11 }
 0x667   :  { %2454 = vmatpush.msrb.mxu0 %v6233_v3  ;;  %2474 = vmatpush.msrb.mxu1 %v6239_v22 }
 0x668   :  { %2494 = vmatpush.msrb.mxu2 %v6245_v54  ;;  %2514 = vmatpush.msrb.mxu3 %v6251_v38 }
 0x669   :  { %2455 = vmatpush.msrb.mxu0 %v6257_v10  ;;  %2475 = vmatpush.msrb.mxu1 %v6263_v37 }
 0x66a   :  { %2495 = vmatpush.msrb.mxu2 %v6269_v17  ;;  %2515 = vmatpush.msrb.mxu3 %v6275_v2 }
 0x66b   :  { %2456 = vmatpush.msrb.mxu0 %v6281_v41  ;;  %2476 = vmatpush.msrb.mxu1 %v6287_v53 }
 0x66c   :  { %2496 = vmatpush.msrb.mxu2 %v6293_v36  ;;  %2516 = vmatpush.msrb.mxu3 %v6299_v18 }
 0x66d   :  { %2457 = vmatpush.msrb.mxu0 %v6305_v32  ;;  %2477 = vmatpush.msrb.mxu1 %v6311_v14 }
 0x66e   :  { %2497 = vmatpush.msrb.mxu2 %v6317_v20  ;;  %2517 = vmatpush.msrb.mxu3 %v6323_v15 }
 0x66f   :  { %2458 = vmatpush.msrb.mxu0 %v6329_v23  ;;  %2478 = vmatpush.msrb.mxu1 %v6335_v34 }
 0x670   :  { %2498 = vmatpush.msrb.mxu2 %v6341_v5  ;;  %2518 = vmatpush.msrb.mxu3 %v6347_v16 }
 0x671   :  { %2459 = vmatpush.msrb.mxu0 %v8149_v29  ;;  %2479 = vmatpush.msrb.mxu1 %v8150_v0 }
 0x672   :  { %2499 = vmatpush.msrb.mxu2 %v8151_v62  ;;  %2519 = vmatpush.msrb.mxu3 %v8152_v26 }
 0x673   :  { %2460 = vmatpush.msrb.mxu0 %v8153_v8  ;;  %2480 = vmatpush.msrb.mxu1 %v8154_v33 }
 0x674   :  { %2500 = vmatpush.msrb.mxu2 %v8155_v1  ;;  %2520 = vmatpush.msrb.mxu3 %v8156_v27 }
 0x675   :  { %2461 = vmatpush.msrb.mxu0 %v8157_v59  ;;  %2481 = vmatpush.msrb.mxu1 %v8158_v40 }
 0x676   :  { %2501 = vmatpush.msrb.mxu2 %v8159_v4  ;;  %2521 = vmatpush.msrb.mxu3 %v8160_v63 }
 0x677   :  { %2462 = vmatpush.msrb.mxu0 %v8161_v60  ;;  %2482 = vmatpush.msrb.mxu1 %v8162_v25 }
 0x678   :  { %2502 = vmatpush.msrb.mxu2 %v8163_v46  ;;  %2522 = vmatpush.msrb.mxu3 %v8164_v61  ;;  %v2273_v46 = vpop.permute.xlu0 %2272 }
 0x679   :  { %2463 = vmatpush.msrb.mxu0 %v8165_v50  ;;  %2483 = vmatpush.msrb.mxu1 %v8166_v12  ;;  %vm2274_vm0 = vcmp.eq.s32.totalorder %v2273_v46, 1  ;;  %v6736_v46 = vld [vmem:[%s7614_s3 + $0x1f0] sm:$0xff] }
 0x67a   :  { %2503 = vmatpush.msrb.mxu2 %v8167_v28  ;;  %2523 = vmatpush.msrb.mxu3 %v8168_v30 }
 0x67b   :  { %2464 = vmatpush.msrb.mxu0 %v8169_v56  ;;  %2484 = vmatpush.msrb.mxu1 %v8170_v48 }
 0x67c   :  { %2504 = vmatpush.msrb.mxu2 %v8171_v58  ;;  %2524 = vmatpush.msrb.mxu3 %v8172_v31  ;;  %v8182_v58 = vld [vmem:[#allocation9_spill] sm:$0xff] }
 0x67d   :  { %2465 = vmatpush.msrb.mxu0 %v8173_v35  ;;  %2485 = vmatpush.msrb.mxu1 %v8174_v39  ;;  %v8181_v35 = vld [vmem:[#allocation54_spill] sm:$0xff] }
 0x67e   :  { %2505 = vmatpush.msrb.mxu2 %v8175_v51  ;;  %2525 = vmatpush.msrb.mxu3 %v8176_v52  ;;  %v641_v39 = vadd.f32 %v8182_v58, %v8181_v35 }
 0x6da   :  { %v2137_v49 = vpop.f32.mrf.mxu0  ;;  %v2157_v9 = vpop.f32.mrf.mxu1 }
 0x6db   :  { %v2200_v47 = vadd.f32 %v2137_v49, %v639_v13  ;;  %v2201_v7 = vadd.f32 %v2157_v9, %v640_v45  ;;  %v8183_v45 = vld [vmem:[#allocation55_spill] sm:$0xff]  ;;  %v8184_v49 = vld [vmem:[#allocation85_spill] sm:$0xff] }
 0x6dc   :  { %v642_v9 = vadd.f32 %v8184_v49, %v8183_v45 }
 0x6dd   :  { %v3700_v19 = vmul.f32 -1.442695, %v2200_v47  ;;  %v3701_v31 = vmul.f32 -1.442695, %v2201_v7 }
 0x6df   :  { %3908 = vpow2.f32 %v3700_v19 }
 0x6e0   :  { %3910 = vpow2.f32 %v3701_v31 }
 0x6e1   :  { %v2177_v51 = vpop.f32.mrf.mxu2  ;;  %v2197_v6 = vpop.f32.mrf.mxu3 }
 0x6e2   :  { %v2202_v48 = vadd.f32 %v2177_v51, %v641_v39  ;;  %v2203_v19 = vadd.f32 %v2197_v6, %v642_v9 }
 0x6e4   :  { %v3702_v52 = vmul.f32 -1.442695, %v2202_v48 }
 0x6e5   :  { %v3909_v56 = vpop.eup %3908 }
 0x6e6   :  { %v3911_v30 = vpop.eup %3910  ;;  %v2213_v55 = vadd.f32 1.0, %v3909_v56  ;;  %3912 = vpow2.f32 %v3702_v52 }
 0x6e7   :  { %v2214_v24 = vadd.f32 1.0, %v3911_v30 }
 0x6e8   :  { %3914 = vrcp.f32 %v2213_v55  ;;  %v2227_v58 = vand.u32 2147483648, %v2213_v55  ;;  %v2225_v52 = vand.u32 2147483647, %v2213_v55  ;;  %vm2221_vm10 = vweird.f32 %v2213_v55 }
 0x6e9   :  { %3916 = vrcp.f32 %v2214_v24  ;;  %v2242_v56 = vand.u32 2147483648, %v2214_v24  ;;  %v2240_v28 = vand.u32 2147483647, %v2214_v24  ;;  %vm2236_vm11 = vweird.f32 %v2214_v24 }
 0x6ea   :  { %vm2226_vm14 = vcmp.eq.f32.partialorder %v2225_v52, 8.507059e+37  ;;  %v6754_v52 = vld [vmem:[%s7614_s3 + $0x1c8] sm:$0xff] }
 0x6eb   :  { %vm2241_vm15 = vcmp.eq.f32.partialorder %v2240_v28, 8.507059e+37 }
 0x6ec   :  { %v3913_v13 = vpop.eup %3912 }
 0x6ed   :  { %v2215_v47 = vadd.f32 1.0, %v3913_v13  ;;  %v2228_v13 = vor.u32 1.1754944e-38, %v2227_v58 }
 0x6ee   :  { %v3915_v7 = vpop.eup %3914 }
 0x6ef   :  { %v3917_v35 = vpop.eup %3916  ;;  %v2217_v31 = vmul.f32 %v3915_v7, %v2213_v55  ;;  %3918 = vrcp.f32 %v2215_v47  ;;  %vm2222_vm8 = vweird.f32 %v3915_v7  ;;  %v2257_v58 = vand.u32 2147483648, %v2215_v47 }
 0x6f0   :  { %v2232_v39 = vmul.f32 %v3917_v35, %v2214_v24  ;;  %3920 = vtanh.f32 %v2203_v19  ;;  %vm2237_vm9 = vweird.f32 %v3917_v35  ;;  %vm2223_vm12 = vmor %vm2221_vm10, %vm2222_vm8  ;;  %vm2251_vm2 = vweird.f32 %v2215_v47 }
 0x6f1   :  { %v2218_v48 = vsub.f32 1.0, %v2217_v31  ;;  %vm2238_vm13 = vmor %vm2236_vm11, %vm2237_vm9  ;;  %v2243_v31 = vor.u32 1.1754944e-38, %v2242_v56 }
 0x6f2   :  { %v2233_v51 = vsub.f32 1.0, %v2232_v39 }
 0x6f3   :  { %v2219_v30 = vmul.f32 %v3915_v7, %v2218_v48 }
 0x6f4   :  { %v2234_v57 = vmul.f32 %v3917_v35, %v2233_v51 }
 0x6f5   :  { %v3919_v12 = vpop.eup %3918  ;;  %v2220_v45 = vadd.f32 %v3915_v7, %v2219_v30 }
 0x6f6   :  { %v2247_v6 = vmul.f32 %v3919_v12, %v2215_v47  ;;  %v2235_v9 = vadd.f32 %v3917_v35, %v2234_v57  ;;  %v3921_v19 = vpop.eup %3920  ;;  %vm2252_vm1 = vweird.f32 %v3919_v12 }
 0x6f7   :  { %v2224_v39 = vsel %vm2223_vm12, %v3915_v7, %v2220_v45  ;;  %v2255_v7 = vand.u32 2147483647, %v2215_v47  ;;  %vm2253_vm3 = vmor %vm2251_vm2, %vm2252_vm1  ;;  %v6748_v47 = vld [vmem:[%s7614_s3 + $0x1c0] sm:$0xff]  ;;  %v6760_v45 = vld [vmem:[%s7614_s3 + $0x1d0] sm:$0xff] }
 0x6f8   :  { %v2248_v49 = vsub.f32 1.0, %v2247_v6  ;;  %v2229_v48 = vsel %vm2226_vm14, %v2228_v13, %v2224_v39  ;;  %v2239_v50 = vsel %vm2238_vm13, %v3917_v35, %v2235_v9  ;;  %v6766_v6 = vld [vmem:[%s7614_s3 + $0x1d8] sm:$0xff]  ;;  %v6772_v13 = vld [vmem:[%s7614_s3 + $0x1a0] sm:$0xff]  ;;  %v6778_v9 = vld [vmem:[%s7614_s3 + $0x1a8] sm:$0xff] }
 0x6f9   :  { %v2244_v51 = vsel %vm2241_vm15, %v2243_v31, %v2239_v50  ;;  %v2263_v61 = vmul.f32 %v3921_v19, %v2229_v48  ;;  %v2258_v50 = vor.u32 1.1754944e-38, %v2257_v58  ;;  %vm2256_vm4 = vcmp.eq.f32.partialorder %v2255_v7, 8.507059e+37  ;;  %v6784_v31 = vld [vmem:[%s7614_s3 + $0x1b0] sm:$0xff]  ;;  %v6791_v39 = vld [vmem:[%s7614_s3 + $0x180] sm:$0xff]  ;;  %v6797_v19 = vld [vmem:[%s7614_s3 + $0x188] sm:$0xff] }
 0x6fa   :  { %v2249_v25 = vmul.f32 %v3919_v12, %v2248_v49  ;;  %v2262_v55 = vmul.f32 %v2244_v51, %v6618_v42 }
 0x6fc   :  { %v2264_v24 = vadd.f32 %v2263_v61, %v2262_v55  ;;  %v2250_v30 = vadd.f32 %v3919_v12, %v2249_v25 }
 0x6fe   :  { %3922 = vtanh.f32 %v2264_v24  ;;  %v6707_v57 = vsel %vm2274_vm0, %v2264_v24, %v6618_v42  ;;  %v2254_v28 = vsel %vm2253_vm3, %v3919_v12, %v2250_v30  ;;  %v6724_v42 = vld [vmem:[%s7614_s3 + $0x1e0] sm:$0xff]  ;;  %v6742_v12 = vld [vmem:[%s7614_s3 + $0x1f8] sm:$0xff]  ;;  %v8207_v30 = vld [vmem:[#allocation85_spill] sm:$0xff] }
 0x6ff   :  { %v2259_v49 = vsel %vm2256_vm4, %v2258_v50, %v2254_v28  ;;  %v8206_v24 = vld [vmem:[#allocation59_spill] sm:$0xff] }
 0x700   :  { %v646_v58 = vadd.f32 %v8207_v30, %v8206_v24  ;;  %v6903_v24 = vld [vmem:[%s7614_s3 + $0x198] sm:$0xff] }
 0x704   :  { %v3923_v35 = vpop.eup %3922 }
 0x705   :  { %v2266_v56 = vmul.f32 %v3923_v35, %v2259_v49 }
 0x707   :  { %v6711_v61 = vsel %vm2274_vm0, %v2266_v56, %v6622_v44  ;;  %v2277_v25 = vsel %vm2274_vm0, %v2266_v56, 0.0  ;;  %v6730_v44 = vld [vmem:[%s7614_s3 + $0x1e8] sm:$0xff] }
 0x708   :  { %3704 = vst [vmem:[%s7618_s7 + $0x40] sm:$0xff] %v2277_v25  ;;  %2301 = vmatmul.f32.vlgmr.msra.gmra.mxu0 %v6711_v61  ;;  %2321 = vmatmul.f32.vlgmr.msra.gmra.mxu1 %v6711_v61 }
 0x709   :  { %2341 = vmatmul.f32.vlgmr.msra.gmra.mxu2 %v6711_v61  ;;  %2361 = vmatmul.f32.vlgmr.msra.gmra.mxu3 %v6711_v61 }
 0x70a   :  { %2615 = vmatpush.msra.mxu0 %v6724_v42  ;;  %2635 = vmatpush.msra.mxu1 %v6730_v44 }
 0x70b   :  { %2655 = vmatpush.msra.mxu2 %v6736_v46  ;;  %2675 = vmatpush.msra.mxu3 %v6742_v12 }
 0x70c   :  { %2616 = vmatpush.msra.mxu0 %v6748_v47  ;;  %2636 = vmatpush.msra.mxu1 %v6754_v52 }
 0x70d   :  { %2656 = vmatpush.msra.mxu2 %v6760_v45  ;;  %2676 = vmatpush.msra.mxu3 %v6766_v6 }
 0x70e   :  { %2617 = vmatpush.msra.mxu0 %v6772_v13  ;;  %2637 = vmatpush.msra.mxu1 %v6778_v9 }
 0x70f   :  { %2657 = vmatpush.msra.mxu2 %v6784_v31  ;;  %2677 = vmatpush.msra.mxu3 %v6213_v21  ;;  %v8185_v21 = vld [vmem:[#allocation16_spill] sm:$0xff] }
 0x710   :  { %2618 = vmatpush.msra.mxu0 %v6791_v39  ;;  %2638 = vmatpush.msra.mxu1 %v6797_v19 }
 0x711   :  { %2658 = vmatpush.msra.mxu2 %v6221_v43  ;;  %2678 = vmatpush.msra.mxu3 %v6227_v11  ;;  %v8186_v43 = vld [vmem:[#allocation17_spill] sm:$0xff] }
 0x712   :  { %2619 = vmatpush.msra.mxu0 %v6233_v3  ;;  %2639 = vmatpush.msra.mxu1 %v6239_v22  ;;  %v8187_v11 = vld [vmem:[#allocation21_spill] sm:$0xff]  ;;  %v8188_v3 = vld [vmem:[#allocation19_spill] sm:$0xff]  ;;  %v8189_v22 = vld [vmem:[#allocation20_spill] sm:$0xff] }
 0x713   :  { %2659 = vmatpush.msra.mxu2 %v6245_v54  ;;  %2679 = vmatpush.msra.mxu3 %v6251_v38  ;;  %v8190_v54 = vld [vmem:[#allocation22_spill] sm:$0xff]  ;;  %v8191_v38 = vld [vmem:[#allocation23_spill] sm:$0xff] }
 0x714   :  { %2620 = vmatpush.msra.mxu0 %v6257_v10  ;;  %2640 = vmatpush.msra.mxu1 %v6263_v37  ;;  %v8192_v10 = vld [vmem:[#allocation36_spill] sm:$0xff]  ;;  %v8193_v37 = vld [vmem:[#allocation37_spill] sm:$0xff] }
 0x715   :  { %2660 = vmatpush.msra.mxu2 %v6269_v17  ;;  %2680 = vmatpush.msra.mxu3 %v6275_v2  ;;  %v8194_v17 = vld [vmem:[#allocation38_spill] sm:$0xff]  ;;  %v8195_v2 = vld [vmem:[#allocation39_spill] sm:$0xff] }
 0x716   :  { %2621 = vmatpush.msra.mxu0 %v6281_v41  ;;  %2641 = vmatpush.msra.mxu1 %v6287_v53  ;;  %v8196_v41 = vld [vmem:[#allocation24_spill] sm:$0xff]  ;;  %v8197_v53 = vld [vmem:[#allocation25_spill] sm:$0xff] }
 0x717   :  { %2661 = vmatpush.msra.mxu2 %v6293_v36  ;;  %2681 = vmatpush.msra.mxu3 %v6299_v18  ;;  %v8198_v36 = vld [vmem:[#allocation26_spill] sm:$0xff]  ;;  %v8199_v18 = vld [vmem:[#allocation27_spill] sm:$0xff] }
 0x718   :  { %2622 = vmatpush.msra.mxu0 %v6305_v32  ;;  %2642 = vmatpush.msra.mxu1 %v6311_v14  ;;  %v8200_v32 = vld [vmem:[#allocation56_spill] sm:$0xff]  ;;  %v8201_v14 = vld [vmem:[#allocation81_spill] sm:$0xff] }
 0x719   :  { %2662 = vmatpush.msra.mxu2 %v6317_v20  ;;  %2682 = vmatpush.msra.mxu3 %v6323_v15  ;;  %v643_v20 = vadd.f32 %v8201_v14, %v8200_v32  ;;  %v8202_v15 = vld [vmem:[#allocation57_spill] sm:$0xff] }
 0x71a   :  { %2623 = vmatpush.msra.mxu0 %v6329_v23  ;;  %2643 = vmatpush.msra.mxu1 %v6335_v34  ;;  %v8203_v23 = vld [vmem:[#allocation82_spill] sm:$0xff] }
 0x71b   :  { %2663 = vmatpush.msra.mxu2 %v6341_v5  ;;  %2683 = vmatpush.msra.mxu3 %v6347_v16  ;;  %v644_v34 = vadd.f32 %v8203_v23, %v8202_v15 }
 0x71c   :  { %2624 = vmatpush.msra.mxu0 %v8149_v29  ;;  %2644 = vmatpush.msra.mxu1 %v8150_v0 }
 0x71d   :  { %2664 = vmatpush.msra.mxu2 %v8151_v62  ;;  %2684 = vmatpush.msra.mxu3 %v8152_v26 }
 0x71e   :  { %2625 = vmatpush.msra.mxu0 %v8153_v8  ;;  %2645 = vmatpush.msra.mxu1 %v8154_v33  ;;  %v8204_v8 = vld [vmem:[#allocation58_spill] sm:$0xff]  ;;  %v8205_v33 = vld [vmem:[#allocation9_spill] sm:$0xff] }
 0x71f   :  { %2665 = vmatpush.msra.mxu2 %v8155_v1  ;;  %2685 = vmatpush.msra.mxu3 %v8156_v27  ;;  %v645_v1 = vadd.f32 %v8205_v33, %v8204_v8 }
 0x720   :  { %2626 = vmatpush.msra.mxu0 %v8157_v59  ;;  %2646 = vmatpush.msra.mxu1 %v8158_v40 }
 0x721   :  { %2666 = vmatpush.msra.mxu2 %v8159_v4  ;;  %2686 = vmatpush.msra.mxu3 %v8160_v63 }
 0x722   :  { %2627 = vmatpush.msra.mxu0 %v8161_v60  ;;  %2647 = vmatpush.msra.mxu1 %v8185_v21 }
 0x723   :  { %2667 = vmatpush.msra.mxu2 %v8186_v43  ;;  %2687 = vmatpush.msra.mxu3 %v8187_v11 }
 0x724   :  { %2628 = vmatpush.msra.mxu0 %v8188_v3  ;;  %2648 = vmatpush.msra.mxu1 %v8189_v22 }
 0x725   :  { %2668 = vmatpush.msra.mxu2 %v8190_v54  ;;  %2688 = vmatpush.msra.mxu3 %v8191_v38 }
 0x726   :  { %2629 = vmatpush.msra.mxu0 %v8192_v10  ;;  %2649 = vmatpush.msra.mxu1 %v8193_v37 }
 0x727   :  { %2669 = vmatpush.msra.mxu2 %v8194_v17  ;;  %2689 = vmatpush.msra.mxu3 %v8195_v2 }
 0x728   :  { %2630 = vmatpush.msra.mxu0 %v8196_v41  ;;  %2650 = vmatpush.msra.mxu1 %v8197_v53 }
 0x729   :  { %2670 = vmatpush.msra.mxu2 %v8198_v36  ;;  %2690 = vmatpush.msra.mxu3 %v8199_v18 }
 0x785   :  { %v2302_v5 = vpop.f32.mrf.mxu0  ;;  %v2322_v16 = vpop.f32.mrf.mxu1 }
 0x786   :  { %v2365_v29 = vadd.f32 %v2302_v5, %v643_v20  ;;  %v2366_v0 = vadd.f32 %v2322_v16, %v644_v34 }
 0x788   :  { %v3705_v62 = vmul.f32 -1.442695, %v2365_v29  ;;  %v3706_v26 = vmul.f32 -1.442695, %v2366_v0  ;;  %v2438_v29 = vpop.permute.xlu1 %2437 }
 0x789   :  { %vm2439_vm13 = vcmp.eq.s32.totalorder %v2438_v29, 1  ;;  %v7077_v29 = vld [vmem:[%s7614_s3 + $0x80] sm:$0xff] }
 0x78a   :  { %3924 = vpow2.f32 %v3705_v62  ;;  %8216 = vst [vmem:[#allocation94_spill] sm:$0xff] %v7077_v29 }
 0x78b   :  { %3926 = vpow2.f32 %v3706_v26 }
 0x78c   :  { %v2342_v27 = vpop.f32.mrf.mxu2  ;;  %v2362_v51 = vpop.f32.mrf.mxu3 }
 0x78d   :  { %v2367_v59 = vadd.f32 %v2342_v27, %v645_v1  ;;  %v2368_v50 = vadd.f32 %v2362_v51, %v646_v58  ;;  %v6909_v58 = vld [vmem:[%s7614_s3 + $0x160] sm:$0xff] }
 0x78f   :  { %v3707_v40 = vmul.f32 -1.442695, %v2367_v59 }
 0x790   :  { %v3925_v4 = vpop.eup %3924 }
 0x791   :  { %v3927_v63 = vpop.eup %3926  ;;  %v2378_v60 = vadd.f32 1.0, %v3925_v4  ;;  %3928 = vpow2.f32 %v3707_v40 }
 0x792   :  { %v2379_v48 = vadd.f32 1.0, %v3927_v63 }
 0x793   :  { %3930 = vrcp.f32 %v2378_v60  ;;  %v2392_v43 = vand.u32 2147483648, %v2378_v60  ;;  %v2390_v22 = vand.u32 2147483647, %v2378_v60  ;;  %vm2386_vm7 = vweird.f32 %v2378_v60 }
 0x794   :  { %3932 = vrcp.f32 %v2379_v48  ;;  %v2407_v11 = vand.u32 2147483648, %v2379_v48  ;;  %v2405_v38 = vand.u32 2147483647, %v2379_v48  ;;  %vm2401_vm8 = vweird.f32 %v2379_v48 }
 0x795   :  { %v2393_v2 = vor.u32 1.1754944e-38, %v2392_v43  ;;  %vm2391_vm11 = vcmp.eq.f32.partialorder %v2390_v22, 8.507059e+37  ;;  %v6963_v43 = vld [vmem:[%s7614_s3 + $0x128] sm:$0xff]  ;;  %v6981_v22 = vld [vmem:[%s7614_s3 + $0x100] sm:$0xff] }
 0x796   :  { %v2408_v53 = vor.u32 1.1754944e-38, %v2407_v11  ;;  %vm2406_vm12 = vcmp.eq.f32.partialorder %v2405_v38, 8.507059e+37  ;;  %v6969_v11 = vld [vmem:[%s7614_s3 + $0x130] sm:$0xff] }
 0x797   :  { %v3929_v55 = vpop.eup %3928  ;;  %v6993_v38 = vld [vmem:[%s7614_s3 + $0x110] sm:$0xff] }
 0x798   :  { %v2380_v7 = vadd.f32 1.0, %v3929_v55 }
 0x799   :  { %v3931_v28 = vpop.eup %3930 }
 0x79a   :  { %v3933_v35 = vpop.eup %3932  ;;  %v2382_v49 = vmul.f32 %v3931_v28, %v2378_v60  ;;  %3934 = vrcp.f32 %v2380_v7  ;;  %vm2387_vm5 = vweird.f32 %v3931_v28  ;;  %v2422_v1 = vand.u32 2147483648, %v2380_v7 }
 0x79b   :  { %v2397_v56 = vmul.f32 %v3933_v35, %v2379_v48  ;;  %3936 = vtanh.f32 %v2368_v50  ;;  %vm2402_vm6 = vweird.f32 %v3933_v35  ;;  %vm2388_vm9 = vmor %vm2386_vm7, %vm2387_vm5  ;;  %vm2416_vm15 = vweird.f32 %v2380_v7  ;;  %v6927_v50 = vld [vmem:[%s7614_s3 + $0x178] sm:$0xff] }
 0x79c   :  { %v2383_v25 = vsub.f32 1.0, %v2382_v49  ;;  %vm2403_vm10 = vmor %vm2401_vm8, %vm2402_vm6  ;;  %v2420_v59 = vand.u32 2147483647, %v2380_v7  ;;  %v2423_v4 = vor.u32 1.1754944e-38, %v2422_v1  ;;  %v6939_v49 = vld [vmem:[%s7614_s3 + $0x148] sm:$0xff] }
 0x79d   :  { %v2398_v21 = vsub.f32 1.0, %v2397_v56  ;;  %v6945_v56 = vld [vmem:[%s7614_s3 + $0x150] sm:$0xff]  ;;  %v7107_v1 = vld [vmem:[%s7614_s3 + $0x68] sm:$0xff] }
 0x79e   :  { %v2384_v3 = vmul.f32 %v3931_v28, %v2383_v25  ;;  %vm2421_vm1 = vcmp.eq.f32.partialorder %v2420_v59, 8.507059e+37  ;;  %v6951_v25 = vld [vmem:[%s7614_s3 + $0x158] sm:$0xff]  ;;  %8221 = vst [vmem:[#allocation42_spill] sm:$0xff] %v7107_v1  ;;  %v7113_v59 = vld [vmem:[%s7614_s3 + $0x70] sm:$0xff] }
 0x79f   :  { %v2399_v54 = vmul.f32 %v3933_v35, %v2398_v21  ;;  %v6957_v21 = vld [vmem:[%s7614_s3 + $0x120] sm:$0xff]  ;;  %8222 = vst [vmem:[#allocation43_spill] sm:$0xff] %v7113_v59 }
 0x7a0   :  { %v3935_v10 = vpop.eup %3934  ;;  %v2385_v37 = vadd.f32 %v3931_v28, %v2384_v3  ;;  %v6975_v3 = vld [vmem:[%s7614_s3 + $0x138] sm:$0xff] }
 0x7a1   :  { %v2412_v17 = vmul.f32 %v3935_v10, %v2380_v7  ;;  %v2400_v41 = vadd.f32 %v3933_v35, %v2399_v54  ;;  %v3937_v32 = vpop.eup %3936  ;;  %vm2417_vm14 = vweird.f32 %v3935_v10  ;;  %v6915_v7 = vld [vmem:[%s7614_s3 + $0x168] sm:$0xff] }
 0x7a2   :  { %v2389_v36 = vsel %vm2388_vm9, %v3931_v28, %v2385_v37  ;;  %vm2418_vm0 = vmor %vm2416_vm15, %vm2417_vm14  ;;  %v6921_v28 = vld [vmem:[%s7614_s3 + $0x170] sm:$0xff]  ;;  %v6987_v54 = vld [vmem:[%s7614_s3 + $0x108] sm:$0xff] }
 0x7a3   :  { %v2413_v20 = vsub.f32 1.0, %v2412_v17  ;;  %v2394_v15 = vsel %vm2391_vm11, %v2393_v2, %v2389_v36  ;;  %v2404_v34 = vsel %vm2403_vm10, %v3933_v35, %v2400_v41  ;;  %v6933_v35 = vld [vmem:[%s7614_s3 + $0x140] sm:$0xff]  ;;  %v7011_v17 = vld [vmem:[%s7614_s3 + $0xe8] sm:$0xff]  ;;  %v7017_v2 = vld [vmem:[%s7614_s3 + $0xf0] sm:$0xff] }
 0x7a4   :  { %v2409_v5 = vsel %vm2406_vm12, %v2408_v53, %v2404_v34  ;;  %v2428_v16 = vmul.f32 %v3937_v32, %v2394_v15  ;;  %v7005_v37 = vld [vmem:[%s7614_s3 + $0xe0] sm:$0xff]  ;;  %v7023_v41 = vld [vmem:[%s7614_s3 + $0xf8] sm:$0xff]  ;;  %v7035_v36 = vld [vmem:[%s7614_s3 + $0xc8] sm:$0xff] }
 0x7a5   :  { %v2414_v0 = vmul.f32 %v3935_v10, %v2413_v20  ;;  %v2427_v62 = vmul.f32 %v2409_v5, %v6707_v57  ;;  %v7029_v53 = vld [vmem:[%s7614_s3 + $0xc0] sm:$0xff]  ;;  %8209 = vst [vmem:[#allocation87_spill] sm:$0xff] %v7035_v36  ;;  %v7041_v32 = vld [vmem:[%s7614_s3 + $0xd0] sm:$0xff]  ;;  %v7047_v20 = vld [vmem:[%s7614_s3 + $0xd8] sm:$0xff] }
 0x7a6   :  { %8208 = vst [vmem:[#allocation86_spill] sm:$0xff] %v7029_v53  ;;  %v7053_v15 = vld [vmem:[%s7614_s3 + $0xa0] sm:$0xff]  ;;  %v7059_v34 = vld [vmem:[%s7614_s3 + $0xa8] sm:$0xff]  ;;  %v7065_v5 = vld [vmem:[%s7614_s3 + $0xb0] sm:$0xff] }
 0x7a7   :  { %v2429_v26 = vadd.f32 %v2428_v16, %v2427_v62  ;;  %v2415_v8 = vadd.f32 %v3935_v10, %v2414_v0  ;;  %8210 = vst [vmem:[#allocation88_spill] sm:$0xff] %v7041_v32  ;;  %v7071_v16 = vld [vmem:[%s7614_s3 + $0xb8] sm:$0xff]  ;;  %v7083_v0 = vld [vmem:[%s7614_s3 + $0x88] sm:$0xff]  ;;  %v7089_v62 = vld [vmem:[%s7614_s3 + $0x90] sm:$0xff] }
 0x7a8   :  { %8211 = vst [vmem:[#allocation89_spill] sm:$0xff] %v7047_v20 }
 0x7a9   :  { %3938 = vtanh.f32 %v2429_v26  ;;  %v6861_v27 = vsel %vm2439_vm13, %v2429_v26, %v6707_v57  ;;  %v2419_v40 = vsel %vm2418_vm0, %v3935_v10, %v2415_v8  ;;  %v6889_v57 = vld [vmem:[%s7614_s3 + $0x1b8] sm:$0xff]  ;;  %8212 = vst [vmem:[#allocation90_spill] sm:$0xff] %v7053_v15  ;;  %v7101_v8 = vld [vmem:[%s7614_s3 + $0x60] sm:$0xff] }
 0x7aa   :  { %v2424_v60 = vsel %vm2421_vm1, %v2423_v4, %v2419_v40  ;;  %v6999_v10 = vld [vmem:[%s7614_s3 + $0x118] sm:$0xff]  ;;  %8213 = vst [vmem:[#allocation91_spill] sm:$0xff] %v7059_v34  ;;  %v7125_v4 = vld [vmem:[%s7614_s3 + $0x40] sm:$0xff] }
 0x7ab   :  { %8214 = vst [vmem:[#allocation92_spill] sm:$0xff] %v7065_v5  ;;  %v7095_v26 = vld [vmem:[%s7614_s3 + $0x98] sm:$0xff] }
 0x7ac   :  { %8215 = vst [vmem:[#allocation93_spill] sm:$0xff] %v7071_v16  ;;  %v7119_v40 = vld [vmem:[%s7614_s3 + $0x78] sm:$0xff] }
 0x7ad   :  { %8217 = vst [vmem:[#allocation95_spill] sm:$0xff] %v7083_v0 }
 0x7ae   :  { %8218 = vst [vmem:[#allocation28_spill] sm:$0xff] %v7089_v62 }
 0x7af   :  { %v3939_v63 = vpop.eup %3938  ;;  %8219 = vst [vmem:[#allocation40_spill] sm:$0xff] %v7095_v26 }
 0x7b0   :  { %v2431_v48 = vmul.f32 %v3939_v63, %v2424_v60  ;;  %8220 = vst [vmem:[#allocation41_spill] sm:$0xff] %v7101_v8  ;;  %v7131_v63 = vld [vmem:[%s7614_s3 + $0x48] sm:$0xff]  ;;  %v7137_v60 = vld [vmem:[%s7614_s3 + $0x50] sm:$0xff] }
 0x7b1   :  { %8223 = vst [vmem:[#allocation44_spill] sm:$0xff] %v7119_v40 }
 0x7b2   :  { %v6865_v51 = vsel %vm2439_vm13, %v2431_v48, %v6711_v61  ;;  %v2442_v55 = vsel %vm2439_vm13, %v2431_v48, 0.0  ;;  %v6897_v61 = vld [vmem:[%s7614_s3 + $0x190] sm:$0xff]  ;;  %8224 = vst [vmem:[#allocation45_spill] sm:$0xff] %v7125_v4  ;;  %v7143_v48 = vld [vmem:[%s7614_s3 + $0x58] sm:$0xff] }
 0x7b3   :  { %3709 = vst [vmem:[%s7618_s7 + $0x48] sm:$0xff] %v2442_v55  ;;  %2466 = vmatmul.f32.vlgmr.msrb.gmra.mxu0 %v6865_v51  ;;  %2486 = vmatmul.f32.vlgmr.msrb.gmra.mxu1 %v6865_v51  ;;  %v7149_v55 = vld [vmem:[%s7614_s3 + $0x20] sm:$0xff] }
 0x7b4   :  { %2506 = vmatmul.f32.vlgmr.msrb.gmra.mxu2 %v6865_v51  ;;  %2526 = vmatmul.f32.vlgmr.msrb.gmra.mxu3 %v6865_v51  ;;  %8225 = vst [vmem:[#allocation46_spill] sm:$0xff] %v7131_v63 }
 0x7b5   :  { %2780 = vmatpush.msrb.mxu0 %v6724_v42  ;;  %2800 = vmatpush.msrb.mxu1 %v6730_v44  ;;  %8226 = vst [vmem:[#allocation47_spill] sm:$0xff] %v7137_v60 }
 0x7b6   :  { %2820 = vmatpush.msrb.mxu2 %v6736_v46  ;;  %2840 = vmatpush.msrb.mxu3 %v6742_v12  ;;  %8227 = vst [vmem:[#allocation48_spill] sm:$0xff] %v7143_v48 }
 0x7b7   :  { %2781 = vmatpush.msrb.mxu0 %v6748_v47  ;;  %2801 = vmatpush.msrb.mxu1 %v6754_v52  ;;  %8228 = vst [vmem:[#allocation49_spill] sm:$0xff] %v7149_v55 }
 0x7b8   :  { %2821 = vmatpush.msrb.mxu2 %v6760_v45  ;;  %2841 = vmatpush.msrb.mxu3 %v6766_v6 }
 0x7b9   :  { %2782 = vmatpush.msrb.mxu0 %v6772_v13  ;;  %2802 = vmatpush.msrb.mxu1 %v6778_v9 }
 0x7ba   :  { %2822 = vmatpush.msrb.mxu2 %v6784_v31  ;;  %2842 = vmatpush.msrb.mxu3 %v6889_v57 }
 0x7bb   :  { %2783 = vmatpush.msrb.mxu0 %v6791_v39  ;;  %2803 = vmatpush.msrb.mxu1 %v6797_v19 }
 0x7bc   :  { %2823 = vmatpush.msrb.mxu2 %v6897_v61  ;;  %2843 = vmatpush.msrb.mxu3 %v6903_v24 }
 0x7bd   :  { %2784 = vmatpush.msrb.mxu0 %v6909_v58  ;;  %2804 = vmatpush.msrb.mxu1 %v6915_v7 }
 0x7be   :  { %2824 = vmatpush.msrb.mxu2 %v6921_v28  ;;  %2844 = vmatpush.msrb.mxu3 %v6927_v50 }
 0x7bf   :  { %2785 = vmatpush.msrb.mxu0 %v6933_v35  ;;  %2805 = vmatpush.msrb.mxu1 %v6939_v49 }
 0x7c0   :  { %2825 = vmatpush.msrb.mxu2 %v6945_v56  ;;  %2845 = vmatpush.msrb.mxu3 %v6951_v25 }
 0x7c1   :  { %2786 = vmatpush.msrb.mxu0 %v6957_v21  ;;  %2806 = vmatpush.msrb.mxu1 %v6963_v43 }
 0x7c2   :  { %2826 = vmatpush.msrb.mxu2 %v6969_v11  ;;  %2846 = vmatpush.msrb.mxu3 %v6975_v3 }
 0x7c3   :  { %2787 = vmatpush.msrb.mxu0 %v6981_v22  ;;  %2807 = vmatpush.msrb.mxu1 %v6987_v54 }
 0x7c4   :  { %2827 = vmatpush.msrb.mxu2 %v6993_v38  ;;  %2847 = vmatpush.msrb.mxu3 %v6999_v10 }
 0x7c5   :  { %2788 = vmatpush.msrb.mxu0 %v7005_v37  ;;  %2808 = vmatpush.msrb.mxu1 %v7011_v17 }
 0x7c6   :  { %2828 = vmatpush.msrb.mxu2 %v7017_v2  ;;  %2848 = vmatpush.msrb.mxu3 %v7023_v41 }
 0x7c7   :  { %2789 = vmatpush.msrb.mxu0 %v7029_v53  ;;  %2809 = vmatpush.msrb.mxu1 %v7035_v36  ;;  %v2603_v36 = vpop.permute.xlu2 %2602 }
 0x7c8   :  { %2829 = vmatpush.msrb.mxu2 %v7041_v32  ;;  %2849 = vmatpush.msrb.mxu3 %v7047_v20  ;;  %vm2604_vm10 = vcmp.eq.s32.totalorder %v2603_v36, 1  ;;  %v8241_v36 = vld [vmem:[#allocation88_spill] sm:$0xff] }
 0x7c9   :  { %2790 = vmatpush.msrb.mxu0 %v7053_v15  ;;  %2810 = vmatpush.msrb.mxu1 %v7059_v34 }
 0x7ca   :  { %2830 = vmatpush.msrb.mxu2 %v7065_v5  ;;  %2850 = vmatpush.msrb.mxu3 %v7071_v16 }
 0x7cb   :  { %2791 = vmatpush.msrb.mxu0 %v7077_v29  ;;  %2811 = vmatpush.msrb.mxu1 %v7083_v0  ;;  %v8237_v0 = vld [vmem:[#allocation62_spill] sm:$0xff] }
 0x7cc   :  { %2831 = vmatpush.msrb.mxu2 %v7089_v62  ;;  %2851 = vmatpush.msrb.mxu3 %v7095_v26  ;;  %v649_v29 = vadd.f32 %v8205_v33, %v8237_v0 }
 0x7cd   :  { %2792 = vmatpush.msrb.mxu0 %v7101_v8  ;;  %2812 = vmatpush.msrb.mxu1 %v7107_v1 }
 0x7ce   :  { %2832 = vmatpush.msrb.mxu2 %v7113_v59  ;;  %2852 = vmatpush.msrb.mxu3 %v7119_v40 }
 0x7cf   :  { %2793 = vmatpush.msrb.mxu0 %v7125_v4  ;;  %2813 = vmatpush.msrb.mxu1 %v7131_v63  ;;  %v7155_v63 = vld [vmem:[%s7614_s3 + $0x28] sm:$0xff] }
 0x7d0   :  { %2833 = vmatpush.msrb.mxu2 %v7137_v60  ;;  %2853 = vmatpush.msrb.mxu3 %v7143_v48  ;;  %8229 = vst [vmem:[#allocation50_spill] sm:$0xff] %v7155_v63  ;;  %v7161_v60 = vld [vmem:[%s7614_s3 + $0x30] sm:$0xff]  ;;  %v7167_v48 = vld [vmem:[%s7614_s3 + $0x38] sm:$0xff] }
 0x7d1   :  { %2794 = vmatpush.msrb.mxu0 %v7149_v55  ;;  %2814 = vmatpush.msrb.mxu1 %v7155_v63  ;;  %8230 = vst [vmem:[#allocation51_spill] sm:$0xff] %v7161_v60  ;;  %v7173_v55 = vld [vmem:[%s7614_s3] sm:$0xff]  ;;  %v7179_v63 = vld [vmem:[%s7614_s3 + $0x8] sm:$0xff] }
 0x7d2   :  { %2834 = vmatpush.msrb.mxu2 %v7161_v60  ;;  %8231 = vst [vmem:[#allocation29_spill] sm:$0xff] %v7167_v48  ;;  %2854 = vmatpush.msrb.mxu3 %v7167_v48  ;;  %v7185_v60 = vld [vmem:[%s7614_s3 + $0x10] sm:$0xff]  ;;  %v8235_v48 = vld [vmem:[#allocation60_spill] sm:$0xff] }
 0x7d3   :  { %8232 = vst [vmem:[#allocation30_spill] sm:$0xff] %v7173_v55  ;;  %2795 = vmatpush.msrb.mxu0 %v7173_v55  ;;  %2815 = vmatpush.msrb.mxu1 %v7179_v63  ;;  %v647_v4 = vadd.f32 %v8201_v14, %v8235_v48  ;;  %v8236_v55 = vld [vmem:[#allocation61_spill] sm:$0xff] }
 0x7d4   :  { %8233 = vst [vmem:[#allocation31_spill] sm:$0xff] %v7179_v63  ;;  %2835 = vmatpush.msrb.mxu2 %v7185_v60  ;;  %2855 = vmatpush.msrb.mxu3 %v8199_v18  ;;  %v648_v40 = vadd.f32 %v8203_v23, %v8236_v55 }
 0x7d5   :  { %8234 = vst [vmem:[#allocation32_spill] sm:$0xff] %v7185_v60 }
 0x830   :  { %v2467_v59 = vpop.f32.mrf.mxu0  ;;  %v2487_v1 = vpop.f32.mrf.mxu1 }
 0x831   :  { %v2530_v8 = vadd.f32 %v2467_v59, %v647_v4  ;;  %v2531_v26 = vadd.f32 %v2487_v1, %v648_v40  ;;  %v8238_v1 = vld [vmem:[#allocation63_spill] sm:$0xff] }
 0x833   :  { %v3710_v63 = vmul.f32 -1.442695, %v2530_v8  ;;  %v3711_v62 = vmul.f32 -1.442695, %v2531_v26  ;;  %v650_v26 = vadd.f32 %v8207_v30, %v8238_v1 }
 0x835   :  { %3940 = vpow2.f32 %v3710_v63 }
 0x836   :  { %3942 = vpow2.f32 %v3711_v62 }
 0x837   :  { %v2507_v60 = vpop.f32.mrf.mxu2  ;;  %v2527_v55 = vpop.f32.mrf.mxu3 }
 0x838   :  { %v2532_v16 = vadd.f32 %v2507_v60, %v649_v29  ;;  %v2533_v4 = vadd.f32 %v2527_v55, %v650_v26 }
 0x83a   :  { %v3712_v18 = vmul.f32 -1.442695, %v2532_v16 }
 0x83b   :  { %v3941_v5 = vpop.eup %3940 }
 0x83c   :  { %v3943_v34 = vpop.eup %3942  ;;  %v2543_v48 = vadd.f32 1.0, %v3941_v5  ;;  %3944 = vpow2.f32 %v3712_v18 }
 0x83d   :  { %v2544_v14 = vadd.f32 1.0, %v3943_v34 }
 0x83e   :  { %3946 = vrcp.f32 %v2543_v48  ;;  %v2557_v60 = vand.u32 2147483648, %v2543_v48  ;;  %v2555_v18 = vand.u32 2147483647, %v2543_v48  ;;  %vm2551_vm4 = vweird.f32 %v2543_v48 }
 0x83f   :  { %3948 = vrcp.f32 %v2544_v14  ;;  %v2572_v5 = vand.u32 2147483648, %v2544_v14  ;;  %v2570_v23 = vand.u32 2147483647, %v2544_v14  ;;  %vm2566_vm5 = vweird.f32 %v2544_v14 }
 0x840   :  { %vm2556_vm8 = vcmp.eq.f32.partialorder %v2555_v18, 8.507059e+37  ;;  %v8244_v18 = vld [vmem:[#allocation91_spill] sm:$0xff] }
 0x841   :  { %vm2571_vm9 = vcmp.eq.f32.partialorder %v2570_v23, 8.507059e+37 }
 0x842   :  { %v3945_v59 = vpop.eup %3944 }
 0x843   :  { %v2545_v8 = vadd.f32 1.0, %v3945_v59  ;;  %v2558_v59 = vor.u32 1.1754944e-38, %v2557_v60 }
 0x844   :  { %v3947_v40 = vpop.eup %3946 }
 0x845   :  { %v3949_v0 = vpop.eup %3948  ;;  %v2547_v62 = vmul.f32 %v3947_v40, %v2543_v48  ;;  %3950 = vrcp.f32 %v2545_v8  ;;  %vm2552_vm2 = vweird.f32 %v3947_v40  ;;  %vm2581_vm12 = vweird.f32 %v2545_v8 }
 0x846   :  { %v2562_v29 = vmul.f32 %v3949_v0, %v2544_v14  ;;  %3952 = vtanh.f32 %v2533_v4  ;;  %vm2567_vm3 = vweird.f32 %v3949_v0  ;;  %vm2553_vm6 = vmor %vm2551_vm4, %vm2552_vm2  ;;  %v2585_v60 = vand.u32 2147483647, %v2545_v8 }
 0x847   :  { %v2548_v16 = vsub.f32 1.0, %v2547_v62  ;;  %vm2568_vm7 = vmor %vm2566_vm5, %vm2567_vm3  ;;  %v2573_v62 = vor.u32 1.1754944e-38, %v2572_v5 }
 0x848   :  { %v2563_v63 = vsub.f32 1.0, %v2562_v29  ;;  %vm2586_vm14 = vcmp.eq.f32.partialorder %v2585_v60, 8.507059e+37  ;;  %v8258_v60 = vld [vmem:[#allocation48_spill] sm:$0xff] }
 0x849   :  { %v2549_v34 = vmul.f32 %v3947_v40, %v2548_v16 }
 0x84a   :  { %v2564_v33 = vmul.f32 %v3949_v0, %v2563_v63 }
 0x84b   :  { %v3951_v15 = vpop.eup %3950  ;;  %v2550_v1 = vadd.f32 %v3947_v40, %v2549_v34 }
 0x84c   :  { %v2577_v55 = vmul.f32 %v3951_v15, %v2545_v8  ;;  %v2565_v26 = vadd.f32 %v3949_v0, %v2564_v33  ;;  %v3953_v4 = vpop.eup %3952  ;;  %vm2582_vm11 = vweird.f32 %v3951_v15  ;;  %v2587_v33 = vand.u32 2147483648, %v2545_v8  ;;  %v8243_v8 = vld [vmem:[#allocation90_spill] sm:$0xff] }
 0x84d   :  { %v2554_v29 = vsel %vm2553_vm6, %v3947_v40, %v2550_v1  ;;  %vm2583_vm13 = vmor %vm2581_vm12, %vm2582_vm11  ;;  %v8245_v1 = vld [vmem:[#allocation92_spill] sm:$0xff] }
 0x84e   :  { %v2578_v30 = vsub.f32 1.0, %v2577_v55  ;;  %v2559_v16 = vsel %vm2556_vm8, %v2558_v59, %v2554_v29  ;;  %v2569_v20 = vsel %vm2568_vm7, %v3949_v0, %v2565_v26  ;;  %v8246_v55 = vld [vmem:[#allocation93_spill] sm:$0xff]  ;;  %v8247_v59 = vld [vmem:[#allocation94_spill] sm:$0xff]  ;;  %v8248_v26 = vld [vmem:[#allocation95_spill] sm:$0xff] }
 0x84f   :  { %v2574_v63 = vsel %vm2571_vm9, %v2573_v62, %v2569_v20  ;;  %v2593_v32 = vmul.f32 %v3953_v4, %v2559_v16  ;;  %v2588_v20 = vor.u32 1.1754944e-38, %v2587_v33  ;;  %v8249_v62 = vld [vmem:[#allocation28_spill] sm:$0xff]  ;;  %v8251_v4 = vld [vmem:[#allocation41_spill] sm:$0xff]  ;;  %v8252_v16 = vld [vmem:[#allocation42_spill] sm:$0xff] }
 0x850   :  { %v2579_v53 = vmul.f32 %v3951_v15, %v2578_v30  ;;  %v2592_v48 = vmul.f32 %v2574_v63, %v6861_v27  ;;  %v8250_v29 = vld [vmem:[#allocation40_spill] sm:$0xff]  ;;  %v8253_v63 = vld [vmem:[#allocation43_spill] sm:$0xff] }
 0x851   :  { %v8257_v33 = vld [vmem:[#allocation47_spill] sm:$0xff] }
 0x852   :  { %v2594_v14 = vadd.f32 %v2593_v32, %v2592_v48  ;;  %v2580_v34 = vadd.f32 %v3951_v15, %v2579_v53  ;;  %v8254_v48 = vld [vmem:[#allocation44_spill] sm:$0xff] }
 0x854   :  { %3954 = vtanh.f32 %v2594_v14  ;;  %v7200_v40 = vsel %vm2604_vm10, %v2594_v14, %v6861_v27  ;;  %v2584_v23 = vsel %vm2583_vm13, %v3951_v15, %v2580_v34  ;;  %v8239_v27 = vld [vmem:[#allocation86_spill] sm:$0xff]  ;;  %v8242_v15 = vld [vmem:[#allocation89_spill] sm:$0xff] }
 0x855   :  { %v2589_v30 = vsel %vm2586_vm14, %v2588_v20, %v2584_v23  ;;  %v8255_v14 = vld [vmem:[#allocation45_spill] sm:$0xff]  ;;  %v8256_v34 = vld [vmem:[#allocation46_spill] sm:$0xff] }
 0x856   :  { %v8259_v23 = vld [vmem:[#allocation49_spill] sm:$0xff]  ;;  %v8260_v20 = vld [vmem:[#allocation50_spill] sm:$0xff] }
 0x85a   :  { %v3955_v0 = vpop.eup %3954 }
 0x85b   :  { %v2596_v5 = vmul.f32 %v3955_v0, %v2589_v30  ;;  %v8261_v0 = vld [vmem:[#allocation51_spill] sm:$0xff]  ;;  %v8262_v30 = vld [vmem:[#allocation29_spill] sm:$0xff] }
 0x85d   :  { %v7204_v32 = vsel %vm2604_vm10, %v2596_v5, %v6865_v51  ;;  %v2607_v53 = vsel %vm2604_vm10, %v2596_v5, 0.0  ;;  %v8240_v51 = vld [vmem:[#allocation87_spill] sm:$0xff]  ;;  %v8263_v5 = vld [vmem:[#allocation30_spill] sm:$0xff] }
 0x85e   :  { %3714 = vst [vmem:[%s7618_s7 + $0x50] sm:$0xff] %v2607_v53  ;;  %2631 = vmatmul.f32.vlgmr.msra.gmra.mxu0 %v7204_v32  ;;  %2651 = vmatmul.f32.vlgmr.msra.gmra.mxu1 %v7204_v32  ;;  %v8264_v53 = vld [vmem:[#allocation31_spill] sm:$0xff] }
 0x85f   :  { %2671 = vmatmul.f32.vlgmr.msra.gmra.mxu2 %v7204_v32  ;;  %2691 = vmatmul.f32.vlgmr.msra.gmra.mxu3 %v7204_v32 }
 0x860   :  { %2945 = vmatpush.msra.mxu0 %v6724_v42  ;;  %2965 = vmatpush.msra.mxu1 %v6730_v44 }
 0x861   :  { %2985 = vmatpush.msra.mxu2 %v6736_v46  ;;  %3005 = vmatpush.msra.mxu3 %v6742_v12 }
 0x862   :  { %2946 = vmatpush.msra.mxu0 %v6748_v47  ;;  %2966 = vmatpush.msra.mxu1 %v6754_v52 }
 0x863   :  { %2986 = vmatpush.msra.mxu2 %v6760_v45  ;;  %3006 = vmatpush.msra.mxu3 %v6766_v6 }
 0x864   :  { %2947 = vmatpush.msra.mxu0 %v6772_v13  ;;  %2967 = vmatpush.msra.mxu1 %v6778_v9 }
 0x865   :  { %2987 = vmatpush.msra.mxu2 %v6784_v31  ;;  %3007 = vmatpush.msra.mxu3 %v6889_v57 }
 0x866   :  { %2948 = vmatpush.msra.mxu0 %v6791_v39  ;;  %2968 = vmatpush.msra.mxu1 %v6797_v19 }
 0x867   :  { %2988 = vmatpush.msra.mxu2 %v6897_v61  ;;  %3008 = vmatpush.msra.mxu3 %v6903_v24 }
 0x868   :  { %2949 = vmatpush.msra.mxu0 %v6909_v58  ;;  %2969 = vmatpush.msra.mxu1 %v6915_v7 }
 0x869   :  { %2989 = vmatpush.msra.mxu2 %v6921_v28  ;;  %3009 = vmatpush.msra.mxu3 %v6927_v50 }
 0x86a   :  { %2950 = vmatpush.msra.mxu0 %v6933_v35  ;;  %2970 = vmatpush.msra.mxu1 %v6939_v49 }
 0x86b   :  { %2990 = vmatpush.msra.mxu2 %v6945_v56  ;;  %3010 = vmatpush.msra.mxu3 %v6951_v25 }
 0x86c   :  { %2951 = vmatpush.msra.mxu0 %v6957_v21  ;;  %2971 = vmatpush.msra.mxu1 %v6963_v43 }
 0x86d   :  { %2991 = vmatpush.msra.mxu2 %v6969_v11  ;;  %3011 = vmatpush.msra.mxu3 %v6975_v3 }
 0x86e   :  { %2952 = vmatpush.msra.mxu0 %v6981_v22  ;;  %2972 = vmatpush.msra.mxu1 %v6987_v54 }
 0x86f   :  { %2992 = vmatpush.msra.mxu2 %v6993_v38  ;;  %3012 = vmatpush.msra.mxu3 %v6999_v10 }
 0x870   :  { %2953 = vmatpush.msra.mxu0 %v7005_v37  ;;  %2973 = vmatpush.msra.mxu1 %v7011_v17 }
 0x871   :  { %2993 = vmatpush.msra.mxu2 %v7017_v2  ;;  %3013 = vmatpush.msra.mxu3 %v7023_v41 }
 0x872   :  { %2954 = vmatpush.msra.mxu0 %v8239_v27  ;;  %2974 = vmatpush.msra.mxu1 %v8240_v51  ;;  %v2768_v51 = vpop.permute.xlu0 %2767 }
 0x873   :  { %2994 = vmatpush.msra.mxu2 %v8241_v36  ;;  %3014 = vmatpush.msra.mxu3 %v8242_v15  ;;  %vm2769_vm7 = vcmp.eq.s32.totalorder %v2768_v51, 1  ;;  %v8290_v51 = vld [vmem:[#allocation44_spill] sm:$0xff] }
 0x874   :  { %2955 = vmatpush.msra.mxu0 %v8243_v8  ;;  %2975 = vmatpush.msra.mxu1 %v8244_v18 }
 0x875   :  { %2995 = vmatpush.msra.mxu2 %v8245_v1  ;;  %3015 = vmatpush.msra.mxu3 %v8246_v55 }
 0x876   :  { %2956 = vmatpush.msra.mxu0 %v8247_v59  ;;  %2976 = vmatpush.msra.mxu1 %v8248_v26 }
 0x877   :  { %2996 = vmatpush.msra.mxu2 %v8249_v62  ;;  %3016 = vmatpush.msra.mxu3 %v8250_v29  ;;  %v8272_v29 = vld [vmem:[#allocation9_spill] sm:$0xff] }
 0x878   :  { %2957 = vmatpush.msra.mxu0 %v8251_v4  ;;  %2977 = vmatpush.msra.mxu1 %v8252_v16 }
 0x879   :  { %2997 = vmatpush.msra.mxu2 %v8253_v63  ;;  %3017 = vmatpush.msra.mxu3 %v8254_v48  ;;  %v8265_v48 = vld [vmem:[#allocation32_spill] sm:$0xff] }
 0x87a   :  { %2958 = vmatpush.msra.mxu0 %v8255_v14  ;;  %2978 = vmatpush.msra.mxu1 %v8256_v34  ;;  %v8269_v34 = vld [vmem:[#allocation65_spill] sm:$0xff] }
 0x87b   :  { %2998 = vmatpush.msra.mxu2 %v8257_v33  ;;  %3018 = vmatpush.msra.mxu3 %v8258_v60  ;;  %v7280_v33 = vld [vmem:[%s7614_s3 + $0x18] sm:$0xff]  ;;  %v8268_v60 = vld [vmem:[#allocation81_spill] sm:$0xff] }
 0x87c   :  { %2959 = vmatpush.msra.mxu0 %v8259_v23  ;;  %2979 = vmatpush.msra.mxu1 %v8260_v20  ;;  %8266 = vst [vmem:[#allocation33_spill] sm:$0xff] %v7280_v33  ;;  %v8267_v23 = vld [vmem:[#allocation64_spill] sm:$0xff] }
 0x87d   :  { %2999 = vmatpush.msra.mxu2 %v8261_v0  ;;  %3019 = vmatpush.msra.mxu3 %v8262_v30  ;;  %v651_v20 = vadd.f32 %v8268_v60, %v8267_v23  ;;  %v8270_v0 = vld [vmem:[#allocation82_spill] sm:$0xff] }
 0x87e   :  { %2960 = vmatpush.msra.mxu0 %v8263_v5  ;;  %2980 = vmatpush.msra.mxu1 %v8264_v53  ;;  %v652_v14 = vadd.f32 %v8270_v0, %v8269_v34 }
 0x87f   :  { %3000 = vmatpush.msra.mxu2 %v8265_v48  ;;  %3020 = vmatpush.msra.mxu3 %v7280_v33  ;;  %v8271_v48 = vld [vmem:[#allocation66_spill] sm:$0xff] }
 0x880   :  { %v653_v62 = vadd.f32 %v8272_v29, %v8271_v48 }
 0x8db   :  { %v2632_v30 = vpop.f32.mrf.mxu0  ;;  %v2652_v63 = vpop.f32.mrf.mxu1 }
 0x8dc   :  { %v2695_v5 = vadd.f32 %v2632_v30, %v651_v20  ;;  %v2696_v16 = vadd.f32 %v2652_v63, %v652_v14  ;;  %v8273_v63 = vld [vmem:[#allocation67_spill] sm:$0xff]  ;;  %v8274_v14 = vld [vmem:[#allocation85_spill] sm:$0xff] }
 0x8de   :  { %v3715_v53 = vmul.f32 -1.442695, %v2695_v5  ;;  %v3716_v4 = vmul.f32 -1.442695, %v2696_v16  ;;  %v654_v16 = vadd.f32 %v8274_v14, %v8273_v63 }
 0x8e0   :  { %3956 = vpow2.f32 %v3715_v53 }
 0x8e1   :  { %3958 = vpow2.f32 %v3716_v4 }
 0x8e2   :  { %v2672_v26 = vpop.f32.mrf.mxu2  ;;  %v2692_v34 = vpop.f32.mrf.mxu3 }
 0x8e3   :  { %v2697_v59 = vadd.f32 %v2672_v26, %v653_v62  ;;  %v2698_v53 = vadd.f32 %v2692_v34, %v654_v16 }
 0x8e5   :  { %v3717_v33 = vmul.f32 -1.442695, %v2697_v59 }
 0x8e6   :  { %v3957_v55 = vpop.eup %3956 }
 0x8e7   :  { %v3959_v1 = vpop.eup %3958  ;;  %v2708_v23 = vadd.f32 1.0, %v3957_v55  ;;  %3960 = vpow2.f32 %v3717_v33 }
 0x8e8   :  { %v2709_v60 = vadd.f32 1.0, %v3959_v1 }
 0x8e9   :  { %3962 = vrcp.f32 %v2708_v23  ;;  %v2722_v29 = vand.u32 2147483648, %v2708_v23  ;;  %v2720_v33 = vand.u32 2147483647, %v2708_v23  ;;  %vm2716_vm1 = vweird.f32 %v2708_v23 }
 0x8ea   :  { %3964 = vrcp.f32 %v2709_v60  ;;  %v2737_v55 = vand.u32 2147483648, %v2709_v60  ;;  %v2735_v18 = vand.u32 2147483647, %v2709_v60  ;;  %vm2731_vm2 = vweird.f32 %v2709_v60 }
 0x8eb   :  { %vm2721_vm5 = vcmp.eq.f32.partialorder %v2720_v33, 8.507059e+37  ;;  %v8293_v33 = vld [vmem:[#allocation47_spill] sm:$0xff] }
 0x8ec   :  { %vm2736_vm6 = vcmp.eq.f32.partialorder %v2735_v18, 8.507059e+37 }
 0x8ed   :  { %v3961_v20 = vpop.eup %3960 }
 0x8ee   :  { %v2710_v30 = vadd.f32 1.0, %v3961_v20  ;;  %v2723_v20 = vor.u32 1.1754944e-38, %v2722_v29 }
 0x8ef   :  { %v3963_v5 = vpop.eup %3962 }
 0x8f0   :  { %v3965_v48 = vpop.eup %3964  ;;  %v2712_v4 = vmul.f32 %v3963_v5, %v2708_v23  ;;  %3966 = vrcp.f32 %v2710_v30  ;;  %vm2717_vm15 = vweird.f32 %v3963_v5  ;;  %v2752_v29 = vand.u32 2147483648, %v2710_v30 }
 0x8f1   :  { %v2727_v26 = vmul.f32 %v3965_v48, %v2709_v60  ;;  %3968 = vtanh.f32 %v2698_v53  ;;  %vm2732_vm0 = vweird.f32 %v3965_v48  ;;  %vm2718_vm3 = vmor %vm2716_vm1, %vm2717_vm15  ;;  %vm2746_vm9 = vweird.f32 %v2710_v30 }
 0x8f2   :  { %v2713_v59 = vsub.f32 1.0, %v2712_v4  ;;  %vm2733_vm4 = vmor %vm2731_vm2, %vm2732_vm0  ;;  %v2738_v4 = vor.u32 1.1754944e-38, %v2737_v55 }
 0x8f3   :  { %v2728_v62 = vsub.f32 1.0, %v2727_v26 }
 0x8f4   :  { %v2714_v1 = vmul.f32 %v3963_v5, %v2713_v59 }
 0x8f5   :  { %v2729_v0 = vmul.f32 %v3965_v48, %v2728_v62 }
 0x8f6   :  { %v3967_v8 = vpop.eup %3966  ;;  %v2715_v63 = vadd.f32 %v3963_v5, %v2714_v1 }
 0x8f7   :  { %v2742_v34 = vmul.f32 %v3967_v8, %v2710_v30  ;;  %v2730_v16 = vadd.f32 %v3965_v48, %v2729_v0  ;;  %v3969_v53 = vpop.eup %3968  ;;  %vm2747_vm8 = vweird.f32 %v3967_v8 }
 0x8f8   :  { %v2719_v26 = vsel %vm2718_vm3, %v3963_v5, %v2715_v63  ;;  %v2750_v5 = vand.u32 2147483647, %v2710_v30  ;;  %vm2748_vm10 = vmor %vm2746_vm9, %vm2747_vm8  ;;  %v8292_v30 = vld [vmem:[#allocation46_spill] sm:$0xff]  ;;  %v8294_v63 = vld [vmem:[#allocation48_spill] sm:$0xff] }
 0x8f9   :  { %v2743_v14 = vsub.f32 1.0, %v2742_v34  ;;  %v2724_v59 = vsel %vm2721_vm5, %v2723_v20, %v2719_v26  ;;  %v2734_v15 = vsel %vm2733_vm4, %v3965_v48, %v2730_v16  ;;  %v8295_v34 = vld [vmem:[#allocation49_spill] sm:$0xff]  ;;  %v8296_v20 = vld [vmem:[#allocation50_spill] sm:$0xff]  ;;  %v8297_v16 = vld [vmem:[#allocation51_spill] sm:$0xff] }
 0x8fa   :  { %v2739_v62 = vsel %vm2736_vm6, %v2738_v4, %v2734_v15  ;;  %v2758_v36 = vmul.f32 %v3969_v53, %v2724_v59  ;;  %v2753_v15 = vor.u32 1.1754944e-38, %v2752_v29  ;;  %vm2751_vm11 = vcmp.eq.f32.partialorder %v2750_v5, 8.507059e+37  ;;  %v8298_v4 = vld [vmem:[#allocation29_spill] sm:$0xff]  ;;  %v8299_v26 = vld [vmem:[#allocation30_spill] sm:$0xff]  ;;  %v8300_v53 = vld [vmem:[#allocation31_spill] sm:$0xff] }
 0x8fb   :  { %v2744_v27 = vmul.f32 %v3967_v8, %v2743_v14  ;;  %v2757_v23 = vmul.f32 %v2739_v62, %v7200_v40  ;;  %v8301_v59 = vld [vmem:[#allocation32_spill] sm:$0xff]  ;;  %v8302_v62 = vld [vmem:[#allocation33_spill] sm:$0xff]  ;;  %v8306_v5 = vld [vmem:[#allocation82_spill] sm:$0xff] }
 0x8fc   :  { %v8305_v29 = vld [vmem:[#allocation69_spill] sm:$0xff] }
 0x8fd   :  { %v2759_v60 = vadd.f32 %v2758_v36, %v2757_v23  ;;  %v2745_v1 = vadd.f32 %v3967_v8, %v2744_v27  ;;  %v8303_v23 = vld [vmem:[#allocation68_spill] sm:$0xff] }
 0x8ff   :  { %3970 = vtanh.f32 %v2759_v60  ;;  %v7294_v0 = vsel %vm2769_vm7, %v2759_v60, %v7200_v40  ;;  %v2749_v18 = vsel %vm2748_vm10, %v3967_v8, %v2745_v1  ;;  %v8288_v40 = vld [vmem:[#allocation42_spill] sm:$0xff]  ;;  %v8291_v8 = vld [vmem:[#allocation45_spill] sm:$0xff] }
 0x900   :  { %v2754_v14 = vsel %vm2751_vm11, %v2753_v15, %v2749_v18  ;;  %v8304_v60 = vld [vmem:[#allocation81_spill] sm:$0xff]  ;;  %v656_v18 = vadd.f32 %v8306_v5, %v8305_v29 }
 0x901   :  { %v655_v1 = vadd.f32 %v8304_v60, %v8303_v23 }
 0x905   :  { %v3971_v48 = vpop.eup %3970 }
 0x906   :  { %v2761_v55 = vmul.f32 %v3971_v48, %v2754_v14 }
 0x908   :  { %v7298_v36 = vsel %vm2769_vm7, %v2761_v55, %v7204_v32  ;;  %v2772_v27 = vsel %vm2769_vm7, %v2761_v55, 0.0  ;;  %v8289_v32 = vld [vmem:[#allocation43_spill] sm:$0xff] }
 0x909   :  { %3719 = vst [vmem:[%s7618_s7 + $0x58] sm:$0xff] %v2772_v27  ;;  %2796 = vmatmul.f32.vlgmr.msrb.gmra.mxu0 %v7298_v36  ;;  %2816 = vmatmul.f32.vlgmr.msrb.gmra.mxu1 %v7298_v36 }
 0x90a   :  { %2836 = vmatmul.f32.vlgmr.msrb.gmra.mxu2 %v7298_v36  ;;  %2856 = vmatmul.f32.vlgmr.msrb.gmra.mxu3 %v7298_v36 }
 0x90b   :  { %3110 = vmatpush.msrb.mxu0 %v6724_v42  ;;  %3130 = vmatpush.msrb.mxu1 %v6730_v44  ;;  %v8275_v42 = vld [vmem:[#allocation86_spill] sm:$0xff]  ;;  %v8276_v44 = vld [vmem:[#allocation87_spill] sm:$0xff] }
 0x90c   :  { %3150 = vmatpush.msrb.mxu2 %v6736_v46  ;;  %3170 = vmatpush.msrb.mxu3 %v6742_v12  ;;  %v8277_v46 = vld [vmem:[#allocation88_spill] sm:$0xff]  ;;  %v8278_v12 = vld [vmem:[#allocation89_spill] sm:$0xff] }
 0x90d   :  { %3111 = vmatpush.msrb.mxu0 %v6748_v47  ;;  %3131 = vmatpush.msrb.mxu1 %v6754_v52  ;;  %v8279_v47 = vld [vmem:[#allocation90_spill] sm:$0xff]  ;;  %v8280_v52 = vld [vmem:[#allocation91_spill] sm:$0xff] }
 0x90e   :  { %3151 = vmatpush.msrb.mxu2 %v6760_v45  ;;  %3171 = vmatpush.msrb.mxu3 %v6766_v6  ;;  %v8281_v45 = vld [vmem:[#allocation92_spill] sm:$0xff]  ;;  %v8282_v6 = vld [vmem:[#allocation93_spill] sm:$0xff] }
 0x90f   :  { %3112 = vmatpush.msrb.mxu0 %v6772_v13  ;;  %3132 = vmatpush.msrb.mxu1 %v6778_v9  ;;  %v8283_v13 = vld [vmem:[#allocation94_spill] sm:$0xff]  ;;  %v8284_v9 = vld [vmem:[#allocation95_spill] sm:$0xff] }
 0x910   :  { %3152 = vmatpush.msrb.mxu2 %v6784_v31  ;;  %3172 = vmatpush.msrb.mxu3 %v6889_v57  ;;  %v8285_v31 = vld [vmem:[#allocation28_spill] sm:$0xff] }
 0x911   :  { %3113 = vmatpush.msrb.mxu0 %v6791_v39  ;;  %3133 = vmatpush.msrb.mxu1 %v6797_v19  ;;  %v8286_v39 = vld [vmem:[#allocation40_spill] sm:$0xff]  ;;  %v8287_v19 = vld [vmem:[#allocation41_spill] sm:$0xff] }
 0x912   :  { %3153 = vmatpush.msrb.mxu2 %v6897_v61  ;;  %3173 = vmatpush.msrb.mxu3 %v6903_v24 }
 0x913   :  { %3114 = vmatpush.msrb.mxu0 %v6909_v58  ;;  %3134 = vmatpush.msrb.mxu1 %v6915_v7 }
 0x914   :  { %3154 = vmatpush.msrb.mxu2 %v6921_v28  ;;  %3174 = vmatpush.msrb.mxu3 %v6927_v50 }
 0x915   :  { %3115 = vmatpush.msrb.mxu0 %v6933_v35  ;;  %3135 = vmatpush.msrb.mxu1 %v6939_v49 }
 0x916   :  { %3155 = vmatpush.msrb.mxu2 %v6945_v56  ;;  %3175 = vmatpush.msrb.mxu3 %v6951_v25 }
 0x917   :  { %3116 = vmatpush.msrb.mxu0 %v6957_v21  ;;  %3136 = vmatpush.msrb.mxu1 %v6963_v43 }
 0x918   :  { %3156 = vmatpush.msrb.mxu2 %v6969_v11  ;;  %3176 = vmatpush.msrb.mxu3 %v6975_v3 }
 0x919   :  { %3117 = vmatpush.msrb.mxu0 %v6981_v22  ;;  %3137 = vmatpush.msrb.mxu1 %v6987_v54 }
 0x91a   :  { %3157 = vmatpush.msrb.mxu2 %v6993_v38  ;;  %3177 = vmatpush.msrb.mxu3 %v6999_v10 }
 0x91b   :  { %3118 = vmatpush.msrb.mxu0 %v7005_v37  ;;  %3138 = vmatpush.msrb.mxu1 %v7011_v17 }
 0x91c   :  { %3158 = vmatpush.msrb.mxu2 %v7017_v2  ;;  %3178 = vmatpush.msrb.mxu3 %v7023_v41 }
 0x91d   :  { %3119 = vmatpush.msrb.mxu0 %v8275_v42  ;;  %3139 = vmatpush.msrb.mxu1 %v8276_v44 }
 0x91e   :  { %3159 = vmatpush.msrb.mxu2 %v8277_v46  ;;  %3179 = vmatpush.msrb.mxu3 %v8278_v12 }
 0x91f   :  { %3120 = vmatpush.msrb.mxu0 %v8279_v47  ;;  %3140 = vmatpush.msrb.mxu1 %v8280_v52 }
 0x920   :  { %3160 = vmatpush.msrb.mxu2 %v8281_v45  ;;  %3180 = vmatpush.msrb.mxu3 %v8282_v6 }
 0x921   :  { %3121 = vmatpush.msrb.mxu0 %v8283_v13  ;;  %3141 = vmatpush.msrb.mxu1 %v8284_v9 }
 0x922   :  { %3161 = vmatpush.msrb.mxu2 %v8285_v31  ;;  %3181 = vmatpush.msrb.mxu3 %v8286_v39 }
 0x923   :  { %3122 = vmatpush.msrb.mxu0 %v8287_v19  ;;  %3142 = vmatpush.msrb.mxu1 %v8288_v40 }
 0x924   :  { %3162 = vmatpush.msrb.mxu2 %v8289_v32  ;;  %3182 = vmatpush.msrb.mxu3 %v8290_v51  ;;  %v2933_v32 = vpop.permute.xlu1 %2932 }
 0x925   :  { %3123 = vmatpush.msrb.mxu0 %v8291_v8  ;;  %3143 = vmatpush.msrb.mxu1 %v8292_v30  ;;  %vm2934_vm4 = vcmp.eq.s32.totalorder %v2933_v32, 1  ;;  %v4232_v32 = vld [vmem:[%s7614_s3 + $0x1f0] sm:$0xff] }
 0x926   :  { %3163 = vmatpush.msrb.mxu2 %v8293_v33  ;;  %3183 = vmatpush.msrb.mxu3 %v8294_v63 }
 0x927   :  { %3124 = vmatpush.msrb.mxu0 %v8295_v34  ;;  %3144 = vmatpush.msrb.mxu1 %v8296_v20 }
 0x928   :  { %3164 = vmatpush.msrb.mxu2 %v8297_v16  ;;  %3184 = vmatpush.msrb.mxu3 %v8298_v4  ;;  %v8308_v16 = vld [vmem:[#allocation9_spill] sm:$0xff] }
 0x929   :  { %3125 = vmatpush.msrb.mxu0 %v8299_v26  ;;  %3145 = vmatpush.msrb.mxu1 %v8300_v53  ;;  %v8307_v26 = vld [vmem:[#allocation70_spill] sm:$0xff] }
 0x92a   :  { %3165 = vmatpush.msrb.mxu2 %v8301_v59  ;;  %3185 = vmatpush.msrb.mxu3 %v8302_v62  ;;  %v657_v53 = vadd.f32 %v8308_v16, %v8307_v26 }
 0x986   :  { %v2797_v15 = vpop.f32.mrf.mxu0  ;;  %v2817_v48 = vpop.f32.mrf.mxu1 }
 0x987   :  { %v2860_v14 = vadd.f32 %v2797_v15, %v655_v1  ;;  %v2861_v55 = vadd.f32 %v2817_v48, %v656_v18  ;;  %v8309_v18 = vld [vmem:[#allocation73_spill] sm:$0xff] }
 0x988   :  { %v8310_v15 = vld [vmem:[#allocation85_spill] sm:$0xff] }
 0x989   :  { %v3720_v27 = vmul.f32 -1.442695, %v2860_v14  ;;  %v3721_v4 = vmul.f32 -1.442695, %v2861_v55  ;;  %v658_v48 = vadd.f32 %v8310_v15, %v8309_v18 }
 0x98b   :  { %3972 = vpow2.f32 %v3720_v27 }
 0x98c   :  { %3974 = vpow2.f32 %v3721_v4 }
 0x98d   :  { %v2837_v59 = vpop.f32.mrf.mxu2  ;;  %v2857_v29 = vpop.f32.mrf.mxu3 }
 0x98e   :  { %v2862_v20 = vadd.f32 %v2837_v59, %v657_v53  ;;  %v2863_v27 = vadd.f32 %v2857_v29, %v658_v48 }
 0x990   :  { %v3722_v62 = vmul.f32 -1.442695, %v2862_v20 }
 0x991   :  { %v3973_v34 = vpop.eup %3972 }
 0x992   :  { %v3975_v63 = vpop.eup %3974  ;;  %v2873_v23 = vadd.f32 1.0, %v3973_v34  ;;  %3976 = vpow2.f32 %v3722_v62 }
 0x993   :  { %v2874_v60 = vadd.f32 1.0, %v3975_v63 }
 0x994   :  { %3978 = vrcp.f32 %v2873_v23  ;;  %v2887_v16 = vand.u32 2147483648, %v2873_v23  ;;  %v2885_v62 = vand.u32 2147483647, %v2873_v23  ;;  %vm2881_vm14 = vweird.f32 %v2873_v23 }
 0x995   :  { %3980 = vrcp.f32 %v2874_v60  ;;  %v2902_v34 = vand.u32 2147483648, %v2874_v60  ;;  %v2900_v33 = vand.u32 2147483647, %v2874_v60  ;;  %vm2896_vm15 = vweird.f32 %v2874_v60 }
 0x996   :  { %vm2886_vm2 = vcmp.eq.f32.partialorder %v2885_v62, 8.507059e+37  ;;  %v4235_v62 = vld [vmem:[%s7614_s3 + $0x1c8] sm:$0xff] }
 0x997   :  { %vm2901_vm3 = vcmp.eq.f32.partialorder %v2900_v33, 8.507059e+37 }
 0x998   :  { %v3977_v1 = vpop.eup %3976 }
 0x999   :  { %v2875_v14 = vadd.f32 1.0, %v3977_v1  ;;  %v2888_v1 = vor.u32 1.1754944e-38, %v2887_v16 }
 0x99a   :  { %v3979_v55 = vpop.eup %3978 }
 0x99b   :  { %v3981_v26 = vpop.eup %3980  ;;  %v2877_v4 = vmul.f32 %v3979_v55, %v2873_v23  ;;  %3982 = vrcp.f32 %v2875_v14  ;;  %vm2882_vm12 = vweird.f32 %v3979_v55  ;;  %v2917_v16 = vand.u32 2147483648, %v2875_v14 }
 0x99c   :  { %v2892_v53 = vmul.f32 %v3981_v26, %v2874_v60  ;;  %3984 = vtanh.f32 %v2863_v27  ;;  %vm2897_vm13 = vweird.f32 %v3981_v26  ;;  %vm2883_vm0 = vmor %vm2881_vm14, %vm2882_vm12  ;;  %vm2911_vm6 = vweird.f32 %v2875_v14 }
 0x99d   :  { %v2878_v20 = vsub.f32 1.0, %v2877_v4  ;;  %vm2898_vm1 = vmor %vm2896_vm15, %vm2897_vm13  ;;  %v2903_v4 = vor.u32 1.1754944e-38, %v2902_v34 }
 0x99e   :  { %v2893_v59 = vsub.f32 1.0, %v2892_v53 }
 0x99f   :  { %v2879_v63 = vmul.f32 %v3979_v55, %v2878_v20 }
 0x9a0   :  { %v2894_v5 = vmul.f32 %v3981_v26, %v2893_v59 }
 0x9a1   :  { %v3983_v30 = vpop.eup %3982  ;;  %v2880_v18 = vadd.f32 %v3979_v55, %v2879_v63 }
 0x9a2   :  { %v2907_v29 = vmul.f32 %v3983_v30, %v2875_v14  ;;  %v2895_v48 = vadd.f32 %v3981_v26, %v2894_v5  ;;  %v3985_v27 = vpop.eup %3984  ;;  %vm2912_vm5 = vweird.f32 %v3983_v30 }
 0x9a3   :  { %v2884_v53 = vsel %vm2883_vm0, %v3979_v55, %v2880_v18  ;;  %v2915_v55 = vand.u32 2147483647, %v2875_v14  ;;  %vm2913_vm7 = vmor %vm2911_vm6, %vm2912_vm5  ;;  %v4234_v14 = vld [vmem:[%s7614_s3 + $0x1c0] sm:$0xff]  ;;  %v4236_v18 = vld [vmem:[%s7614_s3 + $0x1d0] sm:$0xff] }
 0x9a4   :  { %v2908_v15 = vsub.f32 1.0, %v2907_v29  ;;  %v2889_v20 = vsel %vm2886_vm2, %v2888_v1, %v2884_v53  ;;  %v2899_v8 = vsel %vm2898_vm1, %v3981_v26, %v2895_v48  ;;  %v4237_v29 = vld [vmem:[%s7614_s3 + $0x1d8] sm:$0xff]  ;;  %v4238_v1 = vld [vmem:[%s7614_s3 + $0x1a0] sm:$0xff]  ;;  %v4239_v48 = vld [vmem:[%s7614_s3 + $0x1a8] sm:$0xff] }
 0x9a5   :  { %v2904_v59 = vsel %vm2901_vm3, %v2903_v4, %v2899_v8  ;;  %v2923_v51 = vmul.f32 %v3985_v27, %v2889_v20  ;;  %v2918_v8 = vor.u32 1.1754944e-38, %v2917_v16  ;;  %vm2916_vm8 = vcmp.eq.f32.partialorder %v2915_v55, 8.507059e+37  ;;  %v4240_v4 = vld [vmem:[%s7614_s3 + $0x1b0] sm:$0xff]  ;;  %v4241_v53 = vld [vmem:[%s7614_s3 + $0x180] sm:$0xff]  ;;  %v4242_v27 = vld [vmem:[%s7614_s3 + $0x188] sm:$0xff] }
 0x9a6   :  { %v2909_v40 = vmul.f32 %v3983_v30, %v2908_v15  ;;  %v2922_v23 = vmul.f32 %v2904_v59, %v7294_v0 }
 0x9a8   :  { %v2924_v60 = vadd.f32 %v2923_v51, %v2922_v23  ;;  %v2910_v63 = vadd.f32 %v3983_v30, %v2909_v40 }
 0x9aa   :  { %3986 = vtanh.f32 %v2924_v60  ;;  %v7383_v5 = vsel %vm2934_vm4, %v2924_v60, %v7294_v0  ;;  %v2914_v33 = vsel %vm2913_vm7, %v3983_v30, %v2910_v63  ;;  %v4230_v0 = vld [vmem:[%s7614_s3 + $0x1e0] sm:$0xff]  ;;  %v4233_v30 = vld [vmem:[%s7614_s3 + $0x1f8] sm:$0xff]  ;;  %v8332_v60 = vld [vmem:[#allocation77_spill] sm:$0xff] }
 0x9ab   :  { %v2919_v15 = vsel %vm2916_vm8, %v2918_v8, %v2914_v33  ;;  %v8333_v63 = vld [vmem:[#allocation85_spill] sm:$0xff] }
 0x9ac   :  { %v662_v16 = vadd.f32 %v8333_v63, %v8332_v60 }
 0x9b0   :  { %v3987_v26 = vpop.eup %3986 }
 0x9b1   :  { %v2926_v34 = vmul.f32 %v3987_v26, %v2919_v15 }
 0x9b3   :  { %v7387_v51 = vsel %vm2934_vm4, %v2926_v34, %v7298_v36  ;;  %v2937_v40 = vsel %vm2934_vm4, %v2926_v34, 0.0  ;;  %v4231_v36 = vld [vmem:[%s7614_s3 + $0x1e8] sm:$0xff] }
 0x9b4   :  { %3724 = vst [vmem:[%s7618_s7 + $0x60] sm:$0xff] %v2937_v40  ;;  %2961 = vmatmul.f32.vlgmr.msra.gmra.mxu0 %v7387_v51  ;;  %2981 = vmatmul.f32.vlgmr.msra.gmra.mxu1 %v7387_v51 }
 0x9b5   :  { %3001 = vmatmul.f32.vlgmr.msra.gmra.mxu2 %v7387_v51  ;;  %3021 = vmatmul.f32.vlgmr.msra.gmra.mxu3 %v7387_v51 }
 0x9b6   :  { %3275 = vmatpush.msra.mxu0 %v4230_v0  ;;  %3295 = vmatpush.msra.mxu1 %v4231_v36 }
 0x9b7   :  { %3315 = vmatpush.msra.mxu2 %v4232_v32  ;;  %3335 = vmatpush.msra.mxu3 %v4233_v30 }
 0x9b8   :  { %3276 = vmatpush.msra.mxu0 %v4234_v14  ;;  %3296 = vmatpush.msra.mxu1 %v4235_v62 }
 0x9b9   :  { %3316 = vmatpush.msra.mxu2 %v4236_v18  ;;  %3336 = vmatpush.msra.mxu3 %v4237_v29 }
 0x9ba   :  { %3277 = vmatpush.msra.mxu0 %v4238_v1  ;;  %3297 = vmatpush.msra.mxu1 %v4239_v48 }
 0x9bb   :  { %3317 = vmatpush.msra.mxu2 %v4240_v4  ;;  %3337 = vmatpush.msra.mxu3 %v6889_v57  ;;  %v8311_v57 = vld [vmem:[#allocation42_spill] sm:$0xff] }
 0x9bc   :  { %3278 = vmatpush.msra.mxu0 %v4241_v53  ;;  %3298 = vmatpush.msra.mxu1 %v4242_v27 }
 0x9bd   :  { %3318 = vmatpush.msra.mxu2 %v6897_v61  ;;  %3338 = vmatpush.msra.mxu3 %v6903_v24  ;;  %v8312_v61 = vld [vmem:[#allocation43_spill] sm:$0xff]  ;;  %v8313_v24 = vld [vmem:[#allocation44_spill] sm:$0xff] }
 0x9be   :  { %3279 = vmatpush.msra.mxu0 %v6909_v58  ;;  %3299 = vmatpush.msra.mxu1 %v6915_v7  ;;  %v8314_v58 = vld [vmem:[#allocation45_spill] sm:$0xff]  ;;  %v8315_v7 = vld [vmem:[#allocation46_spill] sm:$0xff] }
 0x9bf   :  { %3319 = vmatpush.msra.mxu2 %v6921_v28  ;;  %3339 = vmatpush.msra.mxu3 %v6927_v50  ;;  %v8316_v28 = vld [vmem:[#allocation47_spill] sm:$0xff]  ;;  %v8317_v50 = vld [vmem:[#allocation48_spill] sm:$0xff] }
 0x9c0   :  { %3280 = vmatpush.msra.mxu0 %v6933_v35  ;;  %3300 = vmatpush.msra.mxu1 %v6939_v49  ;;  %v8318_v35 = vld [vmem:[#allocation49_spill] sm:$0xff]  ;;  %v8319_v49 = vld [vmem:[#allocation50_spill] sm:$0xff] }
 0x9c1   :  { %3320 = vmatpush.msra.mxu2 %v6945_v56  ;;  %3340 = vmatpush.msra.mxu3 %v6951_v25  ;;  %v8320_v56 = vld [vmem:[#allocation51_spill] sm:$0xff]  ;;  %v8321_v25 = vld [vmem:[#allocation29_spill] sm:$0xff] }
 0x9c2   :  { %3281 = vmatpush.msra.mxu0 %v6957_v21  ;;  %3301 = vmatpush.msra.mxu1 %v6963_v43  ;;  %v8322_v21 = vld [vmem:[#allocation30_spill] sm:$0xff]  ;;  %v8323_v43 = vld [vmem:[#allocation31_spill] sm:$0xff] }
 0x9c3   :  { %3321 = vmatpush.msra.mxu2 %v6969_v11  ;;  %3341 = vmatpush.msra.mxu3 %v6975_v3  ;;  %v8324_v11 = vld [vmem:[#allocation32_spill] sm:$0xff]  ;;  %v8325_v3 = vld [vmem:[#allocation33_spill] sm:$0xff] }
 0x9c4   :  { %3282 = vmatpush.msra.mxu0 %v6981_v22  ;;  %3302 = vmatpush.msra.mxu1 %v6987_v54  ;;  %v8326_v22 = vld [vmem:[#allocation71_spill] sm:$0xff]  ;;  %v8327_v54 = vld [vmem:[#allocation81_spill] sm:$0xff] }
 0x9c5   :  { %3322 = vmatpush.msra.mxu2 %v6993_v38  ;;  %3342 = vmatpush.msra.mxu3 %v6999_v10  ;;  %v659_v38 = vadd.f32 %v8327_v54, %v8326_v22  ;;  %v8328_v10 = vld [vmem:[#allocation72_spill] sm:$0xff] }
 0x9c6   :  { %3283 = vmatpush.msra.mxu0 %v7005_v37  ;;  %3303 = vmatpush.msra.mxu1 %v7011_v17  ;;  %v8329_v37 = vld [vmem:[#allocation82_spill] sm:$0xff] }
 0x9c7   :  { %3323 = vmatpush.msra.mxu2 %v7017_v2  ;;  %3343 = vmatpush.msra.mxu3 %v7023_v41  ;;  %v660_v17 = vadd.f32 %v8329_v37, %v8328_v10 }
 0x9c8   :  { %3284 = vmatpush.msra.mxu0 %v8275_v42  ;;  %3304 = vmatpush.msra.mxu1 %v8276_v44 }
 0x9c9   :  { %3324 = vmatpush.msra.mxu2 %v8277_v46  ;;  %3344 = vmatpush.msra.mxu3 %v8278_v12 }
 0x9ca   :  { %3285 = vmatpush.msra.mxu0 %v8279_v47  ;;  %3305 = vmatpush.msra.mxu1 %v8280_v52  ;;  %v8330_v47 = vld [vmem:[#allocation74_spill] sm:$0xff]  ;;  %v8331_v52 = vld [vmem:[#allocation9_spill] sm:$0xff] }
 0x9cb   :  { %3325 = vmatpush.msra.mxu2 %v8281_v45  ;;  %3345 = vmatpush.msra.mxu3 %v8282_v6  ;;  %v661_v45 = vadd.f32 %v8331_v52, %v8330_v47 }
 0x9cc   :  { %3286 = vmatpush.msra.mxu0 %v8283_v13  ;;  %3306 = vmatpush.msra.mxu1 %v8284_v9 }
 0x9cd   :  { %3326 = vmatpush.msra.mxu2 %v8285_v31  ;;  %3346 = vmatpush.msra.mxu3 %v8286_v39 }
 0x9ce   :  { %3287 = vmatpush.msra.mxu0 %v8287_v19  ;;  %3307 = vmatpush.msra.mxu1 %v8311_v57 }
 0x9cf   :  { %3327 = vmatpush.msra.mxu2 %v8312_v61  ;;  %3347 = vmatpush.msra.mxu3 %v8313_v24 }
 0x9d0   :  { %3288 = vmatpush.msra.mxu0 %v8314_v58  ;;  %3308 = vmatpush.msra.mxu1 %v8315_v7 }
 0x9d1   :  { %3328 = vmatpush.msra.mxu2 %v8316_v28  ;;  %3348 = vmatpush.msra.mxu3 %v8317_v50 }
 0x9d2   :  { %3289 = vmatpush.msra.mxu0 %v8318_v35  ;;  %3309 = vmatpush.msra.mxu1 %v8319_v49  ;;  %v3098_v35 = vpop.permute.xlu2 %3097 }
 0x9d3   :  { %3329 = vmatpush.msra.mxu2 %v8320_v56  ;;  %3349 = vmatpush.msra.mxu3 %v8321_v25  ;;  %vm3099_vm1 = vcmp.eq.s32.totalorder %v3098_v35, 1 }
 0x9d4   :  { %3290 = vmatpush.msra.mxu0 %v8322_v21  ;;  %3310 = vmatpush.msra.mxu1 %v8323_v43 }
 0x9d5   :  { %3330 = vmatpush.msra.mxu2 %v8324_v11  ;;  %3350 = vmatpush.msra.mxu3 %v8325_v3 }
 0xa31   :  { %v2962_v2 = vpop.f32.mrf.mxu0  ;;  %v2982_v41 = vpop.f32.mrf.mxu1 }
 0xa32   :  { %v3025_v42 = vadd.f32 %v2962_v2, %v659_v38  ;;  %v3026_v44 = vadd.f32 %v2982_v41, %v660_v17 }
 0xa34   :  { %v3725_v46 = vmul.f32 -1.442695, %v3025_v42  ;;  %v3726_v12 = vmul.f32 -1.442695, %v3026_v44 }
 0xa36   :  { %3988 = vpow2.f32 %v3725_v46  ;;  %v8335_v46 = vld [vmem:[#allocation76_spill] sm:$0xff] }
 0xa37   :  { %3990 = vpow2.f32 %v3726_v12 }
 0xa38   :  { %v3002_v6 = vpop.f32.mrf.mxu2  ;;  %v3022_v59 = vpop.f32.mrf.mxu3 }
 0xa39   :  { %v3027_v13 = vadd.f32 %v3002_v6, %v661_v45  ;;  %v3028_v8 = vadd.f32 %v3022_v59, %v662_v16 }
 0xa3b   :  { %v3727_v9 = vmul.f32 -1.442695, %v3027_v13 }
 0xa3c   :  { %v3989_v31 = vpop.eup %3988 }
 0xa3d   :  { %v3991_v39 = vpop.eup %3990  ;;  %v3038_v19 = vadd.f32 1.0, %v3989_v31  ;;  %3992 = vpow2.f32 %v3727_v9  ;;  %v8336_v31 = vld [vmem:[#allocation78_spill] sm:$0xff] }
 0xa3e   :  { %v3039_v20 = vadd.f32 1.0, %v3991_v39  ;;  %v665_v39 = vadd.f32 %v8331_v52, %v8336_v31  ;;  %v3445_v31 = vld [vmem:[%s7616_s5 + $0x50] sm:$0xff] }
 0xa3f   :  { %3994 = vrcp.f32 %v3038_v19  ;;  %v3052_v36 = vand.u32 2147483648, %v3038_v19  ;;  %v3050_v14 = vand.u32 2147483647, %v3038_v19  ;;  %vm3046_vm11 = vweird.f32 %v3038_v19 }
 0xa40   :  { %3996 = vrcp.f32 %v3039_v20  ;;  %v3067_v32 = vand.u32 2147483648, %v3039_v20  ;;  %v3065_v18 = vand.u32 2147483647, %v3039_v20  ;;  %vm3061_vm12 = vweird.f32 %v3039_v20 }
 0xa41   :  { %v3053_v4 = vor.u32 1.1754944e-38, %v3052_v36  ;;  %vm3051_vm15 = vcmp.eq.f32.partialorder %v3050_v14, 8.507059e+37 }
 0xa42   :  { %v3068_v27 = vor.u32 1.1754944e-38, %v3067_v32  ;;  %vm3066_vm0 = vcmp.eq.f32.partialorder %v3065_v18, 8.507059e+37 }
 0xa43   :  { %v3993_v23 = vpop.eup %3992 }
 0xa44   :  { %v3040_v55 = vadd.f32 1.0, %v3993_v23 }
 0xa45   :  { %v3995_v33 = vpop.eup %3994 }
 0xa46   :  { %v3997_v26 = vpop.eup %3996  ;;  %v3042_v15 = vmul.f32 %v3995_v33, %v3038_v19  ;;  %3998 = vrcp.f32 %v3040_v55  ;;  %vm3047_vm9 = vweird.f32 %v3995_v33  ;;  %v3082_v43 = vand.u32 2147483648, %v3040_v55 }
 0xa47   :  { %v3057_v34 = vmul.f32 %v3997_v26, %v3039_v20  ;;  %4000 = vtanh.f32 %v3028_v8  ;;  %vm3062_vm10 = vweird.f32 %v3997_v26  ;;  %vm3048_vm13 = vmor %vm3046_vm11, %vm3047_vm9  ;;  %vm3076_vm3 = vweird.f32 %v3040_v55 }
 0xa48   :  { %v3043_v40 = vsub.f32 1.0, %v3042_v15  ;;  %vm3063_vm14 = vmor %vm3061_vm12, %vm3062_vm10  ;;  %v3080_v3 = vand.u32 2147483647, %v3040_v55  ;;  %v3083_v38 = vor.u32 1.1754944e-38, %v3082_v43  ;;  %v3263_v43 = vpop.permute.xlu0 %3262 }
 0xa49   :  { %v3058_v0 = vsub.f32 1.0, %v3057_v34 }
 0xa4a   :  { %v3044_v30 = vmul.f32 %v3995_v33, %v3043_v40  ;;  %vm3081_vm5 = vcmp.eq.f32.partialorder %v3080_v3, 8.507059e+37 }
 0xa4b   :  { %v3059_v62 = vmul.f32 %v3997_v26, %v3058_v0 }
 0xa4c   :  { %v3999_v29 = vpop.eup %3998  ;;  %v3045_v1 = vadd.f32 %v3995_v33, %v3044_v30 }
 0xa4d   :  { %v3072_v48 = vmul.f32 %v3999_v29, %v3040_v55  ;;  %v3060_v53 = vadd.f32 %v3997_v26, %v3059_v62  ;;  %v4001_v61 = vpop.eup %4000  ;;  %vm3077_vm2 = vweird.f32 %v3999_v29 }
 0xa4e   :  { %v3049_v57 = vsel %vm3048_vm13, %v3995_v33, %v3045_v1  ;;  %vm3078_vm4 = vmor %vm3076_vm3, %vm3077_vm2 }
 0xa4f   :  { %v3073_v24 = vsub.f32 1.0, %v3072_v48  ;;  %v3054_v58 = vsel %vm3051_vm15, %v3053_v4, %v3049_v57  ;;  %v3064_v7 = vsel %vm3063_vm14, %v3997_v26, %v3060_v53  ;;  %v8337_v26 = vld [vmem:[#allocation83_spill] sm:$0xff]  ;;  %vm3264_vm14 = vcmp.eq.s32.totalorder %v3263_v43, 1 }
 0xa50   :  { %v3069_v28 = vsel %vm3066_vm0, %v3068_v27, %v3064_v7  ;;  %v3088_v50 = vmul.f32 %v4001_v61, %v3054_v58  ;;  %v666_v15 = vadd.f32 %v8333_v63, %v8337_v26 }
 0xa51   :  { %v3074_v49 = vmul.f32 %v3999_v29, %v3073_v24  ;;  %v3087_v56 = vmul.f32 %v3069_v28, %v7383_v5 }
 0xa53   :  { %v3089_v25 = vadd.f32 %v3088_v50, %v3087_v56  ;;  %v3075_v21 = vadd.f32 %v3999_v29, %v3074_v49 }
 0xa55   :  { %4002 = vtanh.f32 %v3089_v25  ;;  %v7498_v11 = vsel %vm3099_vm1, %v3089_v25, %v7383_v5  ;;  %v3079_v22 = vsel %vm3078_vm4, %v3999_v29, %v3075_v21  ;;  %v8334_v5 = vld [vmem:[#allocation75_spill] sm:$0xff] }
 0xa56   :  { %v3084_v17 = vsel %vm3081_vm5, %v3083_v38, %v3079_v22  ;;  %v663_v44 = vadd.f32 %v8327_v54, %v8334_v5 }
 0xa5b   :  { %v4003_v10 = vpop.eup %4002 }
 0xa5c   :  { %v3091_v2 = vmul.f32 %v4003_v10, %v3084_v17 }
 0xa5e   :  { %v7502_v41 = vsel %vm3099_vm1, %v3091_v2, %v7387_v51  ;;  %v3102_v42 = vsel %vm3099_vm1, %v3091_v2, 0.0  ;;  %v664_v51 = vadd.f32 %v8329_v37, %v8335_v46 }
 0xa5f   :  { %3729 = vst [vmem:[%s7618_s7 + $0x68] sm:$0xff] %v3102_v42  ;;  %3126 = vmatmul.f32.vlgmr.msrb.gmra.mxu0 %v7502_v41  ;;  %3146 = vmatmul.f32.vlgmr.msrb.gmra.mxu1 %v7502_v41 }
 0xa60   :  { %3166 = vmatmul.f32.vlgmr.msrb.gmra.mxu2 %v7502_v41  ;;  %3186 = vmatmul.f32.vlgmr.msrb.gmra.mxu3 %v7502_v41 }
 0xadc   :  { %v3127_v12 = vpop.f32.mrf.mxu0  ;;  %v3147_v47 = vpop.f32.mrf.mxu1 }
 0xadd   :  { %v3190_v45 = vadd.f32 %v3127_v12, %v663_v44  ;;  %v3191_v6 = vadd.f32 %v3147_v47, %v664_v51 }
 0xadf   :  { %v3730_v13 = vmul.f32 -1.442695, %v3190_v45  ;;  %v3731_v9 = vmul.f32 -1.442695, %v3191_v6  ;;  %v3448_v6 = vld [vmem:[%s7616_s5 + $0x68] sm:$0xff] }
 0xae1   :  { %4004 = vpow2.f32 %v3730_v13  ;;  %v3447_v13 = vld [vmem:[%s7616_s5 + $0x60] sm:$0xff] }
 0xae2   :  { %4006 = vpow2.f32 %v3731_v9  ;;  %v3446_v9 = vld [vmem:[%s7616_s5 + $0x58] sm:$0xff] }
 0xae3   :  { %v3167_v19 = vpop.f32.mrf.mxu2  ;;  %v3187_v33 = vpop.f32.mrf.mxu3 }
 0xae4   :  { %v3192_v20 = vadd.f32 %v3167_v19, %v665_v39  ;;  %v3193_v0 = vadd.f32 %v3187_v33, %v666_v15  ;;  %v3444_v39 = vld [vmem:[%s7616_s5 + $0x48] sm:$0xff]  ;;  %v3443_v19 = vld [vmem:[%s7616_s5 + $0x40] sm:$0xff]  ;;  %v3441_v15 = vld [vmem:[%s7616_s5 + $0x30] sm:$0xff] }
 0xae6   :  { %v3732_v59 = vmul.f32 -1.442695, %v3192_v20  ;;  %v8338_v20 = vld [vmem:[#allocation79_spill] sm:$0xff] }
 0xae7   :  { %v4005_v23 = vpop.eup %4004 }
 0xae8   :  { %v4007_v60 = vpop.eup %4006  ;;  %v3203_v16 = vadd.f32 1.0, %v4005_v23  ;;  %4008 = vpow2.f32 %v3732_v59  ;;  %v667_v59 = vadd.f32 %v8327_v54, %v8338_v20  ;;  %v8339_v23 = vld [vmem:[#allocation80_spill] sm:$0xff] }
 0xae9   :  { %v3204_v55 = vadd.f32 1.0, %v4007_v60  ;;  %v668_v60 = vadd.f32 %v8329_v37, %v8339_v23  ;;  %v3440_v54 = vld [vmem:[%s7616_s5 + $0x28] sm:$0xff]  ;;  %v3439_v37 = vld [vmem:[%s7616_s5 + $0x20] sm:$0xff] }
 0xaea   :  { %4010 = vrcp.f32 %v3203_v16  ;;  %v3217_v18 = vand.u32 2147483648, %v3203_v16  ;;  %v3215_v48 = vand.u32 2147483647, %v3203_v16  ;;  %vm3211_vm8 = vweird.f32 %v3203_v16 }
 0xaeb   :  { %4012 = vrcp.f32 %v3204_v55  ;;  %v3232_v29 = vand.u32 2147483648, %v3204_v55  ;;  %v3230_v53 = vand.u32 2147483647, %v3204_v55  ;;  %vm3226_vm9 = vweird.f32 %v3204_v55 }
 0xaec   :  { %v3218_v24 = vor.u32 1.1754944e-38, %v3217_v18  ;;  %vm3216_vm12 = vcmp.eq.f32.partialorder %v3215_v48, 8.507059e+37  ;;  %v3436_v18 = vld [vmem:[%s7616_s5 + $0x8] sm:$0xff] }
 0xaed   :  { %v3233_v7 = vor.u32 1.1754944e-38, %v3232_v29  ;;  %vm3231_vm13 = vcmp.eq.f32.partialorder %v3230_v53, 8.507059e+37 }
 0xaee   :  { %v4009_v8 = vpop.eup %4008 }
 0xaef   :  { %v3205_v34 = vadd.f32 1.0, %v4009_v8 }
 0xaf0   :  { %v4011_v40 = vpop.eup %4010 }
 0xaf1   :  { %v4013_v36 = vpop.eup %4012  ;;  %v3207_v32 = vmul.f32 %v4011_v40, %v3203_v16  ;;  %4014 = vrcp.f32 %v3205_v34  ;;  %vm3212_vm6 = vweird.f32 %v4011_v40  ;;  %v3247_v17 = vand.u32 2147483648, %v3205_v34  ;;  %v3442_v16 = vld [vmem:[%s7616_s5 + $0x38] sm:$0xff] }
 0xaf2   :  { %v3222_v30 = vmul.f32 %v4013_v36, %v3204_v55  ;;  %4016 = vtanh.f32 %v3193_v0  ;;  %vm3227_vm7 = vweird.f32 %v4013_v36  ;;  %vm3213_vm10 = vmor %vm3211_vm8, %vm3212_vm6  ;;  %vm3241_vm0 = vweird.f32 %v3205_v34  ;;  %v3438_v0 = vld [vmem:[%s7616_s5 + $0x18] sm:$0xff] }
 0xaf3   :  { %v3208_v14 = vsub.f32 1.0, %v3207_v32  ;;  %vm3228_vm11 = vmor %vm3226_vm9, %vm3227_vm7  ;;  %v3245_v42 = vand.u32 2147483647, %v3205_v34  ;;  %v3248_v44 = vor.u32 1.1754944e-38, %v3247_v17 }
 0xaf4   :  { %v3223_v62 = vsub.f32 1.0, %v3222_v30 }
 0xaf5   :  { %v3209_v1 = vmul.f32 %v4011_v40, %v3208_v14  ;;  %vm3246_vm2 = vcmp.eq.f32.partialorder %v3245_v42, 8.507059e+37  ;;  %v3437_v14 = vld [vmem:[%s7616_s5 + $0x10] sm:$0xff] }
 0xaf6   :  { %v3224_v4 = vmul.f32 %v4013_v36, %v3223_v62 }
 0xaf7   :  { %v4015_v27 = vpop.eup %4014  ;;  %v3210_v57 = vadd.f32 %v4011_v40, %v3209_v1 }
 0xaf8   :  { %v3237_v61 = vmul.f32 %v4015_v27, %v3205_v34  ;;  %v3225_v58 = vadd.f32 %v4013_v36, %v3224_v4  ;;  %v4017_v50 = vpop.eup %4016  ;;  %vm3242_vm15 = vweird.f32 %v4015_v27 }
 0xaf9   :  { %v3214_v28 = vsel %vm3213_vm10, %v4011_v40, %v3210_v57  ;;  %vm3243_vm1 = vmor %vm3241_vm0, %vm3242_vm15 }
 0xafa   :  { %v3238_v35 = vsub.f32 1.0, %v3237_v61  ;;  %v3219_v49 = vsel %vm3216_vm12, %v3218_v24, %v3214_v28  ;;  %v3229_v56 = vsel %vm3228_vm11, %v4013_v36, %v3225_v58  ;;  %v8340_v36 = vld [vmem:[#allocation10_spill] sm:$0xff]  ;;  %v8341_v61 = vld [vmem:[#allocation84_spill] sm:$0xff] }
 0xafb   :  { %v3234_v25 = vsel %vm3231_vm13, %v3233_v7, %v3229_v56  ;;  %v3253_v21 = vmul.f32 %v4017_v50, %v3219_v49  ;;  %v669_v32 = vadd.f32 %v8331_v52, %v8340_v36  ;;  %v3435_v52 = vld [vmem:[%s7616_s5] sm:$0xff]  ;;  %v670_v24 = vadd.f32 %v8333_v63, %v8341_v61 }
 0xafc   :  { %v3239_v3 = vmul.f32 %v4015_v27, %v3238_v35  ;;  %v3252_v22 = vmul.f32 %v3234_v25, %v7498_v11 }
 0xafe   :  { %v3254_v38 = vadd.f32 %v3253_v21, %v3252_v22  ;;  %v3240_v10 = vadd.f32 %v4015_v27, %v3239_v3 }
 0xb00   :  { %4018 = vtanh.f32 %v3254_v38  ;;  %v7523_v2 = vsel %vm3264_vm14, %v3254_v38, %v7498_v11  ;;  %v3244_v5 = vsel %vm3243_vm1, %v4015_v27, %v3240_v10  ;;  %v3450_v11 = vld [vmem:[%s7616_s5 + $0x78] sm:$0xff] }
 0xb01   :  { %v3249_v51 = vsel %vm3246_vm2, %v3248_v44, %v3244_v5  ;;  %3455 = vmatpush.msrb.mxu0 %v3450_v11 }
 0xb06   :  { %v4019_v46 = vpop.eup %4018 }
 0xb07   :  { %v3256_v12 = vmul.f32 %v4019_v46, %v3249_v51 }
 0xb09   :  { %v7527_v47 = vsel %vm3264_vm14, %v3256_v12, %v7502_v41  ;;  %v3267_v45 = vsel %vm3264_vm14, %v3256_v12, 0.0  ;;  %v3449_v41 = vld [vmem:[%s7616_s5 + $0x70] sm:$0xff] }
 0xb0a   :  { %3734 = vst [vmem:[%s7618_s7 + $0x70] sm:$0xff] %v3267_v45  ;;  %3291 = vmatmul.f32.vlgmr.msra.gmra.mxu0 %v7527_v47  ;;  %3311 = vmatmul.f32.vlgmr.msra.gmra.mxu1 %v7527_v47 }
 0xb0b   :  { %3331 = vmatmul.f32.vlgmr.msra.gmra.mxu2 %v7527_v47  ;;  %3351 = vmatmul.f32.vlgmr.msra.gmra.mxu3 %v7527_v47 }
 0xb0c   :  { %3456 = vmatpush.msrb.mxu0 %v3449_v41 }
 0xb0e   :  { %3457 = vmatpush.msrb.mxu0 %v3448_v6 }
 0xb10   :  { %3458 = vmatpush.msrb.mxu0 %v3447_v13 }
 0xb12   :  { %3459 = vmatpush.msrb.mxu0 %v3446_v9  ;;  %v3428_v9 = vpop.permute.xlu1 %3427 }
 0xb13   :  { %vm3429_vm11 = vcmp.eq.s32.totalorder %v3428_v9, 1 }
 0xb14   :  { %3460 = vmatpush.msrb.mxu0 %v3445_v31 }
 0xb16   :  { %3461 = vmatpush.msrb.mxu0 %v3444_v39 }
 0xb18   :  { %3462 = vmatpush.msrb.mxu0 %v3443_v19 }
 0xb1a   :  { %3463 = vmatpush.msrb.mxu0 %v3442_v16 }
 0xb1c   :  { %3464 = vmatpush.msrb.mxu0 %v3441_v15 }
 0xb1e   :  { %3465 = vmatpush.msrb.mxu0 %v3440_v54 }
 0xb20   :  { %3466 = vmatpush.msrb.mxu0 %v3439_v37 }
 0xb22   :  { %3467 = vmatpush.msrb.mxu0 %v3438_v0 }
 0xb24   :  { %3468 = vmatpush.msrb.mxu0 %v3437_v14 }
 0xb26   :  { %3469 = vmatpush.msrb.mxu0 %v3436_v18 }
 0xb28   :  { %3470 = vmatpush.msrb.mxu0 %v3435_v52 }
 0xb87   :  { %v3292_v55 = vpop.f32.mrf.mxu0  ;;  %v3312_v33 = vpop.f32.mrf.mxu1 }
 0xb88   :  { %v3355_v8 = vadd.f32 %v3292_v55, %v667_v59  ;;  %v3356_v26 = vadd.f32 %v3312_v33, %v668_v60 }
 0xb8a   :  { %v3735_v34 = vmul.f32 -1.442695, %v3355_v8  ;;  %v3736_v40 = vmul.f32 -1.442695, %v3356_v26 }
 0xb8c   :  { %4020 = vpow2.f32 %v3735_v34 }
 0xb8d   :  { %4022 = vpow2.f32 %v3736_v40 }
 0xb8e   :  { %v3332_v30 = vpop.f32.mrf.mxu2  ;;  %v3352_v27 = vpop.f32.mrf.mxu3 }
 0xb8f   :  { %v3357_v62 = vadd.f32 %v3332_v30, %v669_v32  ;;  %v3358_v28 = vadd.f32 %v3352_v27, %v670_v24 }
 0xb91   :  { %v3737_v29 = vmul.f32 -1.442695, %v3357_v62 }
 0xb92   :  { %v4021_v1 = vpop.eup %4020 }
 0xb93   :  { %v4023_v48 = vpop.eup %4022  ;;  %v3368_v4 = vadd.f32 1.0, %v4021_v1  ;;  %4024 = vpow2.f32 %v3737_v29 }
 0xb94   :  { %v3369_v53 = vadd.f32 1.0, %v4023_v48 }
 0xb95   :  { %4026 = vrcp.f32 %v3368_v4  ;;  %v3382_v21 = vand.u32 2147483648, %v3368_v4  ;;  %v3380_v22 = vand.u32 2147483647, %v3368_v4  ;;  %vm3376_vm5 = vweird.f32 %v3368_v4 }
 0xb96   :  { %4028 = vrcp.f32 %v3369_v53  ;;  %v3397_v43 = vand.u32 2147483648, %v3369_v53  ;;  %v3395_v10 = vand.u32 2147483647, %v3369_v53  ;;  %vm3391_vm6 = vweird.f32 %v3369_v53 }
 0xb97   :  { %v3383_v5 = vor.u32 1.1754944e-38, %v3382_v21  ;;  %vm3381_vm9 = vcmp.eq.f32.partialorder %v3380_v22, 8.507059e+37 }
 0xb98   :  { %v3398_v46 = vor.u32 1.1754944e-38, %v3397_v43  ;;  %vm3396_vm10 = vcmp.eq.f32.partialorder %v3395_v10, 8.507059e+37 }
 0xb99   :  { %v4025_v57 = vpop.eup %4024 }
 0xb9a   :  { %v3370_v58 = vadd.f32 1.0, %v4025_v57 }
 0xb9b   :  { %v4027_v7 = vpop.eup %4026 }
 0xb9c   :  { %v4029_v50 = vpop.eup %4028  ;;  %v3372_v35 = vmul.f32 %v4027_v7, %v3368_v4  ;;  %4030 = vrcp.f32 %v3370_v58  ;;  %vm3377_vm3 = vweird.f32 %v4027_v7  ;;  %v3412_v59 = vand.u32 2147483648, %v3370_v58 }
 0xb9d   :  { %v3387_v49 = vmul.f32 %v4029_v50, %v3369_v53  ;;  %4032 = vtanh.f32 %v3358_v28  ;;  %vm3392_vm4 = vweird.f32 %v4029_v50  ;;  %vm3378_vm7 = vmor %vm3376_vm5, %vm3377_vm3  ;;  %vm3406_vm13 = vweird.f32 %v3370_v58 }
 0xb9e   :  { %v3373_v56 = vsub.f32 1.0, %v3372_v35  ;;  %vm3393_vm8 = vmor %vm3391_vm6, %vm3392_vm4  ;;  %v3410_v60 = vand.u32 2147483647, %v3370_v58  ;;  %v3413_v55 = vor.u32 1.1754944e-38, %v3412_v59 }
 0xb9f   :  { %v3388_v25 = vsub.f32 1.0, %v3387_v49 }
 0xba0   :  { %v3374_v3 = vmul.f32 %v4027_v7, %v3373_v56  ;;  %vm3411_vm15 = vcmp.eq.f32.partialorder %v3410_v60, 8.507059e+37 }
 0xba1   :  { %v3389_v38 = vmul.f32 %v4029_v50, %v3388_v25 }
 0xba2   :  { %v4031_v17 = vpop.eup %4030  ;;  %v3375_v63 = vadd.f32 %v4027_v7, %v3374_v3 }
 0xba3   :  { %v3402_v42 = vmul.f32 %v4031_v17, %v3370_v58  ;;  %v3390_v44 = vadd.f32 %v4029_v50, %v3389_v38  ;;  %v4033_v12 = vpop.eup %4032  ;;  %vm3407_vm12 = vweird.f32 %v4031_v17 }
 0xba4   :  { %v3379_v51 = vsel %vm3378_vm7, %v4027_v7, %v3375_v63  ;;  %vm3408_vm14 = vmor %vm3406_vm13, %vm3407_vm12 }
 0xba5   :  { %v3403_v45 = vsub.f32 1.0, %v3402_v42  ;;  %v3384_v11 = vsel %vm3381_vm9, %v3383_v5, %v3379_v51  ;;  %v3394_v41 = vsel %vm3393_vm8, %v4029_v50, %v3390_v44 }
 0xba6   :  { %v3399_v6 = vsel %vm3396_vm10, %v3398_v46, %v3394_v41  ;;  %v3418_v13 = vmul.f32 %v4033_v12, %v3384_v11 }
 0xba7   :  { %v3404_v31 = vmul.f32 %v4031_v17, %v3403_v45  ;;  %v3417_v39 = vmul.f32 %v3399_v6, %v7523_v2 }
 0xba9   :  { %v3419_v19 = vadd.f32 %v3418_v13, %v3417_v39  ;;  %v3405_v20 = vadd.f32 %v4031_v17, %v3404_v31 }
 0xbab   :  { %4034 = vtanh.f32 %v3419_v19  ;;  %v3431_v23 = vsel %vm3429_vm11, %v3419_v19, %v7523_v2  ;;  %v3409_v16 = vsel %vm3408_vm14, %v4031_v17, %v3405_v20  ;;  %v3779_v2 = vld [vmem:[%s7617_s6] ss:$0 sm:$0xff] }
 0xbac   :  { %3477 = vst [vmem:[#allocation5] sm:$0xff] %v3431_v23  ;;  %v3414_v8 = vsel %vm3411_vm15, %v3413_v55, %v3409_v16 }
 0xbad   :  { %3501 = dma.vmem_to_hbm [thread:$0]  %s3497_s27, 128, %s3499_s4, [#allocation6]  }
 0xbb1   :  { %v4035_v33 = vpop.eup %4034 }
 0xbb2   :  { %v3421_v26 = vmul.f32 %v4035_v33, %v3414_v8 }
 0xbb4   :  { %v3430_v15 = vsel %vm3429_vm11, %v3421_v26, %v7527_v47  ;;  %v3432_v34 = vsel %vm3429_vm11, %v3421_v26, 0.0 }
 0xbb5   :  { %3739 = vst [vmem:[%s7618_s7 + $0x78] sm:$0xff] %v3432_v34  ;;  %3471 = vmatmul.f32.vlgmr.msrb.gmra.mxu0 %v3430_v15 }
 0xc32   :  { %v3472_v47 = vpop.f32.mrf.mxu0 }
 0xc33   :  { %v3473_v40 = vadd.f32 %v3779_v2, %v3472_v47 }
 0xc35   :  { %4036 = vtanh.f32 %v3473_v40 }
 0xc3b   :  { %v4037_v54 = vpop.eup %4036 }
 0xc3c   :  { %3476 = vst [vmem:[#allocation3] sm:$0xff] %v4037_v54 }
 0xc3d   :  { %3490 = dma.vmem_to_hbm [thread:$0]  %s3486_s10, 128, %s3488_s12, [#allocation4]  }
 0xc3e   :  { %4291 = dma.done.wait [#allocation4], 128  }
 0xc3f   :  { %4292 = vsyncadd [#allocation4], 4294967168 }
 0xc40   :  { %4293 = dma.done.wait [#allocation6], 128  }
 0xc41   :  { %4294 = vsyncadd [#allocation6], 4294967168 }
 0xc42   :  { %3512 = vsyncpa [#allocation4], 1 }
 0xc43   :  { %3513 = vsyncpa [#allocation6], 1 }

</bundles_post_ra>
